<compile_context>
chip_gen: v5e
topology: v5e:2x2
jax: 0.10.0
libtpu: 0.0.40
codegen_flags: <defaults>
</compile_context>

<pallas_src>
import jax
import jax.numpy as jnp
from jax.experimental import pallas as pl
from jax.experimental.pallas import tpu as pltpu

BN_EPS = 1e-5
LANE = 128


# --------------------------------------------------------------------- params

def _conv_bn(key, kh, kw, cin, cout):
    """Random conv + BN(inference) params, BN scale folded into the weight."""
    k1, k2, k3, k4, k5 = jax.random.split(key, 5)
    fan_in = float(kh * kw * cin)
    w = jax.random.normal(k1, (kh, kw, cin, cout), jnp.float32) * (fan_in ** -0.5)
    gamma = jax.random.uniform(k2, (cout,), jnp.float32, 0.8, 1.2)
    beta = jax.random.normal(k3, (cout,), jnp.float32) * 0.05
    mean = jax.random.normal(k4, (cout,), jnp.float32) * 0.05
    var = jax.random.uniform(k5, (cout,), jnp.float32, 0.8, 1.2)
    scale = gamma / jnp.sqrt(var + BN_EPS)
    shift = beta - mean * scale
    return w * scale, shift                      # scale folded into weights


def init_params(key, in_channels=3, num_classes=10):
    keys = jax.random.split(key, 12)
    stem_w, stem_sh = _conv_bn(keys[0], 7, 7, in_channels, 64)
    l1 = [_conv_bn(keys[i], 3, 3, 64, 64) for i in range(1, 5)]   # l1b1_c1/c2, l1b2_c1/c2
    l2a_w, l2a_sh = _conv_bn(keys[5], 3, 3, 64, 128)              # l2b1_c1 (stride 2)
    l2b1c2 = _conv_bn(keys[6], 3, 3, 128, 128)
    l2ds_w, l2ds_sh = _conv_bn(keys[7], 1, 1, 64, 128)            # 1x1/s2 downsample
    l2b2c1 = _conv_bn(keys[8], 3, 3, 128, 128)
    l2b2c2 = _conv_bn(keys[9], 3, 3, 128, 128)
    fc_w = jax.random.normal(keys[10], (128, num_classes), jnp.float32) * (128.0 ** -0.5)
    fc_b = jax.random.normal(keys[11], (num_classes,), jnp.float32) * 0.05

    K = 7 * 7 * in_channels
    Kp = ((K + LANE - 1) // LANE) * LANE                          # lane-aligned K for the stem
    l2b = [l2b1c2, l2b2c1, l2b2c2]
    return {
        "stem_w": jnp.pad(stem_w.reshape(K, 64), ((0, Kp - K), (0, 0))).astype(jnp.bfloat16),
        "stem_sh": stem_sh.reshape(1, 64),
        "l1_w": jnp.stack([w.reshape(9, 64, 64) for w, _ in l1]).astype(jnp.bfloat16),
        "l1_sh": jnp.stack([s.reshape(1, 64) for _, s in l1]),
        "l2a_w": l2a_w.reshape(9, 64, 128).astype(jnp.bfloat16),
        "l2a_sh": l2a_sh.reshape(1, 128),
        "l2ds_w": l2ds_w.reshape(64, 128).astype(jnp.bfloat16),
        "l2ds_sh": l2ds_sh.reshape(1, 128),
        "l2b_w": jnp.stack([w.reshape(9, 128, 128) for w, _ in l2b]).astype(jnp.bfloat16),
        "l2b_sh": jnp.stack([s.reshape(1, 128) for _, s in l2b]),
        "fc_w": fc_w,
        "fc_b": fc_b.reshape(1, num_classes),
    }


# ------------------------------------------------------------------ stem glue

def _stem_patches(x, kp):
    """x: (N,H,W,C) -> im2col patches for the 7x7/s2/p3 stem, laid out on the
    zero-padded (Ho+2)x(Wo+2) output grid (padding rows hold all-zero patches)."""
    N, H, W, C = x.shape
    kh = kw = 7
    stride, pad = 2, 3
    Ho = (H + 2 * pad - kh) // stride + 1
    Wo = (W + 2 * pad - kw) // stride + 1
    xp = jnp.pad(x, ((0, 0), (pad, pad), (pad, pad), (0, 0)))
    cols = [xp[:, i:i + stride * Ho:stride, j:j + stride * Wo:stride, :]
            for i in range(kh) for j in range(kw)]
    patches = jnp.concatenate(cols, axis=-1)                      # (N, Ho, Wo, 49*C)
    patches = jnp.pad(patches, ((0, 0), (1, 1), (1, 1), (0, kp - kh * kw * C)))
    return patches.reshape(N, (Ho + 2) * (Wo + 2), kp).astype(jnp.bfloat16), Ho, Wo


# --------------------------------------------------------------------- model

def micro_resnet_forward(x_nchw, p):
    x = jnp.transpose(x_nchw, (0, 2, 3, 1)).astype(jnp.float32)   # NCHW -> NHWC
    N = x.shape[0]
    Kp = p["stem_w"].shape[0]
    nc = p["fc_w"].shape[1]
    ncp = ((nc + LANE - 1) // LANE) * LANE                        # lane-dense fc output width
    fc_w = jnp.pad(p["fc_w"], ((0, 0), (0, ncp - nc)))
    fc_b = jnp.pad(p["fc_b"], ((0, 0), (0, ncp - nc)))

    patches, H0, W0 = _stem_patches(x, Kp)                        # stem conv output H0 x W0
    H1, W1 = (H0 - 1) // 2 + 1, (W0 - 1) // 2 + 1                 # after maxpool(3,2,1)
    H2, W2 = (H1 - 1) // 2 + 1, (W1 - 1) // 2 + 1                 # after layer2 stride 2
    Wp0, Wp1, Wp2 = W0 + 2, W1 + 2, W2 + 2
    S0, S1, S2 = (H0 + 2) * Wp0, (H1 + 2) * Wp1, (H2 + 2) * Wp2
    start1, L1 = Wp1 + 1, (H1 - 1) * Wp1 + W1
    start2, L2 = Wp2 + 1, (H2 - 1) * Wp2 + W2

    def pad_mask(h, w):       # 1.0 at interior positions of the padded (h+2)x(w+2) grid
        m = jnp.zeros((h + 2, w + 2), jnp.float32).at[1:h + 1, 1:w + 1].set(1.0)
        return m.reshape((h + 2) * (w + 2), 1)

    mask0 = pad_mask(H0, W0)                                      # (S0, 1)
    mask1 = pad_mask(H1, W1)[start1:start1 + L1]                  # (L1, 1)
    mask2 = pad_mask(H2, W2)[start2:start2 + L2]                  # (L2, 1)

    def kernel(p_ref, wst_ref, shst_ref, w1_ref, sh1_ref,
               w2a_ref, sh2a_ref, wds_ref, shds_ref, w2b_ref, sh2b_ref,
               wfc_ref, bfc_ref, m0_ref, m1_ref, m2_ref, o_ref,
               s0, t0, a1, b1, c2t, a2, b2, id2):
        f32, bf16 = jnp.float32, jnp.bfloat16

        def conv3x3(src_ref, get_w, wp, start, length):
            """3x3/s1/p1 conv as 9 shifted-row tap matmuls on a padded flat layout."""
            acc = None
            for di in range(3):
                for dj in range(3):
                    off = start + (di - 1) * wp + (dj - 1)        # static, always >= 0
                    lhs = src_ref[pl.ds(off, length), :].astype(bf16)
                    part = jnp.dot(lhs, get_w(di * 3 + dj),
                                   preferred_element_type=f32)
                    acc = part if acc is None else acc + part
            return acc

        # Padding rows/cols of the activation scratch must be zero for the tap trick
        # and the residual/avgpool paths. Zeroed every grid step (cheap; safe under
        # megacore grid sharding, where per-core first-iteration guards would not fire).
        a1[...] = jnp.zeros_like(a1)
        b1[...] = jnp.zeros_like(b1)
        a2[...] = jnp.zeros_like(a2)
        b2[...] = jnp.zeros_like(b2)
        id2[...] = jnp.zeros_like(id2)

        m1 = m1_ref[...]
        m2 = m2_ref[...]

        # ---- stem: 7x7/s2 conv (+folded-BN shift, ReLU) over pre-built patches ----
        stem = jnp.dot(p_ref[0], wst_ref[...], preferred_element_type=f32)   # (S0, 64)
        stem = jnp.maximum(stem + shst_ref[...], 0.0)
        s0[...] = stem * m0_ref[...]     # zero padding positions (safe: post-ReLU >= 0,
        #                                  so 0-padding == PyTorch's -inf maxpool padding)

        # ---- maxpool 3x3 / s2 / p1: horizontal max, then strided vertical max -----
        tlen = S0 - 2
        t0[...] = jnp.maximum(
            jnp.maximum(s0[pl.ds(0, tlen), :], s0[pl.ds(1, tlen), :]),
            s0[pl.ds(2, tlen), :])
        for oi in range(H1):
            row = jnp.maximum(
                jnp.maximum(t0[pl.ds((2 * oi + 0) * Wp0, W1, 2), :],
                            t0[pl.ds((2 * oi + 1) * Wp0, W1, 2), :]),
                t0[pl.ds((2 * oi + 2) * Wp0, W1, 2), :])
            a1[pl.ds((oi + 1) * Wp1 + 1, W1), :] = row

        # ---- layer1: two BasicBlocks (64 -> 64, stride 1) --------------------------
        for blk in range(2):
            w_c1 = lambda t, b=blk: w1_ref[2 * b + 0, t]
            w_c2 = lambda t, b=blk: w1_ref[2 * b + 1, t]
            out1 = jnp.maximum(conv3x3(a1, w_c1, Wp1, start1, L1)
                               + sh1_ref[2 * blk + 0], 0.0)
            b1[pl.ds(start1, L1), :] = out1 * m1
            identity = a1[pl.ds(start1, L1), :]
            out2 = jnp.maximum(conv3x3(b1, w_c2, Wp1, start1, L1)
                               + sh1_ref[2 * blk + 1] + identity, 0.0)
            a1[pl.ds(start1, L1), :] = out2 * m1

        # ---- layer2 block1: 3x3/s2 conv (= stride-1 conv + subsample), 1x1/s2 ds ---
        full1 = jnp.maximum(conv3x3(a1, lambda t: w2a_ref[t], Wp1, start1, L1)
                            + sh2a_ref[...], 0.0)                  # (L1, 128)
        c2t[...] = full1
        for oi in range(H2):
            # conv1 output at even spatial positions -> layer2 padded buffer
            b2[pl.ds((oi + 1) * Wp2 + 1, W2), :] = c2t[pl.ds(2 * oi * Wp1, W2, 2), :]
            # 1x1 stride-2 downsample of the block input (conv + BN shift, no ReLU)
            lhs = a1[pl.ds(2 * oi * Wp1 + start1, W2, 2), :].astype(bf16)
            id2[pl.ds((oi + 1) * Wp2 + 1, W2), :] = (
                jnp.dot(lhs, wds_ref[...], preferred_element_type=f32) + shds_ref[...])
        identity = id2[pl.ds(start2, L2), :]
        out2 = jnp.maximum(conv3x3(b2, lambda t: w2b_ref[0, t], Wp2, start2, L2)
                           + sh2b_ref[0] + identity, 0.0)
        a2[pl.ds(start2, L2), :] = out2 * m2

        # ---- layer2 block2 (128 -> 128, stride 1) ----------------------------------
        out1 = jnp.maximum(conv3x3(a2, lambda t: w2b_ref[1, t], Wp2, start2, L2)
                           + sh2b_ref[1], 0.0)
        b2[pl.ds(start2, L2), :] = out1 * m2
        identity = a2[pl.ds(start2, L2), :]
        out2 = jnp.maximum(conv3x3(b2, lambda t: w2b_ref[2, t], Wp2, start2, L2)
                           + sh2b_ref[2] + identity, 0.0)
        a2[pl.ds(start2, L2), :] = out2 * m2

        # ---- head: global average pool (padding rows are zero) + fc ----------------
        feat = jnp.sum(a2[...], axis=0, keepdims=True) / float(H2 * W2)    # (1, 128)
        logits = jnp.dot(feat, wfc_ref[...], preferred_element_type=f32) + bfc_ref[...]
        o_ref[...] = logits.reshape(1, 1, ncp)          # lane-dense (128-wide) store

    def full_spec(arr):
        shape = arr.shape
        return pl.BlockSpec(shape, lambda b: (0,) * len(shape))

    out = pl.pallas_call(
        kernel,
        out_shape=jax.ShapeDtypeStruct((N, 1, ncp), jnp.float32),
        grid=(N,),
        in_specs=[pl.BlockSpec((1, S0, Kp), lambda b: (b, 0, 0)),
                  full_spec(p["stem_w"]), full_spec(p["stem_sh"]),
                  full_spec(p["l1_w"]), full_spec(p["l1_sh"]),
                  full_spec(p["l2a_w"]), full_spec(p["l2a_sh"]),
                  full_spec(p["l2ds_w"]), full_spec(p["l2ds_sh"]),
                  full_spec(p["l2b_w"]), full_spec(p["l2b_sh"]),
                  full_spec(fc_w), full_spec(fc_b),
                  full_spec(mask0), full_spec(mask1), full_spec(mask2)],
        out_specs=pl.BlockSpec((1, 1, ncp), lambda b: (b, 0, 0)),
        scratch_shapes=[
            pltpu.VMEM((S0, 64), jnp.float32),       # s0: stem output, padded layout
            pltpu.VMEM((S0 - 2, 64), jnp.float32),   # t0: horizontal pool max
            pltpu.VMEM((S1, 64), jnp.float32),       # a1: layer1 activation (padded)
            pltpu.VMEM((S1, 64), jnp.float32),       # b1: layer1 temp
            pltpu.VMEM((L1, 128), jnp.float32),      # c2t: full stride-1 l2b1_c1 output
            pltpu.VMEM((S2, 128), jnp.float32),      # a2: layer2 activation (padded)
            pltpu.VMEM((S2, 128), jnp.float32),      # b2: layer2 temp
            pltpu.VMEM((S2, 128), jnp.float32),      # id2: downsample identity
        ],
        compiler_params=pltpu.CompilerParams(
            dimension_semantics=("parallel",),
            vmem_limit_bytes=32 * 1024 * 1024),
    )(patches, p["stem_w"], p["stem_sh"], p["l1_w"], p["l1_sh"],
      p["l2a_w"], p["l2a_sh"], p["l2ds_w"], p["l2ds_sh"],
      p["l2b_w"], p["l2b_sh"], fc_w, fc_b,
      mask0, mask1, mask2)
    return out.reshape(N, ncp)[:, :nc]


# ----------------------------------------------------------------------- main

if __name__ == "__main__":
    key = jax.random.PRNGKey(0)
    kx, kp = jax.random.split(key)
    x = jax.random.normal(kx, (2, 3, 32, 32), jnp.float32)   # NCHW, PyTorch convention
    params = init_params(kp, in_channels=3, num_classes=10)

    fwd = jax.jit(micro_resnet_forward)
    logits = jax.block_until_ready(fwd(x, params))

    assert logits.shape == (2, 10), logits.shape
    assert bool(jnp.all(jnp.isfinite(logits)))
    print("KERNEL_OK")
</pallas_src>

<mosaic_0001>
module attributes {stable_mosaic.version = 11 : i64} {
  func.func @kernel(%arg0: i32, %arg1: memref<1x324x256xbf16, #tpu.memory_space<vmem>>, %arg2: memref<256x64xbf16, #tpu.memory_space<vmem>>, %arg3: memref<1x64xf32, #tpu.memory_space<vmem>>, %arg4: memref<4x9x64x64xbf16, #tpu.memory_space<vmem>>, %arg5: memref<4x1x64xf32, #tpu.memory_space<vmem>>, %arg6: memref<9x64x128xbf16, #tpu.memory_space<vmem>>, %arg7: memref<1x128xf32, #tpu.memory_space<vmem>>, %arg8: memref<64x128xbf16, #tpu.memory_space<vmem>>, %arg9: memref<1x128xf32, #tpu.memory_space<vmem>>, %arg10: memref<3x9x128x128xbf16, #tpu.memory_space<vmem>>, %arg11: memref<3x1x128xf32, #tpu.memory_space<vmem>>, %arg12: memref<128x128xf32, #tpu.memory_space<vmem>>, %arg13: memref<1x128xf32, #tpu.memory_space<vmem>>, %arg14: memref<324x1xf32, #tpu.memory_space<vmem>>, %arg15: memref<78x1xf32, #tpu.memory_space<vmem>>, %arg16: memref<22x1xf32, #tpu.memory_space<vmem>>, %arg17: memref<1x1x128xf32, #tpu.memory_space<vmem>>, %arg18: memref<324x64xf32, #tpu.memory_space<vmem>>, %arg19: memref<322x64xf32, #tpu.memory_space<vmem>>, %arg20: memref<100x64xf32, #tpu.memory_space<vmem>>, %arg21: memref<100x64xf32, #tpu.memory_space<vmem>>, %arg22: memref<78x128xf32, #tpu.memory_space<vmem>>, %arg23: memref<36x128xf32, #tpu.memory_space<vmem>>, %arg24: memref<36x128xf32, #tpu.memory_space<vmem>>, %arg25: memref<36x128xf32, #tpu.memory_space<vmem>>) attributes {dimension_semantics = [#tpu.dimension_semantics<parallel>], iteration_bounds = array<i64: 2>, scalar_prefetch = 0 : i64, scratch_operands = 8 : i64, tpu.core_type = #tpu.core_type<tc>, window_params = [{transform_indices = @transform_0, window_bounds = array<i64: 1, 324, 256>}, {pipeline_mode = #tpu.pipeline_mode<synchronous>, transform_indices = @transform_1, window_bounds = array<i64: 256, 64>}, {pipeline_mode = #tpu.pipeline_mode<synchronous>, transform_indices = @transform_2, window_bounds = array<i64: 1, 64>}, {pipeline_mode = #tpu.pipeline_mode<synchronous>, transform_indices = @transform_3, window_bounds = array<i64: 4, 9, 64, 64>}, {pipeline_mode = #tpu.pipeline_mode<synchronous>, transform_indices = @transform_4, window_bounds = array<i64: 4, 1, 64>}, {pipeline_mode = #tpu.pipeline_mode<synchronous>, transform_indices = @transform_5, window_bounds = array<i64: 9, 64, 128>}, {pipeline_mode = #tpu.pipeline_mode<synchronous>, transform_indices = @transform_6, window_bounds = array<i64: 1, 128>}, {pipeline_mode = #tpu.pipeline_mode<synchronous>, transform_indices = @transform_7, window_bounds = array<i64: 64, 128>}, {pipeline_mode = #tpu.pipeline_mode<synchronous>, transform_indices = @transform_8, window_bounds = array<i64: 1, 128>}, {pipeline_mode = #tpu.pipeline_mode<synchronous>, transform_indices = @transform_9, window_bounds = array<i64: 3, 9, 128, 128>}, {pipeline_mode = #tpu.pipeline_mode<synchronous>, transform_indices = @transform_10, window_bounds = array<i64: 3, 1, 128>}, {pipeline_mode = #tpu.pipeline_mode<synchronous>, transform_indices = @transform_11, window_bounds = array<i64: 128, 128>}, {pipeline_mode = #tpu.pipeline_mode<synchronous>, transform_indices = @transform_12, window_bounds = array<i64: 1, 128>}, {pipeline_mode = #tpu.pipeline_mode<synchronous>, transform_indices = @transform_13, window_bounds = array<i64: 324, 1>}, {pipeline_mode = #tpu.pipeline_mode<synchronous>, transform_indices = @transform_14, window_bounds = array<i64: 78, 1>}, {pipeline_mode = #tpu.pipeline_mode<synchronous>, transform_indices = @transform_15, window_bounds = array<i64: 22, 1>}, {transform_indices = @transform_16, window_bounds = array<i64: 1, 1, 128>}]} {
    %cst = arith.constant 0.000000e+00 : f32
    %0 = vector.broadcast %cst : f32 to vector<100x64xf32>
    %c0 = arith.constant 0 : index
    %c0_0 = arith.constant 0 : index
    %1 = vector.load %arg20[%c0, %c0_0] : memref<100x64xf32, #tpu.memory_space<vmem>>, vector<100x64xf32>
    tpu.vector_store %arg20[%c0, %c0_0], %0 {strides = array<i32>} : memref<100x64xf32, #tpu.memory_space<vmem>>, vector<100x64xf32>,
    %cst_1 = arith.constant 0.000000e+00 : f32
    %2 = vector.broadcast %cst_1 : f32 to vector<100x64xf32>
    %c0_2 = arith.constant 0 : index
    %c0_3 = arith.constant 0 : index
    %3 = vector.load %arg21[%c0_2, %c0_3] : memref<100x64xf32, #tpu.memory_space<vmem>>, vector<100x64xf32>
    tpu.vector_store %arg21[%c0_2, %c0_3], %2 {strides = array<i32>} : memref<100x64xf32, #tpu.memory_space<vmem>>, vector<100x64xf32>,
    %cst_4 = arith.constant 0.000000e+00 : f32
    %4 = vector.broadcast %cst_4 : f32 to vector<36x128xf32>
    %c0_5 = arith.constant 0 : index
    %c0_6 = arith.constant 0 : index
    %5 = vector.load %arg23[%c0_5, %c0_6] : memref<36x128xf32, #tpu.memory_space<vmem>>, vector<36x128xf32>
    tpu.vector_store %arg23[%c0_5, %c0_6], %4 {strides = array<i32>} : memref<36x128xf32, #tpu.memory_space<vmem>>, vector<36x128xf32>,
    %cst_7 = arith.constant 0.000000e+00 : f32
    %6 = vector.broadcast %cst_7 : f32 to vector<36x128xf32>
    %c0_8 = arith.constant 0 : index
    %c0_9 = arith.constant 0 : index
    %7 = vector.load %arg24[%c0_8, %c0_9] : memref<36x128xf32, #tpu.memory_space<vmem>>, vector<36x128xf32>
    tpu.vector_store %arg24[%c0_8, %c0_9], %6 {strides = array<i32>} : memref<36x128xf32, #tpu.memory_space<vmem>>, vector<36x128xf32>,
    %cst_10 = arith.constant 0.000000e+00 : f32
    %8 = vector.broadcast %cst_10 : f32 to vector<36x128xf32>
    %c0_11 = arith.constant 0 : index
    %c0_12 = arith.constant 0 : index
    %9 = vector.load %arg25[%c0_11, %c0_12] : memref<36x128xf32, #tpu.memory_space<vmem>>, vector<36x128xf32>
    tpu.vector_store %arg25[%c0_11, %c0_12], %8 {strides = array<i32>} : memref<36x128xf32, #tpu.memory_space<vmem>>, vector<36x128xf32>,
    %c0_13 = arith.constant 0 : index
    %c0_14 = arith.constant 0 : index
    %10 = vector.load %arg15[%c0_13, %c0_14] : memref<78x1xf32, #tpu.memory_space<vmem>>, vector<78x1xf32>
    %c0_15 = arith.constant 0 : index
    %c0_16 = arith.constant 0 : index
    %11 = vector.load %arg16[%c0_15, %c0_16] : memref<22x1xf32, #tpu.memory_space<vmem>>, vector<22x1xf32>
    %c0_17 = arith.constant 0 : index
    %c0_18 = arith.constant 0 : index
    %c0_19 = arith.constant 0 : index
    %12 = vector.load %arg1[%c0_17, %c0_18, %c0_19] : memref<1x324x256xbf16, #tpu.memory_space<vmem>>, vector<1x324x256xbf16>
    %13 = vector.shape_cast %12 : vector<1x324x256xbf16> to vector<324x256xbf16>
    %c0_20 = arith.constant 0 : index
    %c0_21 = arith.constant 0 : index
    %14 = vector.load %arg2[%c0_20, %c0_21] : memref<256x64xbf16, #tpu.memory_space<vmem>>, vector<256x64xbf16>
    %cst_22 = arith.constant dense<0.000000e+00> : vector<324x64xf32>
    %15 = tpu.matmul %13, %14, %cst_22 {dimension_numbers = #tpu.dot_dimension_numbers<[1], [0], [0], [1], [0, 0, 1, 1], [], []>} : vector<324x256xbf16>, vector<256x64xbf16>, vector<324x64xf32> -> vector<324x64xf32>
    %c0_23 = arith.constant 0 : index
    %c0_24 = arith.constant 0 : index
    %16 = vector.load %arg3[%c0_23, %c0_24] : memref<1x64xf32, #tpu.memory_space<vmem>>, vector<1x64xf32>
    %17 = vector.broadcast %16 : vector<1x64xf32> to vector<324x64xf32>
    %18 = arith.addf %15, %17 : vector<324x64xf32>
    %cst_25 = arith.constant 0.000000e+00 : f32
    %19 = vector.broadcast %cst_25 : f32 to vector<324x64xf32>
    %20 = arith.maximumf %18, %19 : vector<324x64xf32>
    %c0_26 = arith.constant 0 : index
    %c0_27 = arith.constant 0 : index
    %21 = vector.load %arg14[%c0_26, %c0_27] : memref<324x1xf32, #tpu.memory_space<vmem>>, vector<324x1xf32>
    %22 = vector.broadcast %21 : vector<324x1xf32> to vector<324x64xf32>
    %23 = arith.mulf %20, %22 : vector<324x64xf32>
    %c0_28 = arith.constant 0 : index
    %c0_29 = arith.constant 0 : index
    %24 = vector.load %arg18[%c0_28, %c0_29] : memref<324x64xf32, #tpu.memory_space<vmem>>, vector<324x64xf32>
    tpu.vector_store %arg18[%c0_28, %c0_29], %23 {strides = array<i32>} : memref<324x64xf32, #tpu.memory_space<vmem>>, vector<324x64xf32>,
    %c0_30 = arith.constant 0 : index
    %c0_31 = arith.constant 0 : index
    %25 = vector.load %arg18[%c0_30, %c0_31] : memref<324x64xf32, #tpu.memory_space<vmem>>, vector<322x64xf32>
    %c1 = arith.constant 1 : index
    %c0_32 = arith.constant 0 : index
    %26 = vector.load %arg18[%c1, %c0_32] : memref<324x64xf32, #tpu.memory_space<vmem>>, vector<322x64xf32>
    %27 = arith.maximumf %25, %26 : vector<322x64xf32>
    %c2 = arith.constant 2 : index
    %c0_33 = arith.constant 0 : index
    %28 = vector.load %arg18[%c2, %c0_33] : memref<324x64xf32, #tpu.memory_space<vmem>>, vector<322x64xf32>
    %29 = arith.maximumf %27, %28 : vector<322x64xf32>
    %c0_34 = arith.constant 0 : index
    %c0_35 = arith.constant 0 : index
    %30 = vector.load %arg19[%c0_34, %c0_35] : memref<322x64xf32, #tpu.memory_space<vmem>>, vector<322x64xf32>
    tpu.vector_store %arg19[%c0_34, %c0_35], %29 {strides = array<i32>} : memref<322x64xf32, #tpu.memory_space<vmem>>, vector<322x64xf32>,
    %c0_36 = arith.constant 0 : index
    %c0_37 = arith.constant 0 : index
    %31 = tpu.strided_load %arg19[%c0_36, %c0_37] {strides = array<i32: 2, 1>} : memref<322x64xf32, #tpu.memory_space<vmem>>, vector<8x64xf32>
    %c18 = arith.constant 18 : index
    %c0_38 = arith.constant 0 : index
    %32 = tpu.strided_load %arg19[%c18, %c0_38] {strides = array<i32: 2, 1>} : memref<322x64xf32, #tpu.memory_space<vmem>>, vector<8x64xf32>
    %33 = arith.maximumf %31, %32 : vector<8x64xf32>
    %c36 = arith.constant 36 : index
    %c0_39 = arith.constant 0 : index
    %34 = tpu.strided_load %arg19[%c36, %c0_39] {strides = array<i32: 2, 1>} : memref<322x64xf32, #tpu.memory_space<vmem>>, vector<8x64xf32>
    %35 = arith.maximumf %33, %34 : vector<8x64xf32>
    %c11 = arith.constant 11 : index
    %c0_40 = arith.constant 0 : index
    %36 = vector.load %arg20[%c11, %c0_40] : memref<100x64xf32, #tpu.memory_space<vmem>>, vector<8x64xf32>
    tpu.vector_store %arg20[%c11, %c0_40], %35 {strides = array<i32>} : memref<100x64xf32, #tpu.memory_space<vmem>>, vector<8x64xf32>,
    %c36_41 = arith.constant 36 : index
    %c0_42 = arith.constant 0 : index
    %37 = tpu.strided_load %arg19[%c36_41, %c0_42] {strides = array<i32: 2, 1>} : memref<322x64xf32, #tpu.memory_space<vmem>>, vector<8x64xf32>
    %c54 = arith.constant 54 : index
    %c0_43 = arith.constant 0 : index
    %38 = tpu.strided_load %arg19[%c54, %c0_43] {strides = array<i32: 2, 1>} : memref<322x64xf32, #tpu.memory_space<vmem>>, vector<8x64xf32>
    %39 = arith.maximumf %37, %38 : vector<8x64xf32>
    %c72 = arith.constant 72 : index
    %c0_44 = arith.constant 0 : index
    %40 = tpu.strided_load %arg19[%c72, %c0_44] {strides = array<i32: 2, 1>} : memref<322x64xf32, #tpu.memory_space<vmem>>, vector<8x64xf32>
    %41 = arith.maximumf %39, %40 : vector<8x64xf32>
    %c21 = arith.constant 21 : index
    %c0_45 = arith.constant 0 : index
    %42 = vector.load %arg20[%c21, %c0_45] : memref<100x64xf32, #tpu.memory_space<vmem>>, vector<8x64xf32>
    tpu.vector_store %arg20[%c21, %c0_45], %41 {strides = array<i32>} : memref<100x64xf32, #tpu.memory_space<vmem>>, vector<8x64xf32>,
    %c72_46 = arith.constant 72 : index
    %c0_47 = arith.constant 0 : index
    %43 = tpu.strided_load %arg19[%c72_46, %c0_47] {strides = array<i32: 2, 1>} : memref<322x64xf32, #tpu.memory_space<vmem>>, vector<8x64xf32>
    %c90 = arith.constant 90 : index
    %c0_48 = arith.constant 0 : index
    %44 = tpu.strided_load %arg19[%c90, %c0_48] {strides = array<i32: 2, 1>} : memref<322x64xf32, #tpu.memory_space<vmem>>, vector<8x64xf32>
    %45 = arith.maximumf %43, %44 : vector<8x64xf32>
    %c108 = arith.constant 108 : index
    %c0_49 = arith.constant 0 : index
    %46 = tpu.strided_load %arg19[%c108, %c0_49] {strides = array<i32: 2, 1>} : memref<322x64xf32, #tpu.memory_space<vmem>>, vector<8x64xf32>
    %47 = arith.maximumf %45, %46 : vector<8x64xf32>
    %c31 = arith.constant 31 : index
    %c0_50 = arith.constant 0 : index
    %48 = vector.load %arg20[%c31, %c0_50] : memref<100x64xf32, #tpu.memory_space<vmem>>, vector<8x64xf32>
    tpu.vector_store %arg20[%c31, %c0_50], %47 {strides = array<i32>} : memref<100x64xf32, #tpu.memory_space<vmem>>, vector<8x64xf32>,
    %c108_51 = arith.constant 108 : index
    %c0_52 = arith.constant 0 : index
    %49 = tpu.strided_load %arg19[%c108_51, %c0_52] {strides = array<i32: 2, 1>} : memref<322x64xf32, #tpu.memory_space<vmem>>, vector<8x64xf32>
    %c126 = arith.constant 126 : index
    %c0_53 = arith.constant 0 : index
    %50 = tpu.strided_load %arg19[%c126, %c0_53] {strides = array<i32: 2, 1>} : memref<322x64xf32, #tpu.memory_space<vmem>>, vector<8x64xf32>
    %51 = arith.maximumf %49, %50 : vector<8x64xf32>
    %c144 = arith.constant 144 : index
    %c0_54 = arith.constant 0 : index
    %52 = tpu.strided_load %arg19[%c144, %c0_54] {strides = array<i32: 2, 1>} : memref<322x64xf32, #tpu.memory_space<vmem>>, vector<8x64xf32>
    %53 = arith.maximumf %51, %52 : vector<8x64xf32>
    %c41 = arith.constant 41 : index
    %c0_55 = arith.constant 0 : index
    %54 = vector.load %arg20[%c41, %c0_55] : memref<100x64xf32, #tpu.memory_space<vmem>>, vector<8x64xf32>
    tpu.vector_store %arg20[%c41, %c0_55], %53 {strides = array<i32>} : memref<100x64xf32, #tpu.memory_space<vmem>>, vector<8x64xf32>,
    %c144_56 = arith.constant 144 : index
    %c0_57 = arith.constant 0 : index
    %55 = tpu.strided_load %arg19[%c144_56, %c0_57] {strides = array<i32: 2, 1>} : memref<322x64xf32, #tpu.memory_space<vmem>>, vector<8x64xf32>
    %c162 = arith.constant 162 : index
    %c0_58 = arith.constant 0 : index
    %56 = tpu.strided_load %arg19[%c162, %c0_58] {strides = array<i32: 2, 1>} : memref<322x64xf32, #tpu.memory_space<vmem>>, vector<8x64xf32>
    %57 = arith.maximumf %55, %56 : vector<8x64xf32>
    %c180 = arith.constant 180 : index
    %c0_59 = arith.constant 0 : index
    %58 = tpu.strided_load %arg19[%c180, %c0_59] {strides = array<i32: 2, 1>} : memref<322x64xf32, #tpu.memory_space<vmem>>, vector<8x64xf32>
    %59 = arith.maximumf %57, %58 : vector<8x64xf32>
    %c51 = arith.constant 51 : index
    %c0_60 = arith.constant 0 : index
    %60 = vector.load %arg20[%c51, %c0_60] : memref<100x64xf32, #tpu.memory_space<vmem>>, vector<8x64xf32>
    tpu.vector_store %arg20[%c51, %c0_60], %59 {strides = array<i32>} : memref<100x64xf32, #tpu.memory_space<vmem>>, vector<8x64xf32>,
    %c180_61 = arith.constant 180 : index
    %c0_62 = arith.constant 0 : index
    %61 = tpu.strided_load %arg19[%c180_61, %c0_62] {strides = array<i32: 2, 1>} : memref<322x64xf32, #tpu.memory_space<vmem>>, vector<8x64xf32>
    %c198 = arith.constant 198 : index
    %c0_63 = arith.constant 0 : index
    %62 = tpu.strided_load %arg19[%c198, %c0_63] {strides = array<i32: 2, 1>} : memref<322x64xf32, #tpu.memory_space<vmem>>, vector<8x64xf32>
    %63 = arith.maximumf %61, %62 : vector<8x64xf32>
    %c216 = arith.constant 216 : index
    %c0_64 = arith.constant 0 : index
    %64 = tpu.strided_load %arg19[%c216, %c0_64] {strides = array<i32: 2, 1>} : memref<322x64xf32, #tpu.memory_space<vmem>>, vector<8x64xf32>
    %65 = arith.maximumf %63, %64 : vector<8x64xf32>
    %c61 = arith.constant 61 : index
    %c0_65 = arith.constant 0 : index
    %66 = vector.load %arg20[%c61, %c0_65] : memref<100x64xf32, #tpu.memory_space<vmem>>, vector<8x64xf32>
    tpu.vector_store %arg20[%c61, %c0_65], %65 {strides = array<i32>} : memref<100x64xf32, #tpu.memory_space<vmem>>, vector<8x64xf32>,
    %c216_66 = arith.constant 216 : index
    %c0_67 = arith.constant 0 : index
    %67 = tpu.strided_load %arg19[%c216_66, %c0_67] {strides = array<i32: 2, 1>} : memref<322x64xf32, #tpu.memory_space<vmem>>, vector<8x64xf32>
    %c234 = arith.constant 234 : index
    %c0_68 = arith.constant 0 : index
    %68 = tpu.strided_load %arg19[%c234, %c0_68] {strides = array<i32: 2, 1>} : memref<322x64xf32, #tpu.memory_space<vmem>>, vector<8x64xf32>
    %69 = arith.maximumf %67, %68 : vector<8x64xf32>
    %c252 = arith.constant 252 : index
    %c0_69 = arith.constant 0 : index
    %70 = tpu.strided_load %arg19[%c252, %c0_69] {strides = array<i32: 2, 1>} : memref<322x64xf32, #tpu.memory_space<vmem>>, vector<8x64xf32>
    %71 = arith.maximumf %69, %70 : vector<8x64xf32>
    %c71 = arith.constant 71 : index
    %c0_70 = arith.constant 0 : index
    %72 = vector.load %arg20[%c71, %c0_70] : memref<100x64xf32, #tpu.memory_space<vmem>>, vector<8x64xf32>
    tpu.vector_store %arg20[%c71, %c0_70], %71 {strides = array<i32>} : memref<100x64xf32, #tpu.memory_space<vmem>>, vector<8x64xf32>,
    %c252_71 = arith.constant 252 : index
    %c0_72 = arith.constant 0 : index
    %73 = tpu.strided_load %arg19[%c252_71, %c0_72] {strides = array<i32: 2, 1>} : memref<322x64xf32, #tpu.memory_space<vmem>>, vector<8x64xf32>
    %c270 = arith.constant 270 : index
    %c0_73 = arith.constant 0 : index
    %74 = tpu.strided_load %arg19[%c270, %c0_73] {strides = array<i32: 2, 1>} : memref<322x64xf32, #tpu.memory_space<vmem>>, vector<8x64xf32>
    %75 = arith.maximumf %73, %74 : vector<8x64xf32>
    %c288 = arith.constant 288 : index
    %c0_74 = arith.constant 0 : index
    %76 = tpu.strided_load %arg19[%c288, %c0_74] {strides = array<i32: 2, 1>} : memref<322x64xf32, #tpu.memory_space<vmem>>, vector<8x64xf32>
    %77 = arith.maximumf %75, %76 : vector<8x64xf32>
    %c81 = arith.constant 81 : index
    %c0_75 = arith.constant 0 : index
    %78 = vector.load %arg20[%c81, %c0_75] : memref<100x64xf32, #tpu.memory_space<vmem>>, vector<8x64xf32>
    tpu.vector_store %arg20[%c81, %c0_75], %77 {strides = array<i32>} : memref<100x64xf32, #tpu.memory_space<vmem>>, vector<8x64xf32>,
    %c0_76 = arith.constant 0 : index
    %c0_77 = arith.constant 0 : index
    %79 = vector.load %arg20[%c0_76, %c0_77] : memref<100x64xf32, #tpu.memory_space<vmem>>, vector<78x64xf32>
    %80 = arith.truncf %79 : vector<78x64xf32> to vector<78x64xbf16>
    %c0_78 = arith.constant 0 : index
    %c0_79 = arith.constant 0 : index
    %c0_80 = arith.constant 0 : index
    %c0_81 = arith.constant 0 : index
    %81 = vector.load %arg4[%c0_78, %c0_79, %c0_80, %c0_81] : memref<4x9x64x64xbf16, #tpu.memory_space<vmem>>, vector<1x1x64x64xbf16>
    %82 = vector.shape_cast %81 : vector<1x1x64x64xbf16> to vector<64x64xbf16>
    %cst_82 = arith.constant dense<0.000000e+00> : vector<78x64xf32>
    %83 = tpu.matmul %80, %82, %cst_82 {dimension_numbers = #tpu.dot_dimension_numbers<[1], [0], [0], [1], [0, 0, 1, 1], [], []>} : vector<78x64xbf16>, vector<64x64xbf16>, vector<78x64xf32> -> vector<78x64xf32>
    %c1_83 = arith.constant 1 : index
    %c0_84 = arith.constant 0 : index
    %84 = vector.load %arg20[%c1_83, %c0_84] : memref<100x64xf32, #tpu.memory_space<vmem>>, vector<78x64xf32>
    %85 = arith.truncf %84 : vector<78x64xf32> to vector<78x64xbf16>
    %c0_85 = arith.constant 0 : index
    %c1_86 = arith.constant 1 : index
    %c0_87 = arith.constant 0 : index
    %c0_88 = arith.constant 0 : index
    %86 = vector.load %arg4[%c0_85, %c1_86, %c0_87, %c0_88] : memref<4x9x64x64xbf16, #tpu.memory_space<vmem>>, vector<1x1x64x64xbf16>
    %87 = vector.shape_cast %86 : vector<1x1x64x64xbf16> to vector<64x64xbf16>
    %cst_89 = arith.constant dense<0.000000e+00> : vector<78x64xf32>
    %88 = tpu.matmul %85, %87, %cst_89 {dimension_numbers = #tpu.dot_dimension_numbers<[1], [0], [0], [1], [0, 0, 1, 1], [], []>} : vector<78x64xbf16>, vector<64x64xbf16>, vector<78x64xf32> -> vector<78x64xf32>
    %89 = arith.addf %83, %88 : vector<78x64xf32>
    %c2_90 = arith.constant 2 : index
    %c0_91 = arith.constant 0 : index
    %90 = vector.load %arg20[%c2_90, %c0_91] : memref<100x64xf32, #tpu.memory_space<vmem>>, vector<78x64xf32>
    %91 = arith.truncf %90 : vector<78x64xf32> to vector<78x64xbf16>
    %c0_92 = arith.constant 0 : index
    %c2_93 = arith.constant 2 : index
    %c0_94 = arith.constant 0 : index
    %c0_95 = arith.constant 0 : index
    %92 = vector.load %arg4[%c0_92, %c2_93, %c0_94, %c0_95] : memref<4x9x64x64xbf16, #tpu.memory_space<vmem>>, vector<1x1x64x64xbf16>
    %93 = vector.shape_cast %92 : vector<1x1x64x64xbf16> to vector<64x64xbf16>
    %cst_96 = arith.constant dense<0.000000e+00> : vector<78x64xf32>
    %94 = tpu.matmul %91, %93, %cst_96 {dimension_numbers = #tpu.dot_dimension_numbers<[1], [0], [0], [1], [0, 0, 1, 1], [], []>} : vector<78x64xbf16>, vector<64x64xbf16>, vector<78x64xf32> -> vector<78x64xf32>
    %95 = arith.addf %89, %94 : vector<78x64xf32>
    %c10 = arith.constant 10 : index
    %c0_97 = arith.constant 0 : index
    %96 = vector.load %arg20[%c10, %c0_97] : memref<100x64xf32, #tpu.memory_space<vmem>>, vector<78x64xf32>
    %97 = arith.truncf %96 : vector<78x64xf32> to vector<78x64xbf16>
    %c0_98 = arith.constant 0 : index
    %c3 = arith.constant 3 : index
    %c0_99 = arith.constant 0 : index
    %c0_100 = arith.constant 0 : index
    %98 = vector.load %arg4[%c0_98, %c3, %c0_99, %c0_100] : memref<4x9x64x64xbf16, #tpu.memory_space<vmem>>, vector<1x1x64x64xbf16>
    %99 = vector.shape_cast %98 : vector<1x1x64x64xbf16> to vector<64x64xbf16>
    %cst_101 = arith.constant dense<0.000000e+00> : vector<78x64xf32>
    %100 = tpu.matmul %97, %99, %cst_101 {dimension_numbers = #tpu.dot_dimension_numbers<[1], [0], [0], [1], [0, 0, 1, 1], [], []>} : vector<78x64xbf16>, vector<64x64xbf16>, vector<78x64xf32> -> vector<78x64xf32>
    %101 = arith.addf %95, %100 : vector<78x64xf32>
    %c11_102 = arith.constant 11 : index
    %c0_103 = arith.constant 0 : index
    %102 = vector.load %arg20[%c11_102, %c0_103] : memref<100x64xf32, #tpu.memory_space<vmem>>, vector<78x64xf32>
    %103 = arith.truncf %102 : vector<78x64xf32> to vector<78x64xbf16>
    %c0_104 = arith.constant 0 : index
    %c4 = arith.constant 4 : index
    %c0_105 = arith.constant 0 : index
    %c0_106 = arith.constant 0 : index
    %104 = vector.load %arg4[%c0_104, %c4, %c0_105, %c0_106] : memref<4x9x64x64xbf16, #tpu.memory_space<vmem>>, vector<1x1x64x64xbf16>
    %105 = vector.shape_cast %104 : vector<1x1x64x64xbf16> to vector<64x64xbf16>
    %cst_107 = arith.constant dense<0.000000e+00> : vector<78x64xf32>
    %106 = tpu.matmul %103, %105, %cst_107 {dimension_numbers = #tpu.dot_dimension_numbers<[1], [0], [0], [1], [0, 0, 1, 1], [], []>} : vector<78x64xbf16>, vector<64x64xbf16>, vector<78x64xf32> -> vector<78x64xf32>
    %107 = arith.addf %101, %106 : vector<78x64xf32>
    %c12 = arith.constant 12 : index
    %c0_108 = arith.constant 0 : index
    %108 = vector.load %arg20[%c12, %c0_108] : memref<100x64xf32, #tpu.memory_space<vmem>>, vector<78x64xf32>
    %109 = arith.truncf %108 : vector<78x64xf32> to vector<78x64xbf16>
    %c0_109 = arith.constant 0 : index
    %c5 = arith.constant 5 : index
    %c0_110 = arith.constant 0 : index
    %c0_111 = arith.constant 0 : index
    %110 = vector.load %arg4[%c0_109, %c5, %c0_110, %c0_111] : memref<4x9x64x64xbf16, #tpu.memory_space<vmem>>, vector<1x1x64x64xbf16>
    %111 = vector.shape_cast %110 : vector<1x1x64x64xbf16> to vector<64x64xbf16>
    %cst_112 = arith.constant dense<0.000000e+00> : vector<78x64xf32>
    %112 = tpu.matmul %109, %111, %cst_112 {dimension_numbers = #tpu.dot_dimension_numbers<[1], [0], [0], [1], [0, 0, 1, 1], [], []>} : vector<78x64xbf16>, vector<64x64xbf16>, vector<78x64xf32> -> vector<78x64xf32>
    %113 = arith.addf %107, %112 : vector<78x64xf32>
    %c20 = arith.constant 20 : index
    %c0_113 = arith.constant 0 : index
    %114 = vector.load %arg20[%c20, %c0_113] : memref<100x64xf32, #tpu.memory_space<vmem>>, vector<78x64xf32>
    %115 = arith.truncf %114 : vector<78x64xf32> to vector<78x64xbf16>
    %c0_114 = arith.constant 0 : index
    %c6 = arith.constant 6 : index
    %c0_115 = arith.constant 0 : index
    %c0_116 = arith.constant 0 : index
    %116 = vector.load %arg4[%c0_114, %c6, %c0_115, %c0_116] : memref<4x9x64x64xbf16, #tpu.memory_space<vmem>>, vector<1x1x64x64xbf16>
    %117 = vector.shape_cast %116 : vector<1x1x64x64xbf16> to vector<64x64xbf16>
    %cst_117 = arith.constant dense<0.000000e+00> : vector<78x64xf32>
    %118 = tpu.matmul %115, %117, %cst_117 {dimension_numbers = #tpu.dot_dimension_numbers<[1], [0], [0], [1], [0, 0, 1, 1], [], []>} : vector<78x64xbf16>, vector<64x64xbf16>, vector<78x64xf32> -> vector<78x64xf32>
    %119 = arith.addf %113, %118 : vector<78x64xf32>
    %c21_118 = arith.constant 21 : index
    %c0_119 = arith.constant 0 : index
    %120 = vector.load %arg20[%c21_118, %c0_119] : memref<100x64xf32, #tpu.memory_space<vmem>>, vector<78x64xf32>
    %121 = arith.truncf %120 : vector<78x64xf32> to vector<78x64xbf16>
    %c0_120 = arith.constant 0 : index
    %c7 = arith.constant 7 : index
    %c0_121 = arith.constant 0 : index
    %c0_122 = arith.constant 0 : index
    %122 = vector.load %arg4[%c0_120, %c7, %c0_121, %c0_122] : memref<4x9x64x64xbf16, #tpu.memory_space<vmem>>, vector<1x1x64x64xbf16>
    %123 = vector.shape_cast %122 : vector<1x1x64x64xbf16> to vector<64x64xbf16>
    %cst_123 = arith.constant dense<0.000000e+00> : vector<78x64xf32>
    %124 = tpu.matmul %121, %123, %cst_123 {dimension_numbers = #tpu.dot_dimension_numbers<[1], [0], [0], [1], [0, 0, 1, 1], [], []>} : vector<78x64xbf16>, vector<64x64xbf16>, vector<78x64xf32> -> vector<78x64xf32>
    %125 = arith.addf %119, %124 : vector<78x64xf32>
    %c22 = arith.constant 22 : index
    %c0_124 = arith.constant 0 : index
    %126 = vector.load %arg20[%c22, %c0_124] : memref<100x64xf32, #tpu.memory_space<vmem>>, vector<78x64xf32>
    %127 = arith.truncf %126 : vector<78x64xf32> to vector<78x64xbf16>
    %c0_125 = arith.constant 0 : index
    %c8 = arith.constant 8 : index
    %c0_126 = arith.constant 0 : index
    %c0_127 = arith.constant 0 : index
    %128 = vector.load %arg4[%c0_125, %c8, %c0_126, %c0_127] : memref<4x9x64x64xbf16, #tpu.memory_space<vmem>>, vector<1x1x64x64xbf16>
    %129 = vector.shape_cast %128 : vector<1x1x64x64xbf16> to vector<64x64xbf16>
    %cst_128 = arith.constant dense<0.000000e+00> : vector<78x64xf32>
    %130 = tpu.matmul %127, %129, %cst_128 {dimension_numbers = #tpu.dot_dimension_numbers<[1], [0], [0], [1], [0, 0, 1, 1], [], []>} : vector<78x64xbf16>, vector<64x64xbf16>, vector<78x64xf32> -> vector<78x64xf32>
    %131 = arith.addf %125, %130 : vector<78x64xf32>
    %c0_129 = arith.constant 0 : index
    %c0_130 = arith.constant 0 : index
    %c0_131 = arith.constant 0 : index
    %132 = vector.load %arg5[%c0_129, %c0_130, %c0_131] : memref<4x1x64xf32, #tpu.memory_space<vmem>>, vector<1x1x64xf32>
    %133 = vector.shape_cast %132 : vector<1x1x64xf32> to vector<1x64xf32>
    %134 = vector.broadcast %133 : vector<1x64xf32> to vector<78x64xf32>
    %135 = arith.addf %131, %134 : vector<78x64xf32>
    %cst_132 = arith.constant 0.000000e+00 : f32
    %136 = vector.broadcast %cst_132 : f32 to vector<78x64xf32>
    %137 = arith.maximumf %135, %136 : vector<78x64xf32>
    %138 = vector.broadcast %10 : vector<78x1xf32> to vector<78x64xf32>
    %139 = arith.mulf %137, %138 : vector<78x64xf32>
    %c11_133 = arith.constant 11 : index
    %c0_134 = arith.constant 0 : index
    %140 = vector.load %arg21[%c11_133, %c0_134] : memref<100x64xf32, #tpu.memory_space<vmem>>, vector<78x64xf32>
    tpu.vector_store %arg21[%c11_133, %c0_134], %139 {strides = array<i32>} : memref<100x64xf32, #tpu.memory_space<vmem>>, vector<78x64xf32>,
    %c11_135 = arith.constant 11 : index
    %c0_136 = arith.constant 0 : index
    %141 = vector.load %arg20[%c11_135, %c0_136] : memref<100x64xf32, #tpu.memory_space<vmem>>, vector<78x64xf32>
    %c0_137 = arith.constant 0 : index
    %c0_138 = arith.constant 0 : index
    %142 = vector.load %arg21[%c0_137, %c0_138] : memref<100x64xf32, #tpu.memory_space<vmem>>, vector<78x64xf32>
    %143 = arith.truncf %142 : vector<78x64xf32> to vector<78x64xbf16>
    %c1_139 = arith.constant 1 : index
    %c0_140 = arith.constant 0 : index
    %c0_141 = arith.constant 0 : index
    %c0_142 = arith.constant 0 : index
    %144 = vector.load %arg4[%c1_139, %c0_140, %c0_141, %c0_142] : memref<4x9x64x64xbf16, #tpu.memory_space<vmem>>, vector<1x1x64x64xbf16>
    %145 = vector.shape_cast %144 : vector<1x1x64x64xbf16> to vector<64x64xbf16>
    %cst_143 = arith.constant dense<0.000000e+00> : vector<78x64xf32>
    %146 = tpu.matmul %143, %145, %cst_143 {dimension_numbers = #tpu.dot_dimension_numbers<[1], [0], [0], [1], [0, 0, 1, 1], [], []>} : vector<78x64xbf16>, vector<64x64xbf16>, vector<78x64xf32> -> vector<78x64xf32>
    %c1_144 = arith.constant 1 : index
    %c0_145 = arith.constant 0 : index
    %147 = vector.load %arg21[%c1_144, %c0_145] : memref<100x64xf32, #tpu.memory_space<vmem>>, vector<78x64xf32>
    %148 = arith.truncf %147 : vector<78x64xf32> to vector<78x64xbf16>
    %c1_146 = arith.constant 1 : index
    %c1_147 = arith.constant 1 : index
    %c0_148 = arith.constant 0 : index
    %c0_149 = arith.constant 0 : index
    %149 = vector.load %arg4[%c1_146, %c1_147, %c0_148, %c0_149] : memref<4x9x64x64xbf16, #tpu.memory_space<vmem>>, vector<1x1x64x64xbf16>
    %150 = vector.shape_cast %149 : vector<1x1x64x64xbf16> to vector<64x64xbf16>
    %cst_150 = arith.constant dense<0.000000e+00> : vector<78x64xf32>
    %151 = tpu.matmul %148, %150, %cst_150 {dimension_numbers = #tpu.dot_dimension_numbers<[1], [0], [0], [1], [0, 0, 1, 1], [], []>} : vector<78x64xbf16>, vector<64x64xbf16>, vector<78x64xf32> -> vector<78x64xf32>
    %152 = arith.addf %146, %151 : vector<78x64xf32>
    %c2_151 = arith.constant 2 : index
    %c0_152 = arith.constant 0 : index
    %153 = vector.load %arg21[%c2_151, %c0_152] : memref<100x64xf32, #tpu.memory_space<vmem>>, vector<78x64xf32>
    %154 = arith.truncf %153 : vector<78x64xf32> to vector<78x64xbf16>
    %c1_153 = arith.constant 1 : index
    %c2_154 = arith.constant 2 : index
    %c0_155 = arith.constant 0 : index
    %c0_156 = arith.constant 0 : index
    %155 = vector.load %arg4[%c1_153, %c2_154, %c0_155, %c0_156] : memref<4x9x64x64xbf16, #tpu.memory_space<vmem>>, vector<1x1x64x64xbf16>
    %156 = vector.shape_cast %155 : vector<1x1x64x64xbf16> to vector<64x64xbf16>
    %cst_157 = arith.constant dense<0.000000e+00> : vector<78x64xf32>
    %157 = tpu.matmul %154, %156, %cst_157 {dimension_numbers = #tpu.dot_dimension_numbers<[1], [0], [0], [1], [0, 0, 1, 1], [], []>} : vector<78x64xbf16>, vector<64x64xbf16>, vector<78x64xf32> -> vector<78x64xf32>
    %158 = arith.addf %152, %157 : vector<78x64xf32>
    %c10_158 = arith.constant 10 : index
    %c0_159 = arith.constant 0 : index
    %159 = vector.load %arg21[%c10_158, %c0_159] : memref<100x64xf32, #tpu.memory_space<vmem>>, vector<78x64xf32>
    %160 = arith.truncf %159 : vector<78x64xf32> to vector<78x64xbf16>
    %c1_160 = arith.constant 1 : index
    %c3_161 = arith.constant 3 : index
    %c0_162 = arith.constant 0 : index
    %c0_163 = arith.constant 0 : index
    %161 = vector.load %arg4[%c1_160, %c3_161, %c0_162, %c0_163] : memref<4x9x64x64xbf16, #tpu.memory_space<vmem>>, vector<1x1x64x64xbf16>
    %162 = vector.shape_cast %161 : vector<1x1x64x64xbf16> to vector<64x64xbf16>
    %cst_164 = arith.constant dense<0.000000e+00> : vector<78x64xf32>
    %163 = tpu.matmul %160, %162, %cst_164 {dimension_numbers = #tpu.dot_dimension_numbers<[1], [0], [0], [1], [0, 0, 1, 1], [], []>} : vector<78x64xbf16>, vector<64x64xbf16>, vector<78x64xf32> -> vector<78x64xf32>
    %164 = arith.addf %158, %163 : vector<78x64xf32>
    %c11_165 = arith.constant 11 : index
    %c0_166 = arith.constant 0 : index
    %165 = vector.load %arg21[%c11_165, %c0_166] : memref<100x64xf32, #tpu.memory_space<vmem>>, vector<78x64xf32>
    %166 = arith.truncf %165 : vector<78x64xf32> to vector<78x64xbf16>
    %c1_167 = arith.constant 1 : index
    %c4_168 = arith.constant 4 : index
    %c0_169 = arith.constant 0 : index
    %c0_170 = arith.constant 0 : index
    %167 = vector.load %arg4[%c1_167, %c4_168, %c0_169, %c0_170] : memref<4x9x64x64xbf16, #tpu.memory_space<vmem>>, vector<1x1x64x64xbf16>
    %168 = vector.shape_cast %167 : vector<1x1x64x64xbf16> to vector<64x64xbf16>
    %cst_171 = arith.constant dense<0.000000e+00> : vector<78x64xf32>
    %169 = tpu.matmul %166, %168, %cst_171 {dimension_numbers = #tpu.dot_dimension_numbers<[1], [0], [0], [1], [0, 0, 1, 1], [], []>} : vector<78x64xbf16>, vector<64x64xbf16>, vector<78x64xf32> -> vector<78x64xf32>
    %170 = arith.addf %164, %169 : vector<78x64xf32>
    %c12_172 = arith.constant 12 : index
    %c0_173 = arith.constant 0 : index
    %171 = vector.load %arg21[%c12_172, %c0_173] : memref<100x64xf32, #tpu.memory_space<vmem>>, vector<78x64xf32>
    %172 = arith.truncf %171 : vector<78x64xf32> to vector<78x64xbf16>
    %c1_174 = arith.constant 1 : index
    %c5_175 = arith.constant 5 : index
    %c0_176 = arith.constant 0 : index
    %c0_177 = arith.constant 0 : index
    %173 = vector.load %arg4[%c1_174, %c5_175, %c0_176, %c0_177] : memref<4x9x64x64xbf16, #tpu.memory_space<vmem>>, vector<1x1x64x64xbf16>
    %174 = vector.shape_cast %173 : vector<1x1x64x64xbf16> to vector<64x64xbf16>
    %cst_178 = arith.constant dense<0.000000e+00> : vector<78x64xf32>
    %175 = tpu.matmul %172, %174, %cst_178 {dimension_numbers = #tpu.dot_dimension_numbers<[1], [0], [0], [1], [0, 0, 1, 1], [], []>} : vector<78x64xbf16>, vector<64x64xbf16>, vector<78x64xf32> -> vector<78x64xf32>
    %176 = arith.addf %170, %175 : vector<78x64xf32>
    %c20_179 = arith.constant 20 : index
    %c0_180 = arith.constant 0 : index
    %177 = vector.load %arg21[%c20_179, %c0_180] : memref<100x64xf32, #tpu.memory_space<vmem>>, vector<78x64xf32>
    %178 = arith.truncf %177 : vector<78x64xf32> to vector<78x64xbf16>
    %c1_181 = arith.constant 1 : index
    %c6_182 = arith.constant 6 : index
    %c0_183 = arith.constant 0 : index
    %c0_184 = arith.constant 0 : index
    %179 = vector.load %arg4[%c1_181, %c6_182, %c0_183, %c0_184] : memref<4x9x64x64xbf16, #tpu.memory_space<vmem>>, vector<1x1x64x64xbf16>
    %180 = vector.shape_cast %179 : vector<1x1x64x64xbf16> to vector<64x64xbf16>
    %cst_185 = arith.constant dense<0.000000e+00> : vector<78x64xf32>
    %181 = tpu.matmul %178, %180, %cst_185 {dimension_numbers = #tpu.dot_dimension_numbers<[1], [0], [0], [1], [0, 0, 1, 1], [], []>} : vector<78x64xbf16>, vector<64x64xbf16>, vector<78x64xf32> -> vector<78x64xf32>
    %182 = arith.addf %176, %181 : vector<78x64xf32>
    %c21_186 = arith.constant 21 : index
    %c0_187 = arith.constant 0 : index
    %183 = vector.load %arg21[%c21_186, %c0_187] : memref<100x64xf32, #tpu.memory_space<vmem>>, vector<78x64xf32>
    %184 = arith.truncf %183 : vector<78x64xf32> to vector<78x64xbf16>
    %c1_188 = arith.constant 1 : index
    %c7_189 = arith.constant 7 : index
    %c0_190 = arith.constant 0 : index
    %c0_191 = arith.constant 0 : index
    %185 = vector.load %arg4[%c1_188, %c7_189, %c0_190, %c0_191] : memref<4x9x64x64xbf16, #tpu.memory_space<vmem>>, vector<1x1x64x64xbf16>
    %186 = vector.shape_cast %185 : vector<1x1x64x64xbf16> to vector<64x64xbf16>
    %cst_192 = arith.constant dense<0.000000e+00> : vector<78x64xf32>
    %187 = tpu.matmul %184, %186, %cst_192 {dimension_numbers = #tpu.dot_dimension_numbers<[1], [0], [0], [1], [0, 0, 1, 1], [], []>} : vector<78x64xbf16>, vector<64x64xbf16>, vector<78x64xf32> -> vector<78x64xf32>
    %188 = arith.addf %182, %187 : vector<78x64xf32>
    %c22_193 = arith.constant 22 : index
    %c0_194 = arith.constant 0 : index
    %189 = vector.load %arg21[%c22_193, %c0_194] : memref<100x64xf32, #tpu.memory_space<vmem>>, vector<78x64xf32>
    %190 = arith.truncf %189 : vector<78x64xf32> to vector<78x64xbf16>
    %c1_195 = arith.constant 1 : index
    %c8_196 = arith.constant 8 : index
    %c0_197 = arith.constant 0 : index
    %c0_198 = arith.constant 0 : index
    %191 = vector.load %arg4[%c1_195, %c8_196, %c0_197, %c0_198] : memref<4x9x64x64xbf16, #tpu.memory_space<vmem>>, vector<1x1x64x64xbf16>
    %192 = vector.shape_cast %191 : vector<1x1x64x64xbf16> to vector<64x64xbf16>
    %cst_199 = arith.constant dense<0.000000e+00> : vector<78x64xf32>
    %193 = tpu.matmul %190, %192, %cst_199 {dimension_numbers = #tpu.dot_dimension_numbers<[1], [0], [0], [1], [0, 0, 1, 1], [], []>} : vector<78x64xbf16>, vector<64x64xbf16>, vector<78x64xf32> -> vector<78x64xf32>
    %194 = arith.addf %188, %193 : vector<78x64xf32>
    %c1_200 = arith.constant 1 : index
    %c0_201 = arith.constant 0 : index
    %c0_202 = arith.constant 0 : index
    %195 = vector.load %arg5[%c1_200, %c0_201, %c0_202] : memref<4x1x64xf32, #tpu.memory_space<vmem>>, vector<1x1x64xf32>
    %196 = vector.shape_cast %195 : vector<1x1x64xf32> to vector<1x64xf32>
    %197 = vector.broadcast %196 : vector<1x64xf32> to vector<78x64xf32>
    %198 = arith.addf %194, %197 : vector<78x64xf32>
    %199 = arith.addf %198, %141 : vector<78x64xf32>
    %cst_203 = arith.constant 0.000000e+00 : f32
    %200 = vector.broadcast %cst_203 : f32 to vector<78x64xf32>
    %201 = arith.maximumf %199, %200 : vector<78x64xf32>
    %202 = vector.broadcast %10 : vector<78x1xf32> to vector<78x64xf32>
    %203 = arith.mulf %201, %202 : vector<78x64xf32>
    %c11_204 = arith.constant 11 : index
    %c0_205 = arith.constant 0 : index
    %204 = vector.load %arg20[%c11_204, %c0_205] : memref<100x64xf32, #tpu.memory_space<vmem>>, vector<78x64xf32>
    tpu.vector_store %arg20[%c11_204, %c0_205], %203 {strides = array<i32>} : memref<100x64xf32, #tpu.memory_space<vmem>>, vector<78x64xf32>,
    %c0_206 = arith.constant 0 : index
    %c0_207 = arith.constant 0 : index
    %205 = vector.load %arg20[%c0_206, %c0_207] : memref<100x64xf32, #tpu.memory_space<vmem>>, vector<78x64xf32>
    %206 = arith.truncf %205 : vector<78x64xf32> to vector<78x64xbf16>
    %c2_208 = arith.constant 2 : index
    %c0_209 = arith.constant 0 : index
    %c0_210 = arith.constant 0 : index
    %c0_211 = arith.constant 0 : index
    %207 = vector.load %arg4[%c2_208, %c0_209, %c0_210, %c0_211] : memref<4x9x64x64xbf16, #tpu.memory_space<vmem>>, vector<1x1x64x64xbf16>
    %208 = vector.shape_cast %207 : vector<1x1x64x64xbf16> to vector<64x64xbf16>
    %cst_212 = arith.constant dense<0.000000e+00> : vector<78x64xf32>
    %209 = tpu.matmul %206, %208, %cst_212 {dimension_numbers = #tpu.dot_dimension_numbers<[1], [0], [0], [1], [0, 0, 1, 1], [], []>} : vector<78x64xbf16>, vector<64x64xbf16>, vector<78x64xf32> -> vector<78x64xf32>
    %c1_213 = arith.constant 1 : index
    %c0_214 = arith.constant 0 : index
    %210 = vector.load %arg20[%c1_213, %c0_214] : memref<100x64xf32, #tpu.memory_space<vmem>>, vector<78x64xf32>
    %211 = arith.truncf %210 : vector<78x64xf32> to vector<78x64xbf16>
    %c2_215 = arith.constant 2 : index
    %c1_216 = arith.constant 1 : index
    %c0_217 = arith.constant 0 : index
    %c0_218 = arith.constant 0 : index
    %212 = vector.load %arg4[%c2_215, %c1_216, %c0_217, %c0_218] : memref<4x9x64x64xbf16, #tpu.memory_space<vmem>>, vector<1x1x64x64xbf16>
    %213 = vector.shape_cast %212 : vector<1x1x64x64xbf16> to vector<64x64xbf16>
    %cst_219 = arith.constant dense<0.000000e+00> : vector<78x64xf32>
    %214 = tpu.matmul %211, %213, %cst_219 {dimension_numbers = #tpu.dot_dimension_numbers<[1], [0], [0], [1], [0, 0, 1, 1], [], []>} : vector<78x64xbf16>, vector<64x64xbf16>, vector<78x64xf32> -> vector<78x64xf32>
    %215 = arith.addf %209, %214 : vector<78x64xf32>
    %c2_220 = arith.constant 2 : index
    %c0_221 = arith.constant 0 : index
    %216 = vector.load %arg20[%c2_220, %c0_221] : memref<100x64xf32, #tpu.memory_space<vmem>>, vector<78x64xf32>
    %217 = arith.truncf %216 : vector<78x64xf32> to vector<78x64xbf16>
    %c2_222 = arith.constant 2 : index
    %c2_223 = arith.constant 2 : index
    %c0_224 = arith.constant 0 : index
    %c0_225 = arith.constant 0 : index
    %218 = vector.load %arg4[%c2_222, %c2_223, %c0_224, %c0_225] : memref<4x9x64x64xbf16, #tpu.memory_space<vmem>>, vector<1x1x64x64xbf16>
    %219 = vector.shape_cast %218 : vector<1x1x64x64xbf16> to vector<64x64xbf16>
    %cst_226 = arith.constant dense<0.000000e+00> : vector<78x64xf32>
    %220 = tpu.matmul %217, %219, %cst_226 {dimension_numbers = #tpu.dot_dimension_numbers<[1], [0], [0], [1], [0, 0, 1, 1], [], []>} : vector<78x64xbf16>, vector<64x64xbf16>, vector<78x64xf32> -> vector<78x64xf32>
    %221 = arith.addf %215, %220 : vector<78x64xf32>
    %c10_227 = arith.constant 10 : index
    %c0_228 = arith.constant 0 : index
    %222 = vector.load %arg20[%c10_227, %c0_228] : memref<100x64xf32, #tpu.memory_space<vmem>>, vector<78x64xf32>
    %223 = arith.truncf %222 : vector<78x64xf32> to vector<78x64xbf16>
    %c2_229 = arith.constant 2 : index
    %c3_230 = arith.constant 3 : index
    %c0_231 = arith.constant 0 : index
    %c0_232 = arith.constant 0 : index
    %224 = vector.load %arg4[%c2_229, %c3_230, %c0_231, %c0_232] : memref<4x9x64x64xbf16, #tpu.memory_space<vmem>>, vector<1x1x64x64xbf16>
    %225 = vector.shape_cast %224 : vector<1x1x64x64xbf16> to vector<64x64xbf16>
    %cst_233 = arith.constant dense<0.000000e+00> : vector<78x64xf32>
    %226 = tpu.matmul %223, %225, %cst_233 {dimension_numbers = #tpu.dot_dimension_numbers<[1], [0], [0], [1], [0, 0, 1, 1], [], []>} : vector<78x64xbf16>, vector<64x64xbf16>, vector<78x64xf32> -> vector<78x64xf32>
    %227 = arith.addf %221, %226 : vector<78x64xf32>
    %c11_234 = arith.constant 11 : index
    %c0_235 = arith.constant 0 : index
    %228 = vector.load %arg20[%c11_234, %c0_235] : memref<100x64xf32, #tpu.memory_space<vmem>>, vector<78x64xf32>
    %229 = arith.truncf %228 : vector<78x64xf32> to vector<78x64xbf16>
    %c2_236 = arith.constant 2 : index
    %c4_237 = arith.constant 4 : index
    %c0_238 = arith.constant 0 : index
    %c0_239 = arith.constant 0 : index
    %230 = vector.load %arg4[%c2_236, %c4_237, %c0_238, %c0_239] : memref<4x9x64x64xbf16, #tpu.memory_space<vmem>>, vector<1x1x64x64xbf16>
    %231 = vector.shape_cast %230 : vector<1x1x64x64xbf16> to vector<64x64xbf16>
    %cst_240 = arith.constant dense<0.000000e+00> : vector<78x64xf32>
    %232 = tpu.matmul %229, %231, %cst_240 {dimension_numbers = #tpu.dot_dimension_numbers<[1], [0], [0], [1], [0, 0, 1, 1], [], []>} : vector<78x64xbf16>, vector<64x64xbf16>, vector<78x64xf32> -> vector<78x64xf32>
    %233 = arith.addf %227, %232 : vector<78x64xf32>
    %c12_241 = arith.constant 12 : index
    %c0_242 = arith.constant 0 : index
    %234 = vector.load %arg20[%c12_241, %c0_242] : memref<100x64xf32, #tpu.memory_space<vmem>>, vector<78x64xf32>
    %235 = arith.truncf %234 : vector<78x64xf32> to vector<78x64xbf16>
    %c2_243 = arith.constant 2 : index
    %c5_244 = arith.constant 5 : index
    %c0_245 = arith.constant 0 : index
    %c0_246 = arith.constant 0 : index
    %236 = vector.load %arg4[%c2_243, %c5_244, %c0_245, %c0_246] : memref<4x9x64x64xbf16, #tpu.memory_space<vmem>>, vector<1x1x64x64xbf16>
    %237 = vector.shape_cast %236 : vector<1x1x64x64xbf16> to vector<64x64xbf16>
    %cst_247 = arith.constant dense<0.000000e+00> : vector<78x64xf32>
    %238 = tpu.matmul %235, %237, %cst_247 {dimension_numbers = #tpu.dot_dimension_numbers<[1], [0], [0], [1], [0, 0, 1, 1], [], []>} : vector<78x64xbf16>, vector<64x64xbf16>, vector<78x64xf32> -> vector<78x64xf32>
    %239 = arith.addf %233, %238 : vector<78x64xf32>
    %c20_248 = arith.constant 20 : index
    %c0_249 = arith.constant 0 : index
    %240 = vector.load %arg20[%c20_248, %c0_249] : memref<100x64xf32, #tpu.memory_space<vmem>>, vector<78x64xf32>
    %241 = arith.truncf %240 : vector<78x64xf32> to vector<78x64xbf16>
    %c2_250 = arith.constant 2 : index
    %c6_251 = arith.constant 6 : index
    %c0_252 = arith.constant 0 : index
    %c0_253 = arith.constant 0 : index
    %242 = vector.load %arg4[%c2_250, %c6_251, %c0_252, %c0_253] : memref<4x9x64x64xbf16, #tpu.memory_space<vmem>>, vector<1x1x64x64xbf16>
    %243 = vector.shape_cast %242 : vector<1x1x64x64xbf16> to vector<64x64xbf16>
    %cst_254 = arith.constant dense<0.000000e+00> : vector<78x64xf32>
    %244 = tpu.matmul %241, %243, %cst_254 {dimension_numbers = #tpu.dot_dimension_numbers<[1], [0], [0], [1], [0, 0, 1, 1], [], []>} : vector<78x64xbf16>, vector<64x64xbf16>, vector<78x64xf32> -> vector<78x64xf32>
    %245 = arith.addf %239, %244 : vector<78x64xf32>
    %c21_255 = arith.constant 21 : index
    %c0_256 = arith.constant 0 : index
    %246 = vector.load %arg20[%c21_255, %c0_256] : memref<100x64xf32, #tpu.memory_space<vmem>>, vector<78x64xf32>
    %247 = arith.truncf %246 : vector<78x64xf32> to vector<78x64xbf16>
    %c2_257 = arith.constant 2 : index
    %c7_258 = arith.constant 7 : index
    %c0_259 = arith.constant 0 : index
    %c0_260 = arith.constant 0 : index
    %248 = vector.load %arg4[%c2_257, %c7_258, %c0_259, %c0_260] : memref<4x9x64x64xbf16, #tpu.memory_space<vmem>>, vector<1x1x64x64xbf16>
    %249 = vector.shape_cast %248 : vector<1x1x64x64xbf16> to vector<64x64xbf16>
    %cst_261 = arith.constant dense<0.000000e+00> : vector<78x64xf32>
    %250 = tpu.matmul %247, %249, %cst_261 {dimension_numbers = #tpu.dot_dimension_numbers<[1], [0], [0], [1], [0, 0, 1, 1], [], []>} : vector<78x64xbf16>, vector<64x64xbf16>, vector<78x64xf32> -> vector<78x64xf32>
    %251 = arith.addf %245, %250 : vector<78x64xf32>
    %c22_262 = arith.constant 22 : index
    %c0_263 = arith.constant 0 : index
    %252 = vector.load %arg20[%c22_262, %c0_263] : memref<100x64xf32, #tpu.memory_space<vmem>>, vector<78x64xf32>
    %253 = arith.truncf %252 : vector<78x64xf32> to vector<78x64xbf16>
    %c2_264 = arith.constant 2 : index
    %c8_265 = arith.constant 8 : index
    %c0_266 = arith.constant 0 : index
    %c0_267 = arith.constant 0 : index
    %254 = vector.load %arg4[%c2_264, %c8_265, %c0_266, %c0_267] : memref<4x9x64x64xbf16, #tpu.memory_space<vmem>>, vector<1x1x64x64xbf16>
    %255 = vector.shape_cast %254 : vector<1x1x64x64xbf16> to vector<64x64xbf16>
    %cst_268 = arith.constant dense<0.000000e+00> : vector<78x64xf32>
    %256 = tpu.matmul %253, %255, %cst_268 {dimension_numbers = #tpu.dot_dimension_numbers<[1], [0], [0], [1], [0, 0, 1, 1], [], []>} : vector<78x64xbf16>, vector<64x64xbf16>, vector<78x64xf32> -> vector<78x64xf32>
    %257 = arith.addf %251, %256 : vector<78x64xf32>
    %c2_269 = arith.constant 2 : index
    %c0_270 = arith.constant 0 : index
    %c0_271 = arith.constant 0 : index
    %258 = vector.load %arg5[%c2_269, %c0_270, %c0_271] : memref<4x1x64xf32, #tpu.memory_space<vmem>>, vector<1x1x64xf32>
    %259 = vector.shape_cast %258 : vector<1x1x64xf32> to vector<1x64xf32>
    %260 = vector.broadcast %259 : vector<1x64xf32> to vector<78x64xf32>
    %261 = arith.addf %257, %260 : vector<78x64xf32>
    %cst_272 = arith.constant 0.000000e+00 : f32
    %262 = vector.broadcast %cst_272 : f32 to vector<78x64xf32>
    %263 = arith.maximumf %261, %262 : vector<78x64xf32>
    %264 = vector.broadcast %10 : vector<78x1xf32> to vector<78x64xf32>
    %265 = arith.mulf %263, %264 : vector<78x64xf32>
    %c11_273 = arith.constant 11 : index
    %c0_274 = arith.constant 0 : index
    %266 = vector.load %arg21[%c11_273, %c0_274] : memref<100x64xf32, #tpu.memory_space<vmem>>, vector<78x64xf32>
    tpu.vector_store %arg21[%c11_273, %c0_274], %265 {strides = array<i32>} : memref<100x64xf32, #tpu.memory_space<vmem>>, vector<78x64xf32>,
    %c11_275 = arith.constant 11 : index
    %c0_276 = arith.constant 0 : index
    %267 = vector.load %arg20[%c11_275, %c0_276] : memref<100x64xf32, #tpu.memory_space<vmem>>, vector<78x64xf32>
    %c0_277 = arith.constant 0 : index
    %c0_278 = arith.constant 0 : index
    %268 = vector.load %arg21[%c0_277, %c0_278] : memref<100x64xf32, #tpu.memory_space<vmem>>, vector<78x64xf32>
    %269 = arith.truncf %268 : vector<78x64xf32> to vector<78x64xbf16>
    %c3_279 = arith.constant 3 : index
    %c0_280 = arith.constant 0 : index
    %c0_281 = arith.constant 0 : index
    %c0_282 = arith.constant 0 : index
    %270 = vector.load %arg4[%c3_279, %c0_280, %c0_281, %c0_282] : memref<4x9x64x64xbf16, #tpu.memory_space<vmem>>, vector<1x1x64x64xbf16>
    %271 = vector.shape_cast %270 : vector<1x1x64x64xbf16> to vector<64x64xbf16>
    %cst_283 = arith.constant dense<0.000000e+00> : vector<78x64xf32>
    %272 = tpu.matmul %269, %271, %cst_283 {dimension_numbers = #tpu.dot_dimension_numbers<[1], [0], [0], [1], [0, 0, 1, 1], [], []>} : vector<78x64xbf16>, vector<64x64xbf16>, vector<78x64xf32> -> vector<78x64xf32>
    %c1_284 = arith.constant 1 : index
    %c0_285 = arith.constant 0 : index
    %273 = vector.load %arg21[%c1_284, %c0_285] : memref<100x64xf32, #tpu.memory_space<vmem>>, vector<78x64xf32>
    %274 = arith.truncf %273 : vector<78x64xf32> to vector<78x64xbf16>
    %c3_286 = arith.constant 3 : index
    %c1_287 = arith.constant 1 : index
    %c0_288 = arith.constant 0 : index
    %c0_289 = arith.constant 0 : index
    %275 = vector.load %arg4[%c3_286, %c1_287, %c0_288, %c0_289] : memref<4x9x64x64xbf16, #tpu.memory_space<vmem>>, vector<1x1x64x64xbf16>
    %276 = vector.shape_cast %275 : vector<1x1x64x64xbf16> to vector<64x64xbf16>
    %cst_290 = arith.constant dense<0.000000e+00> : vector<78x64xf32>
    %277 = tpu.matmul %274, %276, %cst_290 {dimension_numbers = #tpu.dot_dimension_numbers<[1], [0], [0], [1], [0, 0, 1, 1], [], []>} : vector<78x64xbf16>, vector<64x64xbf16>, vector<78x64xf32> -> vector<78x64xf32>
    %278 = arith.addf %272, %277 : vector<78x64xf32>
    %c2_291 = arith.constant 2 : index
    %c0_292 = arith.constant 0 : index
    %279 = vector.load %arg21[%c2_291, %c0_292] : memref<100x64xf32, #tpu.memory_space<vmem>>, vector<78x64xf32>
    %280 = arith.truncf %279 : vector<78x64xf32> to vector<78x64xbf16>
    %c3_293 = arith.constant 3 : index
    %c2_294 = arith.constant 2 : index
    %c0_295 = arith.constant 0 : index
    %c0_296 = arith.constant 0 : index
    %281 = vector.load %arg4[%c3_293, %c2_294, %c0_295, %c0_296] : memref<4x9x64x64xbf16, #tpu.memory_space<vmem>>, vector<1x1x64x64xbf16>
    %282 = vector.shape_cast %281 : vector<1x1x64x64xbf16> to vector<64x64xbf16>
    %cst_297 = arith.constant dense<0.000000e+00> : vector<78x64xf32>
    %283 = tpu.matmul %280, %282, %cst_297 {dimension_numbers = #tpu.dot_dimension_numbers<[1], [0], [0], [1], [0, 0, 1, 1], [], []>} : vector<78x64xbf16>, vector<64x64xbf16>, vector<78x64xf32> -> vector<78x64xf32>
    %284 = arith.addf %278, %283 : vector<78x64xf32>
    %c10_298 = arith.constant 10 : index
    %c0_299 = arith.constant 0 : index
    %285 = vector.load %arg21[%c10_298, %c0_299] : memref<100x64xf32, #tpu.memory_space<vmem>>, vector<78x64xf32>
    %286 = arith.truncf %285 : vector<78x64xf32> to vector<78x64xbf16>
    %c3_300 = arith.constant 3 : index
    %c3_301 = arith.constant 3 : index
    %c0_302 = arith.constant 0 : index
    %c0_303 = arith.constant 0 : index
    %287 = vector.load %arg4[%c3_300, %c3_301, %c0_302, %c0_303] : memref<4x9x64x64xbf16, #tpu.memory_space<vmem>>, vector<1x1x64x64xbf16>
    %288 = vector.shape_cast %287 : vector<1x1x64x64xbf16> to vector<64x64xbf16>
    %cst_304 = arith.constant dense<0.000000e+00> : vector<78x64xf32>
    %289 = tpu.matmul %286, %288, %cst_304 {dimension_numbers = #tpu.dot_dimension_numbers<[1], [0], [0], [1], [0, 0, 1, 1], [], []>} : vector<78x64xbf16>, vector<64x64xbf16>, vector<78x64xf32> -> vector<78x64xf32>
    %290 = arith.addf %284, %289 : vector<78x64xf32>
    %c11_305 = arith.constant 11 : index
    %c0_306 = arith.constant 0 : index
    %291 = vector.load %arg21[%c11_305, %c0_306] : memref<100x64xf32, #tpu.memory_space<vmem>>, vector<78x64xf32>
    %292 = arith.truncf %291 : vector<78x64xf32> to vector<78x64xbf16>
    %c3_307 = arith.constant 3 : index
    %c4_308 = arith.constant 4 : index
    %c0_309 = arith.constant 0 : index
    %c0_310 = arith.constant 0 : index
    %293 = vector.load %arg4[%c3_307, %c4_308, %c0_309, %c0_310] : memref<4x9x64x64xbf16, #tpu.memory_space<vmem>>, vector<1x1x64x64xbf16>
    %294 = vector.shape_cast %293 : vector<1x1x64x64xbf16> to vector<64x64xbf16>
    %cst_311 = arith.constant dense<0.000000e+00> : vector<78x64xf32>
    %295 = tpu.matmul %292, %294, %cst_311 {dimension_numbers = #tpu.dot_dimension_numbers<[1], [0], [0], [1], [0, 0, 1, 1], [], []>} : vector<78x64xbf16>, vector<64x64xbf16>, vector<78x64xf32> -> vector<78x64xf32>
    %296 = arith.addf %290, %295 : vector<78x64xf32>
    %c12_312 = arith.constant 12 : index
    %c0_313 = arith.constant 0 : index
    %297 = vector.load %arg21[%c12_312, %c0_313] : memref<100x64xf32, #tpu.memory_space<vmem>>, vector<78x64xf32>
    %298 = arith.truncf %297 : vector<78x64xf32> to vector<78x64xbf16>
    %c3_314 = arith.constant 3 : index
    %c5_315 = arith.constant 5 : index
    %c0_316 = arith.constant 0 : index
    %c0_317 = arith.constant 0 : index
    %299 = vector.load %arg4[%c3_314, %c5_315, %c0_316, %c0_317] : memref<4x9x64x64xbf16, #tpu.memory_space<vmem>>, vector<1x1x64x64xbf16>
    %300 = vector.shape_cast %299 : vector<1x1x64x64xbf16> to vector<64x64xbf16>
    %cst_318 = arith.constant dense<0.000000e+00> : vector<78x64xf32>
    %301 = tpu.matmul %298, %300, %cst_318 {dimension_numbers = #tpu.dot_dimension_numbers<[1], [0], [0], [1], [0, 0, 1, 1], [], []>} : vector<78x64xbf16>, vector<64x64xbf16>, vector<78x64xf32> -> vector<78x64xf32>
    %302 = arith.addf %296, %301 : vector<78x64xf32>
    %c20_319 = arith.constant 20 : index
    %c0_320 = arith.constant 0 : index
    %303 = vector.load %arg21[%c20_319, %c0_320] : memref<100x64xf32, #tpu.memory_space<vmem>>, vector<78x64xf32>
    %304 = arith.truncf %303 : vector<78x64xf32> to vector<78x64xbf16>
    %c3_321 = arith.constant 3 : index
    %c6_322 = arith.constant 6 : index
    %c0_323 = arith.constant 0 : index
    %c0_324 = arith.constant 0 : index
    %305 = vector.load %arg4[%c3_321, %c6_322, %c0_323, %c0_324] : memref<4x9x64x64xbf16, #tpu.memory_space<vmem>>, vector<1x1x64x64xbf16>
    %306 = vector.shape_cast %305 : vector<1x1x64x64xbf16> to vector<64x64xbf16>
    %cst_325 = arith.constant dense<0.000000e+00> : vector<78x64xf32>
    %307 = tpu.matmul %304, %306, %cst_325 {dimension_numbers = #tpu.dot_dimension_numbers<[1], [0], [0], [1], [0, 0, 1, 1], [], []>} : vector<78x64xbf16>, vector<64x64xbf16>, vector<78x64xf32> -> vector<78x64xf32>
    %308 = arith.addf %302, %307 : vector<78x64xf32>
    %c21_326 = arith.constant 21 : index
    %c0_327 = arith.constant 0 : index
    %309 = vector.load %arg21[%c21_326, %c0_327] : memref<100x64xf32, #tpu.memory_space<vmem>>, vector<78x64xf32>
    %310 = arith.truncf %309 : vector<78x64xf32> to vector<78x64xbf16>
    %c3_328 = arith.constant 3 : index
    %c7_329 = arith.constant 7 : index
    %c0_330 = arith.constant 0 : index
    %c0_331 = arith.constant 0 : index
    %311 = vector.load %arg4[%c3_328, %c7_329, %c0_330, %c0_331] : memref<4x9x64x64xbf16, #tpu.memory_space<vmem>>, vector<1x1x64x64xbf16>
    %312 = vector.shape_cast %311 : vector<1x1x64x64xbf16> to vector<64x64xbf16>
    %cst_332 = arith.constant dense<0.000000e+00> : vector<78x64xf32>
    %313 = tpu.matmul %310, %312, %cst_332 {dimension_numbers = #tpu.dot_dimension_numbers<[1], [0], [0], [1], [0, 0, 1, 1], [], []>} : vector<78x64xbf16>, vector<64x64xbf16>, vector<78x64xf32> -> vector<78x64xf32>
    %314 = arith.addf %308, %313 : vector<78x64xf32>
    %c22_333 = arith.constant 22 : index
    %c0_334 = arith.constant 0 : index
    %315 = vector.load %arg21[%c22_333, %c0_334] : memref<100x64xf32, #tpu.memory_space<vmem>>, vector<78x64xf32>
    %316 = arith.truncf %315 : vector<78x64xf32> to vector<78x64xbf16>
    %c3_335 = arith.constant 3 : index
    %c8_336 = arith.constant 8 : index
    %c0_337 = arith.constant 0 : index
    %c0_338 = arith.constant 0 : index
    %317 = vector.load %arg4[%c3_335, %c8_336, %c0_337, %c0_338] : memref<4x9x64x64xbf16, #tpu.memory_space<vmem>>, vector<1x1x64x64xbf16>
    %318 = vector.shape_cast %317 : vector<1x1x64x64xbf16> to vector<64x64xbf16>
    %cst_339 = arith.constant dense<0.000000e+00> : vector<78x64xf32>
    %319 = tpu.matmul %316, %318, %cst_339 {dimension_numbers = #tpu.dot_dimension_numbers<[1], [0], [0], [1], [0, 0, 1, 1], [], []>} : vector<78x64xbf16>, vector<64x64xbf16>, vector<78x64xf32> -> vector<78x64xf32>
    %320 = arith.addf %314, %319 : vector<78x64xf32>
    %c3_340 = arith.constant 3 : index
    %c0_341 = arith.constant 0 : index
    %c0_342 = arith.constant 0 : index
    %321 = vector.load %arg5[%c3_340, %c0_341, %c0_342] : memref<4x1x64xf32, #tpu.memory_space<vmem>>, vector<1x1x64xf32>
    %322 = vector.shape_cast %321 : vector<1x1x64xf32> to vector<1x64xf32>
    %323 = vector.broadcast %322 : vector<1x64xf32> to vector<78x64xf32>
    %324 = arith.addf %320, %323 : vector<78x64xf32>
    %325 = arith.addf %324, %267 : vector<78x64xf32>
    %cst_343 = arith.constant 0.000000e+00 : f32
    %326 = vector.broadcast %cst_343 : f32 to vector<78x64xf32>
    %327 = arith.maximumf %325, %326 : vector<78x64xf32>
    %328 = vector.broadcast %10 : vector<78x1xf32> to vector<78x64xf32>
    %329 = arith.mulf %327, %328 : vector<78x64xf32>
    %c11_344 = arith.constant 11 : index
    %c0_345 = arith.constant 0 : index
    %330 = vector.load %arg20[%c11_344, %c0_345] : memref<100x64xf32, #tpu.memory_space<vmem>>, vector<78x64xf32>
    tpu.vector_store %arg20[%c11_344, %c0_345], %329 {strides = array<i32>} : memref<100x64xf32, #tpu.memory_space<vmem>>, vector<78x64xf32>,
    %c0_346 = arith.constant 0 : index
    %c0_347 = arith.constant 0 : index
    %331 = vector.load %arg20[%c0_346, %c0_347] : memref<100x64xf32, #tpu.memory_space<vmem>>, vector<78x64xf32>
    %332 = arith.truncf %331 : vector<78x64xf32> to vector<78x64xbf16>
    %c0_348 = arith.constant 0 : index
    %c0_349 = arith.constant 0 : index
    %c0_350 = arith.constant 0 : index
    %333 = vector.load %arg6[%c0_348, %c0_349, %c0_350] : memref<9x64x128xbf16, #tpu.memory_space<vmem>>, vector<1x64x128xbf16>
    %334 = vector.shape_cast %333 : vector<1x64x128xbf16> to vector<64x128xbf16>
    %cst_351 = arith.constant dense<0.000000e+00> : vector<78x128xf32>
    %335 = tpu.matmul %332, %334, %cst_351 {dimension_numbers = #tpu.dot_dimension_numbers<[1], [0], [0], [1], [0, 0, 1, 1], [], []>} : vector<78x64xbf16>, vector<64x128xbf16>, vector<78x128xf32> -> vector<78x128xf32>
    %c1_352 = arith.constant 1 : index
    %c0_353 = arith.constant 0 : index
    %336 = vector.load %arg20[%c1_352, %c0_353] : memref<100x64xf32, #tpu.memory_space<vmem>>, vector<78x64xf32>
    %337 = arith.truncf %336 : vector<78x64xf32> to vector<78x64xbf16>
    %c1_354 = arith.constant 1 : index
    %c0_355 = arith.constant 0 : index
    %c0_356 = arith.constant 0 : index
    %338 = vector.load %arg6[%c1_354, %c0_355, %c0_356] : memref<9x64x128xbf16, #tpu.memory_space<vmem>>, vector<1x64x128xbf16>
    %339 = vector.shape_cast %338 : vector<1x64x128xbf16> to vector<64x128xbf16>
    %cst_357 = arith.constant dense<0.000000e+00> : vector<78x128xf32>
    %340 = tpu.matmul %337, %339, %cst_357 {dimension_numbers = #tpu.dot_dimension_numbers<[1], [0], [0], [1], [0, 0, 1, 1], [], []>} : vector<78x64xbf16>, vector<64x128xbf16>, vector<78x128xf32> -> vector<78x128xf32>
    %341 = arith.addf %335, %340 : vector<78x128xf32>
    %c2_358 = arith.constant 2 : index
    %c0_359 = arith.constant 0 : index
    %342 = vector.load %arg20[%c2_358, %c0_359] : memref<100x64xf32, #tpu.memory_space<vmem>>, vector<78x64xf32>
    %343 = arith.truncf %342 : vector<78x64xf32> to vector<78x64xbf16>
    %c2_360 = arith.constant 2 : index
    %c0_361 = arith.constant 0 : index
    %c0_362 = arith.constant 0 : index
    %344 = vector.load %arg6[%c2_360, %c0_361, %c0_362] : memref<9x64x128xbf16, #tpu.memory_space<vmem>>, vector<1x64x128xbf16>
    %345 = vector.shape_cast %344 : vector<1x64x128xbf16> to vector<64x128xbf16>
    %cst_363 = arith.constant dense<0.000000e+00> : vector<78x128xf32>
    %346 = tpu.matmul %343, %345, %cst_363 {dimension_numbers = #tpu.dot_dimension_numbers<[1], [0], [0], [1], [0, 0, 1, 1], [], []>} : vector<78x64xbf16>, vector<64x128xbf16>, vector<78x128xf32> -> vector<78x128xf32>
    %347 = arith.addf %341, %346 : vector<78x128xf32>
    %c10_364 = arith.constant 10 : index
    %c0_365 = arith.constant 0 : index
    %348 = vector.load %arg20[%c10_364, %c0_365] : memref<100x64xf32, #tpu.memory_space<vmem>>, vector<78x64xf32>
    %349 = arith.truncf %348 : vector<78x64xf32> to vector<78x64xbf16>
    %c3_366 = arith.constant 3 : index
    %c0_367 = arith.constant 0 : index
    %c0_368 = arith.constant 0 : index
    %350 = vector.load %arg6[%c3_366, %c0_367, %c0_368] : memref<9x64x128xbf16, #tpu.memory_space<vmem>>, vector<1x64x128xbf16>
    %351 = vector.shape_cast %350 : vector<1x64x128xbf16> to vector<64x128xbf16>
    %cst_369 = arith.constant dense<0.000000e+00> : vector<78x128xf32>
    %352 = tpu.matmul %349, %351, %cst_369 {dimension_numbers = #tpu.dot_dimension_numbers<[1], [0], [0], [1], [0, 0, 1, 1], [], []>} : vector<78x64xbf16>, vector<64x128xbf16>, vector<78x128xf32> -> vector<78x128xf32>
    %353 = arith.addf %347, %352 : vector<78x128xf32>
    %c11_370 = arith.constant 11 : index
    %c0_371 = arith.constant 0 : index
    %354 = vector.load %arg20[%c11_370, %c0_371] : memref<100x64xf32, #tpu.memory_space<vmem>>, vector<78x64xf32>
    %355 = arith.truncf %354 : vector<78x64xf32> to vector<78x64xbf16>
    %c4_372 = arith.constant 4 : index
    %c0_373 = arith.constant 0 : index
    %c0_374 = arith.constant 0 : index
    %356 = vector.load %arg6[%c4_372, %c0_373, %c0_374] : memref<9x64x128xbf16, #tpu.memory_space<vmem>>, vector<1x64x128xbf16>
    %357 = vector.shape_cast %356 : vector<1x64x128xbf16> to vector<64x128xbf16>
    %cst_375 = arith.constant dense<0.000000e+00> : vector<78x128xf32>
    %358 = tpu.matmul %355, %357, %cst_375 {dimension_numbers = #tpu.dot_dimension_numbers<[1], [0], [0], [1], [0, 0, 1, 1], [], []>} : vector<78x64xbf16>, vector<64x128xbf16>, vector<78x128xf32> -> vector<78x128xf32>
    %359 = arith.addf %353, %358 : vector<78x128xf32>
    %c12_376 = arith.constant 12 : index
    %c0_377 = arith.constant 0 : index
    %360 = vector.load %arg20[%c12_376, %c0_377] : memref<100x64xf32, #tpu.memory_space<vmem>>, vector<78x64xf32>
    %361 = arith.truncf %360 : vector<78x64xf32> to vector<78x64xbf16>
    %c5_378 = arith.constant 5 : index
    %c0_379 = arith.constant 0 : index
    %c0_380 = arith.constant 0 : index
    %362 = vector.load %arg6[%c5_378, %c0_379, %c0_380] : memref<9x64x128xbf16, #tpu.memory_space<vmem>>, vector<1x64x128xbf16>
    %363 = vector.shape_cast %362 : vector<1x64x128xbf16> to vector<64x128xbf16>
    %cst_381 = arith.constant dense<0.000000e+00> : vector<78x128xf32>
    %364 = tpu.matmul %361, %363, %cst_381 {dimension_numbers = #tpu.dot_dimension_numbers<[1], [0], [0], [1], [0, 0, 1, 1], [], []>} : vector<78x64xbf16>, vector<64x128xbf16>, vector<78x128xf32> -> vector<78x128xf32>
    %365 = arith.addf %359, %364 : vector<78x128xf32>
    %c20_382 = arith.constant 20 : index
    %c0_383 = arith.constant 0 : index
    %366 = vector.load %arg20[%c20_382, %c0_383] : memref<100x64xf32, #tpu.memory_space<vmem>>, vector<78x64xf32>
    %367 = arith.truncf %366 : vector<78x64xf32> to vector<78x64xbf16>
    %c6_384 = arith.constant 6 : index
    %c0_385 = arith.constant 0 : index
    %c0_386 = arith.constant 0 : index
    %368 = vector.load %arg6[%c6_384, %c0_385, %c0_386] : memref<9x64x128xbf16, #tpu.memory_space<vmem>>, vector<1x64x128xbf16>
    %369 = vector.shape_cast %368 : vector<1x64x128xbf16> to vector<64x128xbf16>
    %cst_387 = arith.constant dense<0.000000e+00> : vector<78x128xf32>
    %370 = tpu.matmul %367, %369, %cst_387 {dimension_numbers = #tpu.dot_dimension_numbers<[1], [0], [0], [1], [0, 0, 1, 1], [], []>} : vector<78x64xbf16>, vector<64x128xbf16>, vector<78x128xf32> -> vector<78x128xf32>
    %371 = arith.addf %365, %370 : vector<78x128xf32>
    %c21_388 = arith.constant 21 : index
    %c0_389 = arith.constant 0 : index
    %372 = vector.load %arg20[%c21_388, %c0_389] : memref<100x64xf32, #tpu.memory_space<vmem>>, vector<78x64xf32>
    %373 = arith.truncf %372 : vector<78x64xf32> to vector<78x64xbf16>
    %c7_390 = arith.constant 7 : index
    %c0_391 = arith.constant 0 : index
    %c0_392 = arith.constant 0 : index
    %374 = vector.load %arg6[%c7_390, %c0_391, %c0_392] : memref<9x64x128xbf16, #tpu.memory_space<vmem>>, vector<1x64x128xbf16>
    %375 = vector.shape_cast %374 : vector<1x64x128xbf16> to vector<64x128xbf16>
    %cst_393 = arith.constant dense<0.000000e+00> : vector<78x128xf32>
    %376 = tpu.matmul %373, %375, %cst_393 {dimension_numbers = #tpu.dot_dimension_numbers<[1], [0], [0], [1], [0, 0, 1, 1], [], []>} : vector<78x64xbf16>, vector<64x128xbf16>, vector<78x128xf32> -> vector<78x128xf32>
    %377 = arith.addf %371, %376 : vector<78x128xf32>
    %c22_394 = arith.constant 22 : index
    %c0_395 = arith.constant 0 : index
    %378 = vector.load %arg20[%c22_394, %c0_395] : memref<100x64xf32, #tpu.memory_space<vmem>>, vector<78x64xf32>
    %379 = arith.truncf %378 : vector<78x64xf32> to vector<78x64xbf16>
    %c8_396 = arith.constant 8 : index
    %c0_397 = arith.constant 0 : index
    %c0_398 = arith.constant 0 : index
    %380 = vector.load %arg6[%c8_396, %c0_397, %c0_398] : memref<9x64x128xbf16, #tpu.memory_space<vmem>>, vector<1x64x128xbf16>
    %381 = vector.shape_cast %380 : vector<1x64x128xbf16> to vector<64x128xbf16>
    %cst_399 = arith.constant dense<0.000000e+00> : vector<78x128xf32>
    %382 = tpu.matmul %379, %381, %cst_399 {dimension_numbers = #tpu.dot_dimension_numbers<[1], [0], [0], [1], [0, 0, 1, 1], [], []>} : vector<78x64xbf16>, vector<64x128xbf16>, vector<78x128xf32> -> vector<78x128xf32>
    %383 = arith.addf %377, %382 : vector<78x128xf32>
    %c0_400 = arith.constant 0 : index
    %c0_401 = arith.constant 0 : index
    %384 = vector.load %arg7[%c0_400, %c0_401] : memref<1x128xf32, #tpu.memory_space<vmem>>, vector<1x128xf32>
    %385 = vector.broadcast %384 : vector<1x128xf32> to vector<78x128xf32>
    %386 = arith.addf %383, %385 : vector<78x128xf32>
    %cst_402 = arith.constant 0.000000e+00 : f32
    %387 = vector.broadcast %cst_402 : f32 to vector<78x128xf32>
    %388 = arith.maximumf %386, %387 : vector<78x128xf32>
    %c0_403 = arith.constant 0 : index
    %c0_404 = arith.constant 0 : index
    %389 = vector.load %arg22[%c0_403, %c0_404] : memref<78x128xf32, #tpu.memory_space<vmem>>, vector<78x128xf32>
    tpu.vector_store %arg22[%c0_403, %c0_404], %388 {strides = array<i32>} : memref<78x128xf32, #tpu.memory_space<vmem>>, vector<78x128xf32>,
    %c0_405 = arith.constant 0 : index
    %c0_406 = arith.constant 0 : index
    %390 = tpu.strided_load %arg22[%c0_405, %c0_406] {strides = array<i32: 2, 1>} : memref<78x128xf32, #tpu.memory_space<vmem>>, vector<4x128xf32>
    %c7_407 = arith.constant 7 : index
    %c0_408 = arith.constant 0 : index
    %391 = vector.load %arg24[%c7_407, %c0_408] : memref<36x128xf32, #tpu.memory_space<vmem>>, vector<4x128xf32>
    tpu.vector_store %arg24[%c7_407, %c0_408], %390 {strides = array<i32>} : memref<36x128xf32, #tpu.memory_space<vmem>>, vector<4x128xf32>,
    %c11_409 = arith.constant 11 : index
    %c0_410 = arith.constant 0 : index
    %392 = tpu.strided_load %arg20[%c11_409, %c0_410] {strides = array<i32: 2, 1>} : memref<100x64xf32, #tpu.memory_space<vmem>>, vector<4x64xf32>
    %393 = arith.truncf %392 : vector<4x64xf32> to vector<4x64xbf16>
    %c0_411 = arith.constant 0 : index
    %c0_412 = arith.constant 0 : index
    %394 = vector.load %arg8[%c0_411, %c0_412] : memref<64x128xbf16, #tpu.memory_space<vmem>>, vector<64x128xbf16>
    %cst_413 = arith.constant dense<0.000000e+00> : vector<4x128xf32>
    %395 = tpu.matmul %393, %394, %cst_413 {dimension_numbers = #tpu.dot_dimension_numbers<[1], [0], [0], [1], [0, 0, 1, 1], [], []>} : vector<4x64xbf16>, vector<64x128xbf16>, vector<4x128xf32> -> vector<4x128xf32>
    %c0_414 = arith.constant 0 : index
    %c0_415 = arith.constant 0 : index
    %396 = vector.load %arg9[%c0_414, %c0_415] : memref<1x128xf32, #tpu.memory_space<vmem>>, vector<1x128xf32>
    %397 = vector.broadcast %396 : vector<1x128xf32> to vector<4x128xf32>
    %398 = arith.addf %395, %397 : vector<4x128xf32>
    %c7_416 = arith.constant 7 : index
    %c0_417 = arith.constant 0 : index
    %399 = vector.load %arg25[%c7_416, %c0_417] : memref<36x128xf32, #tpu.memory_space<vmem>>, vector<4x128xf32>
    tpu.vector_store %arg25[%c7_416, %c0_417], %398 {strides = array<i32>} : memref<36x128xf32, #tpu.memory_space<vmem>>, vector<4x128xf32>,
    %c20_418 = arith.constant 20 : index
    %c0_419 = arith.constant 0 : index
    %400 = tpu.strided_load %arg22[%c20_418, %c0_419] {strides = array<i32: 2, 1>} : memref<78x128xf32, #tpu.memory_space<vmem>>, vector<4x128xf32>
    %c13 = arith.constant 13 : index
    %c0_420 = arith.constant 0 : index
    %401 = vector.load %arg24[%c13, %c0_420] : memref<36x128xf32, #tpu.memory_space<vmem>>, vector<4x128xf32>
    tpu.vector_store %arg24[%c13, %c0_420], %400 {strides = array<i32>} : memref<36x128xf32, #tpu.memory_space<vmem>>, vector<4x128xf32>,
    %c31_421 = arith.constant 31 : index
    %c0_422 = arith.constant 0 : index
    %402 = tpu.strided_load %arg20[%c31_421, %c0_422] {strides = array<i32: 2, 1>} : memref<100x64xf32, #tpu.memory_space<vmem>>, vector<4x64xf32>
    %403 = arith.truncf %402 : vector<4x64xf32> to vector<4x64xbf16>
    %c0_423 = arith.constant 0 : index
    %c0_424 = arith.constant 0 : index
    %404 = vector.load %arg8[%c0_423, %c0_424] : memref<64x128xbf16, #tpu.memory_space<vmem>>, vector<64x128xbf16>
    %cst_425 = arith.constant dense<0.000000e+00> : vector<4x128xf32>
    %405 = tpu.matmul %403, %404, %cst_425 {dimension_numbers = #tpu.dot_dimension_numbers<[1], [0], [0], [1], [0, 0, 1, 1], [], []>} : vector<4x64xbf16>, vector<64x128xbf16>, vector<4x128xf32> -> vector<4x128xf32>
    %c0_426 = arith.constant 0 : index
    %c0_427 = arith.constant 0 : index
    %406 = vector.load %arg9[%c0_426, %c0_427] : memref<1x128xf32, #tpu.memory_space<vmem>>, vector<1x128xf32>
    %407 = vector.broadcast %406 : vector<1x128xf32> to vector<4x128xf32>
    %408 = arith.addf %405, %407 : vector<4x128xf32>
    %c13_428 = arith.constant 13 : index
    %c0_429 = arith.constant 0 : index
    %409 = vector.load %arg25[%c13_428, %c0_429] : memref<36x128xf32, #tpu.memory_space<vmem>>, vector<4x128xf32>
    tpu.vector_store %arg25[%c13_428, %c0_429], %408 {strides = array<i32>} : memref<36x128xf32, #tpu.memory_space<vmem>>, vector<4x128xf32>,
    %c40 = arith.constant 40 : index
    %c0_430 = arith.constant 0 : index
    %410 = tpu.strided_load %arg22[%c40, %c0_430] {strides = array<i32: 2, 1>} : memref<78x128xf32, #tpu.memory_space<vmem>>, vector<4x128xf32>
    %c19 = arith.constant 19 : index
    %c0_431 = arith.constant 0 : index
    %411 = vector.load %arg24[%c19, %c0_431] : memref<36x128xf32, #tpu.memory_space<vmem>>, vector<4x128xf32>
    tpu.vector_store %arg24[%c19, %c0_431], %410 {strides = array<i32>} : memref<36x128xf32, #tpu.memory_space<vmem>>, vector<4x128xf32>,
    %c51_432 = arith.constant 51 : index
    %c0_433 = arith.constant 0 : index
    %412 = tpu.strided_load %arg20[%c51_432, %c0_433] {strides = array<i32: 2, 1>} : memref<100x64xf32, #tpu.memory_space<vmem>>, vector<4x64xf32>
    %413 = arith.truncf %412 : vector<4x64xf32> to vector<4x64xbf16>
    %c0_434 = arith.constant 0 : index
    %c0_435 = arith.constant 0 : index
    %414 = vector.load %arg8[%c0_434, %c0_435] : memref<64x128xbf16, #tpu.memory_space<vmem>>, vector<64x128xbf16>
    %cst_436 = arith.constant dense<0.000000e+00> : vector<4x128xf32>
    %415 = tpu.matmul %413, %414, %cst_436 {dimension_numbers = #tpu.dot_dimension_numbers<[1], [0], [0], [1], [0, 0, 1, 1], [], []>} : vector<4x64xbf16>, vector<64x128xbf16>, vector<4x128xf32> -> vector<4x128xf32>
    %c0_437 = arith.constant 0 : index
    %c0_438 = arith.constant 0 : index
    %416 = vector.load %arg9[%c0_437, %c0_438] : memref<1x128xf32, #tpu.memory_space<vmem>>, vector<1x128xf32>
    %417 = vector.broadcast %416 : vector<1x128xf32> to vector<4x128xf32>
    %418 = arith.addf %415, %417 : vector<4x128xf32>
    %c19_439 = arith.constant 19 : index
    %c0_440 = arith.constant 0 : index
    %419 = vector.load %arg25[%c19_439, %c0_440] : memref<36x128xf32, #tpu.memory_space<vmem>>, vector<4x128xf32>
    tpu.vector_store %arg25[%c19_439, %c0_440], %418 {strides = array<i32>} : memref<36x128xf32, #tpu.memory_space<vmem>>, vector<4x128xf32>,
    %c60 = arith.constant 60 : index
    %c0_441 = arith.constant 0 : index
    %420 = tpu.strided_load %arg22[%c60, %c0_441] {strides = array<i32: 2, 1>} : memref<78x128xf32, #tpu.memory_space<vmem>>, vector<4x128xf32>
    %c25 = arith.constant 25 : index
    %c0_442 = arith.constant 0 : index
    %421 = vector.load %arg24[%c25, %c0_442] : memref<36x128xf32, #tpu.memory_space<vmem>>, vector<4x128xf32>
    tpu.vector_store %arg24[%c25, %c0_442], %420 {strides = array<i32>} : memref<36x128xf32, #tpu.memory_space<vmem>>, vector<4x128xf32>,
    %c71_443 = arith.constant 71 : index
    %c0_444 = arith.constant 0 : index
    %422 = tpu.strided_load %arg20[%c71_443, %c0_444] {strides = array<i32: 2, 1>} : memref<100x64xf32, #tpu.memory_space<vmem>>, vector<4x64xf32>
    %423 = arith.truncf %422 : vector<4x64xf32> to vector<4x64xbf16>
    %c0_445 = arith.constant 0 : index
    %c0_446 = arith.constant 0 : index
    %424 = vector.load %arg8[%c0_445, %c0_446] : memref<64x128xbf16, #tpu.memory_space<vmem>>, vector<64x128xbf16>
    %cst_447 = arith.constant dense<0.000000e+00> : vector<4x128xf32>
    %425 = tpu.matmul %423, %424, %cst_447 {dimension_numbers = #tpu.dot_dimension_numbers<[1], [0], [0], [1], [0, 0, 1, 1], [], []>} : vector<4x64xbf16>, vector<64x128xbf16>, vector<4x128xf32> -> vector<4x128xf32>
    %c0_448 = arith.constant 0 : index
    %c0_449 = arith.constant 0 : index
    %426 = vector.load %arg9[%c0_448, %c0_449] : memref<1x128xf32, #tpu.memory_space<vmem>>, vector<1x128xf32>
    %427 = vector.broadcast %426 : vector<1x128xf32> to vector<4x128xf32>
    %428 = arith.addf %425, %427 : vector<4x128xf32>
    %c25_450 = arith.constant 25 : index
    %c0_451 = arith.constant 0 : index
    %429 = vector.load %arg25[%c25_450, %c0_451] : memref<36x128xf32, #tpu.memory_space<vmem>>, vector<4x128xf32>
    tpu.vector_store %arg25[%c25_450, %c0_451], %428 {strides = array<i32>} : memref<36x128xf32, #tpu.memory_space<vmem>>, vector<4x128xf32>,
    %c7_452 = arith.constant 7 : index
    %c0_453 = arith.constant 0 : index
    %430 = vector.load %arg25[%c7_452, %c0_453] : memref<36x128xf32, #tpu.memory_space<vmem>>, vector<22x128xf32>
    %c0_454 = arith.constant 0 : index
    %c0_455 = arith.constant 0 : index
    %431 = vector.load %arg24[%c0_454, %c0_455] : memref<36x128xf32, #tpu.memory_space<vmem>>, vector<22x128xf32>
    %432 = arith.truncf %431 : vector<22x128xf32> to vector<22x128xbf16>
    %c0_456 = arith.constant 0 : index
    %c0_457 = arith.constant 0 : index
    %c0_458 = arith.constant 0 : index
    %c0_459 = arith.constant 0 : index
    %433 = vector.load %arg10[%c0_456, %c0_457, %c0_458, %c0_459] : memref<3x9x128x128xbf16, #tpu.memory_space<vmem>>, vector<1x1x128x128xbf16>
    %434 = vector.shape_cast %433 : vector<1x1x128x128xbf16> to vector<128x128xbf16>
    %cst_460 = arith.constant dense<0.000000e+00> : vector<22x128xf32>
    %435 = tpu.matmul %432, %434, %cst_460 {dimension_numbers = #tpu.dot_dimension_numbers<[1], [0], [0], [1], [0, 0, 1, 1], [], []>} : vector<22x128xbf16>, vector<128x128xbf16>, vector<22x128xf32> -> vector<22x128xf32>
    %c1_461 = arith.constant 1 : index
    %c0_462 = arith.constant 0 : index
    %436 = vector.load %arg24[%c1_461, %c0_462] : memref<36x128xf32, #tpu.memory_space<vmem>>, vector<22x128xf32>
    %437 = arith.truncf %436 : vector<22x128xf32> to vector<22x128xbf16>
    %c0_463 = arith.constant 0 : index
    %c1_464 = arith.constant 1 : index
    %c0_465 = arith.constant 0 : index
    %c0_466 = arith.constant 0 : index
    %438 = vector.load %arg10[%c0_463, %c1_464, %c0_465, %c0_466] : memref<3x9x128x128xbf16, #tpu.memory_space<vmem>>, vector<1x1x128x128xbf16>
    %439 = vector.shape_cast %438 : vector<1x1x128x128xbf16> to vector<128x128xbf16>
    %cst_467 = arith.constant dense<0.000000e+00> : vector<22x128xf32>
    %440 = tpu.matmul %437, %439, %cst_467 {dimension_numbers = #tpu.dot_dimension_numbers<[1], [0], [0], [1], [0, 0, 1, 1], [], []>} : vector<22x128xbf16>, vector<128x128xbf16>, vector<22x128xf32> -> vector<22x128xf32>
    %441 = arith.addf %435, %440 : vector<22x128xf32>
    %c2_468 = arith.constant 2 : index
    %c0_469 = arith.constant 0 : index
    %442 = vector.load %arg24[%c2_468, %c0_469] : memref<36x128xf32, #tpu.memory_space<vmem>>, vector<22x128xf32>
    %443 = arith.truncf %442 : vector<22x128xf32> to vector<22x128xbf16>
    %c0_470 = arith.constant 0 : index
    %c2_471 = arith.constant 2 : index
    %c0_472 = arith.constant 0 : index
    %c0_473 = arith.constant 0 : index
    %444 = vector.load %arg10[%c0_470, %c2_471, %c0_472, %c0_473] : memref<3x9x128x128xbf16, #tpu.memory_space<vmem>>, vector<1x1x128x128xbf16>
    %445 = vector.shape_cast %444 : vector<1x1x128x128xbf16> to vector<128x128xbf16>
    %cst_474 = arith.constant dense<0.000000e+00> : vector<22x128xf32>
    %446 = tpu.matmul %443, %445, %cst_474 {dimension_numbers = #tpu.dot_dimension_numbers<[1], [0], [0], [1], [0, 0, 1, 1], [], []>} : vector<22x128xbf16>, vector<128x128xbf16>, vector<22x128xf32> -> vector<22x128xf32>
    %447 = arith.addf %441, %446 : vector<22x128xf32>
    %c6_475 = arith.constant 6 : index
    %c0_476 = arith.constant 0 : index
    %448 = vector.load %arg24[%c6_475, %c0_476] : memref<36x128xf32, #tpu.memory_space<vmem>>, vector<22x128xf32>
    %449 = arith.truncf %448 : vector<22x128xf32> to vector<22x128xbf16>
    %c0_477 = arith.constant 0 : index
    %c3_478 = arith.constant 3 : index
    %c0_479 = arith.constant 0 : index
    %c0_480 = arith.constant 0 : index
    %450 = vector.load %arg10[%c0_477, %c3_478, %c0_479, %c0_480] : memref<3x9x128x128xbf16, #tpu.memory_space<vmem>>, vector<1x1x128x128xbf16>
    %451 = vector.shape_cast %450 : vector<1x1x128x128xbf16> to vector<128x128xbf16>
    %cst_481 = arith.constant dense<0.000000e+00> : vector<22x128xf32>
    %452 = tpu.matmul %449, %451, %cst_481 {dimension_numbers = #tpu.dot_dimension_numbers<[1], [0], [0], [1], [0, 0, 1, 1], [], []>} : vector<22x128xbf16>, vector<128x128xbf16>, vector<22x128xf32> -> vector<22x128xf32>
    %453 = arith.addf %447, %452 : vector<22x128xf32>
    %c7_482 = arith.constant 7 : index
    %c0_483 = arith.constant 0 : index
    %454 = vector.load %arg24[%c7_482, %c0_483] : memref<36x128xf32, #tpu.memory_space<vmem>>, vector<22x128xf32>
    %455 = arith.truncf %454 : vector<22x128xf32> to vector<22x128xbf16>
    %c0_484 = arith.constant 0 : index
    %c4_485 = arith.constant 4 : index
    %c0_486 = arith.constant 0 : index
    %c0_487 = arith.constant 0 : index
    %456 = vector.load %arg10[%c0_484, %c4_485, %c0_486, %c0_487] : memref<3x9x128x128xbf16, #tpu.memory_space<vmem>>, vector<1x1x128x128xbf16>
    %457 = vector.shape_cast %456 : vector<1x1x128x128xbf16> to vector<128x128xbf16>
    %cst_488 = arith.constant dense<0.000000e+00> : vector<22x128xf32>
    %458 = tpu.matmul %455, %457, %cst_488 {dimension_numbers = #tpu.dot_dimension_numbers<[1], [0], [0], [1], [0, 0, 1, 1], [], []>} : vector<22x128xbf16>, vector<128x128xbf16>, vector<22x128xf32> -> vector<22x128xf32>
    %459 = arith.addf %453, %458 : vector<22x128xf32>
    %c8_489 = arith.constant 8 : index
    %c0_490 = arith.constant 0 : index
    %460 = vector.load %arg24[%c8_489, %c0_490] : memref<36x128xf32, #tpu.memory_space<vmem>>, vector<22x128xf32>
    %461 = arith.truncf %460 : vector<22x128xf32> to vector<22x128xbf16>
    %c0_491 = arith.constant 0 : index
    %c5_492 = arith.constant 5 : index
    %c0_493 = arith.constant 0 : index
    %c0_494 = arith.constant 0 : index
    %462 = vector.load %arg10[%c0_491, %c5_492, %c0_493, %c0_494] : memref<3x9x128x128xbf16, #tpu.memory_space<vmem>>, vector<1x1x128x128xbf16>
    %463 = vector.shape_cast %462 : vector<1x1x128x128xbf16> to vector<128x128xbf16>
    %cst_495 = arith.constant dense<0.000000e+00> : vector<22x128xf32>
    %464 = tpu.matmul %461, %463, %cst_495 {dimension_numbers = #tpu.dot_dimension_numbers<[1], [0], [0], [1], [0, 0, 1, 1], [], []>} : vector<22x128xbf16>, vector<128x128xbf16>, vector<22x128xf32> -> vector<22x128xf32>
    %465 = arith.addf %459, %464 : vector<22x128xf32>
    %c12_496 = arith.constant 12 : index
    %c0_497 = arith.constant 0 : index
    %466 = vector.load %arg24[%c12_496, %c0_497] : memref<36x128xf32, #tpu.memory_space<vmem>>, vector<22x128xf32>
    %467 = arith.truncf %466 : vector<22x128xf32> to vector<22x128xbf16>
    %c0_498 = arith.constant 0 : index
    %c6_499 = arith.constant 6 : index
    %c0_500 = arith.constant 0 : index
    %c0_501 = arith.constant 0 : index
    %468 = vector.load %arg10[%c0_498, %c6_499, %c0_500, %c0_501] : memref<3x9x128x128xbf16, #tpu.memory_space<vmem>>, vector<1x1x128x128xbf16>
    %469 = vector.shape_cast %468 : vector<1x1x128x128xbf16> to vector<128x128xbf16>
    %cst_502 = arith.constant dense<0.000000e+00> : vector<22x128xf32>
    %470 = tpu.matmul %467, %469, %cst_502 {dimension_numbers = #tpu.dot_dimension_numbers<[1], [0], [0], [1], [0, 0, 1, 1], [], []>} : vector<22x128xbf16>, vector<128x128xbf16>, vector<22x128xf32> -> vector<22x128xf32>
    %471 = arith.addf %465, %470 : vector<22x128xf32>
    %c13_503 = arith.constant 13 : index
    %c0_504 = arith.constant 0 : index
    %472 = vector.load %arg24[%c13_503, %c0_504] : memref<36x128xf32, #tpu.memory_space<vmem>>, vector<22x128xf32>
    %473 = arith.truncf %472 : vector<22x128xf32> to vector<22x128xbf16>
    %c0_505 = arith.constant 0 : index
    %c7_506 = arith.constant 7 : index
    %c0_507 = arith.constant 0 : index
    %c0_508 = arith.constant 0 : index
    %474 = vector.load %arg10[%c0_505, %c7_506, %c0_507, %c0_508] : memref<3x9x128x128xbf16, #tpu.memory_space<vmem>>, vector<1x1x128x128xbf16>
    %475 = vector.shape_cast %474 : vector<1x1x128x128xbf16> to vector<128x128xbf16>
    %cst_509 = arith.constant dense<0.000000e+00> : vector<22x128xf32>
    %476 = tpu.matmul %473, %475, %cst_509 {dimension_numbers = #tpu.dot_dimension_numbers<[1], [0], [0], [1], [0, 0, 1, 1], [], []>} : vector<22x128xbf16>, vector<128x128xbf16>, vector<22x128xf32> -> vector<22x128xf32>
    %477 = arith.addf %471, %476 : vector<22x128xf32>
    %c14 = arith.constant 14 : index
    %c0_510 = arith.constant 0 : index
    %478 = vector.load %arg24[%c14, %c0_510] : memref<36x128xf32, #tpu.memory_space<vmem>>, vector<22x128xf32>
    %479 = arith.truncf %478 : vector<22x128xf32> to vector<22x128xbf16>
    %c0_511 = arith.constant 0 : index
    %c8_512 = arith.constant 8 : index
    %c0_513 = arith.constant 0 : index
    %c0_514 = arith.constant 0 : index
    %480 = vector.load %arg10[%c0_511, %c8_512, %c0_513, %c0_514] : memref<3x9x128x128xbf16, #tpu.memory_space<vmem>>, vector<1x1x128x128xbf16>
    %481 = vector.shape_cast %480 : vector<1x1x128x128xbf16> to vector<128x128xbf16>
    %cst_515 = arith.constant dense<0.000000e+00> : vector<22x128xf32>
    %482 = tpu.matmul %479, %481, %cst_515 {dimension_numbers = #tpu.dot_dimension_numbers<[1], [0], [0], [1], [0, 0, 1, 1], [], []>} : vector<22x128xbf16>, vector<128x128xbf16>, vector<22x128xf32> -> vector<22x128xf32>
    %483 = arith.addf %477, %482 : vector<22x128xf32>
    %c0_516 = arith.constant 0 : index
    %c0_517 = arith.constant 0 : index
    %c0_518 = arith.constant 0 : index
    %484 = vector.load %arg11[%c0_516, %c0_517, %c0_518] : memref<3x1x128xf32, #tpu.memory_space<vmem>>, vector<1x1x128xf32>
    %485 = vector.shape_cast %484 : vector<1x1x128xf32> to vector<1x128xf32>
    %486 = vector.broadcast %485 : vector<1x128xf32> to vector<22x128xf32>
    %487 = arith.addf %483, %486 : vector<22x128xf32>
    %488 = arith.addf %487, %430 : vector<22x128xf32>
    %cst_519 = arith.constant 0.000000e+00 : f32
    %489 = vector.broadcast %cst_519 : f32 to vector<22x128xf32>
    %490 = arith.maximumf %488, %489 : vector<22x128xf32>
    %491 = vector.broadcast %11 : vector<22x1xf32> to vector<22x128xf32>
    %492 = arith.mulf %490, %491 : vector<22x128xf32>
    %c7_520 = arith.constant 7 : index
    %c0_521 = arith.constant 0 : index
    %493 = vector.load %arg23[%c7_520, %c0_521] : memref<36x128xf32, #tpu.memory_space<vmem>>, vector<22x128xf32>
    tpu.vector_store %arg23[%c7_520, %c0_521], %492 {strides = array<i32>} : memref<36x128xf32, #tpu.memory_space<vmem>>, vector<22x128xf32>,
    %c0_522 = arith.constant 0 : index
    %c0_523 = arith.constant 0 : index
    %494 = vector.load %arg23[%c0_522, %c0_523] : memref<36x128xf32, #tpu.memory_space<vmem>>, vector<22x128xf32>
    %495 = arith.truncf %494 : vector<22x128xf32> to vector<22x128xbf16>
    %c1_524 = arith.constant 1 : index
    %c0_525 = arith.constant 0 : index
    %c0_526 = arith.constant 0 : index
    %c0_527 = arith.constant 0 : index
    %496 = vector.load %arg10[%c1_524, %c0_525, %c0_526, %c0_527] : memref<3x9x128x128xbf16, #tpu.memory_space<vmem>>, vector<1x1x128x128xbf16>
    %497 = vector.shape_cast %496 : vector<1x1x128x128xbf16> to vector<128x128xbf16>
    %cst_528 = arith.constant dense<0.000000e+00> : vector<22x128xf32>
    %498 = tpu.matmul %495, %497, %cst_528 {dimension_numbers = #tpu.dot_dimension_numbers<[1], [0], [0], [1], [0, 0, 1, 1], [], []>} : vector<22x128xbf16>, vector<128x128xbf16>, vector<22x128xf32> -> vector<22x128xf32>
    %c1_529 = arith.constant 1 : index
    %c0_530 = arith.constant 0 : index
    %499 = vector.load %arg23[%c1_529, %c0_530] : memref<36x128xf32, #tpu.memory_space<vmem>>, vector<22x128xf32>
    %500 = arith.truncf %499 : vector<22x128xf32> to vector<22x128xbf16>
    %c1_531 = arith.constant 1 : index
    %c1_532 = arith.constant 1 : index
    %c0_533 = arith.constant 0 : index
    %c0_534 = arith.constant 0 : index
    %501 = vector.load %arg10[%c1_531, %c1_532, %c0_533, %c0_534] : memref<3x9x128x128xbf16, #tpu.memory_space<vmem>>, vector<1x1x128x128xbf16>
    %502 = vector.shape_cast %501 : vector<1x1x128x128xbf16> to vector<128x128xbf16>
    %cst_535 = arith.constant dense<0.000000e+00> : vector<22x128xf32>
    %503 = tpu.matmul %500, %502, %cst_535 {dimension_numbers = #tpu.dot_dimension_numbers<[1], [0], [0], [1], [0, 0, 1, 1], [], []>} : vector<22x128xbf16>, vector<128x128xbf16>, vector<22x128xf32> -> vector<22x128xf32>
    %504 = arith.addf %498, %503 : vector<22x128xf32>
    %c2_536 = arith.constant 2 : index
    %c0_537 = arith.constant 0 : index
    %505 = vector.load %arg23[%c2_536, %c0_537] : memref<36x128xf32, #tpu.memory_space<vmem>>, vector<22x128xf32>
    %506 = arith.truncf %505 : vector<22x128xf32> to vector<22x128xbf16>
    %c1_538 = arith.constant 1 : index
    %c2_539 = arith.constant 2 : index
    %c0_540 = arith.constant 0 : index
    %c0_541 = arith.constant 0 : index
    %507 = vector.load %arg10[%c1_538, %c2_539, %c0_540, %c0_541] : memref<3x9x128x128xbf16, #tpu.memory_space<vmem>>, vector<1x1x128x128xbf16>
    %508 = vector.shape_cast %507 : vector<1x1x128x128xbf16> to vector<128x128xbf16>
    %cst_542 = arith.constant dense<0.000000e+00> : vector<22x128xf32>
    %509 = tpu.matmul %506, %508, %cst_542 {dimension_numbers = #tpu.dot_dimension_numbers<[1], [0], [0], [1], [0, 0, 1, 1], [], []>} : vector<22x128xbf16>, vector<128x128xbf16>, vector<22x128xf32> -> vector<22x128xf32>
    %510 = arith.addf %504, %509 : vector<22x128xf32>
    %c6_543 = arith.constant 6 : index
    %c0_544 = arith.constant 0 : index
    %511 = vector.load %arg23[%c6_543, %c0_544] : memref<36x128xf32, #tpu.memory_space<vmem>>, vector<22x128xf32>
    %512 = arith.truncf %511 : vector<22x128xf32> to vector<22x128xbf16>
    %c1_545 = arith.constant 1 : index
    %c3_546 = arith.constant 3 : index
    %c0_547 = arith.constant 0 : index
    %c0_548 = arith.constant 0 : index
    %513 = vector.load %arg10[%c1_545, %c3_546, %c0_547, %c0_548] : memref<3x9x128x128xbf16, #tpu.memory_space<vmem>>, vector<1x1x128x128xbf16>
    %514 = vector.shape_cast %513 : vector<1x1x128x128xbf16> to vector<128x128xbf16>
    %cst_549 = arith.constant dense<0.000000e+00> : vector<22x128xf32>
    %515 = tpu.matmul %512, %514, %cst_549 {dimension_numbers = #tpu.dot_dimension_numbers<[1], [0], [0], [1], [0, 0, 1, 1], [], []>} : vector<22x128xbf16>, vector<128x128xbf16>, vector<22x128xf32> -> vector<22x128xf32>
    %516 = arith.addf %510, %515 : vector<22x128xf32>
    %c7_550 = arith.constant 7 : index
    %c0_551 = arith.constant 0 : index
    %517 = vector.load %arg23[%c7_550, %c0_551] : memref<36x128xf32, #tpu.memory_space<vmem>>, vector<22x128xf32>
    %518 = arith.truncf %517 : vector<22x128xf32> to vector<22x128xbf16>
    %c1_552 = arith.constant 1 : index
    %c4_553 = arith.constant 4 : index
    %c0_554 = arith.constant 0 : index
    %c0_555 = arith.constant 0 : index
    %519 = vector.load %arg10[%c1_552, %c4_553, %c0_554, %c0_555] : memref<3x9x128x128xbf16, #tpu.memory_space<vmem>>, vector<1x1x128x128xbf16>
    %520 = vector.shape_cast %519 : vector<1x1x128x128xbf16> to vector<128x128xbf16>
    %cst_556 = arith.constant dense<0.000000e+00> : vector<22x128xf32>
    %521 = tpu.matmul %518, %520, %cst_556 {dimension_numbers = #tpu.dot_dimension_numbers<[1], [0], [0], [1], [0, 0, 1, 1], [], []>} : vector<22x128xbf16>, vector<128x128xbf16>, vector<22x128xf32> -> vector<22x128xf32>
    %522 = arith.addf %516, %521 : vector<22x128xf32>
    %c8_557 = arith.constant 8 : index
    %c0_558 = arith.constant 0 : index
    %523 = vector.load %arg23[%c8_557, %c0_558] : memref<36x128xf32, #tpu.memory_space<vmem>>, vector<22x128xf32>
    %524 = arith.truncf %523 : vector<22x128xf32> to vector<22x128xbf16>
    %c1_559 = arith.constant 1 : index
    %c5_560 = arith.constant 5 : index
    %c0_561 = arith.constant 0 : index
    %c0_562 = arith.constant 0 : index
    %525 = vector.load %arg10[%c1_559, %c5_560, %c0_561, %c0_562] : memref<3x9x128x128xbf16, #tpu.memory_space<vmem>>, vector<1x1x128x128xbf16>
    %526 = vector.shape_cast %525 : vector<1x1x128x128xbf16> to vector<128x128xbf16>
    %cst_563 = arith.constant dense<0.000000e+00> : vector<22x128xf32>
    %527 = tpu.matmul %524, %526, %cst_563 {dimension_numbers = #tpu.dot_dimension_numbers<[1], [0], [0], [1], [0, 0, 1, 1], [], []>} : vector<22x128xbf16>, vector<128x128xbf16>, vector<22x128xf32> -> vector<22x128xf32>
    %528 = arith.addf %522, %527 : vector<22x128xf32>
    %c12_564 = arith.constant 12 : index
    %c0_565 = arith.constant 0 : index
    %529 = vector.load %arg23[%c12_564, %c0_565] : memref<36x128xf32, #tpu.memory_space<vmem>>, vector<22x128xf32>
    %530 = arith.truncf %529 : vector<22x128xf32> to vector<22x128xbf16>
    %c1_566 = arith.constant 1 : index
    %c6_567 = arith.constant 6 : index
    %c0_568 = arith.constant 0 : index
    %c0_569 = arith.constant 0 : index
    %531 = vector.load %arg10[%c1_566, %c6_567, %c0_568, %c0_569] : memref<3x9x128x128xbf16, #tpu.memory_space<vmem>>, vector<1x1x128x128xbf16>
    %532 = vector.shape_cast %531 : vector<1x1x128x128xbf16> to vector<128x128xbf16>
    %cst_570 = arith.constant dense<0.000000e+00> : vector<22x128xf32>
    %533 = tpu.matmul %530, %532, %cst_570 {dimension_numbers = #tpu.dot_dimension_numbers<[1], [0], [0], [1], [0, 0, 1, 1], [], []>} : vector<22x128xbf16>, vector<128x128xbf16>, vector<22x128xf32> -> vector<22x128xf32>
    %534 = arith.addf %528, %533 : vector<22x128xf32>
    %c13_571 = arith.constant 13 : index
    %c0_572 = arith.constant 0 : index
    %535 = vector.load %arg23[%c13_571, %c0_572] : memref<36x128xf32, #tpu.memory_space<vmem>>, vector<22x128xf32>
    %536 = arith.truncf %535 : vector<22x128xf32> to vector<22x128xbf16>
    %c1_573 = arith.constant 1 : index
    %c7_574 = arith.constant 7 : index
    %c0_575 = arith.constant 0 : index
    %c0_576 = arith.constant 0 : index
    %537 = vector.load %arg10[%c1_573, %c7_574, %c0_575, %c0_576] : memref<3x9x128x128xbf16, #tpu.memory_space<vmem>>, vector<1x1x128x128xbf16>
    %538 = vector.shape_cast %537 : vector<1x1x128x128xbf16> to vector<128x128xbf16>
    %cst_577 = arith.constant dense<0.000000e+00> : vector<22x128xf32>
    %539 = tpu.matmul %536, %538, %cst_577 {dimension_numbers = #tpu.dot_dimension_numbers<[1], [0], [0], [1], [0, 0, 1, 1], [], []>} : vector<22x128xbf16>, vector<128x128xbf16>, vector<22x128xf32> -> vector<22x128xf32>
    %540 = arith.addf %534, %539 : vector<22x128xf32>
    %c14_578 = arith.constant 14 : index
    %c0_579 = arith.constant 0 : index
    %541 = vector.load %arg23[%c14_578, %c0_579] : memref<36x128xf32, #tpu.memory_space<vmem>>, vector<22x128xf32>
    %542 = arith.truncf %541 : vector<22x128xf32> to vector<22x128xbf16>
    %c1_580 = arith.constant 1 : index
    %c8_581 = arith.constant 8 : index
    %c0_582 = arith.constant 0 : index
    %c0_583 = arith.constant 0 : index
    %543 = vector.load %arg10[%c1_580, %c8_581, %c0_582, %c0_583] : memref<3x9x128x128xbf16, #tpu.memory_space<vmem>>, vector<1x1x128x128xbf16>
    %544 = vector.shape_cast %543 : vector<1x1x128x128xbf16> to vector<128x128xbf16>
    %cst_584 = arith.constant dense<0.000000e+00> : vector<22x128xf32>
    %545 = tpu.matmul %542, %544, %cst_584 {dimension_numbers = #tpu.dot_dimension_numbers<[1], [0], [0], [1], [0, 0, 1, 1], [], []>} : vector<22x128xbf16>, vector<128x128xbf16>, vector<22x128xf32> -> vector<22x128xf32>
    %546 = arith.addf %540, %545 : vector<22x128xf32>
    %c1_585 = arith.constant 1 : index
    %c0_586 = arith.constant 0 : index
    %c0_587 = arith.constant 0 : index
    %547 = vector.load %arg11[%c1_585, %c0_586, %c0_587] : memref<3x1x128xf32, #tpu.memory_space<vmem>>, vector<1x1x128xf32>
    %548 = vector.shape_cast %547 : vector<1x1x128xf32> to vector<1x128xf32>
    %549 = vector.broadcast %548 : vector<1x128xf32> to vector<22x128xf32>
    %550 = arith.addf %546, %549 : vector<22x128xf32>
    %cst_588 = arith.constant 0.000000e+00 : f32
    %551 = vector.broadcast %cst_588 : f32 to vector<22x128xf32>
    %552 = arith.maximumf %550, %551 : vector<22x128xf32>
    %553 = vector.broadcast %11 : vector<22x1xf32> to vector<22x128xf32>
    %554 = arith.mulf %552, %553 : vector<22x128xf32>
    %c7_589 = arith.constant 7 : index
    %c0_590 = arith.constant 0 : index
    %555 = vector.load %arg24[%c7_589, %c0_590] : memref<36x128xf32, #tpu.memory_space<vmem>>, vector<22x128xf32>
    tpu.vector_store %arg24[%c7_589, %c0_590], %554 {strides = array<i32>} : memref<36x128xf32, #tpu.memory_space<vmem>>, vector<22x128xf32>,
    %c7_591 = arith.constant 7 : index
    %c0_592 = arith.constant 0 : index
    %556 = vector.load %arg23[%c7_591, %c0_592] : memref<36x128xf32, #tpu.memory_space<vmem>>, vector<22x128xf32>
    %c0_593 = arith.constant 0 : index
    %c0_594 = arith.constant 0 : index
    %557 = vector.load %arg24[%c0_593, %c0_594] : memref<36x128xf32, #tpu.memory_space<vmem>>, vector<22x128xf32>
    %558 = arith.truncf %557 : vector<22x128xf32> to vector<22x128xbf16>
    %c2_595 = arith.constant 2 : index
    %c0_596 = arith.constant 0 : index
    %c0_597 = arith.constant 0 : index
    %c0_598 = arith.constant 0 : index
    %559 = vector.load %arg10[%c2_595, %c0_596, %c0_597, %c0_598] : memref<3x9x128x128xbf16, #tpu.memory_space<vmem>>, vector<1x1x128x128xbf16>
    %560 = vector.shape_cast %559 : vector<1x1x128x128xbf16> to vector<128x128xbf16>
    %cst_599 = arith.constant dense<0.000000e+00> : vector<22x128xf32>
    %561 = tpu.matmul %558, %560, %cst_599 {dimension_numbers = #tpu.dot_dimension_numbers<[1], [0], [0], [1], [0, 0, 1, 1], [], []>} : vector<22x128xbf16>, vector<128x128xbf16>, vector<22x128xf32> -> vector<22x128xf32>
    %c1_600 = arith.constant 1 : index
    %c0_601 = arith.constant 0 : index
    %562 = vector.load %arg24[%c1_600, %c0_601] : memref<36x128xf32, #tpu.memory_space<vmem>>, vector<22x128xf32>
    %563 = arith.truncf %562 : vector<22x128xf32> to vector<22x128xbf16>
    %c2_602 = arith.constant 2 : index
    %c1_603 = arith.constant 1 : index
    %c0_604 = arith.constant 0 : index
    %c0_605 = arith.constant 0 : index
    %564 = vector.load %arg10[%c2_602, %c1_603, %c0_604, %c0_605] : memref<3x9x128x128xbf16, #tpu.memory_space<vmem>>, vector<1x1x128x128xbf16>
    %565 = vector.shape_cast %564 : vector<1x1x128x128xbf16> to vector<128x128xbf16>
    %cst_606 = arith.constant dense<0.000000e+00> : vector<22x128xf32>
    %566 = tpu.matmul %563, %565, %cst_606 {dimension_numbers = #tpu.dot_dimension_numbers<[1], [0], [0], [1], [0, 0, 1, 1], [], []>} : vector<22x128xbf16>, vector<128x128xbf16>, vector<22x128xf32> -> vector<22x128xf32>
    %567 = arith.addf %561, %566 : vector<22x128xf32>
    %c2_607 = arith.constant 2 : index
    %c0_608 = arith.constant 0 : index
    %568 = vector.load %arg24[%c2_607, %c0_608] : memref<36x128xf32, #tpu.memory_space<vmem>>, vector<22x128xf32>
    %569 = arith.truncf %568 : vector<22x128xf32> to vector<22x128xbf16>
    %c2_609 = arith.constant 2 : index
    %c2_610 = arith.constant 2 : index
    %c0_611 = arith.constant 0 : index
    %c0_612 = arith.constant 0 : index
    %570 = vector.load %arg10[%c2_609, %c2_610, %c0_611, %c0_612] : memref<3x9x128x128xbf16, #tpu.memory_space<vmem>>, vector<1x1x128x128xbf16>
    %571 = vector.shape_cast %570 : vector<1x1x128x128xbf16> to vector<128x128xbf16>
    %cst_613 = arith.constant dense<0.000000e+00> : vector<22x128xf32>
    %572 = tpu.matmul %569, %571, %cst_613 {dimension_numbers = #tpu.dot_dimension_numbers<[1], [0], [0], [1], [0, 0, 1, 1], [], []>} : vector<22x128xbf16>, vector<128x128xbf16>, vector<22x128xf32> -> vector<22x128xf32>
    %573 = arith.addf %567, %572 : vector<22x128xf32>
    %c6_614 = arith.constant 6 : index
    %c0_615 = arith.constant 0 : index
    %574 = vector.load %arg24[%c6_614, %c0_615] : memref<36x128xf32, #tpu.memory_space<vmem>>, vector<22x128xf32>
    %575 = arith.truncf %574 : vector<22x128xf32> to vector<22x128xbf16>
    %c2_616 = arith.constant 2 : index
    %c3_617 = arith.constant 3 : index
    %c0_618 = arith.constant 0 : index
    %c0_619 = arith.constant 0 : index
    %576 = vector.load %arg10[%c2_616, %c3_617, %c0_618, %c0_619] : memref<3x9x128x128xbf16, #tpu.memory_space<vmem>>, vector<1x1x128x128xbf16>
    %577 = vector.shape_cast %576 : vector<1x1x128x128xbf16> to vector<128x128xbf16>
    %cst_620 = arith.constant dense<0.000000e+00> : vector<22x128xf32>
    %578 = tpu.matmul %575, %577, %cst_620 {dimension_numbers = #tpu.dot_dimension_numbers<[1], [0], [0], [1], [0, 0, 1, 1], [], []>} : vector<22x128xbf16>, vector<128x128xbf16>, vector<22x128xf32> -> vector<22x128xf32>
    %579 = arith.addf %573, %578 : vector<22x128xf32>
    %c7_621 = arith.constant 7 : index
    %c0_622 = arith.constant 0 : index
    %580 = vector.load %arg24[%c7_621, %c0_622] : memref<36x128xf32, #tpu.memory_space<vmem>>, vector<22x128xf32>
    %581 = arith.truncf %580 : vector<22x128xf32> to vector<22x128xbf16>
    %c2_623 = arith.constant 2 : index
    %c4_624 = arith.constant 4 : index
    %c0_625 = arith.constant 0 : index
    %c0_626 = arith.constant 0 : index
    %582 = vector.load %arg10[%c2_623, %c4_624, %c0_625, %c0_626] : memref<3x9x128x128xbf16, #tpu.memory_space<vmem>>, vector<1x1x128x128xbf16>
    %583 = vector.shape_cast %582 : vector<1x1x128x128xbf16> to vector<128x128xbf16>
    %cst_627 = arith.constant dense<0.000000e+00> : vector<22x128xf32>
    %584 = tpu.matmul %581, %583, %cst_627 {dimension_numbers = #tpu.dot_dimension_numbers<[1], [0], [0], [1], [0, 0, 1, 1], [], []>} : vector<22x128xbf16>, vector<128x128xbf16>, vector<22x128xf32> -> vector<22x128xf32>
    %585 = arith.addf %579, %584 : vector<22x128xf32>
    %c8_628 = arith.constant 8 : index
    %c0_629 = arith.constant 0 : index
    %586 = vector.load %arg24[%c8_628, %c0_629] : memref<36x128xf32, #tpu.memory_space<vmem>>, vector<22x128xf32>
    %587 = arith.truncf %586 : vector<22x128xf32> to vector<22x128xbf16>
    %c2_630 = arith.constant 2 : index
    %c5_631 = arith.constant 5 : index
    %c0_632 = arith.constant 0 : index
    %c0_633 = arith.constant 0 : index
    %588 = vector.load %arg10[%c2_630, %c5_631, %c0_632, %c0_633] : memref<3x9x128x128xbf16, #tpu.memory_space<vmem>>, vector<1x1x128x128xbf16>
    %589 = vector.shape_cast %588 : vector<1x1x128x128xbf16> to vector<128x128xbf16>
    %cst_634 = arith.constant dense<0.000000e+00> : vector<22x128xf32>
    %590 = tpu.matmul %587, %589, %cst_634 {dimension_numbers = #tpu.dot_dimension_numbers<[1], [0], [0], [1], [0, 0, 1, 1], [], []>} : vector<22x128xbf16>, vector<128x128xbf16>, vector<22x128xf32> -> vector<22x128xf32>
    %591 = arith.addf %585, %590 : vector<22x128xf32>
    %c12_635 = arith.constant 12 : index
    %c0_636 = arith.constant 0 : index
    %592 = vector.load %arg24[%c12_635, %c0_636] : memref<36x128xf32, #tpu.memory_space<vmem>>, vector<22x128xf32>
    %593 = arith.truncf %592 : vector<22x128xf32> to vector<22x128xbf16>
    %c2_637 = arith.constant 2 : index
    %c6_638 = arith.constant 6 : index
    %c0_639 = arith.constant 0 : index
    %c0_640 = arith.constant 0 : index
    %594 = vector.load %arg10[%c2_637, %c6_638, %c0_639, %c0_640] : memref<3x9x128x128xbf16, #tpu.memory_space<vmem>>, vector<1x1x128x128xbf16>
    %595 = vector.shape_cast %594 : vector<1x1x128x128xbf16> to vector<128x128xbf16>
    %cst_641 = arith.constant dense<0.000000e+00> : vector<22x128xf32>
    %596 = tpu.matmul %593, %595, %cst_641 {dimension_numbers = #tpu.dot_dimension_numbers<[1], [0], [0], [1], [0, 0, 1, 1], [], []>} : vector<22x128xbf16>, vector<128x128xbf16>, vector<22x128xf32> -> vector<22x128xf32>
    %597 = arith.addf %591, %596 : vector<22x128xf32>
    %c13_642 = arith.constant 13 : index
    %c0_643 = arith.constant 0 : index
    %598 = vector.load %arg24[%c13_642, %c0_643] : memref<36x128xf32, #tpu.memory_space<vmem>>, vector<22x128xf32>
    %599 = arith.truncf %598 : vector<22x128xf32> to vector<22x128xbf16>
    %c2_644 = arith.constant 2 : index
    %c7_645 = arith.constant 7 : index
    %c0_646 = arith.constant 0 : index
    %c0_647 = arith.constant 0 : index
    %600 = vector.load %arg10[%c2_644, %c7_645, %c0_646, %c0_647] : memref<3x9x128x128xbf16, #tpu.memory_space<vmem>>, vector<1x1x128x128xbf16>
    %601 = vector.shape_cast %600 : vector<1x1x128x128xbf16> to vector<128x128xbf16>
    %cst_648 = arith.constant dense<0.000000e+00> : vector<22x128xf32>
    %602 = tpu.matmul %599, %601, %cst_648 {dimension_numbers = #tpu.dot_dimension_numbers<[1], [0], [0], [1], [0, 0, 1, 1], [], []>} : vector<22x128xbf16>, vector<128x128xbf16>, vector<22x128xf32> -> vector<22x128xf32>
    %603 = arith.addf %597, %602 : vector<22x128xf32>
    %c14_649 = arith.constant 14 : index
    %c0_650 = arith.constant 0 : index
    %604 = vector.load %arg24[%c14_649, %c0_650] : memref<36x128xf32, #tpu.memory_space<vmem>>, vector<22x128xf32>
    %605 = arith.truncf %604 : vector<22x128xf32> to vector<22x128xbf16>
    %c2_651 = arith.constant 2 : index
    %c8_652 = arith.constant 8 : index
    %c0_653 = arith.constant 0 : index
    %c0_654 = arith.constant 0 : index
    %606 = vector.load %arg10[%c2_651, %c8_652, %c0_653, %c0_654] : memref<3x9x128x128xbf16, #tpu.memory_space<vmem>>, vector<1x1x128x128xbf16>
    %607 = vector.shape_cast %606 : vector<1x1x128x128xbf16> to vector<128x128xbf16>
    %cst_655 = arith.constant dense<0.000000e+00> : vector<22x128xf32>
    %608 = tpu.matmul %605, %607, %cst_655 {dimension_numbers = #tpu.dot_dimension_numbers<[1], [0], [0], [1], [0, 0, 1, 1], [], []>} : vector<22x128xbf16>, vector<128x128xbf16>, vector<22x128xf32> -> vector<22x128xf32>
    %609 = arith.addf %603, %608 : vector<22x128xf32>
    %c2_656 = arith.constant 2 : index
    %c0_657 = arith.constant 0 : index
    %c0_658 = arith.constant 0 : index
    %610 = vector.load %arg11[%c2_656, %c0_657, %c0_658] : memref<3x1x128xf32, #tpu.memory_space<vmem>>, vector<1x1x128xf32>
    %611 = vector.shape_cast %610 : vector<1x1x128xf32> to vector<1x128xf32>
    %612 = vector.broadcast %611 : vector<1x128xf32> to vector<22x128xf32>
    %613 = arith.addf %609, %612 : vector<22x128xf32>
    %614 = arith.addf %613, %556 : vector<22x128xf32>
    %cst_659 = arith.constant 0.000000e+00 : f32
    %615 = vector.broadcast %cst_659 : f32 to vector<22x128xf32>
    %616 = arith.maximumf %614, %615 : vector<22x128xf32>
    %617 = vector.broadcast %11 : vector<22x1xf32> to vector<22x128xf32>
    %618 = arith.mulf %616, %617 : vector<22x128xf32>
    %c7_660 = arith.constant 7 : index
    %c0_661 = arith.constant 0 : index
    %619 = vector.load %arg23[%c7_660, %c0_661] : memref<36x128xf32, #tpu.memory_space<vmem>>, vector<22x128xf32>
    tpu.vector_store %arg23[%c7_660, %c0_661], %618 {strides = array<i32>} : memref<36x128xf32, #tpu.memory_space<vmem>>, vector<22x128xf32>,
    %c0_662 = arith.constant 0 : index
    %c0_663 = arith.constant 0 : index
    %620 = vector.load %arg23[%c0_662, %c0_663] : memref<36x128xf32, #tpu.memory_space<vmem>>, vector<36x128xf32>
    %cst_664 = arith.constant dense<0.000000e+00> : vector<128xf32>
    %621 = vector.multi_reduction <add>, %620, %cst_664 [0] : vector<36x128xf32> to vector<128xf32>
    %622 = vector.shape_cast %621 : vector<128xf32> to vector<1x128xf32>
    %cst_665 = arith.constant 1.600000e+01 : f32
    %623 = vector.broadcast %cst_665 : f32 to vector<1x128xf32>
    %624 = arith.divf %622, %623 : vector<1x128xf32>
    %c0_666 = arith.constant 0 : index
    %c0_667 = arith.constant 0 : index
    %625 = vector.load %arg12[%c0_666, %c0_667] : memref<128x128xf32, #tpu.memory_space<vmem>>, vector<128x128xf32>
    %cst_668 = arith.constant dense<0.000000e+00> : vector<1x128xf32>
    %626 = tpu.matmul %624, %625, %cst_668 {dimension_numbers = #tpu.dot_dimension_numbers<[1], [0], [0], [1], [0, 0, 1, 1], [], []>} : vector<1x128xf32>, vector<128x128xf32>, vector<1x128xf32> -> vector<1x128xf32>
    %c0_669 = arith.constant 0 : index
    %c0_670 = arith.constant 0 : index
    %627 = vector.load %arg13[%c0_669, %c0_670] : memref<1x128xf32, #tpu.memory_space<vmem>>, vector<1x128xf32>
    %628 = arith.addf %626, %627 : vector<1x128xf32>
    %629 = vector.shape_cast %628 : vector<1x128xf32> to vector<1x1x128xf32>
    %c0_671 = arith.constant 0 : index
    %c0_672 = arith.constant 0 : index
    %c0_673 = arith.constant 0 : index
    %630 = vector.load %arg17[%c0_671, %c0_672, %c0_673] : memref<1x1x128xf32, #tpu.memory_space<vmem>>, vector<1x1x128xf32>
    tpu.vector_store %arg17[%c0_671, %c0_672, %c0_673], %629 {strides = array<i32>} : memref<1x1x128xf32, #tpu.memory_space<vmem>>, vector<1x1x128xf32>,
    return
  }
  func.func @transform_0(%arg0: i32) -> (i32, i32, i32) {
    %c0_i32 = arith.constant 0 : i32
    %c0_i32_0 = arith.constant 0 : i32
    %c0_i32_1 = arith.constant 0 : i32
    return %arg0, %c0_i32, %c0_i32_0 : i32, i32, i32
  }
  func.func @transform_1(%arg0: i32) -> (i32, i32) {
    %c0_i32 = arith.constant 0 : i32
    %c0_i32_0 = arith.constant 0 : i32
    %c0_i32_1 = arith.constant 0 : i32
    return %c0_i32, %c0_i32_0 : i32, i32
  }
  func.func @transform_2(%arg0: i32) -> (i32, i32) {
    %c0_i32 = arith.constant 0 : i32
    %c0_i32_0 = arith.constant 0 : i32
    %c0_i32_1 = arith.constant 0 : i32
    return %c0_i32, %c0_i32_0 : i32, i32
  }
  func.func @transform_3(%arg0: i32) -> (i32, i32, i32, i32) {
    %c0_i32 = arith.constant 0 : i32
    %c0_i32_0 = arith.constant 0 : i32
    %c0_i32_1 = arith.constant 0 : i32
    %c0_i32_2 = arith.constant 0 : i32
    %c0_i32_3 = arith.constant 0 : i32
    return %c0_i32, %c0_i32_0, %c0_i32_1, %c0_i32_2 : i32, i32, i32, i32
  }
  func.func @transform_4(%arg0: i32) -> (i32, i32, i32) {
    %c0_i32 = arith.constant 0 : i32
    %c0_i32_0 = arith.constant 0 : i32
    %c0_i32_1 = arith.constant 0 : i32
    %c0_i32_2 = arith.constant 0 : i32
    return %c0_i32, %c0_i32_0, %c0_i32_1 : i32, i32, i32
  }
  func.func @transform_5(%arg0: i32) -> (i32, i32, i32) {
    %c0_i32 = arith.constant 0 : i32
    %c0_i32_0 = arith.constant 0 : i32
    %c0_i32_1 = arith.constant 0 : i32
    %c0_i32_2 = arith.constant 0 : i32
    return %c0_i32, %c0_i32_0, %c0_i32_1 : i32, i32, i32
  }
  func.func @transform_6(%arg0: i32) -> (i32, i32) {
    %c0_i32 = arith.constant 0 : i32
    %c0_i32_0 = arith.constant 0 : i32
    %c0_i32_1 = arith.constant 0 : i32
    return %c0_i32, %c0_i32_0 : i32, i32
  }
  func.func @transform_7(%arg0: i32) -> (i32, i32) {
    %c0_i32 = arith.constant 0 : i32
    %c0_i32_0 = arith.constant 0 : i32
    %c0_i32_1 = arith.constant 0 : i32
    return %c0_i32, %c0_i32_0 : i32, i32
  }
  func.func @transform_8(%arg0: i32) -> (i32, i32) {
    %c0_i32 = arith.constant 0 : i32
    %c0_i32_0 = arith.constant 0 : i32
    %c0_i32_1 = arith.constant 0 : i32
    return %c0_i32, %c0_i32_0 : i32, i32
  }
  func.func @transform_9(%arg0: i32) -> (i32, i32, i32, i32) {
    %c0_i32 = arith.constant 0 : i32
    %c0_i32_0 = arith.constant 0 : i32
    %c0_i32_1 = arith.constant 0 : i32
    %c0_i32_2 = arith.constant 0 : i32
    %c0_i32_3 = arith.constant 0 : i32
    return %c0_i32, %c0_i32_0, %c0_i32_1, %c0_i32_2 : i32, i32, i32, i32
  }
  func.func @transform_10(%arg0: i32) -> (i32, i32, i32) {
    %c0_i32 = arith.constant 0 : i32
    %c0_i32_0 = arith.constant 0 : i32
    %c0_i32_1 = arith.constant 0 : i32
    %c0_i32_2 = arith.constant 0 : i32
    return %c0_i32, %c0_i32_0, %c0_i32_1 : i32, i32, i32
  }
  func.func @transform_11(%arg0: i32) -> (i32, i32) {
    %c0_i32 = arith.constant 0 : i32
    %c0_i32_0 = arith.constant 0 : i32
    %c0_i32_1 = arith.constant 0 : i32
    return %c0_i32, %c0_i32_0 : i32, i32
  }
  func.func @transform_12(%arg0: i32) -> (i32, i32) {
    %c0_i32 = arith.constant 0 : i32
    %c0_i32_0 = arith.constant 0 : i32
    %c0_i32_1 = arith.constant 0 : i32
    return %c0_i32, %c0_i32_0 : i32, i32
  }
  func.func @transform_13(%arg0: i32) -> (i32, i32) {
    %c0_i32 = arith.constant 0 : i32
    %c0_i32_0 = arith.constant 0 : i32
    %c0_i32_1 = arith.constant 0 : i32
    return %c0_i32, %c0_i32_0 : i32, i32
  }
  func.func @transform_14(%arg0: i32) -> (i32, i32) {
    %c0_i32 = arith.constant 0 : i32
    %c0_i32_0 = arith.constant 0 : i32
    %c0_i32_1 = arith.constant 0 : i32
    return %c0_i32, %c0_i32_0 : i32, i32
  }
  func.func @transform_15(%arg0: i32) -> (i32, i32) {
    %c0_i32 = arith.constant 0 : i32
    %c0_i32_0 = arith.constant 0 : i32
    %c0_i32_1 = arith.constant 0 : i32
    return %c0_i32, %c0_i32_0 : i32, i32
  }
  func.func @transform_16(%arg0: i32) -> (i32, i32, i32) {
    %c0_i32 = arith.constant 0 : i32
    %c0_i32_0 = arith.constant 0 : i32
    %c0_i32_1 = arith.constant 0 : i32
    return %arg0, %c0_i32, %c0_i32_0 : i32, i32, i32
  }
}

</mosaic_0001>

<bundles_post_ra>
// kernel: micro_resnet_forward.1
= control target key start
LH: loop header
LB: loop body
LE: loop exit
PB: predicated region body
PF: predicated region fallthrough
CT: control target
= control target key end

     0   :  { %s16275_s0 = inlined_call_operand.vmem [shape: bf16[2,324,256], index: 0, kind: input, shape index: {}]   ;;  %s16276_s1 = inlined_call_operand.vmem [shape: bf16[256,64], index: 1, kind: input, shape index: {}]   ;;  %s16277_s2 = inlined_call_operand.vmem [shape: f32[1,64], index: 2, kind: input, shape index: {}]   ;;  %s16278_s3 = inlined_call_operand.vmem [shape: bf16[4,9,64,64], index: 3, kind: input, shape index: {}]   ;;  %s16279_s4 = inlined_call_operand.vmem [shape: f32[4,1,64], index: 4, kind: input, shape index: {}]   ;;  %s16280_s5 = inlined_call_operand.vmem [shape: bf16[9,64,128], index: 5, kind: input, shape index: {}]   ;;  %s16281_s6 = inlined_call_operand.vmem [shape: f32[1,128], index: 6, kind: input, shape index: {}]   ;;  %s16282_s7 = inlined_call_operand.vmem [shape: bf16[64,128], index: 7, kind: input, shape index: {}]   ;;  %s16283_s8 = inlined_call_operand.vmem [shape: f32[1,128], index: 8, kind: input, shape index: {}]   ;;  %s16284_s9 = inlined_call_operand.vmem [shape: bf16[3,9,128,128], index: 9, kind: input, shape index: {}]   ;;  %s16285_s10 = inlined_call_operand.vmem [shape: f32[3,1,128], index: 10, kind: input, shape index: {}]   ;;  %s16286_s11 = inlined_call_operand.vmem [shape: f32[128,128], index: 11, kind: input, shape index: {}]   ;;  %s16287_s12 = inlined_call_operand.vmem [shape: f32[1,128], index: 12, kind: input, shape index: {}]   ;;  %s16288_s13 = inlined_call_operand.vmem [shape: f32[324,1], index: 13, kind: input, shape index: {}]   ;;  %s16289_s14 = inlined_call_operand.vmem [shape: f32[78,1], index: 14, kind: input, shape index: {}]   ;;  %s16290_s15 = inlined_call_operand.vmem [shape: f32[22,1], index: 15, kind: input, shape index: {}]   ;;  %s16291_s16 = inlined_call_operand.hbm [shape: f32[2,1,128], index: 16, kind: output, shape index: {}]  }
   0x1   :  { %16298 = sst [smem:[#allocation19_spill]] %s16275_s0 }
   0x2   :  { %16299 = sst [smem:[#allocation20_spill]] %s16287_s12 }
   0x3   :  { %21 = vsyncpa [#allocation11], 0 }
   0x4   :  { %23 = vsyncpa [#allocation11 + $0x1], 0  ;;  %s13316_s21 = smov 0   ;;  %s13318_s22 = smov 0  }
   0x5   :  { %s13320_s23 = smov 0   ;;  %s13322_s24 = smov 0  }
   0x6 LB: > { %16300 = sst [smem:[#allocation13_spill]] %s13214_s21  ;;  %s13337_s25 = sadd.s32 4294967295, %s13226_s24   ;;  %s13226_s24 = sphi %s13322_s24, %s16313_s24   ;;  %s13222_s23 = sphi %s13320_s23, %s16315_s23   ;;  %s13218_s22 = sphi %s13318_s22, %s16317_s22   ;;  %s13214_s21 = sphi %s13316_s21, %s16316_s21  }
   0x7   : > { %16301 = sst [smem:[#allocation14_spill]] %s13222_s23  ;;  %s9760_s26 = sadd.s32 4294967294, %s13226_s24  }
   0x8   : > { %16302 = sst [smem:[#allocation15_spill]] %s13226_s24  ;;  %s13341_s27 = sadd.s32 1, %s13226_s24  }
   0x9   : > { %16303 = sst [smem:[#allocation16_spill]] %s13341_s27  ;;  %s377_s28 = sadd.s32 1, %s13222_s23 }
   0xa   : > { %s374_s29 = ssub.s32 %s13226_s24, %s13341_s27  ;;  %p387_p0 = scmp.ne.s32.totalorder %s13222_s23, %s13218_s22 }
   0xb   : > { %p375_p1 = scmp.eq.s32.totalorder %s374_s29, 0  ;;  %p388_p2 = scmp.eq.s32.totalorder %s13337_s25, 1 }
   0xc   : > { %p393_p3 = scmp.ne.s32.totalorder %s13218_s22, %s13214_s21  ;;  %p394_p4 = scmp.eq.s32.totalorder %s9760_s26, 1 }
   0xd   : > { %s13352_s30 = scalar_select %p375_p1, %s13222_s23, %s377_s28  }
   0xe   : > { %p13354_p5 = por %p388_p2, %p387_p0  ;;  %p13358_p6 = por %p394_p4, %p393_p3 }
   0xf   : > { %16304 = sst [smem:[#allocation17_spill]] %s13352_s30  ;;  %p9763_p7 = scmp.ge.s32.totalorder %s13226_s24, 1 }
  0x10   : > { %s16306_s17 = scalar_select %p13358_p6, 1, 0 }
  0x11   : > { %p465_p8 = scmp.lt.s32.totalorder %s13226_s24, 3 }
  0x12   : > { %16307 = sst [smem:[#allocation18_spill]] %s16306_s17 }
  0x13   : > { %p466_p9 = pnand %p9763_p7, %p465_p8 }
  0x14   : > { %p514_p10 = scmp.lt.s32.totalorder (!%p466_p9), %s13337_s25, 1  ;;  %s16308_s23 = sld [smem:[#allocation19_spill]] (!%p466_p9) }
  0x15   : > { %469 = sbr.rel (%p466_p9) target bundleno = 2985 (0xba9), region = 84  ;;  %s512_s17 = sand.u32 (!%p466_p9), 1, %s13218_s22  }
  0x16   : > { %s9701_s12 = scalar_lea.hbm (!%p466_p9), %s16291_s16, %s13337_s25  ;;  %s16309_s26 = sld [smem:[#allocation20_spill]] (!%p466_p9) }
  0x17   : > { %s9705_s29 = sshll.u32 (!%p466_p9), %s9701_s12, 4  ;;  %s13184_s20 = scalar_lea.hbm (!%p466_p9), %s16291_s16, 2  ;;  %s9706_s29 = int_to_ptr.hbm [resolvable:$true] %s9705_s29 }
  0x18   : > { %s13178_s21 = sshra.s32 (!%p466_p9), %s9706_s29, 4  ;;  %s13179_s21 = int_to_ptr.hbm [resolvable:$true] %s13178_s21 }
  0x19   : > { %p13185_p0 = scmp.lt.s32.totalorder (!%p466_p9), %s13179_s21, %s16291_s16 }
  0x1a   : > { %v12680_v0 = vld [vmem:[%s16276_s1 + $0x38] sm:$0xff]  ;;  %v12679_v2 = vld [vmem:[%s16276_s1 + $0x30] sm:$0xff]  ;;  %v13228_v4 = vmov 0   ;;  %v12678_v5 = vld [vmem:[%s16276_s1 + $0x28] sm:$0xff]  ;;  %s515_s27 = scalar_select %p514_p10, %s13337_s25, 1  ;;  %vm520_vm0 = vcmask 523264  }
  0x1b   : > { %v12688_v1 = vld [vmem:[%s16276_s1 + $0x78] sm:$0xff]  ;;  %956 = vmatpush.bf16.msra.mxu0 %v12680_v0  ;;  %v12687_v3 = vld [vmem:[%s16276_s1 + $0x70] sm:$0xff]  ;;  %13144 = vset.pattern.permute.xlu0 %v13228_v4  ;;  %v12686_v6 = vld [vmem:[%s16276_s1 + $0x68] sm:$0xff]  ;;  %vm533_vm1 = vcmask 519168   ;;  %vm2897_vm2 = vcmask 521216   ;;  %vm9637_vm3 = vcmask 1043456  }
  0x1c   : > { %1069 = vmatpush.bf16.msra.mxu1 %v12688_v1  ;;  %13145 = vset.pattern.permute.xlu1 %v13228_v4  ;;  %v12677_v7 = vld [vmem:[%s16276_s1 + $0x20] sm:$0xff]  ;;  %v12676_v9 = vld [vmem:[%s16276_s1 + $0x18] sm:$0xff]  ;;  %v12675_v12 = vld [vmem:[%s16276_s1 + $0x10] sm:$0xff]  ;;  %s13101_s18 = smul.u32 328, %s515_s27  ;;  %s13180_s27 = scalar_lea.hbm %s13179_s21, 1 }
  0x1d   : > { %13146 = vset.pattern.permute.xlu2 %v13228_v4  ;;  %v12685_v8 = vld [vmem:[%s16276_s1 + $0x60] sm:$0xff]  ;;  %v12684_v10 = vld [vmem:[%s16276_s1 + $0x58] sm:$0xff]  ;;  %v12683_v13 = vld [vmem:[%s16276_s1 + $0x50] sm:$0xff]  ;;  %p13181_p11 = scmp.ne.s32.totalorder %s13179_s21, %s13180_s27  ;;  %p13186_p1 = scmp.lt.s32.totalorder %s13184_s20, %s13180_s27 }
  0x1e   : > { %v1223_v11 = vld [vmem:[%s16288_s13] sm:$0xff]  ;;  %v12674_v14 = vld [vmem:[%s16276_s1 + $0x8] sm:$0xff]  ;;  %s13414_s30 = scalar_lea.vmem %s16308_s23, %s13101_s18  ;;  %v1225_v25 = vld [vmem:[%s16288_s13 + $0x10] sm:$0xff]  ;;  %s9693_s23 = scalar_lea.sflag [#allocation11], %s512_s17 }
  0x1f   : > { %957 = vmatpush.bf16.msra.mxu0 %v12679_v2  ;;  %1266 = vperm.xlu0 %13144, %v1223_v11   ;;  %v12682_v15 = vld [vmem:[%s16276_s1 + $0x48] sm:$0xff]  ;;  %v12673_v17 = vld [vmem:[%s16276_s1] sm:$0xff]  ;;  %v1226_v26 = vld [vmem:[%s16288_s13 + $0x18] sm:$0xff]  ;;  %p13182_p12 = pnand %p13181_p11, %p13354_p5  ;;  %p13187_p2 = por %p13186_p1, %p13185_p0 }
  0x20   : > { %1070 = vmatpush.bf16.msra.mxu1 %v12687_v3  ;;  %v1224_v16 = vld [vmem:[%s16288_s13 + $0x8] sm:$0xff]  ;;  %v12681_v18 = vld [vmem:[%s16276_s1 + $0x40] sm:$0xff]  ;;  %1276 = vperm.xlu1 %13145, %v1225_v25   ;;  %v9775_v27 = vld [vmem:[%s13414_s30 + $0x10] sm:$0xf] }
  0x21   : > { %v9767_v19 = vld [vmem:[%s13414_s30] sm:$0xf]  ;;  %v12634_v20 = vld [vmem:[%s13414_s30 + $0x4] sm:$0xf0]  ;;  %v12633_v21 = vld [vmem:[%s13414_s30 + $0x4] sm:$0xf]  ;;  %p13183_p13 = pneg %p13182_p12 }
  0x22   : > { %v9769_v22 = vld [vmem:[%s13414_s30 + $0x8] sm:$0xf0]  ;;  %v9768_v23 = vor.u32 %v12634_v20, %v9767_v19  ;;  %v12636_v28 = vld [vmem:[%s13414_s30 + $0x14] sm:$0xf0]  ;;  %v12635_v29 = vld [vmem:[%s13414_s30 + $0x14] sm:$0xf] }
  0x23   : > { %958 = vmatpush.bf16.msra.mxu0 %v12678_v5  ;;  %v9772_v24 = vor.u32 %v12633_v21, %v9769_v22  ;;  %v9777_v30 = vld [vmem:[%s13414_s30 + $0x18] sm:$0xf0]  ;;  %v9776_v31 = vor.u32 %v12636_v28, %v9775_v27  ;;  %v9783_v33 = vld [vmem:[%s13414_s30 + $0x20] sm:$0xf]  ;;  %v12638_v34 = vld [vmem:[%s13414_s30 + $0x24] sm:$0xf0]  ;;  %p13188_p3 = pnand %p13187_p2, %p13183_p13 }
  0x24   : > { %1071 = vmatpush.bf16.msra.mxu1 %v12686_v6  ;;  %v9780_v32 = vor.u32 %v12635_v29, %v9777_v30  ;;  %v12637_v35 = vld [vmem:[%s13414_s30 + $0x24] sm:$0xf]  ;;  %v9785_v36 = vld [vmem:[%s13414_s30 + $0x28] sm:$0xf0]  ;;  %v9784_v37 = vor.u32 %v12638_v34, %v9783_v33  ;;  %v1229_v39 = vld [vmem:[%s16288_s13 + $0x30] sm:$0xff] }
  0x25   : > { %v9788_v38 = vor.u32 %v12637_v35, %v9785_v36  ;;  %v1227_v40 = vld [vmem:[%s16288_s13 + $0x20] sm:$0xff]  ;;  %v1230_v41 = vld [vmem:[%s16288_s13 + $0x38] sm:$0xff]  ;;  %v9791_v42 = vld [vmem:[%s13414_s30 + $0x30] sm:$0xf] }
  0x26   : > { %1286 = vperm.xlu2 %13146, %v1227_v40   ;;  %v12640_v43 = vld [vmem:[%s13414_s30 + $0x34] sm:$0xf0]  ;;  %v12639_v44 = vld [vmem:[%s13414_s30 + $0x34] sm:$0xf]  ;;  %v9793_v45 = vld [vmem:[%s13414_s30 + $0x38] sm:$0xf0] }
  0x27   : > { %959 = vmatpush.bf16.msra.mxu0 %v12677_v7  ;;  %1271 = vperm.xlu0 %13144, %v1224_v16   ;;  %v9792_v46 = vor.u32 %v12640_v43, %v9791_v42  ;;  %v9796_v47 = vor.u32 %v12639_v44, %v9793_v45  ;;  %v1228_v48 = vld [vmem:[%s16288_s13 + $0x28] sm:$0xff]  ;;  %v1233_v50 = vld [vmem:[%s16288_s13 + $0x50] sm:$0xff]  ;;  %v1235_v51 = vld [vmem:[%s16288_s13 + $0x60] sm:$0xff] }
  0x28   : > { %1072 = vmatpush.bf16.msra.mxu1 %v12685_v8  ;;  %1281 = vperm.xlu1 %13145, %v1226_v26   ;;  %v1232_v49 = vld [vmem:[%s16288_s13 + $0x48] sm:$0xff]  ;;  %v9799_v52 = vld [vmem:[%s13414_s30 + $0x40] sm:$0xf]  ;;  %v12641_v54 = vld [vmem:[%s13414_s30 + $0x44] sm:$0xf] }
  0x29   : > { %v12642_v53 = vld [vmem:[%s13414_s30 + $0x44] sm:$0xf0]  ;;  %v9801_v55 = vld [vmem:[%s13414_s30 + $0x48] sm:$0xf0]  ;;  %v1238_v59 = vld [vmem:[%s16288_s13 + $0x78] sm:$0xff] }
  0x2a   : > { %v9800_v56 = vor.u32 %v12642_v53, %v9799_v52  ;;  %v9804_v57 = vor.u32 %v12641_v54, %v9801_v55  ;;  %v1236_v58 = vld [vmem:[%s16288_s13 + $0x68] sm:$0xff]  ;;  %v1231_v60 = vld [vmem:[%s16288_s13 + $0x40] sm:$0xff]  ;;  %v1241_v62 = vld [vmem:[%s16288_s13 + $0x90] sm:$0xff] }
  0x2b   : > { %960 = vmatpush.bf16.msra.mxu0 %v12676_v9  ;;  %v1239_v61 = vld [vmem:[%s16288_s13 + $0x80] sm:$0xff]  ;;  %v9807_v63 = vld [vmem:[%s13414_s30 + $0x50] sm:$0xf]  ;;  %v12644_v0 = vld [vmem:[%s13414_s30 + $0x54] sm:$0xf0] }
  0x2c   : > { %1073 = vmatpush.bf16.msra.mxu1 %v12684_v10  ;;  %v12643_v1 = vld [vmem:[%s13414_s30 + $0x54] sm:$0xf]  ;;  %v9809_v2 = vld [vmem:[%s13414_s30 + $0x58] sm:$0xf0]  ;;  %v9808_v3 = vor.u32 %v12644_v0, %v9807_v63  ;;  %v1244_v7 = vld [vmem:[%s16288_s13 + $0xa8] sm:$0xff] }
  0x2d   : > { %v9812_v4 = vor.u32 %v12643_v1, %v9809_v2  ;;  %v1234_v5 = vld [vmem:[%s16288_s13 + $0x58] sm:$0xff]  ;;  %v1237_v8 = vld [vmem:[%s16288_s13 + $0x70] sm:$0xff]  ;;  %v9815_v10 = vld [vmem:[%s13414_s30 + $0x60] sm:$0xf] }
  0x2e   : > { %1291 = vperm.xlu2 %13146, %v1228_v48   ;;  %v1242_v6 = vld [vmem:[%s16288_s13 + $0x98] sm:$0xff]  ;;  %v1245_v9 = vld [vmem:[%s16288_s13 + $0xb0] sm:$0xff]  ;;  %v12646_v11 = vld [vmem:[%s13414_s30 + $0x64] sm:$0xf0] }
  0x2f   : > { %961 = vmatpush.bf16.msra.mxu0 %v12675_v12  ;;  %1296 = vperm.xlu0 %13144, %v1229_v39   ;;  %v12645_v12 = vld [vmem:[%s13414_s30 + $0x64] sm:$0xf]  ;;  %v1250_v19 = vld [vmem:[%s16288_s13 + $0xd8] sm:$0xff]  ;;  %v9823_v20 = vld [vmem:[%s13414_s30 + $0x70] sm:$0xf] }
  0x30   : > { %1074 = vmatpush.bf16.msra.mxu1 %v12683_v13  ;;  %1301 = vperm.xlu1 %13145, %v1230_v41   ;;  %v9817_v13 = vld [vmem:[%s13414_s30 + $0x68] sm:$0xf0]  ;;  %v1247_v16 = vld [vmem:[%s16288_s13 + $0xc0] sm:$0xff]  ;;  %v9825_v25 = vld [vmem:[%s13414_s30 + $0x78] sm:$0xf0] }
  0x31   : > { %v1243_v21 = vld [vmem:[%s16288_s13 + $0xa0] sm:$0xff]  ;;  %v1253_v28 = vld [vmem:[%s16288_s13 + $0xf0] sm:$0xff]  ;;  %v1246_v29 = vld [vmem:[%s16288_s13 + $0xb8] sm:$0xff] }
  0x32   : > { %v1251_v22 = vld [vmem:[%s16288_s13 + $0xe0] sm:$0xff]  ;;  %v1254_v30 = vld [vmem:[%s16288_s13 + $0xf8] sm:$0xff]  ;;  %v1249_v33 = vld [vmem:[%s16288_s13 + $0xd0] sm:$0xff] }
  0x33   : > { %962 = vmatpush.bf16.msra.mxu0 %v12674_v14  ;;  %v9816_v14 = vor.u32 %v12646_v11, %v9815_v10  ;;  %v1257_v34 = vld [vmem:[%s16288_s13 + $0x110] sm:$0xff]  ;;  %v12650_v35 = vld [vmem:[%s13414_s30 + $0x84] sm:$0xf0]  ;;  %v12649_v36 = vld [vmem:[%s13414_s30 + $0x84] sm:$0xf] }
  0x34   : > { %1075 = vmatpush.bf16.msra.mxu1 %v12682_v15  ;;  %v9820_v15 = vor.u32 %v12645_v12, %v9817_v13  ;;  %v1259_v44 = vld [vmem:[%s16288_s13 + $0x120] sm:$0xff]  ;;  %v1260_v48 = vld [vmem:[%s16288_s13 + $0x128] sm:$0xff] }
  0x35   : > { %v563_v54 = vld [vmem:[%s16289_s14] sm:$0xff] }
  0x36   : > { %1306 = vperm.xlu2 %13146, %v1231_v60   ;;  %v12652_v60 = vld [vmem:[%s13414_s30 + $0x94] sm:$0xf0]  ;;  %v567_v10 = vld [vmem:[%s16289_s14 + $0x20] sm:$0xff] }
  0x37   : > { %963 = vmatpush.bf16.msra.mxu0 %v12673_v17  ;;  %1311 = vperm.xlu0 %13144, %v1232_v49   ;;  %v1240_v17 = vld [vmem:[%s16288_s13 + $0x88] sm:$0xff] }
  0x38   : > { %1076 = vmatpush.bf16.msra.mxu1 %v12681_v18  ;;  %1316 = vperm.xlu1 %13145, %v1233_v50   ;;  %v1248_v18 = vld [vmem:[%s16288_s13 + $0xc8] sm:$0xff] }
  0x3a   : > { %964 = vmatmul.bf16.vlgmr.msra.gmra.mxu0 %v9768_v23  ;;  %v12648_v23 = vld [vmem:[%s13414_s30 + $0x74] sm:$0xf0] }
  0x3b   : > { %1077 = vmatmul.bf16.vlgmr.msra.gmra.mxu1 %v9772_v24  ;;  %v12647_v24 = vld [vmem:[%s13414_s30 + $0x74] sm:$0xf]  ;;  %v9824_v26 = vor.u32 %v12648_v23, %v9823_v20  ;;  %v9847_v23 = vld [vmem:[%s13414_s30 + $0xa0] sm:$0xf] }
  0x3c   : > { %v9828_v27 = vor.u32 %v12647_v24, %v9825_v25  ;;  %v1261_v24 = vld [vmem:[%s16288_s13 + $0x130] sm:$0xff]  ;;  %v570_v25 = vld [vmem:[%s16289_s14 + $0x38] sm:$0xff] }
  0x3e   : > { %1321 = vperm.xlu2 %13146, %v1234_v5  }
  0x3f   : > { %1326 = vperm.xlu0 %13144, %v1235_v51  }
  0x40   : > { %1331 = vperm.xlu1 %13145, %v1236_v58   ;;  %v564_v58 = vld [vmem:[%s16289_s14 + $0x8] sm:$0xff] }
  0x46   : > { %1336 = vperm.xlu2 %13146, %v1237_v8  }
  0x47   : > { %1341 = vperm.xlu0 %13144, %v1238_v59  }
  0x48   : > { %1346 = vperm.xlu1 %13145, %v1239_v61   ;;  %v12651_v61 = vld [vmem:[%s13414_s30 + $0x94] sm:$0xf] }
  0x4a   : > { %969 = vmatmul.bf16.gmra.mxu0 %v9776_v31  ;;  %v1256_v31 = vld [vmem:[%s16288_s13 + $0x108] sm:$0xff] }
  0x4b   : > { %1082 = vmatmul.bf16.gmra.mxu1 %v9780_v32  ;;  %v9831_v32 = vld [vmem:[%s13414_s30 + $0x80] sm:$0xf] }
  0x4c   : > { %v9832_v39 = vor.u32 %v12650_v35, %v9831_v32 }
  0x4e   : > { %1351 = vperm.xlu2 %13146, %v1240_v17  }
  0x4f   : > { %1356 = vperm.xlu0 %13144, %v1241_v62   ;;  %v9841_v62 = vld [vmem:[%s13414_s30 + $0x98] sm:$0xf0] }
  0x50   : > { %1361 = vperm.xlu1 %13145, %v1242_v6   ;;  %v9844_v2 = vor.u32 %v12651_v61, %v9841_v62  ;;  %v566_v6 = vld [vmem:[%s16289_s14 + $0x18] sm:$0xff]  ;;  %v568_v61 = vld [vmem:[%s16289_s14 + $0x28] sm:$0xff] }
  0x51   : > { %v1262_v62 = vld [vmem:[%s16288_s13 + $0x138] sm:$0xff] }
  0x56   : > { %1366 = vperm.xlu2 %13146, %v1243_v21  }
  0x57   : > { %1371 = vperm.xlu0 %13144, %v1244_v7  }
  0x58   : > { %1376 = vperm.xlu1 %13145, %v1245_v9   ;;  %v1258_v9 = vld [vmem:[%s16288_s13 + $0x118] sm:$0xff] }
  0x5a   : > { %974 = vmatmul.bf16.gmra.mxu0 %v9784_v37  ;;  %v9833_v37 = vld [vmem:[%s13414_s30 + $0x88] sm:$0xf0] }
  0x5b   : > { %1087 = vmatmul.bf16.gmra.mxu1 %v9788_v38  ;;  %v13557_v38 = vld [vmem:[%s16277_s2] ss:$0 sm:$0xff]  ;;  %v9836_v40 = vor.u32 %v12649_v36, %v9833_v37 }
  0x5e   : > { %1381 = vperm.xlu2 %13146, %v1246_v29   ;;  %v9849_v29 = vld [vmem:[%s13414_s30 + $0xa8] sm:$0xf0] }
  0x5f   : > { %1386 = vperm.xlu0 %13144, %v1247_v16  }
  0x60   : > { %1391 = vperm.xlu1 %13145, %v1248_v18  }
  0x66   : > { %1396 = vperm.xlu2 %13146, %v1249_v33  }
  0x67   : > { %1401 = vperm.xlu0 %13144, %v1250_v19   ;;  %v569_v19 = vld [vmem:[%s16289_s14 + $0x30] sm:$0xff] }
  0x68   : > { %1406 = vperm.xlu1 %13145, %v1251_v22  }
  0x6a   : > { %979 = vmatmul.bf16.gmra.mxu0 %v9792_v46 }
  0x6b   : > { %1092 = vmatmul.bf16.gmra.mxu1 %v9796_v47  ;;  %v1252_v47 = vld [vmem:[%s16288_s13 + $0xe8] sm:$0xff] }
  0x6e   : > { %1411 = vperm.xlu2 %13146, %v1252_v47   ;;  %v573_v47 = vld [vmem:[%s16290_s15] sm:$0xff] }
  0x6f   : > { %1416 = vperm.xlu0 %13144, %v1253_v28   ;;  %v12653_v28 = vld [vmem:[%s13414_s30 + $0xa4] sm:$0xf] }
  0x70   : > { %1421 = vperm.xlu1 %13145, %v1254_v30   ;;  %v9852_v33 = vor.u32 %v12653_v28, %v9849_v29 }
  0x77   : > { %1431 = vperm.xlu0 %13144, %v1256_v31  }
  0x78   : > { %1436 = vperm.xlu1 %13145, %v1257_v34  }
  0x7a   : > { %984 = vmatmul.bf16.gmra.mxu0 %v9800_v56  ;;  %v9839_v56 = vld [vmem:[%s13414_s30 + $0x90] sm:$0xf] }
  0x7b   : > { %1097 = vmatmul.bf16.gmra.mxu1 %v9804_v57  ;;  %v1255_v57 = vld [vmem:[%s16288_s13 + $0x100] sm:$0xff]  ;;  %v9840_v1 = vor.u32 %v12652_v60, %v9839_v56  ;;  %v575_v56 = vld [vmem:[%s16290_s15 + $0x10] sm:$0x3f] }
  0x7c   : > { %1426 = vperm.xlu2 %13146, %v1255_v57   ;;  %v9855_v60 = vld [vmem:[%s13414_s30 + $0xb0] sm:$0xf] }
  0x7f   : > { %1446 = vperm.xlu0 %13144, %v1259_v44  }
  0x80   : > { %1451 = vperm.xlu1 %13145, %v1260_v48  }
  0x84   : > { %1441 = vperm.xlu2 %13146, %v1258_v9  }
  0x87   : > { %2830 = vperm.xlu0 %13144, %v563_v54  }
  0x88   : > { %2835 = vperm.xlu1 %13145, %v564_v58  }
  0x8a   : > { %989 = vmatmul.bf16.gmra.mxu0 %v9808_v3 }
  0x8b   : > { %1102 = vmatmul.bf16.gmra.mxu1 %v9812_v4 }
  0x8c   : > { %1456 = vperm.xlu2 %13146, %v1261_v24  }
  0x8f   : > { %2845 = vperm.xlu0 %13144, %v566_v6  }
  0x90   : > { %2850 = vperm.xlu1 %13145, %v567_v10  }
  0x91   : > { %v1267_v45 = vpop.permute.xlu0 %1266 }
  0x92   : > { %v1277_v7 = vpop.permute.xlu1 %1276 }
  0x97   : > { %2860 = vperm.xlu0 %13144, %v569_v19  }
  0x98   : > { %2865 = vperm.xlu1 %13145, %v570_v25  }
  0x99   : > { %v1272_v59 = vpop.permute.xlu0 %1271 }
  0x9a   : > { %994 = vmatmul.bf16.gmra.mxu0 %v9816_v14 }
  0x9b   : > { %1107 = vmatmul.bf16.gmra.mxu1 %v9820_v15 }
  0xa0   : > { %7944 = vperm.xlu1 %13145, %v573_v47  }
  0xa1   : > { %v1297_v19 = vpop.permute.xlu0 %1296 }
  0xa8   : > { %1461 = vperm.xlu1 %13145, %v1262_v62  }
  0xaa   : > { %999 = vmatmul.bf16.gmra.mxu0 %v9824_v26  ;;  %v1282_v26 = vpop.permute.xlu1 %1281 }
  0xab   : > { %1112 = vmatmul.bf16.gmra.mxu1 %v9828_v27  ;;  %v12654_v27 = vld [vmem:[%s13414_s30 + $0xa4] sm:$0xf0] }
  0xac   : > { %v9848_v32 = vor.u32 %v12654_v27, %v9847_v23  ;;  %v13229_v23 = vmov 0.0  }
  0xad   : > { %521 = vst.msk [vmem:[#allocation4] sm:$0xff] %vm520_vm0, %v13229_v23 }
  0xae   : > { %522 = vst.msk [vmem:[#allocation4 + $0x8] sm:$0xff] %vm520_vm0, %v13229_v23 }
  0xaf   : > { %523 = vst.msk [vmem:[#allocation4 + $0x10] sm:$0xff] %vm520_vm0, %v13229_v23 }
  0xb0   : > { %524 = vst.msk [vmem:[#allocation4 + $0x18] sm:$0xff] %vm520_vm0, %v13229_v23 }
  0xb1   : > { %525 = vst.msk [vmem:[#allocation4 + $0x20] sm:$0xff] %vm520_vm0, %v13229_v23 }
  0xb2   : > { %526 = vst.msk [vmem:[#allocation4 + $0x28] sm:$0xff] %vm520_vm0, %v13229_v23 }
  0xb3   : > { %527 = vst.msk [vmem:[#allocation4 + $0x30] sm:$0xff] %vm520_vm0, %v13229_v23 }
  0xb4   : > { %528 = vst.msk [vmem:[#allocation4 + $0x38] sm:$0xff] %vm520_vm0, %v13229_v23 }
  0xb5   : > { %529 = vst.msk [vmem:[#allocation4 + $0x40] sm:$0xff] %vm520_vm0, %v13229_v23 }
  0xb6   : > { %530 = vst.msk [vmem:[#allocation4 + $0x48] sm:$0xff] %vm520_vm0, %v13229_v23 }
  0xb7   : > { %v965_v41 = vpop.f32.mrf.mxu0  ;;  %531 = vst.msk [vmem:[#allocation4 + $0x50] sm:$0xff] %vm520_vm0, %v13229_v23 }
  0xb8   : > { %v1078_v42 = vpop.f32.mrf.mxu1  ;;  %v966_v43 = vadd.f32 %v13557_v38, %v965_v41  ;;  %v572_v41 = vld [vmem:[%s16289_s14 + $0x48] sm:$0x3f]  ;;  %532 = vst.msk [vmem:[#allocation4 + $0x58] sm:$0xff] %vm520_vm0, %v13229_v23 }
  0xb9   : > { %2875 = vperm.xlu0 %13144, %v572_v41   ;;  %v1302_v41 = vpop.permute.xlu1 %1301  ;;  %535 = vst.msk [vmem:[#allocation5] sm:$0xff] %vm520_vm0, %v13229_v23 }
  0xba   : > { %v1079_v46 = vadd.f32 %v1078_v42, %v966_v43  ;;  %1004 = vmatmul.bf16.gmra.mxu0 %v9832_v39  ;;  %v1287_v43 = vpop.permute.xlu2 %1286  ;;  %536 = vst.msk [vmem:[#allocation5 + $0x8] sm:$0xff] %vm520_vm0, %v13229_v23 }
  0xbb   : > { %1117 = vmatmul.bf16.gmra.mxu1 %v9836_v40  ;;  %537 = vst.msk [vmem:[#allocation5 + $0x10] sm:$0xff] %vm520_vm0, %v13229_v23 }
  0xbc   : > { %v1182_v49 = vmax.f32 %v1079_v46, 0.0  ;;  %v565_v46 = vld [vmem:[%s16289_s14 + $0x10] sm:$0xff]  ;;  %538 = vst.msk [vmem:[#allocation5 + $0x18] sm:$0xff] %vm520_vm0, %v13229_v23 }
  0xbd   : > { %2840 = vperm.xlu2 %13146, %v565_v46   ;;  %539 = vst.msk [vmem:[#allocation5 + $0x20] sm:$0xff] %vm520_vm0, %v13229_v23 }
  0xbe   : > { %v1469_v50 = vmul.f32 %v1267_v45, %v1182_v49  ;;  %540 = vst.msk [vmem:[#allocation5 + $0x28] sm:$0xff] %vm520_vm0, %v13229_v23 }
  0xbf   : > { %v967_v51 = vpop.f32.mrf.mxu0  ;;  %541 = vst.msk [vmem:[#allocation5 + $0x30] sm:$0xff] %vm520_vm0, %v13229_v23 }
  0xc0   : > { %v1080_v52 = vpop.f32.mrf.mxu1  ;;  %1510 = vst.msk [vmem:[#allocation2] sm:$0xff] %vm520_vm0, %v1469_v50  ;;  %v968_v53 = vadd.f32 %v13557_v38, %v967_v51 }
  0xc1   : > { %7954 = vperm.xlu0 %13144, %v575_v56   ;;  %542 = vst.msk [vmem:[#allocation5 + $0x38] sm:$0xff] %vm520_vm0, %v13229_v23 }
  0xc2   : > { %v1081_v55 = vadd.f32 %v1080_v52, %v968_v53  ;;  %543 = vst.msk [vmem:[#allocation5 + $0x40] sm:$0xff] %vm520_vm0, %v13229_v23 }
  0xc3   : > { %544 = vst.msk [vmem:[#allocation5 + $0x48] sm:$0xff] %vm520_vm0, %v13229_v23 }
  0xc4   : > { %v1183_v63 = vmax.f32 %v1081_v55, 0.0  ;;  %545 = vst.msk [vmem:[#allocation5 + $0x50] sm:$0xff] %vm520_vm0, %v13229_v23 }
  0xc5   : > { %2855 = vperm.xlu2 %13146, %v568_v61   ;;  %546 = vst.msk [vmem:[#allocation5 + $0x58] sm:$0xff] %vm520_vm0, %v13229_v23 }
  0xc6   : > { %v1470_v0 = vmul.f32 %v1272_v59, %v1183_v63  ;;  %v1292_v63 = vpop.permute.xlu2 %1291  ;;  %548 = vst [vmem:[#allocation7] sm:$0xff] %v13229_v23 }
  0xc7   : > { %v970_v3 = vpop.f32.mrf.mxu0  ;;  %v1551_v13 = vld [vmem:[#allocation2] sm:$0xff]  ;;  %549 = vst [vmem:[#allocation7 + $0x8] sm:$0xff] %v13229_v23 }
  0xc8   : > { %v1083_v4 = vpop.f32.mrf.mxu1  ;;  %1511 = vst.msk [vmem:[#allocation2 + $0x8] sm:$0xff] %vm520_vm0, %v1470_v0  ;;  %v971_v5 = vadd.f32 %v13557_v38, %v970_v3  ;;  %v12656_v0 = vld [vmem:[%s13414_s30 + $0xb4] sm:$0xf0] }
  0xc9   : > { %550 = vst [vmem:[#allocation7 + $0x10] sm:$0xff] %v13229_v23 }
  0xca   : > { %v1084_v8 = vadd.f32 %v1083_v4, %v971_v5  ;;  %1009 = vmatmul.bf16.gmra.mxu0 %v9840_v1  ;;  %v12655_v1 = vld [vmem:[%s13414_s30 + $0xb4] sm:$0xf]  ;;  %v9856_v5 = vor.u32 %v12656_v0, %v9855_v60  ;;  %551 = vst [vmem:[#allocation7 + $0x18] sm:$0xff] %v13229_v23 }
  0xcb   : > { %1122 = vmatmul.bf16.gmra.mxu1 %v9844_v2  ;;  %v9857_v2 = vld [vmem:[%s13414_s30 + $0xb8] sm:$0xf0]  ;;  %552 = vst [vmem:[#allocation7 + $0x20] sm:$0xf] %v13229_v23 }
  0xcc   : > { %v1184_v11 = vmax.f32 %v1084_v8, 0.0  ;;  %v9860_v6 = vor.u32 %v12655_v1, %v9857_v2  ;;  %553 = vst [vmem:[#allocation8] sm:$0xff] %v13229_v23 }
  0xcd   : > { %554 = vst [vmem:[#allocation8 + $0x8] sm:$0xff] %v13229_v23 }
  0xce   : > { %v1471_v12 = vmul.f32 %v1277_v7, %v1184_v11  ;;  %555 = vst [vmem:[#allocation8 + $0x10] sm:$0xff] %v13229_v23 }
  0xcf   : > { %v1592_v14 = vld [vmem:[#allocation2 + $0x1] sm:$0xff]  ;;  %v972_v15 = vpop.f32.mrf.mxu0  ;;  %556 = vst [vmem:[#allocation8 + $0x18] sm:$0xff] %v13229_v23 }
  0xd0   : > { %v1085_v16 = vpop.f32.mrf.mxu1  ;;  %v1633_v17 = vmax.f32 %v1551_v13, %v1592_v14  ;;  %1512 = vst.msk [vmem:[#allocation2 + $0x10] sm:$0xff] %vm520_vm0, %v1471_v12  ;;  %v973_v18 = vadd.f32 %v13557_v38, %v972_v15  ;;  %v1674_v20 = vld [vmem:[#allocation2 + $0x2] sm:$0xff]  ;;  %v12696_v13 = vld [vmem:[%s16278_s3 + $0x38] sm:$0xff] }
  0xd1   : > { %v1552_v34 = vld [vmem:[#allocation2 + $0x8] sm:$0xff]  ;;  %v12692_v14 = vld [vmem:[%s16278_s3 + $0x18] sm:$0xff]  ;;  %1952 = vmatpush.bf16.msra.mxu2 %v12696_v13  ;;  %557 = vst [vmem:[#allocation8 + $0x20] sm:$0xf] %v13229_v23 }
  0xd2   : > { %v1715_v21 = vmax.f32 %v1633_v17, %v1674_v20  ;;  %v1086_v22 = vadd.f32 %v1085_v16, %v973_v18  ;;  %v571_v18 = vld [vmem:[%s16289_s14 + $0x40] sm:$0xff]  ;;  %2025 = vmatpush.bf16.msra.mxu3 %v12692_v14  ;;  %v12695_v20 = vld [vmem:[%s16278_s3 + $0x30] sm:$0xff]  ;;  %558 = vst [vmem:[#allocation9] sm:$0xff] %v13229_v23 }
  0xd3   : > { %2870 = vperm.xlu2 %13146, %v571_v18   ;;  %559 = vst [vmem:[#allocation9 + $0x8] sm:$0xff] %v13229_v23 }
  0xd4   : > { %1756 = vst.msk [vmem:[#allocation3] sm:$0xff] %vm520_vm0, %v1715_v21  ;;  %v1185_v30 = vmax.f32 %v1086_v22, 0.0  ;;  %v12691_v21 = vld [vmem:[%s16278_s3 + $0x10] sm:$0xff] }
  0xd5   : > { %1953 = vmatpush.bf16.msra.mxu2 %v12695_v20  ;;  %560 = vst [vmem:[#allocation9 + $0x10] sm:$0xff] %v13229_v23 }
  0xd6   : > { %v1472_v31 = vmul.f32 %v1282_v26, %v1185_v30  ;;  %2026 = vmatpush.bf16.msra.mxu3 %v12691_v21  ;;  %561 = vst [vmem:[#allocation9 + $0x18] sm:$0xff] %v13229_v23 }
  0xd7   : > { %v1593_v35 = vld [vmem:[#allocation2 + $0x9] sm:$0xff]  ;;  %v975_v36 = vpop.f32.mrf.mxu0 }
  0xd8   : > { %v1088_v37 = vpop.f32.mrf.mxu1  ;;  %v1634_v39 = vmax.f32 %v1552_v34, %v1593_v35  ;;  %1513 = vst.msk [vmem:[#allocation2 + $0x18] sm:$0xff] %vm520_vm0, %v1472_v31  ;;  %v976_v40 = vadd.f32 %v13557_v38, %v975_v36  ;;  %v1675_v42 = vld [vmem:[#allocation2 + $0xa] sm:$0xff]  ;;  %v9863_v34 = vld [vmem:[%s13414_s30 + $0xc0] sm:$0xf] }
  0xd9   : > { %v1553_v50 = vld [vmem:[#allocation2 + $0x10] sm:$0xff]  ;;  %v12694_v31 = vld [vmem:[%s16278_s3 + $0x28] sm:$0xff] }
  0xda   : > { %v1716_v44 = vmax.f32 %v1634_v39, %v1675_v42  ;;  %v1089_v45 = vadd.f32 %v1088_v37, %v976_v40  ;;  %1014 = vmatmul.bf16.gmra.mxu0 %v9848_v32  ;;  %v12690_v32 = vld [vmem:[%s16278_s3 + $0x8] sm:$0xff]  ;;  %v12657_v39 = vld [vmem:[%s13414_s30 + $0xc4] sm:$0xf]  ;;  %1954 = vmatpush.bf16.msra.mxu2 %v12694_v31 }
  0xdb   : > { %1127 = vmatmul.bf16.gmra.mxu1 %v9852_v33  ;;  %v12658_v37 = vld [vmem:[%s13414_s30 + $0xc4] sm:$0xf0]  ;;  %v9865_v42 = vld [vmem:[%s13414_s30 + $0xc8] sm:$0xf0]  ;;  %2027 = vmatpush.bf16.msra.mxu3 %v12690_v32  ;;  %v1317_v32 = vpop.permute.xlu1 %1316 }
  0xdc   : > { %1757 = vst.msk [vmem:[#allocation3 + $0x8] sm:$0xff] %vm520_vm0, %v1716_v44  ;;  %v1186_v48 = vmax.f32 %v1089_v45, 0.0  ;;  %v574_v40 = vld [vmem:[%s16290_s15 + $0x8] sm:$0xff]  ;;  %v12689_v44 = vld [vmem:[%s16278_s3] sm:$0xff]  ;;  %v9864_v47 = vor.u32 %v12658_v37, %v9863_v34 }
  0xdd   : > { %7949 = vperm.xlu2 %13146, %v574_v40  }
  0xde   : > { %v1473_v49 = vmul.f32 %v1287_v43, %v1186_v48  ;;  %v12693_v43 = vld [vmem:[%s16278_s3 + $0x20] sm:$0xff]  ;;  %v9868_v48 = vor.u32 %v12657_v39, %v9865_v42  ;;  %v1885_v42 = vld [vmem:[#allocation4 + $0x1] sm:$0xff] }
  0xdf   : > { %v1594_v51 = vld [vmem:[#allocation2 + $0x11] sm:$0xff]  ;;  %v977_v52 = vpop.f32.mrf.mxu0  ;;  %1955 = vmatpush.bf16.msra.mxu2 %v12693_v43  ;;  %2028 = vmatpush.bf16.msra.mxu3 %v12689_v44 }
  0xe0   : > { %v1090_v53 = vpop.f32.mrf.mxu1  ;;  %v1635_v54 = vmax.f32 %v1553_v50, %v1594_v51  ;;  %1514 = vst.msk [vmem:[#allocation2 + $0x20] sm:$0xff] %vm520_vm0, %v1473_v49  ;;  %v978_v55 = vadd.f32 %v13557_v38, %v977_v52  ;;  %v1676_v57 = vld [vmem:[#allocation2 + $0x12] sm:$0xff] }
  0xe1   : > { %v1554_v7 = vld [vmem:[#allocation2 + $0x18] sm:$0xff] }
  0xe2   : > { %v1717_v58 = vmax.f32 %v1635_v54, %v1676_v57  ;;  %v1091_v59 = vadd.f32 %v1090_v53, %v978_v55 }
  0xe4   : > { %1758 = vst.msk [vmem:[#allocation3 + $0x10] sm:$0xff] %vm520_vm0, %v1717_v58  ;;  %v1187_v3 = vmax.f32 %v1091_v59, 0.0  ;;  %v1263_v58 = vld [vmem:[%s16288_s13 + $0x140] sm:$0xf]  ;;  %v1307_v59 = vpop.permute.xlu2 %1306 }
  0xe5   : > { %1466 = vperm.xlu2 %13146, %v1263_v58  }
  0xe6   : > { %v1474_v4 = vmul.f32 %v1292_v63, %v1187_v3 }
  0xe7   : > { %v1595_v8 = vld [vmem:[#allocation2 + $0x19] sm:$0xff]  ;;  %v980_v9 = vpop.f32.mrf.mxu0 }
  0xe8   : > { %v1093_v10 = vpop.f32.mrf.mxu1  ;;  %v1636_v11 = vmax.f32 %v1554_v7, %v1595_v8  ;;  %1515 = vst.msk [vmem:[#allocation2 + $0x28] sm:$0xff] %vm520_vm0, %v1474_v4  ;;  %v981_v12 = vadd.f32 %v13557_v38, %v980_v9  ;;  %v1677_v15 = vld [vmem:[#allocation2 + $0x1a] sm:$0xff]  ;;  %v9871_v7 = vld [vmem:[%s13414_s30 + $0xd0] sm:$0xf]  ;;  %v12659_v9 = vld [vmem:[%s13414_s30 + $0xd4] sm:$0xf] }
  0xe9   : > { %v1555_v25 = vld [vmem:[#allocation2 + $0x20] sm:$0xff]  ;;  %v12660_v8 = vld [vmem:[%s13414_s30 + $0xd4] sm:$0xf0] }
  0xea   : > { %v1718_v16 = vmax.f32 %v1636_v11, %v1677_v15  ;;  %v1094_v17 = vadd.f32 %v1093_v10, %v981_v12  ;;  %1019 = vmatmul.bf16.gmra.mxu0 %v9856_v5  ;;  %v9873_v10 = vld [vmem:[%s13414_s30 + $0xd8] sm:$0xf0]  ;;  %v1312_v12 = vpop.permute.xlu0 %1311  ;;  %v9872_v14 = vor.u32 %v12660_v8, %v9871_v7 }
  0xeb   : > { %1132 = vmatmul.bf16.gmra.mxu1 %v9860_v6  ;;  %v9876_v15 = vor.u32 %v12659_v9, %v9873_v10 }
  0xec   : > { %1759 = vst.msk [vmem:[#allocation3 + $0x18] sm:$0xff] %vm520_vm0, %v1718_v16  ;;  %v1188_v22 = vmax.f32 %v1094_v17, 0.0 }
  0xee   : > { %v1475_v24 = vmul.f32 %v1297_v19, %v1188_v22 }
  0xef   : > { %v1596_v26 = vld [vmem:[#allocation2 + $0x21] sm:$0xff]  ;;  %v982_v27 = vpop.f32.mrf.mxu0 }
  0xf0   : > { %v1095_v28 = vpop.f32.mrf.mxu1  ;;  %v1637_v29 = vmax.f32 %v1555_v25, %v1596_v26  ;;  %1516 = vst.msk [vmem:[#allocation2 + $0x30] sm:$0xff] %vm520_vm0, %v1475_v24  ;;  %v983_v30 = vadd.f32 %v13557_v38, %v982_v27  ;;  %v1678_v33 = vld [vmem:[#allocation2 + $0x22] sm:$0xff] }
  0xf1   : > { %v1556_v49 = vld [vmem:[#allocation2 + $0x28] sm:$0xff] }
  0xf2   : > { %v1719_v35 = vmax.f32 %v1637_v29, %v1678_v33  ;;  %v1096_v36 = vadd.f32 %v1095_v28, %v983_v30  ;;  %v1798_v25 = vld [vmem:[#allocation3] ss:$2 sm:$0xff] }
  0xf4   : > { %1760 = vst.msk [vmem:[#allocation3 + $0x20] sm:$0xff] %vm520_vm0, %v1719_v35  ;;  %v1189_v45 = vmax.f32 %v1096_v36, 0.0 }
  0xf6   : > { %v1476_v46 = vmul.f32 %v1302_v41, %v1189_v45  ;;  %v1862_v45 = vld [vmem:[#allocation4] sm:$0xff] }
  0xf7   : > { %v1597_v50 = vld [vmem:[#allocation2 + $0x29] sm:$0xff]  ;;  %v985_v51 = vpop.f32.mrf.mxu0 }
  0xf8   : > { %v1098_v52 = vpop.f32.mrf.mxu1  ;;  %v1638_v53 = vmax.f32 %v1556_v49, %v1597_v50  ;;  %1517 = vst.msk [vmem:[#allocation2 + $0x38] sm:$0xff] %vm520_vm0, %v1476_v46  ;;  %v986_v54 = vadd.f32 %v13557_v38, %v985_v51  ;;  %v1679_v55 = vld [vmem:[#allocation2 + $0x2a] sm:$0xff]  ;;  %v9879_v46 = vld [vmem:[%s13414_s30 + $0xe0] sm:$0xf]  ;;  %v1322_v51 = vpop.permute.xlu2 %1321 }
  0xf9   : > { %v1557_v62 = vld [vmem:[#allocation2 + $0x30] sm:$0xff]  ;;  %v9881_v49 = vld [vmem:[%s13414_s30 + $0xe8] sm:$0xf0] }
  0xfa   : > { %v1720_v56 = vmax.f32 %v1638_v53, %v1679_v55  ;;  %v1099_v57 = vadd.f32 %v1098_v52, %v986_v54  ;;  %1024 = vmatmul.bf16.gmra.mxu0 %v9864_v47  ;;  %v12662_v47 = vld [vmem:[%s13414_s30 + $0xe4] sm:$0xf0] }
  0xfb   : > { %1137 = vmatmul.bf16.gmra.mxu1 %v9868_v48  ;;  %v1800_v20 = vld [vmem:[#allocation3 + $0x12] ss:$2 sm:$0xff]  ;;  %v9880_v54 = vor.u32 %v12662_v47, %v9879_v46 }
  0xfc   : > { %1761 = vst.msk [vmem:[#allocation3 + $0x28] sm:$0xff] %vm520_vm0, %v1720_v56  ;;  %v1190_v60 = vmax.f32 %v1099_v57, 0.0  ;;  %v1801_v28 = vmax.f32 %v1798_v25, %v1800_v20  ;;  %v12661_v48 = vld [vmem:[%s13414_s30 + $0xe4] sm:$0xf] }
  0xfd   : > { %v9884_v58 = vor.u32 %v12661_v48, %v9881_v49 }
  0xfe   : > { %v1477_v61 = vmul.f32 %v1307_v59, %v1190_v60 }
  0xff   : > { %v1598_v63 = vld [vmem:[#allocation2 + $0x31] sm:$0xff]  ;;  %v987_v0 = vpop.f32.mrf.mxu0 }
 0x100   : > { %v1100_v1 = vpop.f32.mrf.mxu1  ;;  %v1639_v2 = vmax.f32 %v1557_v62, %v1598_v63  ;;  %1518 = vst.msk [vmem:[#allocation2 + $0x40] sm:$0xff] %vm520_vm0, %v1477_v61  ;;  %v988_v3 = vadd.f32 %v13557_v38, %v987_v0  ;;  %v1680_v4 = vld [vmem:[#allocation2 + $0x32] sm:$0xff] }
 0x101   : > { %v1558_v16 = vld [vmem:[#allocation2 + $0x38] sm:$0xff] }
 0x102   : > { %v1721_v5 = vmax.f32 %v1639_v2, %v1680_v4  ;;  %v1101_v6 = vadd.f32 %v1100_v1, %v988_v3 }
 0x104   : > { %1762 = vst.msk [vmem:[#allocation3 + $0x30] sm:$0xff] %vm520_vm0, %v1721_v5  ;;  %v1191_v11 = vmax.f32 %v1101_v6, 0.0  ;;  %v1327_v5 = vpop.permute.xlu0 %1326 }
 0x106   : > { %v1478_v13 = vmul.f32 %v1312_v12, %v1191_v11 }
 0x107   : > { %v1599_v17 = vld [vmem:[#allocation2 + $0x39] sm:$0xff]  ;;  %v990_v18 = vpop.f32.mrf.mxu0 }
 0x108   : > { %v1103_v19 = vpop.f32.mrf.mxu1  ;;  %v1640_v21 = vmax.f32 %v1558_v16, %v1599_v17  ;;  %1519 = vst.msk [vmem:[#allocation2 + $0x48] sm:$0xff] %vm520_vm0, %v1478_v13  ;;  %v991_v22 = vadd.f32 %v13557_v38, %v990_v18  ;;  %v1681_v24 = vld [vmem:[#allocation2 + $0x3a] sm:$0xff]  ;;  %v9887_v16 = vld [vmem:[%s13414_s30 + $0xf0] sm:$0xf]  ;;  %v12663_v18 = vld [vmem:[%s13414_s30 + $0xf4] sm:$0xf] }
 0x109   : > { %v1559_v34 = vld [vmem:[#allocation2 + $0x40] sm:$0xff]  ;;  %v12664_v17 = vld [vmem:[%s13414_s30 + $0xf4] sm:$0xf0] }
 0x10a   : > { %v1722_v26 = vmax.f32 %v1640_v21, %v1681_v24  ;;  %v1104_v27 = vadd.f32 %v1103_v19, %v991_v22  ;;  %1029 = vmatmul.bf16.gmra.mxu0 %v9872_v14  ;;  %v9889_v19 = vld [vmem:[%s13414_s30 + $0xf8] sm:$0xf0]  ;;  %v1332_v21 = vpop.permute.xlu1 %1331  ;;  %v9888_v23 = vor.u32 %v12664_v17, %v9887_v16 }
 0x10b   : > { %1142 = vmatmul.bf16.gmra.mxu1 %v9876_v15  ;;  %v1803_v29 = vld [vmem:[#allocation3 + $0x24] ss:$2 sm:$0xff]  ;;  %v9892_v24 = vor.u32 %v12663_v18, %v9889_v19 }
 0x10c   : > { %1763 = vst.msk [vmem:[#allocation3 + $0x38] sm:$0xff] %vm520_vm0, %v1722_v26  ;;  %v1192_v30 = vmax.f32 %v1104_v27, 0.0  ;;  %v1804_v31 = vmax.f32 %v1801_v28, %v1803_v29  ;;  %v9903_v18 = vld [vmem:[%s13414_s30 + $0x110] sm:$0xf]  ;;  %v12668_v19 = vld [vmem:[%s13414_s30 + $0x114] sm:$0xf0] }
 0x10e   : > { %v1479_v33 = vmul.f32 %v1317_v32, %v1192_v30  ;;  %1805 = vst.msk [vmem:[#allocation4 + $0xb] sm:$0xff] %vm520_vm0, %v1804_v31 }
 0x10f   : > { %v1600_v35 = vld [vmem:[#allocation2 + $0x41] sm:$0xff]  ;;  %v992_v36 = vpop.f32.mrf.mxu0 }
 0x110   : > { %v1105_v37 = vpop.f32.mrf.mxu1  ;;  %v1641_v39 = vmax.f32 %v1559_v34, %v1600_v35  ;;  %1520 = vst.msk [vmem:[#allocation2 + $0x50] sm:$0xff] %vm520_vm0, %v1479_v33  ;;  %v993_v40 = vadd.f32 %v13557_v38, %v992_v36  ;;  %v1682_v41 = vld [vmem:[#allocation2 + $0x42] sm:$0xff]  ;;  %v1806_v33 = vld [vmem:[#allocation3 + $0x24] ss:$2 sm:$0xff] }
 0x111   : > { %v1560_v59 = vld [vmem:[#allocation2 + $0x48] sm:$0xff] }
 0x112   : > { %v1723_v43 = vmax.f32 %v1641_v39, %v1682_v41  ;;  %v1106_v44 = vadd.f32 %v1105_v37, %v993_v40  ;;  %v1337_v41 = vpop.permute.xlu2 %1336 }
 0x114   : > { %1764 = vst.msk [vmem:[#allocation3 + $0x40] sm:$0xff] %vm520_vm0, %v1723_v43  ;;  %v1193_v50 = vmax.f32 %v1106_v44, 0.0 }
 0x115   : > { %v1886_v52 = vld [vmem:[#allocation4 + $0x9] sm:$0xff] }
 0x116   : > { %v1863_v53 = vld [vmem:[#allocation4 + $0x8] sm:$0xff]  ;;  %v1480_v55 = vmul.f32 %v1322_v51, %v1193_v50  ;;  %v1895_v56 = vpack.c.bf16 %v1886_v52, %v1885_v42  ;;  %v9895_v52 = vld [vmem:[%s13414_s30 + $0x100] sm:$0xf] }
 0x117   : > { %v1872_v57 = vpack.c.bf16 %v1863_v53, %v1862_v45  ;;  %v1601_v60 = vld [vmem:[#allocation2 + $0x49] sm:$0xff]  ;;  %v995_v61 = vpop.f32.mrf.mxu0 }
 0x118   : > { %v1108_v62 = vpop.f32.mrf.mxu1  ;;  %v1642_v63 = vmax.f32 %v1560_v59, %v1601_v60  ;;  %1521 = vst.msk [vmem:[#allocation2 + $0x58] sm:$0xff] %vm520_vm0, %v1480_v55  ;;  %v996_v0 = vadd.f32 %v13557_v38, %v995_v61  ;;  %10013 = vmatmul.msk.bf16.vlgmr.msra.gmra.mxu2 %vm520_vm0, %v1895_v56  ;;  %v1683_v1 = vld [vmem:[#allocation2 + $0x4a] sm:$0xff] }
 0x119   : > { %10034 = vmatmul.msk.bf16.vlgmr.msra.gmra.mxu3 %vm520_vm0, %v1872_v57  ;;  %v1561_v7 = vld [vmem:[#allocation2 + $0x50] sm:$0xff]  ;;  %v12666_v53 = vld [vmem:[%s13414_s30 + $0x104] sm:$0xf0]  ;;  %v9897_v55 = vld [vmem:[%s13414_s30 + $0x108] sm:$0xf0]  ;;  %v1342_v57 = vpop.permute.xlu0 %1341 }
 0x11a   : > { %v1724_v2 = vmax.f32 %v1642_v63, %v1683_v1  ;;  %v1109_v3 = vadd.f32 %v1108_v62, %v996_v0  ;;  %1034 = vmatmul.bf16.gmra.mxu0 %v9880_v54  ;;  %v12665_v54 = vld [vmem:[%s13414_s30 + $0x104] sm:$0xf]  ;;  %v9896_v59 = vor.u32 %v12666_v53, %v9895_v52  ;;  %v12670_v52 = vld [vmem:[%s13414_s30 + $0x124] sm:$0xf0] }
 0x11b   : > { %1147 = vmatmul.bf16.gmra.mxu1 %v9884_v58  ;;  %v1808_v29 = vld [vmem:[#allocation3 + $0x36] ss:$2 sm:$0xff]  ;;  %v9900_v60 = vor.u32 %v12665_v54, %v9897_v55 }
 0x11c   : > { %1765 = vst.msk [vmem:[#allocation3 + $0x48] sm:$0xff] %vm520_vm0, %v1724_v2  ;;  %v1194_v4 = vmax.f32 %v1109_v3, 0.0  ;;  %v1809_v36 = vmax.f32 %v1806_v33, %v1808_v29  ;;  %v12669_v54 = vld [vmem:[%s13414_s30 + $0x124] sm:$0xf]  ;;  %v9913_v55 = vld [vmem:[%s13414_s30 + $0x128] sm:$0xf0] }
 0x11e   : > { %v1481_v6 = vmul.f32 %v1327_v5, %v1194_v4 }
 0x11f   : > { %v1602_v8 = vld [vmem:[#allocation2 + $0x51] sm:$0xff]  ;;  %v997_v9 = vpop.f32.mrf.mxu0 }
 0x120   : > { %v1110_v10 = vpop.f32.mrf.mxu1  ;;  %v1643_v11 = vmax.f32 %v1561_v7, %v1602_v8  ;;  %1522 = vst.msk [vmem:[#allocation2 + $0x60] sm:$0xff] %vm520_vm0, %v1481_v6  ;;  %v998_v12 = vadd.f32 %v13557_v38, %v997_v9  ;;  %v1684_v13 = vld [vmem:[#allocation2 + $0x52] sm:$0xff]  ;;  %v1347_v7 = vpop.permute.xlu1 %1346 }
 0x121   : > { %v1562_v25 = vld [vmem:[#allocation2 + $0x58] sm:$0xff] }
 0x122   : > { %v1725_v14 = vmax.f32 %v1643_v11, %v1684_v13  ;;  %v1111_v15 = vadd.f32 %v1110_v10, %v998_v12 }
 0x124   : > { %1766 = vst.msk [vmem:[#allocation3 + $0x50] sm:$0xff] %vm520_vm0, %v1725_v14  ;;  %v1195_v20 = vmax.f32 %v1111_v15, 0.0 }
 0x126   : > { %v1482_v22 = vmul.f32 %v1332_v21, %v1195_v20  ;;  %v12667_v20 = vld [vmem:[%s13414_s30 + $0x114] sm:$0xf]  ;;  %v9905_v21 = vld [vmem:[%s13414_s30 + $0x118] sm:$0xf0] }
 0x127   : > { %v1603_v26 = vld [vmem:[#allocation2 + $0x59] sm:$0xff]  ;;  %v1000_v27 = vpop.f32.mrf.mxu0 }
 0x128   : > { %v1113_v28 = vpop.f32.mrf.mxu1  ;;  %v1644_v30 = vmax.f32 %v1562_v25, %v1603_v26  ;;  %1523 = vst.msk [vmem:[#allocation2 + $0x68] sm:$0xff] %vm520_vm0, %v1482_v22  ;;  %v1001_v31 = vadd.f32 %v13557_v38, %v1000_v27  ;;  %v1685_v32 = vld [vmem:[#allocation2 + $0x5a] sm:$0xff]  ;;  %v9904_v25 = vor.u32 %v12668_v19, %v9903_v18  ;;  %v9908_v26 = vor.u32 %v12667_v20, %v9905_v21 }
 0x129   : > { %v1563_v43 = vld [vmem:[#allocation2 + $0x60] sm:$0xff] }
 0x12a   : > { %v1726_v34 = vmax.f32 %v1644_v30, %v1685_v32  ;;  %v1114_v35 = vadd.f32 %v1113_v28, %v1001_v31  ;;  %1039 = vmatmul.bf16.gmra.mxu0 %v9888_v23  ;;  %v1352_v23 = vpop.permute.xlu2 %1351 }
 0x12b   : > { %1152 = vmatmul.bf16.gmra.mxu1 %v9892_v24  ;;  %v1811_v37 = vld [vmem:[#allocation3 + $0x48] ss:$2 sm:$0xff] }
 0x12c   : > { %1767 = vst.msk [vmem:[#allocation3 + $0x58] sm:$0xff] %vm520_vm0, %v1726_v34  ;;  %v1196_v39 = vmax.f32 %v1114_v35, 0.0  ;;  %v1812_v40 = vmax.f32 %v1809_v36, %v1811_v37  ;;  %v1357_v37 = vpop.permute.xlu0 %1356 }
 0x12e   : > { %v1483_v42 = vmul.f32 %v1337_v41, %v1196_v39  ;;  %1813 = vst.msk [vmem:[#allocation4 + $0x15] sm:$0xff] %vm520_vm0, %v1812_v40 }
 0x12f   : > { %v1604_v44 = vld [vmem:[#allocation2 + $0x61] sm:$0xff]  ;;  %v1002_v45 = vpop.f32.mrf.mxu0 }
 0x130   : > { %v1115_v46 = vpop.f32.mrf.mxu1  ;;  %v1645_v47 = vmax.f32 %v1563_v43, %v1604_v44  ;;  %1524 = vst.msk [vmem:[#allocation2 + $0x70] sm:$0xff] %vm520_vm0, %v1483_v42  ;;  %v1003_v48 = vadd.f32 %v13557_v38, %v1002_v45  ;;  %v1686_v49 = vld [vmem:[#allocation2 + $0x62] sm:$0xff] }
 0x131   : > { %v1564_v61 = vld [vmem:[#allocation2 + $0x68] sm:$0xff] }
 0x132   : > { %v1727_v50 = vmax.f32 %v1645_v47, %v1686_v49  ;;  %v1116_v51 = vadd.f32 %v1115_v46, %v1003_v48  ;;  %v1814_v48 = vld [vmem:[#allocation3 + $0x48] ss:$2 sm:$0xff] }
 0x134   : > { %1768 = vst.msk [vmem:[#allocation3 + $0x60] sm:$0xff] %vm520_vm0, %v1727_v50  ;;  %v1197_v56 = vmax.f32 %v1116_v51, 0.0  ;;  %v9911_v51 = vld [vmem:[%s13414_s30 + $0x120] sm:$0xf] }
 0x136   : > { %v1484_v58 = vmul.f32 %v1342_v57, %v1197_v56 }
 0x137   : > { %v1605_v62 = vld [vmem:[#allocation2 + $0x69] sm:$0xff]  ;;  %v1005_v63 = vpop.f32.mrf.mxu0 }
 0x138   : > { %v1118_v0 = vpop.f32.mrf.mxu1  ;;  %v1646_v1 = vmax.f32 %v1564_v61, %v1605_v62  ;;  %1525 = vst.msk [vmem:[#allocation2 + $0x78] sm:$0xff] %vm520_vm0, %v1484_v58  ;;  %v1006_v2 = vadd.f32 %v13557_v38, %v1005_v63  ;;  %v1687_v3 = vld [vmem:[#allocation2 + $0x6a] sm:$0xff]  ;;  %v9912_v61 = vor.u32 %v12670_v52, %v9911_v51  ;;  %v9916_v62 = vor.u32 %v12669_v54, %v9913_v55 }
 0x139   : > { %v1565_v9 = vld [vmem:[#allocation2 + $0x70] sm:$0xff] }
 0x13a   : > { %v1728_v4 = vmax.f32 %v1646_v1, %v1687_v3  ;;  %v1119_v5 = vadd.f32 %v1118_v0, %v1006_v2  ;;  %1044 = vmatmul.bf16.gmra.mxu0 %v9896_v59  ;;  %v1362_v59 = vpop.permute.xlu1 %1361 }
 0x13b   : > { %1157 = vmatmul.bf16.gmra.mxu1 %v9900_v60 }
 0x13c   : > { %1769 = vst.msk [vmem:[#allocation3 + $0x68] sm:$0xff] %vm520_vm0, %v1728_v4  ;;  %v1198_v6 = vmax.f32 %v1119_v5, 0.0 }
 0x13e   : > { %v1485_v8 = vmul.f32 %v1347_v7, %v1198_v6 }
 0x13f   : > { %v1606_v10 = vld [vmem:[#allocation2 + $0x71] sm:$0xff]  ;;  %v1007_v11 = vpop.f32.mrf.mxu0 }
 0x140   : > { %v1120_v12 = vpop.f32.mrf.mxu1  ;;  %v1647_v13 = vmax.f32 %v1565_v9, %v1606_v10  ;;  %1526 = vst.msk [vmem:[#allocation2 + $0x80] sm:$0xff] %vm520_vm0, %v1485_v8  ;;  %v1008_v14 = vadd.f32 %v13557_v38, %v1007_v11  ;;  %v1688_v15 = vld [vmem:[#allocation2 + $0x72] sm:$0xff]  ;;  %v1887_v9 = vld [vmem:[#allocation4 + $0x11] sm:$0xff]  ;;  %v1367_v10 = vpop.permute.xlu2 %1366 }
 0x141   : > { %v1566_v27 = vld [vmem:[#allocation2 + $0x78] sm:$0xff] }
 0x142   : > { %v1729_v16 = vmax.f32 %v1647_v13, %v1688_v15  ;;  %v1121_v17 = vadd.f32 %v1120_v12, %v1008_v14  ;;  %v1864_v12 = vld [vmem:[#allocation4 + $0x10] sm:$0xff] }
 0x143   : > { %v1816_v44 = vld [vmem:[#allocation3 + $0x5a] ss:$2 sm:$0xff] }
 0x144   : > { %1770 = vst.msk [vmem:[#allocation3 + $0x70] sm:$0xff] %vm520_vm0, %v1729_v16  ;;  %v1199_v22 = vmax.f32 %v1121_v17, 0.0  ;;  %v1817_v53 = vmax.f32 %v1814_v48, %v1816_v44  ;;  %v616_v48 = vld [vmem:[%s13414_s30 + $0x140] sm:$0x33] }
 0x146   : > { %v1486_v24 = vmul.f32 %v1352_v23, %v1199_v22 }
 0x147   : > { %v1607_v28 = vld [vmem:[#allocation2 + $0x79] sm:$0xff]  ;;  %v1010_v29 = vpop.f32.mrf.mxu0 }
 0x148   : > { %v1123_v30 = vpop.f32.mrf.mxu1  ;;  %v1648_v31 = vmax.f32 %v1566_v27, %v1607_v28  ;;  %1527 = vst.msk [vmem:[#allocation2 + $0x88] sm:$0xff] %vm520_vm0, %v1486_v24  ;;  %v1011_v32 = vadd.f32 %v13557_v38, %v1010_v29  ;;  %v1689_v33 = vld [vmem:[#allocation2 + $0x7a] sm:$0xff]  ;;  %v12671_v28 = vld [vmem:[%s13414_s30 + $0x134] sm:$0xf] }
 0x149   : > { %v1567_v40 = vld [vmem:[#allocation2 + $0x80] sm:$0xff]  ;;  %v12672_v27 = vld [vmem:[%s13414_s30 + $0x134] sm:$0xf0]  ;;  %v9921_v29 = vld [vmem:[%s13414_s30 + $0x138] sm:$0xf0] }
 0x14a   : > { %v1730_v34 = vmax.f32 %v1648_v31, %v1689_v33  ;;  %v1124_v35 = vadd.f32 %v1123_v30, %v1011_v32  ;;  %1049 = vmatmul.bf16.gmra.mxu0 %v9904_v25  ;;  %v1372_v31 = vpop.permute.xlu0 %1371 }
 0x14b   : > { %1162 = vmatmul.bf16.gmra.mxu1 %v9908_v26  ;;  %v9919_v26 = vld [vmem:[%s13414_s30 + $0x130] sm:$0xf]  ;;  %s513_s30 = scalar_lea.vmem [#allocation10], %s512_s17 }
 0x14c   : > { %1771 = vst.msk [vmem:[#allocation3 + $0x78] sm:$0xff] %vm520_vm0, %v1730_v34  ;;  %v1200_v36 = vmax.f32 %v1124_v35, 0.0  ;;  %v9920_v33 = vor.u32 %v12672_v27, %v9919_v26  ;;  %v9924_v34 = vor.u32 %v12671_v28, %v9921_v29  ;;  %s9703_s28 = sshll.u32 %s513_s30, 4  ;;  %s9704_s28 = int_to_ptr.vmem [resolvable:$true] %s9703_s28 }
 0x14e   : > { %v1487_v39 = vmul.f32 %v1357_v37, %v1200_v36 }
 0x14f   : > { %v1608_v41 = vld [vmem:[#allocation2 + $0x81] sm:$0xff]  ;;  %v1012_v42 = vpop.f32.mrf.mxu0 }
 0x150   : > { %v1125_v43 = vpop.f32.mrf.mxu1  ;;  %v1649_v45 = vmax.f32 %v1567_v40, %v1608_v41  ;;  %1528 = vst.msk [vmem:[#allocation2 + $0x90] sm:$0xff] %vm520_vm0, %v1487_v39  ;;  %v1013_v46 = vadd.f32 %v13557_v38, %v1012_v42  ;;  %v1690_v47 = vld [vmem:[#allocation2 + $0x82] sm:$0xff]  ;;  %v13825_v40 = vld [vmem:[%s16277_s2] ss:$0 sm:$0xff] }
 0x151   : > { %v1568_v63 = vld [vmem:[#allocation2 + $0x88] sm:$0xff] }
 0x152   : > { %v1731_v49 = vmax.f32 %v1649_v45, %v1690_v47  ;;  %v1126_v50 = vadd.f32 %v1125_v43, %v1013_v46  ;;  %v1377_v46 = vpop.permute.xlu1 %1376 }
 0x153   : > { %v1819_v56 = vld [vmem:[#allocation3 + $0x6c] ss:$2 sm:$0xff] }
 0x154   : > { %1772 = vst.msk [vmem:[#allocation3 + $0x80] sm:$0xff] %vm520_vm0, %v1731_v49  ;;  %v1201_v57 = vmax.f32 %v1126_v50, 0.0  ;;  %v1820_v58 = vmax.f32 %v1817_v53, %v1819_v56 }
 0x156   : > { %v1488_v60 = vmul.f32 %v1362_v59, %v1201_v57  ;;  %1821 = vst.msk [vmem:[#allocation4 + $0x1f] sm:$0xff] %vm520_vm0, %v1820_v58  ;;  %v774_v57 = vunpack.c.l.b16 %v616_v48  ;;  %v1822_v58 = vld [vmem:[#allocation3 + $0x6c] ss:$2 sm:$0xff] }
 0x157   : > { %v1609_v0 = vld [vmem:[#allocation2 + $0x89] sm:$0xff]  ;;  %v1015_v1 = vpop.f32.mrf.mxu0 }
 0x158   : > { %v1128_v2 = vpop.f32.mrf.mxu1  ;;  %v1650_v3 = vmax.f32 %v1568_v63, %v1609_v0  ;;  %1529 = vst.msk [vmem:[#allocation2 + $0x98] sm:$0xff] %vm520_vm0, %v1488_v60  ;;  %v1016_v4 = vadd.f32 %v13557_v38, %v1015_v1  ;;  %v1691_v5 = vld [vmem:[#allocation2 + $0x8a] sm:$0xff] }
 0x159   : > { %v1569_v17 = vld [vmem:[#allocation2 + $0x90] sm:$0xff] }
 0x15a   : > { %v1732_v6 = vmax.f32 %v1650_v3, %v1691_v5  ;;  %v1129_v7 = vadd.f32 %v1128_v2, %v1016_v4  ;;  %1054 = vmatmul.bf16.gmra.mxu0 %v9912_v61  ;;  %v775_v61 = vunpack.c.h.b16 %v616_v48  ;;  %v1382_v2 = vpop.permute.xlu2 %1381  ;;  %v816_v4 = vpack.c.b16 %v774_v57, %v774_v57 }
 0x15b   : > { %1167 = vmatmul.bf16.gmra.mxu1 %v9916_v62 }
 0x15c   : > { %1773 = vst.msk [vmem:[#allocation3 + $0x88] sm:$0xff] %vm520_vm0, %v1732_v6  ;;  %v1202_v8 = vmax.f32 %v1129_v7, 0.0  ;;  %v817_v5 = vpack.c.b16 %v775_v61, %v775_v61 }
 0x15d   : > { %v1888_v11 = vld [vmem:[#allocation4 + $0x19] sm:$0xff] }
 0x15e   : > { %v1865_v13 = vld [vmem:[#allocation4 + $0x18] sm:$0xff]  ;;  %v1489_v14 = vmul.f32 %v1367_v10, %v1202_v8  ;;  %v1896_v15 = vpack.c.bf16 %v1888_v11, %v1887_v9 }
 0x15f   : > { %v1873_v16 = vpack.c.bf16 %v1865_v13, %v1864_v12  ;;  %v1610_v18 = vld [vmem:[#allocation2 + $0x91] sm:$0xff]  ;;  %v1017_v19 = vpop.f32.mrf.mxu0 }
 0x160   : > { %v1130_v20 = vpop.f32.mrf.mxu1  ;;  %v1651_v21 = vmax.f32 %v1569_v17, %v1610_v18  ;;  %1530 = vst.msk [vmem:[#allocation2 + $0xa0] sm:$0xff] %vm520_vm0, %v1489_v14  ;;  %v1018_v22 = vadd.f32 %v13557_v38, %v1017_v19  ;;  %10014 = vmatmul.msk.bf16.gmra.mxu2 %vm520_vm0, %v1896_v15  ;;  %v1692_v23 = vld [vmem:[#allocation2 + $0x92] sm:$0xff]  ;;  %v1387_v17 = vpop.permute.xlu0 %1386 }
 0x161   : > { %10035 = vmatmul.msk.bf16.gmra.mxu3 %vm520_vm0, %v1873_v16  ;;  %v1570_v35 = vld [vmem:[#allocation2 + $0x98] sm:$0xff]  ;;  %v1866_v19 = vld [vmem:[#allocation4 + $0x20] sm:$0xff] }
 0x162   : > { %v1733_v24 = vmax.f32 %v1651_v21, %v1692_v23  ;;  %v1131_v25 = vadd.f32 %v1130_v20, %v1018_v22  ;;  %v1889_v16 = vld [vmem:[#allocation4 + $0x21] sm:$0xff] }
 0x163   : > { %v1824_v53 = vld [vmem:[#allocation3 + $0x7e] ss:$2 sm:$0xff] }
 0x164   : > { %1774 = vst.msk [vmem:[#allocation3 + $0x90] sm:$0xff] %vm520_vm0, %v1733_v24  ;;  %v1203_v30 = vmax.f32 %v1131_v25, 0.0  ;;  %v1825_v62 = vmax.f32 %v1822_v58, %v1824_v53 }
 0x166   : > { %v1490_v32 = vmul.f32 %v1372_v31, %v1203_v30 }
 0x167   : > { %v1611_v38 = vld [vmem:[#allocation2 + $0x99] sm:$0xff]  ;;  %v1020_v36 = vpop.f32.mrf.mxu0 }
 0x168   : > { %v1133_v37 = vpop.f32.mrf.mxu1  ;;  %v1652_v39 = vmax.f32 %v1570_v35, %v1611_v38  ;;  %1531 = vst.msk [vmem:[#allocation2 + $0xa8] sm:$0xff] %vm520_vm0, %v1490_v32  ;;  %v1021_v41 = vadd.f32 %v13825_v40, %v1020_v36  ;;  %v1693_v42 = vld [vmem:[#allocation2 + $0x9a] sm:$0xff] }
 0x169   : > { %v1571_v49 = vld [vmem:[#allocation2 + $0xa0] sm:$0xff] }
 0x16a   : > { %v1734_v43 = vmax.f32 %v1652_v39, %v1693_v42  ;;  %v1134_v44 = vadd.f32 %v1133_v37, %v1021_v41  ;;  %1059 = vmatmul.bf16.gmra.mxu0 %v9920_v33 }
 0x16b   : > { %1172 = vmatmul.bf16.gmra.mxu1 %v9924_v34  ;;  %v1392_v34 = vpop.permute.xlu1 %1391 }
 0x16c   : > { %1775 = vst.msk [vmem:[#allocation3 + $0x98] sm:$0xff] %vm520_vm0, %v1734_v43  ;;  %v1204_v45 = vmax.f32 %v1134_v44, 0.0 }
 0x16e   : > { %v1491_v47 = vmul.f32 %v1377_v46, %v1204_v45 }
 0x16f   : > { %v1612_v50 = vld [vmem:[#allocation2 + $0xa1] sm:$0xff]  ;;  %v1022_v51 = vpop.f32.mrf.mxu0 }
 0x170   : > { %v1135_v52 = vpop.f32.mrf.mxu1  ;;  %v1653_v54 = vmax.f32 %v1571_v49, %v1612_v50  ;;  %1532 = vst.msk [vmem:[#allocation2 + $0xb0] sm:$0xff] %vm520_vm0, %v1491_v47  ;;  %v1023_v55 = vadd.f32 %v13825_v40, %v1022_v51  ;;  %v1694_v56 = vld [vmem:[#allocation2 + $0xa2] sm:$0xff]  ;;  %v1397_v47 = vpop.permute.xlu2 %1396 }
 0x171   : > { %v1572_v6 = vld [vmem:[#allocation2 + $0xa8] sm:$0xff] }
 0x172   : > { %v1735_v59 = vmax.f32 %v1653_v54, %v1694_v56  ;;  %v1136_v60 = vadd.f32 %v1135_v52, %v1023_v55 }
 0x173   : > { %v1827_v63 = vld [vmem:[#allocation3 + $0x90] ss:$2 sm:$0xff] }
 0x174   : > { %1776 = vst.msk [vmem:[#allocation3 + $0xa0] sm:$0xff] %vm520_vm0, %v1735_v59  ;;  %v1205_v0 = vmax.f32 %v1136_v60, 0.0  ;;  %v1828_v1 = vmax.f32 %v1825_v62, %v1827_v63  ;;  %v1402_v59 = vpop.permute.xlu0 %1401 }
 0x176   : > { %v1492_v3 = vmul.f32 %v1382_v2, %v1205_v0  ;;  %1829 = vst.msk [vmem:[#allocation4 + $0x29] sm:$0xff] %vm520_vm0, %v1828_v1 }
 0x177   : > { %v1613_v7 = vld [vmem:[#allocation2 + $0xa9] sm:$0xff]  ;;  %v1025_v8 = vpop.f32.mrf.mxu0 }
 0x178   : > { %v1138_v9 = vpop.f32.mrf.mxu1  ;;  %v1654_v10 = vmax.f32 %v1572_v6, %v1613_v7  ;;  %1533 = vst.msk [vmem:[#allocation2 + $0xb8] sm:$0xff] %vm520_vm0, %v1492_v3  ;;  %v1026_v11 = vadd.f32 %v13825_v40, %v1025_v8  ;;  %v1695_v12 = vld [vmem:[#allocation2 + $0xaa] sm:$0xff] }
 0x179   : > { %v1573_v24 = vld [vmem:[#allocation2 + $0xb0] sm:$0xff] }
 0x17a   : > { %v1736_v13 = vmax.f32 %v1654_v10, %v1695_v12  ;;  %v1139_v14 = vadd.f32 %v1138_v9, %v1026_v11  ;;  %1064 = vmatmul.bf16.gmra.mxu0 %v816_v4 }
 0x17b   : > { %1177 = vmatmul.bf16.gmra.mxu1 %v817_v5  ;;  %v1830_v5 = vld [vmem:[#allocation3 + $0x90] ss:$2 sm:$0xff] }
 0x17c   : > { %1777 = vst.msk [vmem:[#allocation3 + $0xa8] sm:$0xff] %vm520_vm0, %v1736_v13  ;;  %v1206_v15 = vmax.f32 %v1139_v14, 0.0 }
 0x17d   : > { %v1890_v18 = vld [vmem:[#allocation4 + $0x29] sm:$0xff] }
 0x17e   : > { %v1867_v20 = vld [vmem:[#allocation4 + $0x28] sm:$0xff]  ;;  %v1493_v21 = vmul.f32 %v1387_v17, %v1206_v15  ;;  %v1897_v22 = vpack.c.bf16 %v1890_v18, %v1889_v16  ;;  %v1407_v15 = vpop.permute.xlu1 %1406 }
 0x17f   : > { %v1874_v23 = vpack.c.bf16 %v1867_v20, %v1866_v19  ;;  %v1614_v25 = vld [vmem:[#allocation2 + $0xb1] sm:$0xff]  ;;  %v1027_v26 = vpop.f32.mrf.mxu0 }
 0x180   : > { %v1140_v27 = vpop.f32.mrf.mxu1  ;;  %v1655_v28 = vmax.f32 %v1573_v24, %v1614_v25  ;;  %1534 = vst.msk [vmem:[#allocation2 + $0xc0] sm:$0xff] %vm520_vm0, %v1493_v21  ;;  %v1028_v29 = vadd.f32 %v13825_v40, %v1027_v26  ;;  %10015 = vmatmul.msk.bf16.gmra.mxu2 %vm520_vm0, %v1897_v22  ;;  %v1696_v30 = vld [vmem:[#allocation2 + $0xb2] sm:$0xff] }
 0x181   : > { %10036 = vmatmul.msk.bf16.gmra.mxu3 %vm520_vm0, %v1874_v23  ;;  %v1574_v38 = vld [vmem:[#allocation2 + $0xb8] sm:$0xff] }
 0x182   : > { %v1737_v31 = vmax.f32 %v1655_v28, %v1696_v30  ;;  %v1141_v32 = vadd.f32 %v1140_v27, %v1028_v29  ;;  %v12700_v27 = vld [vmem:[%s16278_s3 + $0x58] sm:$0xff]  ;;  %v1412_v28 = vpop.permute.xlu2 %1411 }
 0x183   : > { %2122 = vmatpush.bf16.msrb.mxu2 %v12700_v27 }
 0x184   : > { %1778 = vst.msk [vmem:[#allocation3 + $0xb0] sm:$0xff] %vm520_vm0, %v1737_v31  ;;  %v1207_v33 = vmax.f32 %v1141_v32, 0.0 }
 0x186   : > { %v1494_v35 = vmul.f32 %v1392_v34, %v1207_v33 }
 0x187   : > { %v1615_v36 = vld [vmem:[#allocation2 + $0xb9] sm:$0xff]  ;;  %v1030_v37 = vpop.f32.mrf.mxu0 }
 0x188   : > { %v1143_v39 = vpop.f32.mrf.mxu1  ;;  %v1656_v41 = vmax.f32 %v1574_v38, %v1615_v36  ;;  %1535 = vst.msk [vmem:[#allocation2 + $0xc8] sm:$0xff] %vm520_vm0, %v1494_v35  ;;  %v1031_v42 = vadd.f32 %v13825_v40, %v1030_v37  ;;  %v1697_v43 = vld [vmem:[#allocation2 + $0xba] sm:$0xff] }
 0x189   : > { %v1575_v49 = vld [vmem:[#allocation2 + $0xc0] sm:$0xff] }
 0x18a   : > { %v1738_v44 = vmax.f32 %v1656_v41, %v1697_v43  ;;  %v1144_v45 = vadd.f32 %v1143_v39, %v1031_v42  ;;  %v1417_v41 = vpop.permute.xlu0 %1416  ;;  %v1422_v42 = vpop.permute.xlu1 %1421 }
 0x18b   : > { %v1832_v1 = vld [vmem:[#allocation3 + $0xa2] ss:$2 sm:$0xff] }
 0x18c   : > { %1779 = vst.msk [vmem:[#allocation3 + $0xb8] sm:$0xff] %vm520_vm0, %v1738_v44  ;;  %v1208_v46 = vmax.f32 %v1144_v45, 0.0  ;;  %v1833_v8 = vmax.f32 %v1830_v5, %v1832_v1 }
 0x18e   : > { %v1495_v48 = vmul.f32 %v1397_v47, %v1208_v46 }
 0x18f   : > { %v1616_v50 = vld [vmem:[#allocation2 + $0xc1] sm:$0xff]  ;;  %v1032_v51 = vpop.f32.mrf.mxu0 }
 0x190   : > { %v1145_v52 = vpop.f32.mrf.mxu1  ;;  %v1657_v53 = vmax.f32 %v1575_v49, %v1616_v50  ;;  %1536 = vst.msk [vmem:[#allocation2 + $0xd0] sm:$0xff] %vm520_vm0, %v1495_v48  ;;  %v1033_v54 = vadd.f32 %v13825_v40, %v1032_v51  ;;  %v1698_v55 = vld [vmem:[#allocation2 + $0xc2] sm:$0xff] }
 0x191   : > { %v1576_v61 = vld [vmem:[#allocation2 + $0xc8] sm:$0xff] }
 0x192   : > { %v1739_v56 = vmax.f32 %v1657_v53, %v1698_v55  ;;  %v1146_v57 = vadd.f32 %v1145_v52, %v1033_v54  ;;  %v12699_v54 = vld [vmem:[%s16278_s3 + $0x50] sm:$0xff]  ;;  %v1427_v55 = vpop.permute.xlu2 %1426 }
 0x193   : > { %2123 = vmatpush.bf16.msrb.mxu2 %v12699_v54 }
 0x194   : > { %1780 = vst.msk [vmem:[#allocation3 + $0xc0] sm:$0xff] %vm520_vm0, %v1739_v56  ;;  %v1209_v58 = vmax.f32 %v1146_v57, 0.0 }
 0x196   : > { %v1496_v60 = vmul.f32 %v1402_v59, %v1209_v58 }
 0x197   : > { %v1617_v62 = vld [vmem:[#allocation2 + $0xc9] sm:$0xff]  ;;  %v1035_v63 = vpop.f32.mrf.mxu0 }
 0x198   : > { %v1148_v0 = vpop.f32.mrf.mxu1  ;;  %v1658_v2 = vmax.f32 %v1576_v61, %v1617_v62  ;;  %1537 = vst.msk [vmem:[#allocation2 + $0xd8] sm:$0xff] %vm520_vm0, %v1496_v60  ;;  %v1036_v3 = vadd.f32 %v13825_v40, %v1035_v63  ;;  %v1699_v4 = vld [vmem:[#allocation2 + $0xca] sm:$0xff]  ;;  %v1437_v62 = vpop.permute.xlu1 %1436 }
 0x199   : > { %v1577_v17 = vld [vmem:[#allocation2 + $0xd0] sm:$0xff] }
 0x19a   : > { %v1740_v6 = vmax.f32 %v1658_v2, %v1699_v4  ;;  %v1149_v7 = vadd.f32 %v1148_v0, %v1036_v3 }
 0x19b   : > { %v1957_v9 = vpop.f32.mrf.mxu2  ;;  %v1835_v11 = vld [vmem:[#allocation3 + $0xb4] ss:$2 sm:$0xff] }
 0x19c   : > { %v2030_v10 = vpop.f32.mrf.mxu3  ;;  %1781 = vst.msk [vmem:[#allocation3 + $0xc8] sm:$0xff] %vm520_vm0, %v1740_v6  ;;  %v1210_v12 = vmax.f32 %v1149_v7, 0.0  ;;  %v1836_v14 = vmax.f32 %v1833_v8, %v1835_v11  ;;  %v1838_v2 = vld [vmem:[#allocation3 + $0xb4] ss:$2 sm:$0xff] }
 0x19d   : > { %v13851_v13 = vadd.f32 %v2030_v10, %v1957_v9 }
 0x19e   : > { %v1497_v16 = vmul.f32 %v1407_v15, %v1210_v12  ;;  %1837 = vst.msk [vmem:[#allocation4 + $0x33] sm:$0xff] %vm520_vm0, %v1836_v14  ;;  %v1442_v15 = vpop.permute.xlu2 %1441 }
 0x19f   : > { %v1618_v18 = vld [vmem:[#allocation2 + $0xd1] sm:$0xff]  ;;  %v1037_v19 = vpop.f32.mrf.mxu0 }
 0x1a0   : > { %v1150_v20 = vpop.f32.mrf.mxu1  ;;  %v1659_v21 = vmax.f32 %v1577_v17, %v1618_v18  ;;  %1538 = vst.msk [vmem:[#allocation2 + $0xe0] sm:$0xff] %vm520_vm0, %v1497_v16  ;;  %v1038_v22 = vadd.f32 %v13825_v40, %v1037_v19  ;;  %v1700_v23 = vld [vmem:[#allocation2 + $0xd2] sm:$0xff]  ;;  %v13875_v19 = vpop.permute.xlu1 %1451 }
 0x1a1   : > { %v1578_v30 = vld [vmem:[#allocation2 + $0xd8] sm:$0xff] }
 0x1a2   : > { %v1741_v24 = vmax.f32 %v1659_v21, %v1700_v23  ;;  %v1151_v25 = vadd.f32 %v1150_v20, %v1038_v22 }
 0x1a4   : > { %1782 = vst.msk [vmem:[#allocation3 + $0xd0] sm:$0xff] %vm520_vm0, %v1741_v24  ;;  %v1211_v26 = vmax.f32 %v1151_v25, 0.0  ;;  %v12698_v24 = vld [vmem:[%s16278_s3 + $0x48] sm:$0xff]  ;;  %v1432_v25 = vpop.permute.xlu0 %1431 }
 0x1a5   : > { %v1891_v23 = vld [vmem:[#allocation4 + $0x31] sm:$0xff]  ;;  %2124 = vmatpush.bf16.msrb.mxu2 %v12698_v24 }
 0x1a6   : > { %v1498_v29 = vmul.f32 %v1412_v28, %v1211_v26  ;;  %v1868_v27 = vld [vmem:[#allocation4 + $0x30] sm:$0xff] }
 0x1a7   : > { %v1619_v31 = vld [vmem:[#allocation2 + $0xd9] sm:$0xff]  ;;  %v1040_v32 = vpop.f32.mrf.mxu0 }
 0x1a8   : > { %v1153_v33 = vpop.f32.mrf.mxu1  ;;  %v1660_v34 = vmax.f32 %v1578_v30, %v1619_v31  ;;  %1539 = vst.msk [vmem:[#allocation2 + $0xe8] sm:$0xff] %vm520_vm0, %v1498_v29  ;;  %v1041_v35 = vadd.f32 %v13825_v40, %v1040_v32  ;;  %v1701_v38 = vld [vmem:[#allocation2 + $0xda] sm:$0xff] }
 0x1a9   : > { %v1579_v44 = vld [vmem:[#allocation2 + $0xe0] sm:$0xff] }
 0x1aa   : > { %v1742_v36 = vmax.f32 %v1660_v34, %v1701_v38  ;;  %v1154_v37 = vadd.f32 %v1153_v33, %v1041_v35 }
 0x1ab   : > { %v1840_v61 = vld [vmem:[#allocation3 + $0xc6] ss:$2 sm:$0xff] }
 0x1ac   : > { %1783 = vst.msk [vmem:[#allocation3 + $0xd8] sm:$0xff] %vm520_vm0, %v1742_v36  ;;  %v1212_v39 = vmax.f32 %v1154_v37, 0.0  ;;  %v1841_v5 = vmax.f32 %v1838_v2, %v1840_v61 }
 0x1ae   : > { %v1499_v43 = vmul.f32 %v1417_v41, %v1212_v39  ;;  %v13885_v39 = vpop.permute.xlu2 %1456 }
 0x1af   : > { %v1620_v45 = vld [vmem:[#allocation2 + $0xe1] sm:$0xff]  ;;  %v1042_v46 = vpop.f32.mrf.mxu0 }
 0x1b0   : > { %v1155_v47 = vpop.f32.mrf.mxu1  ;;  %v1661_v48 = vmax.f32 %v1579_v44, %v1620_v45  ;;  %1540 = vst.msk [vmem:[#allocation2 + $0xf0] sm:$0xff] %vm520_vm0, %v1499_v43  ;;  %v1043_v49 = vadd.f32 %v13825_v40, %v1042_v46  ;;  %v1702_v50 = vld [vmem:[#allocation2 + $0xe2] sm:$0xff]  ;;  %v13887_v43 = vpop.permute.xlu1 %2835 }
 0x1b1   : > { %v1580_v57 = vld [vmem:[#allocation2 + $0xe8] sm:$0xff] }
 0x1b2   : > { %v1743_v51 = vmax.f32 %v1661_v48, %v1702_v50  ;;  %v1156_v52 = vadd.f32 %v1155_v47, %v1043_v49 }
 0x1b4   : > { %1784 = vst.msk [vmem:[#allocation3 + $0xe0] sm:$0xff] %vm520_vm0, %v1743_v51  ;;  %v1213_v53 = vmax.f32 %v1156_v52, 0.0  ;;  %v12704_v52 = vld [vmem:[%s16278_s3 + $0x78] sm:$0xff] }
 0x1b5   : > { %2229 = vmatpush.bf16.msrb.mxu3 %v12704_v52 }
 0x1b6   : > { %v1500_v56 = vmul.f32 %v1422_v42, %v1213_v53 }
 0x1b7   : > { %v1621_v58 = vld [vmem:[#allocation2 + $0xe9] sm:$0xff]  ;;  %v1045_v59 = vpop.f32.mrf.mxu0 }
 0x1b8   : > { %v1158_v60 = vpop.f32.mrf.mxu1  ;;  %v1662_v63 = vmax.f32 %v1580_v57, %v1621_v58  ;;  %1541 = vst.msk [vmem:[#allocation2 + $0xf8] sm:$0xff] %vm520_vm0, %v1500_v56  ;;  %v1046_v0 = vadd.f32 %v13825_v40, %v1045_v59  ;;  %v1703_v1 = vld [vmem:[#allocation2 + $0xea] sm:$0xff]  ;;  %v13895_v56 = vpop.permute.xlu2 %2840 }
 0x1b9   : > { %v1581_v10 = vld [vmem:[#allocation2 + $0xf0] sm:$0xff]  ;;  %v13901_v59 = vpop.permute.xlu1 %2850 }
 0x1ba   : > { %v1744_v3 = vmax.f32 %v1662_v63, %v1703_v1  ;;  %v1159_v4 = vadd.f32 %v1158_v60, %v1046_v0  ;;  %v12703_v58 = vld [vmem:[%s16278_s3 + $0x70] sm:$0xff] }
 0x1bb   : > { %v1843_v6 = vld [vmem:[#allocation3 + $0xd8] ss:$2 sm:$0xff]  ;;  %2230 = vmatpush.bf16.msrb.mxu3 %v12703_v58 }
 0x1bc   : > { %1785 = vst.msk [vmem:[#allocation3 + $0xe8] sm:$0xff] %vm520_vm0, %v1744_v3  ;;  %v1214_v7 = vmax.f32 %v1159_v4, 0.0  ;;  %v1844_v8 = vmax.f32 %v1841_v5, %v1843_v6  ;;  %v12702_v3 = vld [vmem:[%s16278_s3 + $0x68] sm:$0xff] }
 0x1be   : > { %v1501_v9 = vmul.f32 %v1427_v55, %v1214_v7  ;;  %1845 = vst.msk [vmem:[#allocation4 + $0x3d] sm:$0xff] %vm520_vm0, %v1844_v8  ;;  %v13908_v7 = vpop.f32.mrf.mxu2  ;;  %v13910_v8 = vpop.f32.mrf.mxu3 }
 0x1bf   : > { %v1622_v11 = vld [vmem:[#allocation2 + $0xf1] sm:$0xff]  ;;  %v1047_v12 = vpop.f32.mrf.mxu0  ;;  %2231 = vmatpush.bf16.msrb.mxu3 %v12702_v3 }
 0x1c0   : > { %v1160_v14 = vpop.f32.mrf.mxu1  ;;  %v1663_v16 = vmax.f32 %v1581_v10, %v1622_v11  ;;  %1542 = vst.msk [vmem:[#allocation2 + $0x100] sm:$0xff] %vm520_vm0, %v1501_v9  ;;  %v1048_v17 = vadd.f32 %v13825_v40, %v1047_v12  ;;  %v1704_v18 = vld [vmem:[#allocation2 + $0xf2] sm:$0xff]  ;;  %v12697_v10 = vld [vmem:[%s16278_s3 + $0x40] sm:$0xff]  ;;  %v1447_v12 = vpop.permute.xlu0 %1446 }
 0x1c1   : > { %v1582_v32 = vld [vmem:[#allocation2 + $0xf8] sm:$0xff]  ;;  %v12701_v11 = vld [vmem:[%s16278_s3 + $0x60] sm:$0xff]  ;;  %2125 = vmatpush.bf16.msrb.mxu2 %v12697_v10  ;;  %v13923_v24 = vpop.permute.xlu1 %2865 }
 0x1c2   : > { %v1745_v20 = vmax.f32 %v1663_v16, %v1704_v18  ;;  %v1161_v21 = vadd.f32 %v1160_v14, %v1048_v17  ;;  %v13919_v14 = vpop.permute.xlu2 %2855 }
 0x1c3   : > { %2232 = vmatpush.bf16.msrb.mxu3 %v12701_v11 }
 0x1c4   : > { %1786 = vst.msk [vmem:[#allocation3 + $0xf0] sm:$0xff] %vm520_vm0, %v1745_v20  ;;  %v1215_v22 = vmax.f32 %v1161_v21, 0.0 }
 0x1c5   : > { %v1892_v26 = vld [vmem:[#allocation4 + $0x39] sm:$0xff] }
 0x1c6   : > { %v1869_v28 = vld [vmem:[#allocation4 + $0x38] sm:$0xff]  ;;  %v1502_v29 = vmul.f32 %v1432_v25, %v1215_v22  ;;  %v1898_v30 = vpack.c.bf16 %v1892_v26, %v1891_v23 }
 0x1c7   : > { %v1875_v31 = vpack.c.bf16 %v1869_v28, %v1868_v27  ;;  %v1623_v33 = vld [vmem:[#allocation2 + $0xf9] sm:$0xff]  ;;  %v1050_v34 = vpop.f32.mrf.mxu0  ;;  %v13163_v27 = vld [vmem:[#allocation7] sm:$0xff] }
 0x1c8   : > { %v1163_v35 = vpop.f32.mrf.mxu1  ;;  %v1664_v38 = vmax.f32 %v1582_v32, %v1623_v33  ;;  %1543 = vst.msk [vmem:[#allocation2 + $0x108] sm:$0xff] %vm520_vm0, %v1502_v29  ;;  %v1051_v36 = vadd.f32 %v13825_v40, %v1050_v34  ;;  %10016 = vmatmul.msk.bf16.gmra.mxu2 %vm520_vm0, %v1898_v30  ;;  %v1705_v37 = vld [vmem:[#allocation2 + $0xfa] sm:$0xff] }
 0x1c9   : > { %10037 = vmatmul.msk.bf16.gmra.mxu3 %vm520_vm0, %v1875_v31  ;;  %v1583_v46 = vld [vmem:[#allocation2 + $0x100] sm:$0xff]  ;;  %534 = vst.msk [vmem:[#allocation4 + $0x60] sm:$0xf] %vm533_vm1, %v13163_v27 }
 0x1ca   : > { %v1746_v41 = vmax.f32 %v1664_v38, %v1705_v37  ;;  %v1164_v42 = vadd.f32 %v1163_v35, %v1051_v36  ;;  %v1846_v26 = vld [vmem:[#allocation3 + $0xd8] ss:$2 sm:$0xff]  ;;  %547 = vst.msk [vmem:[#allocation5 + $0x60] sm:$0xf] %vm533_vm1, %v13163_v27 }
 0x1cc   : > { %1787 = vst.msk [vmem:[#allocation3 + $0xf8] sm:$0xff] %vm520_vm0, %v1746_v41  ;;  %v1216_v44 = vmax.f32 %v1164_v42, 0.0 }
 0x1ce   : > { %v1503_v45 = vmul.f32 %v1437_v62, %v1216_v44 }
 0x1cf   : > { %v1624_v47 = vld [vmem:[#allocation2 + $0x101] sm:$0xff]  ;;  %v1052_v48 = vpop.f32.mrf.mxu0 }
 0x1d0   : > { %v1165_v49 = vpop.f32.mrf.mxu1  ;;  %v1665_v50 = vmax.f32 %v1583_v46, %v1624_v47  ;;  %1544 = vst.msk [vmem:[#allocation2 + $0x110] sm:$0xff] %vm520_vm0, %v1503_v45  ;;  %v1053_v51 = vadd.f32 %v13825_v40, %v1052_v48  ;;  %v1706_v53 = vld [vmem:[#allocation2 + $0x102] sm:$0xff]  ;;  %v13934_v47 = vpop.permute.xlu2 %2870 }
 0x1d1   : > { %v1584_v61 = vld [vmem:[#allocation2 + $0x108] sm:$0xff] }
 0x1d2   : > { %v1747_v54 = vmax.f32 %v1665_v50, %v1706_v53  ;;  %v1166_v55 = vadd.f32 %v1165_v49, %v1053_v51  ;;  %v13936_v51 = vpop.permute.xlu1 %7944 }
 0x1d3   : > { %v1848_v21 = vld [vmem:[#allocation3 + $0xea] ss:$2 sm:$0xff] }
 0x1d4   : > { %1788 = vst.msk [vmem:[#allocation3 + $0x100] sm:$0xff] %vm520_vm0, %v1747_v54  ;;  %v1217_v57 = vmax.f32 %v1166_v55, 0.0  ;;  %v1849_v30 = vmax.f32 %v1846_v26, %v1848_v21 }
 0x1d6   : > { %v1504_v60 = vmul.f32 %v1442_v15, %v1217_v57 }
 0x1d7   : > { %v1625_v62 = vld [vmem:[#allocation2 + $0x109] sm:$0xff]  ;;  %v1055_v63 = vpop.f32.mrf.mxu0 }
 0x1d8   : > { %v1168_v0 = vpop.f32.mrf.mxu1  ;;  %v1666_v1 = vmax.f32 %v1584_v61, %v1625_v62  ;;  %1545 = vst.msk [vmem:[#allocation2 + $0x118] sm:$0xff] %vm520_vm0, %v1504_v60  ;;  %v1056_v2 = vadd.f32 %v13825_v40, %v1055_v63  ;;  %v1707_v4 = vld [vmem:[#allocation2 + $0x10a] sm:$0xff]  ;;  %v12708_v60 = vld [vmem:[%s16278_s3 + $0x98] sm:$0xff] }
 0x1d9   : > { %v1585_v16 = vld [vmem:[#allocation2 + $0x110] sm:$0xff]  ;;  %2336 = vmatpush.bf16.msra.mxu2 %v12708_v60 }
 0x1da   : > { %v1748_v5 = vmax.f32 %v1666_v1, %v1707_v4  ;;  %v1169_v6 = vadd.f32 %v1168_v0, %v1056_v2  ;;  %v1462_v11 = vpop.permute.xlu1 %1461 }
 0x1dc   : > { %1789 = vst.msk [vmem:[#allocation3 + $0x108] sm:$0xff] %vm520_vm0, %v1748_v5  ;;  %v1218_v9 = vmax.f32 %v1169_v6, 0.0 }
 0x1de   : > { %v1505_v15 = vmul.f32 %v1447_v12, %v1218_v9  ;;  %v13950_v9 = vpop.permute.xlu2 %7949 }
 0x1df   : > { %v1626_v17 = vld [vmem:[#allocation2 + $0x111] sm:$0xff]  ;;  %v1057_v18 = vpop.f32.mrf.mxu0 }
 0x1e0   : > { %v1170_v20 = vpop.f32.mrf.mxu1  ;;  %v1667_v22 = vmax.f32 %v1585_v16, %v1626_v17  ;;  %1546 = vst.msk [vmem:[#allocation2 + $0x120] sm:$0xff] %vm520_vm0, %v1505_v15  ;;  %v1058_v23 = vadd.f32 %v13825_v40, %v1057_v18  ;;  %v1708_v25 = vld [vmem:[#allocation2 + $0x112] sm:$0xff] }
 0x1e1   : > { %v1586_v37 = vld [vmem:[#allocation2 + $0x118] sm:$0xff] }
 0x1e2   : > { %v1749_v28 = vmax.f32 %v1667_v22, %v1708_v25  ;;  %v1171_v29 = vadd.f32 %v1170_v20, %v1058_v23 }
 0x1e3   : > { %v1962_v31 = vpop.f32.mrf.mxu2  ;;  %v1851_v33 = vld [vmem:[#allocation3 + $0xfc] ss:$2 sm:$0xff] }
 0x1e4   : > { %v2035_v32 = vpop.f32.mrf.mxu3  ;;  %1790 = vst.msk [vmem:[#allocation3 + $0x110] sm:$0xff] %vm520_vm0, %v1749_v28  ;;  %v1219_v34 = vmax.f32 %v1171_v29, 0.0  ;;  %v1852_v38 = vmax.f32 %v1849_v30, %v1851_v33  ;;  %v2055_v28 = vld [vmem:[#allocation4 + $0x2] sm:$0xff]  ;;  %v2056_v29 = vld [vmem:[#allocation4 + $0xa] sm:$0xff] }
 0x1e5   : > { %v13928_v35 = vadd.f32 %v2035_v32, %v1962_v31  ;;  %v2163_v31 = vld [vmem:[#allocation4 + $0x12] sm:$0xff] }
 0x1e6   : > { %v1506_v36 = vmul.f32 %v13875_v19, %v1219_v34  ;;  %1853 = vst.msk [vmem:[#allocation4 + $0x47] sm:$0xff] %vm520_vm0, %v1852_v38  ;;  %v1467_v32 = vpop.permute.xlu2 %1466  ;;  %v2065_v34 = vpack.c.bf16 %v2056_v29, %v2055_v28  ;;  %v2172_v38 = vpack.c.bf16 %v2163_v31, %v2056_v29  ;;  %v2269_v28 = vld [vmem:[#allocation4 + $0xb] sm:$0xff] }
 0x1e7   : > { %v1627_v41 = vld [vmem:[#allocation2 + $0x119] sm:$0xff]  ;;  %v1060_v42 = vpop.f32.mrf.mxu0 }
 0x1e8   : > { %v1173_v44 = vpop.f32.mrf.mxu1  ;;  %v1668_v45 = vmax.f32 %v1586_v37, %v1627_v41  ;;  %1547 = vst.msk [vmem:[#allocation2 + $0x128] sm:$0xff] %vm520_vm0, %v1506_v36  ;;  %v1061_v46 = vadd.f32 %v13825_v40, %v1060_v42  ;;  %v1709_v48 = vld [vmem:[#allocation2 + $0x11a] sm:$0xff]  ;;  %v12706_v41 = vld [vmem:[%s16278_s3 + $0x88] sm:$0xff] }
 0x1e9   : > { %v1587_v61 = vld [vmem:[#allocation2 + $0x120] sm:$0xff] }
 0x1ea   : > { %v1750_v49 = vmax.f32 %v1668_v45, %v1709_v48  ;;  %v1174_v50 = vadd.f32 %v1173_v44, %v1061_v46  ;;  %v1854_v42 = vld [vmem:[#allocation3 + $0xfc] ss:$2 sm:$0xff] }
 0x1eb   : > { %v13955_v26 = vpop.f32.mrf.mxu2 }
 0x1ec   : > { %1791 = vst.msk [vmem:[#allocation3 + $0x118] sm:$0xff] %vm520_vm0, %v1750_v49  ;;  %v1220_v19 = vmax.f32 %v1174_v50, 0.0  ;;  %v13957_v27 = vpop.f32.mrf.mxu3 }
 0x1ed   : > { %v1893_v52 = vld [vmem:[#allocation4 + $0x41] sm:$0xff]  ;;  %v1894_v53 = vld [vmem:[#allocation4 + $0x49] sm:$0x3f] }
 0x1ee   : > { %v1870_v54 = vld [vmem:[#allocation4 + $0x40] sm:$0xff]  ;;  %v1507_v55 = vmul.f32 %v13885_v39, %v1220_v19  ;;  %v1899_v57 = vpack.c.bf16 %v1894_v53, %v1893_v52  ;;  %v1871_v58 = vld [vmem:[#allocation4 + $0x48] sm:$0x3f] }
 0x1ef   : > { %v1628_v62 = vld [vmem:[#allocation2 + $0x121] sm:$0xff]  ;;  %v1062_v63 = vpop.f32.mrf.mxu0  ;;  %v1876_v0 = vpack.c.bf16 %v1871_v58, %v1870_v54  ;;  %v12707_v39 = vld [vmem:[%s16278_s3 + $0x90] sm:$0xff] }
 0x1f0   : > { %v1175_v1 = vpop.f32.mrf.mxu1  ;;  %v1669_v2 = vmax.f32 %v1587_v61, %v1628_v62  ;;  %1548 = vst.msk [vmem:[#allocation2 + $0x130] sm:$0xff] %vm520_vm0, %v1507_v55  ;;  %v1063_v3 = vadd.f32 %v13825_v40, %v1062_v63  ;;  %10017 = vmatmul.msk.bf16.gmra.mxu2 %vm520_vm0, %v1899_v57  ;;  %v1710_v4 = vld [vmem:[#allocation2 + $0x122] sm:$0xff]  ;;  %v2058_v19 = vld [vmem:[#allocation4 + $0x1a] sm:$0xff]  ;;  %v2165_v52 = vld [vmem:[#allocation4 + $0x22] sm:$0xff] }
 0x1f1   : > { %10038 = vmatmul.msk.bf16.gmra.mxu3 %vm520_vm0, %v1876_v0  ;;  %2337 = vmatpush.bf16.msra.mxu2 %v12707_v39  ;;  %v1588_v15 = vld [vmem:[#allocation2 + $0x128] sm:$0xff]  ;;  %v2066_v53 = vpack.c.bf16 %v2058_v19, %v2163_v31  ;;  %v2173_v54 = vpack.c.bf16 %v2165_v52, %v2058_v19  ;;  %v12705_v55 = vld [vmem:[%s16278_s3 + $0x80] sm:$0xff]  ;;  %v12712_v62 = vld [vmem:[%s16278_s3 + $0xb8] sm:$0xff] }
 0x1f2   : > { %v1751_v5 = vmax.f32 %v1669_v2, %v1710_v4  ;;  %v1176_v6 = vadd.f32 %v1175_v1, %v1063_v3  ;;  %v2060_v57 = vld [vmem:[#allocation4 + $0x2a] sm:$0xff]  ;;  %v2167_v58 = vld [vmem:[#allocation4 + $0x32] sm:$0xff]  ;;  %2443 = vmatpush.bf16.msra.mxu3 %v12712_v62  ;;  %v12711_v63 = vld [vmem:[%s16278_s3 + $0xb0] sm:$0xff] }
 0x1f3   : > { %v1856_v36 = vld [vmem:[#allocation3 + $0x10e] ss:$2 sm:$0xff]  ;;  %v2067_v60 = vpack.c.bf16 %v2060_v57, %v2165_v52  ;;  %v2174_v61 = vpack.c.bf16 %v2167_v58, %v2060_v57  ;;  %v12710_v0 = vld [vmem:[%s16278_s3 + $0xa8] sm:$0xff] }
 0x1f4   : > { %1792 = vst.msk [vmem:[#allocation3 + $0x120] sm:$0xff] %vm520_vm0, %v1751_v5  ;;  %v1221_v10 = vmax.f32 %v1176_v6, 0.0  ;;  %v1857_v44 = vmax.f32 %v1854_v42, %v1856_v36  ;;  %v2062_v1 = vld [vmem:[#allocation4 + $0x3a] sm:$0xff]  ;;  %v2169_v2 = vld [vmem:[#allocation4 + $0x42] sm:$0xff]  ;;  %v12709_v3 = vld [vmem:[%s16278_s3 + $0xa0] sm:$0xff] }
 0x1f5   : > { %2338 = vmatpush.bf16.msra.mxu2 %v12706_v41  ;;  %v2068_v4 = vpack.c.bf16 %v2062_v1, %v2167_v58  ;;  %v2175_v39 = vpack.c.bf16 %v2169_v2, %v2062_v1  ;;  %v12716_v5 = vld [vmem:[%s16278_s3 + $0xd8] sm:$0xff]  ;;  %v12718_v62 = vld [vmem:[%s16278_s3 + $0xe8] sm:$0xff] }
 0x1f6   : > { %v1508_v12 = vmul.f32 %v1462_v11, %v1221_v10  ;;  %2444 = vmatpush.bf16.msra.mxu3 %v12711_v63  ;;  %v2064_v6 = vld [vmem:[#allocation4 + $0x4a] sm:$0x3f] }
 0x1f7   : > { %v1629_v16 = vld [vmem:[#allocation2 + $0x129] sm:$0xff]  ;;  %v1065_v17 = vpop.f32.mrf.mxu0  ;;  %v12728_v41 = vld [vmem:[%s16278_s3 + $0x138] sm:$0xff] }
 0x1f8   : > { %v1178_v18 = vpop.f32.mrf.mxu1  ;;  %v1670_v20 = vmax.f32 %v1588_v15, %v1629_v16  ;;  %1549 = vst.msk [vmem:[#allocation2 + $0x138] sm:$0xff] %vm520_vm0, %v1508_v12  ;;  %v1066_v21 = vadd.f32 %v13825_v40, %v1065_v17  ;;  %v1711_v22 = vld [vmem:[#allocation2 + $0x12a] sm:$0xff]  ;;  %v2069_v12 = vpack.c.bf16 %v2064_v6, %v2169_v2  ;;  %v12736_v42 = vld [vmem:[%s16278_s3 + $0x178] sm:$0xff]  ;;  %3073 = vmatpush.bf16.msrb.mxu0 %v12728_v41  ;;  %v12717_v6 = vld [vmem:[%s16278_s3 + $0xe0] sm:$0xff] }
 0x1f9   : > { %2339 = vmatpush.bf16.msra.mxu2 %v12705_v55  ;;  %v12715_v16 = vld [vmem:[%s16278_s3 + $0xd0] sm:$0xff]  ;;  %3170 = vmatpush.bf16.msrb.mxu1 %v12736_v42  ;;  %v2273_v19 = vld [vmem:[#allocation4 + $0x2b] sm:$0xff] }
 0x1fa   : > { %v1752_v23 = vmax.f32 %v1670_v20, %v1711_v22  ;;  %v1179_v25 = vadd.f32 %v1178_v18, %v1066_v21  ;;  %2445 = vmatpush.bf16.msra.mxu3 %v12710_v0  ;;  %v2270_v22 = vld [vmem:[#allocation4 + $0x13] sm:$0xff]  ;;  %v12720_v55 = vld [vmem:[%s16278_s3 + $0xf8] sm:$0xff]  ;;  %v12723_v42 = vld [vmem:[%s16278_s3 + $0x110] sm:$0xff] }
 0x1fb   : > { %v2279_v29 = vpack.c.bf16 %v2270_v22, %v2269_v28  ;;  %v2276_v0 = vld [vmem:[#allocation4 + $0x43] sm:$0xff] }
 0x1fc   : > { %1793 = vst.msk [vmem:[#allocation3 + $0x128] sm:$0xff] %vm520_vm0, %v1752_v23  ;;  %v1222_v30 = vmax.f32 %v1179_v25, 0.0  ;;  %v14004_v25 = vld [vmem:[#allocation4 + $0x14] sm:$0xff]  ;;  %v14052_v2 = vld [vmem:[#allocation4 + $0x44] sm:$0xff] }
 0x1fe   : > { %v1509_v33 = vmul.f32 %v1467_v32, %v1222_v30  ;;  %2446 = vmatpush.bf16.msra.mxu3 %v12709_v3  ;;  %v2376_v30 = vld [vmem:[#allocation4 + $0xc] sm:$0xff]  ;;  %v12714_v32 = vld [vmem:[%s16278_s3 + $0xc8] sm:$0xff] }
 0x1ff   : > { %v1067_v37 = vpop.f32.mrf.mxu0  ;;  %v2386_v31 = vpack.c.bf16 %v14004_v25, %v2376_v30 }
 0x200   : > { %v1180_v40 = vpop.f32.mrf.mxu1  ;;  %1550 = vst.msk [vmem:[#allocation2 + $0x140] sm:$0xf] %vm533_vm1, %v1509_v33  ;;  %10063 = vmatmul.msk.bf16.vlgmr.msrb.gmra.mxu2 %vm520_vm0, %v2065_v34  ;;  %v2272_v33 = vld [vmem:[#allocation4 + $0x23] sm:$0xff] }
 0x201   : > { %10092 = vmatmul.msk.bf16.vlgmr.msrb.gmra.mxu3 %vm520_vm0, %v2172_v38  ;;  %2550 = vmatpush.bf16.msrb.mxu2 %v12716_v5  ;;  %v14012_v34 = vld [vmem:[#allocation4 + $0x24] sm:$0xff]  ;;  %v2271_v38 = vld [vmem:[#allocation4 + $0x1b] sm:$0xff] }
 0x202   : > { %v2280_v36 = vpack.c.bf16 %v2272_v33, %v2271_v38  ;;  %v14014_v37 = vld [vmem:[#allocation4 + $0x1c] sm:$0xff]  ;;  %2657 = vmatpush.bf16.msrb.mxu3 %v12720_v55 }
 0x203   : > { %v1967_v45 = vpop.f32.mrf.mxu2  ;;  %v1859_v48 = vld [vmem:[#allocation3 + $0x120] ss:$2 sm:$0xff]  ;;  %v2387_v40 = vpack.c.bf16 %v14012_v34, %v14014_v37 }
 0x204   : > { %v2040_v46 = vpop.f32.mrf.mxu3  ;;  %v1860_v50 = vmax.f32 %v1857_v44, %v1859_v48  ;;  %v14030_v48 = vld [vmem:[#allocation4 + $0x2c] sm:$0xff]  ;;  %v14056_v5 = vld [vmem:[#allocation4 + $0x3c] sm:$0xff] }
 0x205   : > { %v13966_v49 = vadd.f32 %v2040_v46, %v1967_v45  ;;  %2551 = vmatpush.bf16.msrb.mxu2 %v12715_v16  ;;  %v2274_v45 = vld [vmem:[#allocation4 + $0x33] sm:$0xff] }
 0x206   : > { %1861 = vst.msk [vmem:[#allocation4 + $0x51] sm:$0xff] %vm520_vm0, %v1860_v50  ;;  %v14032_v50 = vld [vmem:[#allocation4 + $0x34] sm:$0xff]  ;;  %v2281_v52 = vpack.c.bf16 %v2274_v45, %v2273_v19  ;;  %v2038_v45 = vadd.f32 %v13957_v27, %v13955_v26 }
 0x207   : > { %v12722_v27 = vld [vmem:[%s16278_s3 + $0x108] sm:$0xff] }
 0x209   : > { %2552 = vmatpush.bf16.msrb.mxu2 %v12714_v32 }
 0x20b   : > { %v13998_v17 = vpop.f32.mrf.mxu2 }
 0x20c   : > { %v14000_v18 = vpop.f32.mrf.mxu3 }
 0x20d   : > { %v2170_v10 = vld [vmem:[#allocation4 + $0x4a] sm:$0xff]  ;;  %v2171_v11 = vld [vmem:[#allocation4 + $0x52] sm:$0x3f] }
 0x20e   : > { %v2176_v15 = vpack.c.bf16 %v2171_v11, %v2170_v10  ;;  %v2389_v10 = vpack.c.bf16 %v14052_v2, %v14056_v5  ;;  %v12724_v11 = vld [vmem:[%s16278_s3 + $0x118] sm:$0xff]  ;;  %v2385_v33 = vld [vmem:[#allocation4 + $0x54] sm:$0x3f] }
 0x20f   : > { %v2277_v28 = vld [vmem:[#allocation4 + $0x4b] sm:$0xff] }
 0x210   : > { %10064 = vmatmul.msk.bf16.gmra.mxu2 %vm520_vm0, %v2066_v53  ;;  %v12713_v53 = vld [vmem:[%s16278_s3 + $0xc0] sm:$0xff] }
 0x211   : > { %10093 = vmatmul.msk.bf16.gmra.mxu3 %vm520_vm0, %v2173_v54  ;;  %v2388_v54 = vpack.c.bf16 %v14032_v50, %v14030_v48  ;;  %2553 = vmatpush.bf16.msrb.mxu2 %v12713_v53  ;;  %v14073_v32 = vld [vmem:[#allocation4 + $0x4c] sm:$0xff] }
 0x220   : > { %10065 = vmatmul.msk.bf16.gmra.mxu2 %vm520_vm0, %v2067_v60 }
 0x221   : > { %10094 = vmatmul.msk.bf16.gmra.mxu3 %vm520_vm0, %v2174_v61  ;;  %v12719_v61 = vld [vmem:[%s16278_s3 + $0xf0] sm:$0xff] }
 0x222   : > { %2658 = vmatpush.bf16.msrb.mxu3 %v12719_v61 }
 0x226   : > { %2659 = vmatpush.bf16.msrb.mxu3 %v12718_v62 }
 0x22a   : > { %2660 = vmatpush.bf16.msrb.mxu3 %v12717_v6  ;;  %v2592_v6 = vld [vmem:[#allocation4 + $0x25] sm:$0xff] }
 0x230   : > { %10066 = vmatmul.msk.bf16.gmra.mxu2 %vm520_vm0, %v2068_v4  ;;  %v2275_v4 = vld [vmem:[#allocation4 + $0x3b] sm:$0xff] }
 0x231   : > { %10095 = vmatmul.msk.bf16.gmra.mxu3 %vm520_vm0, %v2175_v39  ;;  %v2282_v39 = vpack.c.bf16 %v2276_v0, %v2275_v4  ;;  %v2593_v4 = vld [vmem:[#allocation4 + $0x2d] sm:$0xff] }
 0x240   : > { %10067 = vmatmul.msk.bf16.gmra.mxu2 %vm520_vm0, %v2069_v12 }
 0x241   : > { %10096 = vmatmul.msk.bf16.gmra.mxu3 %vm520_vm0, %v2176_v15 }
 0x24b   : > { %v1972_v20 = vpop.f32.mrf.mxu2 }
 0x24c   : > { %v2045_v21 = vpop.f32.mrf.mxu3 }
 0x24d   : > { %v14002_v23 = vadd.f32 %v2045_v21, %v1972_v20  ;;  %v2033_v21 = vadd.f32 %v13910_v8, %v13908_v7 }
 0x250   : > { %10121 = vmatmul.msk.bf16.vlgmr.msra.gmra.mxu2 %vm520_vm0, %v2279_v29  ;;  %v2278_v29 = vld [vmem:[#allocation4 + $0x53] sm:$0x3f] }
 0x251   : > { %10150 = vmatmul.msk.bf16.vlgmr.msra.gmra.mxu3 %vm520_vm0, %v2386_v31  ;;  %2764 = vmatpush.bf16.msra.mxu2 %v12724_v11 }
 0x253   : > { %v14026_v44 = vpop.f32.mrf.mxu2 }
 0x254   : > { %v14028_v46 = vpop.f32.mrf.mxu3 }
 0x255   : > { %2765 = vmatpush.bf16.msra.mxu2 %v12723_v42 }
 0x259   : > { %2766 = vmatpush.bf16.msra.mxu2 %v12722_v27 }
 0x260   : > { %10122 = vmatmul.msk.bf16.gmra.mxu2 %vm520_vm0, %v2280_v36  ;;  %v2283_v36 = vpack.c.bf16 %v2278_v29, %v2277_v28  ;;  %v12735_v28 = vld [vmem:[%s16278_s3 + $0x170] sm:$0xff] }
 0x261   : > { %10151 = vmatmul.msk.bf16.gmra.mxu3 %vm520_vm0, %v2387_v40  ;;  %v2390_v40 = vpack.c.bf16 %v2385_v33, %v14073_v32  ;;  %3171 = vmatpush.bf16.msrb.mxu1 %v12735_v28 }
 0x270   : > { %10123 = vmatmul.msk.bf16.gmra.mxu2 %vm520_vm0, %v2281_v52 }
 0x271   : > { %10152 = vmatmul.msk.bf16.gmra.mxu3 %vm520_vm0, %v2388_v54  ;;  %v2591_v54 = vld [vmem:[#allocation4 + $0x1d] sm:$0xff] }
 0x273   : > { %v1977_v57 = vpop.f32.mrf.mxu2 }
 0x274   : > { %v2050_v58 = vpop.f32.mrf.mxu3 }
 0x275   : > { %v14044_v60 = vadd.f32 %v2050_v58, %v1977_v57  ;;  %v2590_v57 = vld [vmem:[#allocation4 + $0x15] sm:$0xff] }
 0x276   : > { %v2600_v58 = vpack.c.bf16 %v2591_v54, %v2590_v57  ;;  %v2492_v54 = vld [vmem:[#allocation4 + $0x5c] sm:$0x3f] }
 0x27b   : > { %v1979_v63 = vpop.f32.mrf.mxu2 }
 0x27c   : > { %v2052_v1 = vpop.f32.mrf.mxu3 }
 0x27d   : > { %v14054_v3 = vadd.f32 %v2052_v1, %v1979_v63 }
 0x280   : > { %10124 = vmatmul.msk.bf16.gmra.mxu2 %vm520_vm0, %v2282_v39 }
 0x281   : > { %10153 = vmatmul.msk.bf16.gmra.mxu3 %vm520_vm0, %v2389_v10  ;;  %v2601_v10 = vpack.c.bf16 %v2593_v4, %v2592_v6 }
 0x283   : > { %v2127_v12 = vpop.f32.mrf.mxu2 }
 0x284   : > { %v2152_v15 = vadd.f32 %v2127_v12, %v13851_v13  ;;  %v2234_v16 = vpop.f32.mrf.mxu3 }
 0x286   : > { %v14069_v20 = vadd.f32 %v2234_v16, %v2152_v15 }
 0x28b   : > { %v2129_v22 = vpop.f32.mrf.mxu2 }
 0x28c   : > { %v2153_v30 = vadd.f32 %v2129_v22, %v2033_v21  ;;  %v2236_v31 = vpop.f32.mrf.mxu3  ;;  %v2495_v21 = vpack.c.bf16 %v14056_v5, %v14032_v50  ;;  %v2594_v22 = vld [vmem:[#allocation4 + $0x35] sm:$0xff] }
 0x28e   : > { %v14075_v38 = vadd.f32 %v2236_v31, %v2153_v30 }
 0x290   : > { %10125 = vmatmul.msk.bf16.gmra.mxu2 %vm520_vm0, %v2283_v36 }
 0x291   : > { %10154 = vmatmul.msk.bf16.gmra.mxu3 %vm520_vm0, %v2390_v40 }
 0x293   : > { %v2132_v13 = vpop.f32.mrf.mxu2 }
 0x294   : > { %v2154_v7 = vadd.f32 %v2132_v13, %v13928_v35  ;;  %v2239_v8 = vpop.f32.mrf.mxu3  ;;  %v2493_v35 = vpack.c.bf16 %v14014_v37, %v14004_v25  ;;  %v2043_v25 = vadd.f32 %v14000_v18, %v13998_v17  ;;  %v12727_v18 = vld [vmem:[%s16278_s3 + $0x130] sm:$0xff]  ;;  %v2597_v13 = vld [vmem:[#allocation4 + $0x4d] sm:$0xff] }
 0x295   : > { %3074 = vmatpush.bf16.msrb.mxu0 %v12727_v18 }
 0x296   : > { %v14081_v41 = vadd.f32 %v2239_v8, %v2154_v7  ;;  %v2496_v7 = vpack.c.bf16 %v14073_v32, %v14052_v2  ;;  %v2596_v8 = vld [vmem:[#allocation4 + $0x45] sm:$0xff]  ;;  %v2598_v2 = vld [vmem:[#allocation4 + $0x55] sm:$0xff]  ;;  %v2599_v32 = vld [vmem:[#allocation4 + $0x5d] sm:$0x3f] }
 0x297   : > { %v2603_v42 = vpack.c.bf16 %v2597_v13, %v2596_v8 }
 0x29b   : > { %v2134_v19 = vpop.f32.mrf.mxu2 }
 0x29c   : > { %v2155_v52 = vadd.f32 %v2134_v19, %v2038_v45  ;;  %v2241_v53 = vpop.f32.mrf.mxu3 }
 0x29e   : > { %v14088_v55 = vadd.f32 %v2241_v53, %v2155_v52 }
 0x2a0   : > { %10179 = vmatmul.msk.bf16.vlgmr.msrb.gmra.mxu2 %vm520_vm0, %v2493_v35 }
 0x2a1   : > { %10208 = vmatmul.msk.bf16.vlgmr.msrb.gmra.mxu3 %vm520_vm0, %v2600_v58 }
 0x2a3   : > { %v2137_v61 = vpop.f32.mrf.mxu2 }
 0x2a4   : > { %v2156_v62 = vadd.f32 %v2137_v61, %v13966_v49  ;;  %v2244_v63 = vpop.f32.mrf.mxu3  ;;  %v2494_v49 = vpack.c.bf16 %v14030_v48, %v14012_v34  ;;  %v2595_v48 = vld [vmem:[#allocation4 + $0x3d] sm:$0xff]  ;;  %v2604_v61 = vpack.c.bf16 %v2599_v32, %v2598_v2 }
 0x2a5   : > { %v2602_v29 = vpack.c.bf16 %v2595_v48, %v2594_v22  ;;  %v2705_v32 = vld [vmem:[#allocation4 + $0x56] sm:$0xff] }
 0x2a6   : > { %v14095_v26 = vadd.f32 %v2244_v63, %v2156_v62 }
 0x2ab   : > { %v2139_v37 = vpop.f32.mrf.mxu2 }
 0x2ac   : > { %v2157_v0 = vadd.f32 %v2139_v37, %v2043_v25  ;;  %v2246_v1 = vpop.f32.mrf.mxu3  ;;  %v2698_v37 = vld [vmem:[#allocation4 + $0x1e] sm:$0xff] }
 0x2ae   : > { %v14102_v39 = vadd.f32 %v2246_v1, %v2157_v0  ;;  %v2697_v1 = vld [vmem:[#allocation4 + $0x16] sm:$0xff] }
 0x2af   : > { %v2707_v4 = vpack.c.bf16 %v2698_v37, %v2697_v1 }
 0x2b0   : > { %10180 = vmatmul.msk.bf16.gmra.mxu2 %vm520_vm0, %v2494_v49 }
 0x2b1   : > { %10209 = vmatmul.msk.bf16.gmra.mxu3 %vm520_vm0, %v2601_v10 }
 0x2b3   : > { %v2142_v11 = vpop.f32.mrf.mxu2 }
 0x2b4   : > { %v2158_v12 = vadd.f32 %v2142_v11, %v14002_v23  ;;  %v2249_v15 = vpop.f32.mrf.mxu3  ;;  %v12721_v23 = vld [vmem:[%s16278_s3 + $0x100] sm:$0xff] }
 0x2b5   : > { %2767 = vmatpush.bf16.msra.mxu2 %v12721_v23 }
 0x2b6   : > { %v14109_v17 = vadd.f32 %v2249_v15, %v2158_v12 }
 0x2bb   : > { %v14114_v16 = vpop.f32.mrf.mxu2 }
 0x2bc   : > { %v14116_v34 = vpop.f32.mrf.mxu3 }
 0x2c0   : > { %10181 = vmatmul.msk.bf16.gmra.mxu2 %vm520_vm0, %v2495_v21 }
 0x2c1   : > { %10210 = vmatmul.msk.bf16.gmra.mxu3 %vm520_vm0, %v2602_v29 }
 0x2c3   : > { %v2147_v30 = vpop.f32.mrf.mxu2 }
 0x2c4   : > { %v2160_v31 = vadd.f32 %v2147_v30, %v14044_v60  ;;  %v2254_v50 = vpop.f32.mrf.mxu3  ;;  %v2702_v30 = vld [vmem:[#allocation4 + $0x3e] sm:$0xff] }
 0x2c6   : > { %v2267_v5 = vadd.f32 %v2254_v50, %v2160_v31 }
 0x2cb   : > { %v2149_v33 = vpop.f32.mrf.mxu2 }
 0x2cc   : > { %v14130_v36 = vadd.f32 %v2149_v33, %v14054_v3  ;;  %v14132_v40 = vpop.f32.mrf.mxu3  ;;  %v2491_v3 = vld [vmem:[#allocation4 + $0x54] sm:$0xff] }
 0x2cd   : > { %v2497_v58 = vpack.c.bf16 %v2492_v54, %v2491_v3 }
 0x2d0   : > { %10182 = vmatmul.msk.bf16.gmra.mxu2 %vm520_vm0, %v2496_v7 }
 0x2d1   : > { %10211 = vmatmul.msk.bf16.gmra.mxu3 %vm520_vm0, %v2603_v42  ;;  %v12732_v42 = vld [vmem:[%s16278_s3 + $0x158] sm:$0xff] }
 0x2d2   : > { %3000 = vmatpush.bf16.msra.mxu3 %v12732_v42 }
 0x2d3   : > { %v2341_v45 = vpop.f32.mrf.mxu2 }
 0x2d4   : > { %v2366_v60 = vadd.f32 %v2341_v45, %v14069_v20  ;;  %v2448_v19 = vpop.f32.mrf.mxu3 }
 0x2d6   : > { %v2473_v52 = vadd.f32 %v2448_v19, %v2366_v60  ;;  %v2704_v60 = vld [vmem:[#allocation4 + $0x4e] sm:$0xff]  ;;  %v2703_v19 = vld [vmem:[#allocation4 + $0x46] sm:$0xff] }
 0x2db   : > { %v2343_v53 = vpop.f32.mrf.mxu2 }
 0x2dc   : > { %v14140_v35 = vadd.f32 %v2343_v53, %v14075_v38  ;;  %v14142_v57 = vpop.f32.mrf.mxu3  ;;  %v2710_v53 = vpack.c.bf16 %v2704_v60, %v2703_v19 }
 0x2e0   : > { %10183 = vmatmul.msk.bf16.gmra.mxu2 %vm520_vm0, %v2497_v58  ;;  %v2706_v58 = vld [vmem:[#allocation4 + $0x5e] sm:$0x3f] }
 0x2e1   : > { %10212 = vmatmul.msk.bf16.gmra.mxu3 %vm520_vm0, %v2604_v61  ;;  %v2711_v61 = vpack.c.bf16 %v2706_v58, %v2705_v32  ;;  %v12743_v58 = vld [vmem:[%s16278_s3 + $0x1b0] sm:$0xff] }
 0x2e3   : > { %v2346_v62 = vpop.f32.mrf.mxu2 }
 0x2e4   : > { %v2368_v20 = vadd.f32 %v2346_v62, %v14081_v41  ;;  %v2453_v63 = vpop.f32.mrf.mxu3  ;;  %v2700_v41 = vld [vmem:[#allocation4 + $0x2e] sm:$0xff] }
 0x2e6   : > { %v2475_v27 = vadd.f32 %v2453_v63, %v2368_v20 }
 0x2eb   : > { %v2348_v25 = vpop.f32.mrf.mxu2 }
 0x2ec   : > { %v14148_v38 = vadd.f32 %v2348_v25, %v14088_v55  ;;  %v14150_v0 = vpop.f32.mrf.mxu3  ;;  %v2699_v55 = vld [vmem:[#allocation4 + $0x26] sm:$0xff]  ;;  %v12730_v25 = vld [vmem:[%s16278_s3 + $0x148] sm:$0xff] }
 0x2ed   : > { %v2708_v48 = vpack.c.bf16 %v2700_v41, %v2699_v55 }
 0x2f0   : > { %10237 = vmatmul.msk.bf16.vlgmr.msra.gmra.mxu2 %vm520_vm0, %v2707_v4  ;;  %v12729_v4 = vld [vmem:[%s16278_s3 + $0x140] sm:$0xff] }
 0x2f3   : > { %v2351_v49 = vpop.f32.mrf.mxu2 }
 0x2f4   : > { %v2370_v6 = vadd.f32 %v2351_v49, %v14095_v26  ;;  %v2458_v10 = vpop.f32.mrf.mxu3  ;;  %v2701_v26 = vld [vmem:[#allocation4 + $0x36] sm:$0xff] }
 0x2f5   : > { %v2709_v50 = vpack.c.bf16 %v2702_v30, %v2701_v26  ;;  %v12744_v30 = vld [vmem:[%s16278_s3 + $0x1b8] sm:$0xff] }
 0x2f6   : > { %v2477_v11 = vadd.f32 %v2458_v10, %v2370_v6 }
 0x2fb   : > { %v2353_v12 = vpop.f32.mrf.mxu2 }
 0x2fc   : > { %v14155_v15 = vadd.f32 %v2353_v12, %v14102_v39  ;;  %v14157_v18 = vpop.f32.mrf.mxu3  ;;  %v12726_v39 = vld [vmem:[%s16278_s3 + $0x128] sm:$0xff] }
 0x2fd   : > { %3075 = vmatpush.bf16.msrb.mxu0 %v12726_v39 }
 0x300   : > { %10238 = vmatmul.msk.bf16.gmra.mxu2 %vm520_vm0, %v2708_v48  ;;  %v12725_v48 = vld [vmem:[%s16278_s3 + $0x120] sm:$0xff] }
 0x301   : > { %3076 = vmatpush.bf16.msrb.mxu0 %v12725_v48 }
 0x303   : > { %v2356_v21 = vpop.f32.mrf.mxu2 }
 0x304   : > { %v2372_v22 = vadd.f32 %v2356_v21, %v14109_v17  ;;  %v2463_v23 = vpop.f32.mrf.mxu3  ;;  %v12734_v17 = vld [vmem:[%s16278_s3 + $0x168] sm:$0xff]  ;;  %v12733_v21 = vld [vmem:[%s16278_s3 + $0x160] sm:$0xff] }
 0x305   : > { %3172 = vmatpush.bf16.msrb.mxu1 %v12734_v17  ;;  %v14228_v17 = vld [vmem:[%s16279_s4] ss:$0 sm:$0xff] }
 0x306   : > { %v2479_v28 = vadd.f32 %v2463_v23, %v2372_v22  ;;  %v12739_v22 = vld [vmem:[%s16278_s3 + $0x190] sm:$0xff] }
 0x309   : > { %3173 = vmatpush.bf16.msrb.mxu1 %v12733_v21 }
 0x30b   : > { %v14161_v29 = vpop.f32.mrf.mxu2 }
 0x30c   : > { %v14163_v31 = vpop.f32.mrf.mxu3 }
 0x310   : > { %10239 = vmatmul.msk.bf16.gmra.mxu2 %vm520_vm0, %v2709_v50  ;;  %v12737_v50 = vld [vmem:[%s16278_s3 + $0x180] sm:$0xff] }
 0x313   : > { %v2361_v33 = vpop.f32.mrf.mxu2 }
 0x314   : > { %v2374_v13 = vadd.f32 %v2361_v33, %v2267_v5  ;;  %v2468_v7 = vpop.f32.mrf.mxu3  ;;  %v12731_v5 = vld [vmem:[%s16278_s3 + $0x150] sm:$0xff] }
 0x315   : > { %3001 = vmatpush.bf16.msra.mxu3 %v12731_v5 }
 0x316   : > { %v2481_v8 = vadd.f32 %v2468_v7, %v2374_v13  ;;  %v2474_v7 = vadd.f32 %v14142_v57, %v14140_v35 }
 0x319   : > { %3002 = vmatpush.bf16.msra.mxu3 %v12730_v25  ;;  %v3103_v25 = vld [vmem:[#allocation5 + $0x2] sm:$0xff] }
 0x31b   : > { %v14175_v45 = vpop.f32.mrf.mxu2 }
 0x31d   : > { %3003 = vmatpush.bf16.msra.mxu3 %v12729_v4 }
 0x320   : > { %10240 = vmatmul.msk.bf16.gmra.mxu2 %vm520_vm0, %v2710_v53  ;;  %v14233_v53 = vpop.permute.xlu0 %2830 }
 0x321   : > { %3384 = vmatpush.bf16.msrb.mxu3 %v12744_v30 }
 0x323   : > { %v2555_v3 = vpop.f32.mrf.mxu2 }
 0x324   : > { %v2580_v54 = vadd.f32 %v2555_v3, %v2473_v52 }
 0x325   : > { %3385 = vmatpush.bf16.msrb.mxu3 %v12743_v58  ;;  %v2478_v58 = vadd.f32 %v14157_v18, %v14155_v15  ;;  %v2048_v15 = vadd.f32 %v14028_v46, %v14026_v44 }
 0x32b   : > { %v2557_v2 = vpop.f32.mrf.mxu2 }
 0x32c   : > { %v2581_v42 = vadd.f32 %v2557_v2, %v2474_v7  ;;  %v2933_v2 = vld [vmem:[#allocation5 + $0x1] sm:$0xff] }
 0x330   : > { %10241 = vmatmul.msk.bf16.gmra.mxu2 %vm520_vm0, %v2711_v61 }
 0x333   : > { %v2560_v62 = vpop.f32.mrf.mxu2 }
 0x334   : > { %v2582_v20 = vadd.f32 %v2560_v62, %v2475_v27  ;;  %v14196_v27 = vpop.f32.mrf.mxu3  ;;  %v2909_v62 = vld [vmem:[#allocation5] sm:$0xff] }
 0x33b   : > { %v14182_v63 = vpop.f32.mrf.mxu2 }
 0x33c   : > { %v2662_v12 = vpop.f32.mrf.mxu3 }
 0x33d   : > { %v2687_v39 = vadd.f32 %v2662_v12, %v2580_v54 }
 0x343   : > { %v2565_v52 = vpop.f32.mrf.mxu2 }
 0x344   : > { %v14187_v37 = vadd.f32 %v2565_v52, %v2477_v11  ;;  %v12740_v11 = vld [vmem:[%s16278_s3 + $0x198] sm:$0xff]  ;;  %v2664_v23 = vpop.f32.mrf.mxu3 }
 0x345   : > { %3277 = vmatpush.bf16.msrb.mxu2 %v12740_v11  ;;  %v2688_v3 = vadd.f32 %v2664_v23, %v2581_v42 }
 0x349   : > { %3278 = vmatpush.bf16.msrb.mxu2 %v12739_v22 }
 0x34b   : > { %v14189_v1 = vpop.f32.mrf.mxu2 }
 0x34c   : > { %v2667_v33 = vpop.f32.mrf.mxu3 }
 0x34d   : > { %v2689_v52 = vadd.f32 %v2667_v33, %v2582_v20 }
 0x353   : > { %v2570_v49 = vpop.f32.mrf.mxu2 }
 0x354   : > { %v14194_v6 = vadd.f32 %v2570_v49, %v2479_v28  ;;  %v12738_v28 = vld [vmem:[%s16278_s3 + $0x188] sm:$0xff]  ;;  %v2669_v61 = vpop.f32.mrf.mxu3  ;;  %v2476_v49 = vadd.f32 %v14150_v0, %v14148_v38 }
 0x355   : > { %3279 = vmatpush.bf16.msrb.mxu2 %v12738_v28 }
 0x356   : > { %v2583_v30 = vadd.f32 %v14182_v63, %v2476_v49  ;;  %v2585_v49 = vadd.f32 %v14189_v1, %v2478_v58 }
 0x358   : > { %v2690_v0 = vadd.f32 %v2669_v61, %v2583_v30 }
 0x359   : > { %3280 = vmatpush.bf16.msrb.mxu2 %v12737_v50 }
 0x35b   : > { %v14198_v10 = vpop.f32.mrf.mxu2 }
 0x35c   : > { %v2672_v20 = vpop.f32.mrf.mxu3 }
 0x363   : > { %v2575_v41 = vpop.f32.mrf.mxu2 }
 0x364   : > { %v14203_v55 = vadd.f32 %v2575_v41, %v2481_v8 }
 0x36b   : > { %v14217_v26 = vpop.f32.mrf.mxu2 }
 0x373   : > { %v2769_v13 = vpop.f32.mrf.mxu2 }
 0x374   : > { %v2794_v8 = vadd.f32 %v2769_v13, %v2687_v39 }
 0x376   : > { %v2808_v60 = vadd.f32 %v14228_v17, %v2794_v8 }
 0x378   : > { %v2818_v19 = vmax.f32 %v2808_v60, 0.0  ;;  %v14254_v60 = vpop.permute.xlu0 %2845 }
 0x37a   : > { %v2878_v54 = vmul.f32 %v14233_v53, %v2818_v19  ;;  %v2674_v19 = vpop.f32.mrf.mxu3 }
 0x37b   : > { %v2771_v5 = vpop.f32.mrf.mxu2 }
 0x37c   : > { %2888 = vst.msk [vmem:[#allocation5 + $0xb] sm:$0xff] %vm520_vm0, %v2878_v54  ;;  %v2795_v32 = vadd.f32 %v2771_v5, %v2688_v3  ;;  %v2691_v3 = vadd.f32 %v2672_v20, %v14187_v37  ;;  %v12742_v37 = vld [vmem:[%s16278_s3 + $0x1a8] sm:$0xff] }
 0x37d   : > { %3386 = vmatpush.bf16.msrb.mxu3 %v12742_v37 }
 0x37e   : > { %v2809_v35 = vadd.f32 %v14228_v17, %v2795_v32 }
 0x380   : > { %v2819_v57 = vmax.f32 %v2809_v35, 0.0  ;;  %v14296_v58 = vpop.permute.xlu0 %2860 }
 0x382   : > { %v2879_v4 = vmul.f32 %v13887_v43, %v2819_v57 }
 0x383   : > { %v2774_v12 = vpop.f32.mrf.mxu2  ;;  %v2934_v11 = vld [vmem:[#allocation5 + $0x9] sm:$0xff] }
 0x384   : > { %v2910_v41 = vld [vmem:[#allocation5 + $0x8] sm:$0xff]  ;;  %2889 = vst.msk [vmem:[#allocation5 + $0x13] sm:$0xff] %vm520_vm0, %v2879_v4  ;;  %v2796_v21 = vadd.f32 %v2774_v12, %v2689_v52  ;;  %v2943_v22 = vpack.c.bf16 %v2934_v11, %v2933_v2  ;;  %v2159_v11 = vadd.f32 %v14114_v16, %v2048_v15  ;;  %v12756_v15 = vld [vmem:[%s16278_s3 + $0x218] sm:$0xff] }
 0x385   : > { %v3104_v48 = vld [vmem:[#allocation5 + $0xa] sm:$0xff]  ;;  %v2919_v23 = vpack.c.bf16 %v2910_v41, %v2909_v62  ;;  %v2692_v41 = vadd.f32 %v2674_v19, %v2585_v49  ;;  %3705 = vmatpush.bf16.msra.mxu2 %v12756_v15 }
 0x386   : > { %v3113_v28 = vpack.c.bf16 %v3104_v48, %v3103_v25  ;;  %v2810_v50 = vadd.f32 %v14228_v17, %v2796_v21  ;;  %10274 = vmatmul.msk.bf16.vlgmr.msra.gmra.mxu3 %vm520_vm0, %v2943_v22  ;;  %v2677_v21 = vpop.f32.mrf.mxu3  ;;  %v2266_v30 = vadd.f32 %v14116_v34, %v2159_v11  ;;  %v12746_v49 = vld [vmem:[%s16278_s3 + $0x1c8] sm:$0xff]  ;;  %v12745_v11 = vld [vmem:[%s16278_s3 + $0x1c0] sm:$0xff] }
 0x387   : > { %10295 = vmatmul.msk.bf16.vlgmr.msrb.gmra.mxu0 %vm520_vm0, %v2919_v23  ;;  %v2693_v16 = vadd.f32 %v2677_v21, %v14194_v6 }
 0x388   : > { %10324 = vmatmul.msk.bf16.vlgmr.msrb.gmra.mxu1 %vm520_vm0, %v3113_v28  ;;  %v2820_v38 = vmax.f32 %v2810_v50, 0.0  ;;  %v2373_v46 = vadd.f32 %v14161_v29, %v2266_v30  ;;  %v12741_v29 = vld [vmem:[%s16278_s3 + $0x1a0] sm:$0xff] }
 0x389   : > { %3387 = vmatpush.bf16.msrb.mxu3 %v12741_v29 }
 0x38a   : > { %v2880_v39 = vmul.f32 %v13895_v56, %v2820_v38 }
 0x38b   : > { %v2776_v33 = vpop.f32.mrf.mxu2  ;;  %v3211_v13 = vld [vmem:[#allocation5 + $0x12] sm:$0xff] }
 0x38c   : > { %2890 = vst.msk [vmem:[#allocation5 + $0x1b] sm:$0xff] %vm520_vm0, %v2880_v39  ;;  %v2797_v7 = vadd.f32 %v2776_v33, %v2690_v0  ;;  %v3220_v8 = vpack.c.bf16 %v3211_v13, %v3104_v48  ;;  %v2935_v5 = vld [vmem:[#allocation5 + $0x11] sm:$0xff]  ;;  %v2480_v39 = vadd.f32 %v14163_v31, %v2373_v46  ;;  %v12748_v31 = vld [vmem:[%s16278_s3 + $0x1d8] sm:$0xff] }
 0x38d   : > { %v2911_v32 = vld [vmem:[#allocation5 + $0x10] sm:$0xff]  ;;  %3491 = vmatpush.bf16.msra.mxu0 %v12748_v31 }
 0x38e   : > { %v2811_v63 = vadd.f32 %v14228_v17, %v2797_v7  ;;  %10353 = vmatmul.msk.bf16.vlgmr.msrb.gmra.mxu2 %vm520_vm0, %v3220_v8  ;;  %v2679_v6 = vpop.f32.mrf.mxu3  ;;  %v3424_v15 = vld [vmem:[#allocation5 + $0xc] sm:$0xff] }
 0x390   : > { %v2821_v42 = vmax.f32 %v2811_v63, 0.0 }
 0x392   : > { %v2881_v54 = vmul.f32 %v14254_v60, %v2821_v42 }
 0x393   : > { %v2779_v61 = vpop.f32.mrf.mxu2  ;;  %v2936_v35 = vld [vmem:[#allocation5 + $0x19] sm:$0xff] }
 0x394   : > { %v2912_v57 = vld [vmem:[#allocation5 + $0x18] sm:$0xff]  ;;  %2891 = vst.msk [vmem:[#allocation5 + $0x23] sm:$0xff] %vm520_vm0, %v2881_v54  ;;  %v2798_v62 = vadd.f32 %v2779_v61, %v2691_v3  ;;  %v2944_v25 = vpack.c.bf16 %v2936_v35, %v2935_v5  ;;  %v2587_v3 = vadd.f32 %v14198_v10, %v2480_v39  ;;  %v12752_v5 = vld [vmem:[%s16278_s3 + $0x1f8] sm:$0xff]  ;;  %v12754_v39 = vld [vmem:[%s16278_s3 + $0x208] sm:$0xff] }
 0x395   : > { %v3106_v2 = vld [vmem:[#allocation5 + $0x1a] sm:$0xff]  ;;  %v2920_v52 = vpack.c.bf16 %v2912_v57, %v2911_v32  ;;  %3598 = vmatpush.bf16.msra.mxu1 %v12752_v5 }
 0x396   : > { %v3114_v4 = vpack.c.bf16 %v3106_v2, %v3211_v13  ;;  %v2812_v12 = vadd.f32 %v14228_v17, %v2798_v62  ;;  %10275 = vmatmul.msk.bf16.gmra.mxu3 %vm520_vm0, %v2944_v25  ;;  %v12747_v10 = vld [vmem:[%s16278_s3 + $0x1d0] sm:$0xff]  ;;  %v2694_v35 = vadd.f32 %v2679_v6, %v2587_v3  ;;  %v14351_v3 = vpop.permute.xlu0 %2875 }
 0x397   : > { %10296 = vmatmul.msk.bf16.gmra.mxu0 %vm520_vm0, %v2920_v52  ;;  %v12751_v61 = vld [vmem:[%s16278_s3 + $0x1f0] sm:$0xff] }
 0x398   : > { %10325 = vmatmul.msk.bf16.gmra.mxu1 %vm520_vm0, %v3114_v4  ;;  %v2822_v18 = vmax.f32 %v2812_v12, 0.0  ;;  %v2268_v4 = vadd.f32 %v14132_v40, %v14130_v36  ;;  %3492 = vmatpush.bf16.msra.mxu0 %v12747_v10  ;;  %v12750_v12 = vld [vmem:[%s16278_s3 + $0x1e8] sm:$0xff]  ;;  %v2682_v40 = vpop.f32.mrf.mxu3 }
 0x399   : > { %3599 = vmatpush.bf16.msra.mxu1 %v12751_v61 }
 0x39a   : > { %v2882_v48 = vmul.f32 %v13901_v59, %v2822_v18  ;;  %v2375_v36 = vadd.f32 %v14175_v45, %v2268_v4  ;;  %v12755_v45 = vld [vmem:[%s16278_s3 + $0x210] sm:$0xff] }
 0x39b   : > { %v2781_v1 = vpop.f32.mrf.mxu2  ;;  %v3213_v22 = vld [vmem:[#allocation5 + $0x22] sm:$0xff]  ;;  %3706 = vmatpush.bf16.msra.mxu2 %v12755_v45  ;;  %v3318_v4 = vld [vmem:[#allocation5 + $0x13] sm:$0xff] }
 0x39c   : > { %2892 = vst.msk [vmem:[#allocation5 + $0x2b] sm:$0xff] %vm520_vm0, %v2882_v48  ;;  %v2799_v23 = vadd.f32 %v2781_v1, %v2692_v41  ;;  %v3221_v28 = vpack.c.bf16 %v3213_v22, %v3106_v2  ;;  %v2937_v38 = vld [vmem:[#allocation5 + $0x21] sm:$0xff]  ;;  %3493 = vmatpush.bf16.msra.mxu0 %v12746_v49  ;;  %v2695_v48 = vadd.f32 %v2682_v40, %v14203_v55 }
 0x39d   : > { %v2913_v0 = vld [vmem:[#allocation5 + $0x20] sm:$0xff]  ;;  %3600 = vmatpush.bf16.msra.mxu1 %v12750_v12  ;;  %v12749_v41 = vld [vmem:[%s16278_s3 + $0x1e0] sm:$0xff] }
 0x39e   : > { %v2813_v44 = vadd.f32 %v14228_v17, %v2799_v23  ;;  %10354 = vmatmul.msk.bf16.gmra.mxu2 %vm520_vm0, %v3221_v28  ;;  %v2482_v23 = vadd.f32 %v14196_v27, %v2375_v36  ;;  %v12760_v27 = vld [vmem:[%s16278_s3 + $0x238] sm:$0xff]  ;;  %v3317_v12 = vld [vmem:[#allocation5 + $0xb] sm:$0xff] }
 0x39f   : > { %3812 = vmatpush.bf16.msra.mxu3 %v12760_v27  ;;  %3707 = vmatpush.bf16.msra.mxu2 %v12754_v39  ;;  %v3532_v49 = vld [vmem:[#allocation5 + $0x1c] sm:$0xff]  ;;  %v3327_v36 = vpack.c.bf16 %v3318_v4, %v3317_v12 }
 0x3a0   : > { %v2823_v50 = vmax.f32 %v2813_v44, 0.0  ;;  %3494 = vmatpush.bf16.msra.mxu0 %v12745_v11  ;;  %v3639_v11 = vld [vmem:[#allocation5 + $0x1d] sm:$0xff] }
 0x3a1   : > { %3601 = vmatpush.bf16.msra.mxu1 %v12749_v41  ;;  %v3638_v41 = vld [vmem:[#allocation5 + $0x15] sm:$0xff] }
 0x3a2   : > { %v2883_v20 = vmul.f32 %v13919_v14, %v2823_v50 }
 0x3a3   : > { %v2784_v33 = vpop.f32.mrf.mxu2  ;;  %v2938_v13 = vld [vmem:[#allocation5 + $0x29] sm:$0xff] }
 0x3a4   : > { %v2914_v7 = vld [vmem:[#allocation5 + $0x28] sm:$0xff]  ;;  %2893 = vst.msk [vmem:[#allocation5 + $0x33] sm:$0xff] %vm520_vm0, %v2883_v20  ;;  %v2800_v34 = vadd.f32 %v2784_v33, %v2693_v16  ;;  %v2945_v63 = vpack.c.bf16 %v2938_v13, %v2937_v38  ;;  %v2589_v38 = vadd.f32 %v14217_v26, %v2482_v23  ;;  %v2684_v13 = vpop.f32.mrf.mxu3  ;;  %v3319_v23 = vld [vmem:[#allocation5 + $0x1b] sm:$0xff] }
 0x3a5   : > { %v3108_v8 = vld [vmem:[#allocation5 + $0x2a] sm:$0xff]  ;;  %v2921_v42 = vpack.c.bf16 %v2914_v7, %v2913_v0 }
 0x3a6   : > { %v3115_v19 = vpack.c.bf16 %v3108_v8, %v3213_v22  ;;  %v2814_v54 = vadd.f32 %v14228_v17, %v2800_v34  ;;  %10276 = vmatmul.msk.bf16.gmra.mxu3 %vm520_vm0, %v2945_v63  ;;  %v2696_v26 = vadd.f32 %v2684_v13, %v2589_v38  ;;  %v12753_v63 = vld [vmem:[%s16278_s3 + $0x200] sm:$0xff] }
 0x3a7   : > { %10297 = vmatmul.msk.bf16.gmra.mxu0 %vm520_vm0, %v2921_v42  ;;  %3708 = vmatpush.bf16.msra.mxu2 %v12753_v63  ;;  %v3321_v27 = vld [vmem:[#allocation5 + $0x2b] sm:$0xff] }
 0x3a8   : > { %10326 = vmatmul.msk.bf16.gmra.mxu1 %vm520_vm0, %v3115_v19  ;;  %v2824_v32 = vmax.f32 %v2814_v54, 0.0 }
 0x3aa   : > { %v2884_v57 = vmul.f32 %v14296_v58, %v2824_v32 }
 0x3ab   : > { %v2786_v2 = vpop.f32.mrf.mxu2  ;;  %v3215_v62 = vld [vmem:[#allocation5 + $0x32] sm:$0xff] }
 0x3ac   : > { %2894 = vst.msk [vmem:[#allocation5 + $0x3b] sm:$0xff] %vm520_vm0, %v2884_v57  ;;  %v2801_v25 = vadd.f32 %v2786_v2, %v2694_v35  ;;  %v3222_v52 = vpack.c.bf16 %v3215_v62, %v3108_v8  ;;  %v2939_v1 = vld [vmem:[#allocation5 + $0x31] sm:$0xff] }
 0x3ad   : > { %v2915_v22 = vld [vmem:[#allocation5 + $0x30] sm:$0xff] }
 0x3ae   : > { %v2815_v37 = vadd.f32 %v14228_v17, %v2801_v25  ;;  %10355 = vmatmul.msk.bf16.gmra.mxu2 %vm520_vm0, %v3222_v52  ;;  %v3534_v45 = vld [vmem:[#allocation5 + $0x2c] sm:$0xff] }
 0x3b0   : > { %v2825_v18 = vmax.f32 %v2815_v37, 0.0  ;;  %v3425_v37 = vld [vmem:[#allocation5 + $0x14] sm:$0xff] }
 0x3b1   : > { %v3434_v40 = vpack.c.bf16 %v3425_v37, %v3424_v15  ;;  %v3540_v15 = vld [vmem:[#allocation5 + $0x5c] sm:$0x3f] }
 0x3b2   : > { %v2885_v21 = vmul.f32 %v13923_v24, %v2825_v18  ;;  %v3541_v18 = vpack.c.bf16 %v3532_v49, %v3425_v37 }
 0x3b3   : > { %v2789_v28 = vpop.f32.mrf.mxu2  ;;  %v2940_v30 = vld [vmem:[#allocation5 + $0x39] sm:$0xff] }
 0x3b4   : > { %v2916_v44 = vld [vmem:[#allocation5 + $0x38] sm:$0xff]  ;;  %2895 = vst.msk [vmem:[#allocation5 + $0x43] sm:$0xff] %vm520_vm0, %v2885_v21  ;;  %v2802_v50 = vadd.f32 %v2789_v28, %v2695_v48  ;;  %v2946_v16 = vpack.c.bf16 %v2940_v30, %v2939_v1  ;;  %v3648_v48 = vpack.c.bf16 %v3639_v11, %v3638_v41  ;;  %v12758_v21 = vld [vmem:[%s16278_s3 + $0x228] sm:$0xff]  ;;  %v3320_v1 = vld [vmem:[#allocation5 + $0x23] sm:$0xff] }
 0x3b5   : > { %v3110_v46 = vld [vmem:[#allocation5 + $0x3a] sm:$0xff]  ;;  %v2922_v20 = vpack.c.bf16 %v2916_v44, %v2915_v22  ;;  %v3427_v22 = vld [vmem:[#allocation5 + $0x24] sm:$0xff]  ;;  %v3328_v28 = vpack.c.bf16 %v3320_v1, %v3319_v23 }
 0x3b6   : > { %v3116_v55 = vpack.c.bf16 %v3110_v46, %v3215_v62  ;;  %v2816_v0 = vadd.f32 %v14228_v17, %v2802_v50  ;;  %10277 = vmatmul.msk.bf16.gmra.mxu3 %vm520_vm0, %v2946_v16  ;;  %v3435_v30 = vpack.c.bf16 %v3427_v22, %v3532_v49  ;;  %v3542_v44 = vpack.c.bf16 %v3534_v45, %v3427_v22  ;;  %v3640_v50 = vld [vmem:[#allocation5 + $0x25] sm:$0xff] }
 0x3b7   : > { %10298 = vmatmul.msk.bf16.gmra.mxu0 %vm520_vm0, %v2922_v20  ;;  %v3322_v20 = vld [vmem:[#allocation5 + $0x33] sm:$0xff] }
 0x3b8   : > { %10327 = vmatmul.msk.bf16.gmra.mxu1 %vm520_vm0, %v3116_v55  ;;  %v2826_v33 = vmax.f32 %v2816_v0, 0.0  ;;  %v3429_v55 = vld [vmem:[#allocation5 + $0x34] sm:$0xff]  ;;  %v12757_v0 = vld [vmem:[%s16278_s3 + $0x220] sm:$0xff]  ;;  %v3329_v39 = vpack.c.bf16 %v3322_v20, %v3321_v27  ;;  %v3746_v20 = vld [vmem:[#allocation5 + $0x1e] sm:$0xff] }
 0x3ba   : > { %v2886_v7 = vmul.f32 %v13934_v47, %v2826_v33  ;;  %v3436_v33 = vpack.c.bf16 %v3429_v55, %v3534_v45  ;;  %v3647_v45 = vld [vmem:[#allocation5 + $0x5d] sm:$0x3f] }
 0x3bb   : > { %v2791_v8 = vpop.f32.mrf.mxu2  ;;  %v3217_v34 = vld [vmem:[#allocation5 + $0x42] sm:$0xff] }
 0x3bc   : > { %2896 = vst.msk [vmem:[#allocation5 + $0x4b] sm:$0xff] %vm520_vm0, %v2886_v7  ;;  %v2803_v42 = vadd.f32 %v2791_v8, %v2696_v26  ;;  %v3223_v19 = vpack.c.bf16 %v3217_v34, %v3110_v46  ;;  %v2941_v31 = vld [vmem:[#allocation5 + $0x41] sm:$0xff]  ;;  %v3641_v46 = vld [vmem:[#allocation5 + $0x2d] sm:$0xff]  ;;  %v3642_v7 = vld [vmem:[#allocation5 + $0x35] sm:$0xff] }
 0x3bd   : > { %v2917_v5 = vld [vmem:[#allocation5 + $0x40] sm:$0xff]  ;;  %v3649_v16 = vpack.c.bf16 %v3641_v46, %v3640_v50 }
 0x3be   : > { %v2817_v29 = vadd.f32 %v14228_v17, %v2803_v42  ;;  %10356 = vmatmul.msk.bf16.gmra.mxu2 %vm520_vm0, %v3223_v19  ;;  %v12759_v17 = vld [vmem:[%s16278_s3 + $0x230] sm:$0xff] }
 0x3bf   : > { %3813 = vmatpush.bf16.msra.mxu3 %v12759_v17  ;;  %v3536_v38 = vld [vmem:[#allocation5 + $0x3c] sm:$0xff] }
 0x3c0   : > { %v2827_v6 = vmax.f32 %v2817_v29, 0.0  ;;  %v3543_v13 = vpack.c.bf16 %v3536_v38, %v3429_v55  ;;  %v3643_v26 = vld [vmem:[#allocation5 + $0x3d] sm:$0xff] }
 0x3c1   : > { %v3650_v8 = vpack.c.bf16 %v3643_v26, %v3642_v7  ;;  %v3323_v29 = vld [vmem:[#allocation5 + $0x3b] sm:$0xff] }
 0x3c2   : > { %v2887_v54 = vmul.f32 %v14351_v3, %v2827_v6 }
 0x3c3   : > { %v2942_v32 = vld [vmem:[#allocation5 + $0x49] sm:$0x3f]  ;;  %3814 = vmatpush.bf16.msra.mxu3 %v12758_v21 }
 0x3c4   : > { %v2918_v10 = vld [vmem:[#allocation5 + $0x48] sm:$0x3f]  ;;  %2898 = vst.msk [vmem:[#allocation5 + $0x53] sm:$0x3f] %vm2897_vm2, %v2887_v54  ;;  %v2947_v35 = vpack.c.bf16 %v2942_v32, %v2941_v31 }
 0x3c5   : > { %v3112_v61 = vld [vmem:[#allocation5 + $0x4a] sm:$0x3f]  ;;  %v2923_v57 = vpack.c.bf16 %v2918_v10, %v2917_v5 }
 0x3c6   : > { %v3117_v2 = vpack.c.bf16 %v3112_v61, %v3217_v34  ;;  %10278 = vmatmul.msk.bf16.gmra.mxu3 %vm520_vm0, %v2947_v35  ;;  %v3218_v62 = vld [vmem:[#allocation5 + $0x4a] sm:$0xff] }
 0x3c7   : > { %10299 = vmatmul.msk.bf16.gmra.mxu0 %vm520_vm0, %v2923_v57  ;;  %3815 = vmatpush.bf16.msra.mxu3 %v12757_v0  ;;  %v3324_v34 = vld [vmem:[#allocation5 + $0x43] sm:$0xff]  ;;  %v3745_v0 = vld [vmem:[#allocation5 + $0x16] sm:$0xff] }
 0x3c8   : > { %10328 = vmatmul.msk.bf16.gmra.mxu1 %vm520_vm0, %v3117_v2  ;;  %v3431_v63 = vld [vmem:[#allocation5 + $0x44] sm:$0xff]  ;;  %v3330_v54 = vpack.c.bf16 %v3324_v34, %v3323_v29 }
 0x3c9   : > { %v3437_v31 = vpack.c.bf16 %v3431_v63, %v3536_v38  ;;  %v3644_v57 = vld [vmem:[#allocation5 + $0x45] sm:$0xff] }
 0x3cb   : > { %v3219_v25 = vld [vmem:[#allocation5 + $0x52] sm:$0x3f] }
 0x3cc   : > { %v3224_v52 = vpack.c.bf16 %v3219_v25, %v3218_v62  ;;  %v3538_v42 = vld [vmem:[#allocation5 + $0x4c] sm:$0xff]  ;;  %v3433_v37 = vld [vmem:[#allocation5 + $0x54] sm:$0x3f] }
 0x3cd   : > { %v3544_v5 = vpack.c.bf16 %v3538_v42, %v3431_v63  ;;  %v3645_v10 = vld [vmem:[#allocation5 + $0x4d] sm:$0xff]  ;;  %v3438_v41 = vpack.c.bf16 %v3433_v37, %v3538_v42  ;;  %v3646_v22 = vld [vmem:[#allocation5 + $0x55] sm:$0xff]  ;;  %v3750_v37 = vld [vmem:[#allocation5 + $0x3e] sm:$0xff] }
 0x3ce   : > { %10357 = vmatmul.msk.bf16.gmra.mxu2 %vm520_vm0, %v3224_v52  ;;  %v3651_v17 = vpack.c.bf16 %v3645_v10, %v3644_v57  ;;  %v3326_v4 = vld [vmem:[#allocation5 + $0x53] sm:$0x3f] }
 0x3cf   : > { %v3539_v12 = vld [vmem:[#allocation5 + $0x54] sm:$0xff] }
 0x3d6   : > { %10382 = vmatmul.msk.bf16.vlgmr.msrb.gmra.mxu3 %vm520_vm0, %v3327_v36 }
 0x3d7   : > { %10411 = vmatmul.msk.bf16.vlgmr.msra.gmra.mxu0 %vm520_vm0, %v3434_v40  ;;  %v3325_v40 = vld [vmem:[#allocation5 + $0x4b] sm:$0xff] }
 0x3d8   : > { %10440 = vmatmul.msk.bf16.vlgmr.msra.gmra.mxu1 %vm520_vm0, %v3541_v18  ;;  %v3331_v11 = vpack.c.bf16 %v3326_v4, %v3325_v40 }
 0x3de   : > { %10469 = vmatmul.msk.bf16.vlgmr.msra.gmra.mxu2 %vm520_vm0, %v3648_v48  ;;  %v3545_v48 = vpack.c.bf16 %v3540_v15, %v3539_v12  ;;  %v3749_v15 = vld [vmem:[#allocation5 + $0x36] sm:$0xff] }
 0x3e6   : > { %10383 = vmatmul.msk.bf16.gmra.mxu3 %vm520_vm0, %v3328_v28 }
 0x3e7   : > { %10412 = vmatmul.msk.bf16.gmra.mxu0 %vm520_vm0, %v3435_v30 }
 0x3e8   : > { %10441 = vmatmul.msk.bf16.gmra.mxu1 %vm520_vm0, %v3542_v44  ;;  %v3652_v44 = vpack.c.bf16 %v3647_v45, %v3646_v22  ;;  %v12768_v22 = vld [vmem:[%s16278_s3 + $0x278] sm:$0xff] }
 0x3e9   : > { %3998 = vmatpush.bf16.msrb.mxu0 %v12768_v22 }
 0x3ee   : > { %10470 = vmatmul.msk.bf16.gmra.mxu2 %vm520_vm0, %v3649_v16 }
 0x3f6   : > { %10384 = vmatmul.msk.bf16.gmra.mxu3 %vm520_vm0, %v3329_v39  ;;  %v3755_v39 = vpack.c.bf16 %v3746_v20, %v3745_v0 }
 0x3f7   : > { %10413 = vmatmul.msk.bf16.gmra.mxu0 %vm520_vm0, %v3436_v33 }
 0x3f8   : > { %10442 = vmatmul.msk.bf16.gmra.mxu1 %vm520_vm0, %v3543_v13 }
 0x3fe   : > { %10471 = vmatmul.msk.bf16.gmra.mxu2 %vm520_vm0, %v3650_v8 }
 0x404   : > { %v3078_v19 = vpop.f32.mrf.mxu0 }
 0x405   : > { %v3175_v6 = vpop.f32.mrf.mxu1 }
 0x406   : > { %10385 = vmatmul.msk.bf16.gmra.mxu3 %vm520_vm0, %v3330_v54 }
 0x407   : > { %10414 = vmatmul.msk.bf16.gmra.mxu0 %vm520_vm0, %v3437_v31 }
 0x408   : > { %10443 = vmatmul.msk.bf16.gmra.mxu1 %vm520_vm0, %v3544_v5 }
 0x409   : > { %v3005_v32 = vpop.f32.mrf.mxu3 }
 0x40a   : > { %v3079_v61 = vadd.f32 %v3078_v19, %v3005_v32  ;;  %v3748_v19 = vld [vmem:[#allocation5 + $0x2e] sm:$0xff] }
 0x40c   : > { %v14383_v35 = vpop.f32.mrf.mxu0  ;;  %v3200_v62 = vadd.f32 %v3175_v6, %v3079_v61  ;;  %v3747_v6 = vld [vmem:[#allocation5 + $0x26] sm:$0xff] }
 0x40d   : > { %v14385_v2 = vpop.f32.mrf.mxu1  ;;  %v3756_v31 = vpack.c.bf16 %v3748_v19, %v3747_v6 }
 0x40e   : > { %10472 = vmatmul.msk.bf16.gmra.mxu2 %vm520_vm0, %v3651_v17 }
 0x411   : > { %v14388_v25 = vpop.f32.mrf.mxu3  ;;  %v3282_v52 = vpop.f32.mrf.mxu2 }
 0x412   : > { %v14390_v49 = vadd.f32 %v3282_v52, %v3200_v62 }
 0x414   : > { %v3083_v36 = vpop.f32.mrf.mxu0 }
 0x415   : > { %v3180_v18 = vpop.f32.mrf.mxu1 }
 0x416   : > { %10386 = vmatmul.msk.bf16.gmra.mxu3 %vm520_vm0, %v3331_v11 }
 0x417   : > { %10415 = vmatmul.msk.bf16.gmra.mxu0 %vm520_vm0, %v3438_v41 }
 0x418   : > { %10444 = vmatmul.msk.bf16.gmra.mxu1 %vm520_vm0, %v3545_v48 }
 0x419   : > { %v3010_v21 = vpop.f32.mrf.mxu3  ;;  %v14395_v1 = vpop.f32.mrf.mxu2 }
 0x41a   : > { %v3084_v23 = vadd.f32 %v3083_v36, %v3010_v21  ;;  %v3757_v36 = vpack.c.bf16 %v3750_v37, %v3749_v15 }
 0x41c   : > { %v14397_v28 = vpop.f32.mrf.mxu0  ;;  %v3202_v46 = vadd.f32 %v3180_v18, %v3084_v23 }
 0x41d   : > { %v14399_v30 = vpop.f32.mrf.mxu1 }
 0x41e   : > { %10473 = vmatmul.msk.bf16.gmra.mxu2 %vm520_vm0, %v3652_v44  ;;  %v3752_v44 = vld [vmem:[#allocation5 + $0x4e] sm:$0xff] }
 0x421   : > { %v14402_v50 = vpop.f32.mrf.mxu3  ;;  %v3287_v16 = vpop.f32.mrf.mxu2 }
 0x422   : > { %v3309_v55 = vadd.f32 %v3287_v16, %v3202_v46  ;;  %v3751_v16 = vld [vmem:[#allocation5 + $0x46] sm:$0xff] }
 0x423   : > { %v3758_v20 = vpack.c.bf16 %v3752_v44, %v3751_v16  ;;  %v12776_v44 = vld [vmem:[%s16278_s3 + $0x2b8] sm:$0xff]  ;;  %v12762_v16 = vld [vmem:[%s16278_s3 + $0x248] sm:$0xff] }
 0x424   : > { %v3088_v38 = vpop.f32.mrf.mxu0  ;;  %4275 = vmatpush.bf16.msrb.mxu3 %v12776_v44 }
 0x425   : > { %v3185_v27 = vpop.f32.mrf.mxu1 }
 0x426   : > { %10498 = vmatmul.msk.bf16.vlgmr.msra.gmra.mxu3 %vm520_vm0, %v3755_v39  ;;  %v3753_v39 = vld [vmem:[#allocation5 + $0x56] sm:$0xff] }
 0x429   : > { %v3015_v33 = vpop.f32.mrf.mxu3  ;;  %v14405_v13 = vpop.f32.mrf.mxu2 }
 0x42a   : > { %v3089_v26 = vadd.f32 %v3088_v38, %v3015_v33  ;;  %v3754_v33 = vld [vmem:[#allocation5 + $0x5e] sm:$0x3f] }
 0x42c   : > { %v14407_v7 = vpop.f32.mrf.mxu0  ;;  %v3204_v34 = vadd.f32 %v3185_v27, %v3089_v26  ;;  %v3759_v26 = vpack.c.bf16 %v3754_v33, %v3753_v39  ;;  %v12761_v33 = vld [vmem:[%s16278_s3 + $0x240] sm:$0xff] }
 0x42d   : > { %v14409_v8 = vpop.f32.mrf.mxu1 }
 0x431   : > { %v14411_v63 = vpop.f32.mrf.mxu3  ;;  %v3292_v42 = vpop.f32.mrf.mxu2 }
 0x432   : > { %v3311_v29 = vadd.f32 %v3292_v42, %v3204_v34  ;;  %v12767_v34 = vld [vmem:[%s16278_s3 + $0x270] sm:$0xff] }
 0x433   : > { %3999 = vmatpush.bf16.msrb.mxu0 %v12767_v34  ;;  %v12775_v34 = vld [vmem:[%s16278_s3 + $0x2b0] sm:$0xff] }
 0x434   : > { %v3093_v54 = vpop.f32.mrf.mxu0  ;;  %4276 = vmatpush.bf16.msrb.mxu3 %v12775_v34 }
 0x435   : > { %v3190_v5 = vpop.f32.mrf.mxu1 }
 0x436   : > { %10499 = vmatmul.msk.bf16.gmra.mxu3 %vm520_vm0, %v3756_v31 }
 0x439   : > { %v3020_v32 = vpop.f32.mrf.mxu3  ;;  %v14414_v10 = vpop.f32.mrf.mxu2 }
 0x43a   : > { %v3094_v61 = vadd.f32 %v3093_v54, %v3020_v32 }
 0x43c   : > { %v3206_v57 = vadd.f32 %v3190_v5, %v3094_v61  ;;  %v14416_v17 = vpop.f32.mrf.mxu0 }
 0x43d   : > { %v14418_v62 = vpop.f32.mrf.mxu1 }
 0x441   : > { %v14420_v52 = vpop.f32.mrf.mxu3  ;;  %v3297_v4 = vpop.f32.mrf.mxu2 }
 0x442   : > { %v3313_v12 = vadd.f32 %v3297_v4, %v3206_v57 }
 0x444   : > { %v3098_v40 = vpop.f32.mrf.mxu0 }
 0x445   : > { %v3195_v48 = vpop.f32.mrf.mxu1 }
 0x446   : > { %10500 = vmatmul.msk.bf16.gmra.mxu3 %vm520_vm0, %v3757_v36 }
 0x449   : > { %v3025_v18 = vpop.f32.mrf.mxu3  ;;  %v14423_v11 = vpop.f32.mrf.mxu2 }
 0x44a   : > { %v3099_v41 = vadd.f32 %v3098_v40, %v3025_v18  ;;  %v12772_v40 = vld [vmem:[%s16278_s3 + $0x298] sm:$0xff] }
 0x44b   : > { %4168 = vmatpush.bf16.msrb.mxu2 %v12772_v40 }
 0x44c   : > { %v3208_v21 = vadd.f32 %v3195_v48, %v3099_v41  ;;  %v14447_v32 = vpop.f32.mrf.mxu0  ;;  %v12765_v41 = vld [vmem:[%s16278_s3 + $0x260] sm:$0xff]  ;;  %v12771_v48 = vld [vmem:[%s16278_s3 + $0x290] sm:$0xff] }
 0x44d   : > { %v14449_v61 = vpop.f32.mrf.mxu1 }
 0x44f   : > { %4169 = vmatpush.bf16.msrb.mxu2 %v12771_v48  ;;  %v14510_v48 = vld [vmem:[%s16279_s4 + $0x1] ss:$0 sm:$0xff] }
 0x451   : > { %v14428_v45 = vpop.f32.mrf.mxu3  ;;  %v3302_v23 = vpop.f32.mrf.mxu2 }
 0x452   : > { %v3315_v46 = vadd.f32 %v3302_v23, %v3208_v21 }
 0x454   : > { %v3496_v37 = vpop.f32.mrf.mxu0 }
 0x455   : > { %v3603_v36 = vpop.f32.mrf.mxu1 }
 0x456   : > { %10501 = vmatmul.msk.bf16.gmra.mxu3 %vm520_vm0, %v3758_v20  ;;  %v12770_v20 = vld [vmem:[%s16278_s3 + $0x288] sm:$0xff] }
 0x457   : > { %4170 = vmatpush.bf16.msrb.mxu2 %v12770_v20  ;;  %v3086_v20 = vadd.f32 %v14397_v28, %v14402_v50  ;;  %v2900_v50 = vld [vmem:[#allocation4 + $0x13] sm:$0xff] }
 0x459   : > { %v3389_v38 = vpop.f32.mrf.mxu3  ;;  %v14451_v57 = vpop.f32.mrf.mxu2 }
 0x45a   : > { %v3414_v0 = vadd.f32 %v3389_v38, %v14390_v49  ;;  %v12766_v49 = vld [vmem:[%s16278_s3 + $0x268] sm:$0xff] }
 0x45b   : > { %4000 = vmatpush.bf16.msrb.mxu0 %v12766_v49 }
 0x45c   : > { %v3498_v21 = vpop.f32.mrf.mxu0 }
 0x45d   : > { %v3605_v38 = vpop.f32.mrf.mxu1 }
 0x45f   : > { %4001 = vmatpush.bf16.msrb.mxu0 %v12765_v41 }
 0x461   : > { %v3391_v27 = vpop.f32.mrf.mxu3  ;;  %v3710_v18 = vpop.f32.mrf.mxu2 }
 0x466   : > { %10502 = vmatmul.msk.bf16.gmra.mxu3 %vm520_vm0, %v3759_v26  ;;  %v12769_v26 = vld [vmem:[%s16278_s3 + $0x280] sm:$0xff] }
 0x467   : > { %4171 = vmatpush.bf16.msrb.mxu2 %v12769_v26 }
 0x469   : > { %v3394_v42 = vpop.f32.mrf.mxu3  ;;  %v3712_v39 = vpop.f32.mrf.mxu2 }
 0x46a   : > { %v14436_v19 = vadd.f32 %v3394_v42, %v3309_v55 }
 0x471   : > { %v14438_v6 = vpop.f32.mrf.mxu3 }
 0x479   : > { %v3399_v54 = vpop.f32.mrf.mxu3 }
 0x47a   : > { %v14443_v31 = vadd.f32 %v3399_v54, %v3311_v29  ;;  %v12764_v29 = vld [vmem:[%s16278_s3 + $0x258] sm:$0xff]  ;;  %v3501_v54 = vpop.f32.mrf.mxu0 }
 0x47b   : > { %4071 = vmatpush.bf16.msrb.mxu1 %v12764_v29  ;;  %v12780_v29 = vld [vmem:[%s16278_s3 + $0x2d8] sm:$0xff] }
 0x47c   : > { %4382 = vmatpush.bf16.msra.mxu0 %v12780_v29 }
 0x481   : > { %v14445_v5 = vpop.f32.mrf.mxu3 }
 0x489   : > { %v3404_v55 = vpop.f32.mrf.mxu3 }
 0x48a   : > { %v14453_v4 = vadd.f32 %v3404_v55, %v3313_v12  ;;  %v12763_v12 = vld [vmem:[%s16278_s3 + $0x250] sm:$0xff] }
 0x48b   : > { %4072 = vmatpush.bf16.msrb.mxu1 %v12763_v12  ;;  %v3608_v12 = vpop.f32.mrf.mxu1 }
 0x48f   : > { %4073 = vmatpush.bf16.msrb.mxu1 %v12762_v16  ;;  %v2899_v16 = vld [vmem:[#allocation4 + $0xb] sm:$0xff] }
 0x491   : > { %v14455_v15 = vpop.f32.mrf.mxu3 }
 0x493   : > { %4074 = vmatpush.bf16.msrb.mxu1 %v12761_v33 }
 0x499   : > { %v3409_v22 = vpop.f32.mrf.mxu3 }
 0x49a   : > { %v14472_v23 = vadd.f32 %v3409_v22, %v3315_v46  ;;  %v3081_v46 = vadd.f32 %v14383_v35, %v14388_v25  ;;  %v3521_v35 = vadd.f32 %v3496_v37, %v3414_v0  ;;  %v12774_v25 = vld [vmem:[%s16278_s3 + $0x2a8] sm:$0xff]  ;;  %v3715_v0 = vpop.f32.mrf.mxu2 }
 0x49b   : > { %4277 = vmatpush.bf16.msrb.mxu3 %v12774_v25  ;;  %v3203_v25 = vadd.f32 %v14399_v30, %v3086_v20 }
 0x49c   : > { %v3201_v49 = vadd.f32 %v14385_v2, %v3081_v46  ;;  %v3628_v41 = vadd.f32 %v3603_v36, %v3521_v35  ;;  %v12773_v2 = vld [vmem:[%s16278_s3 + $0x2a0] sm:$0xff]  ;;  %v3503_v36 = vpop.f32.mrf.mxu0 }
 0x49e   : > { %v3308_v55 = vadd.f32 %v14395_v1, %v3201_v49  ;;  %v3735_v37 = vadd.f32 %v3710_v18, %v3628_v41  ;;  %v3610_v18 = vpop.f32.mrf.mxu1 }
 0x49f   : > { %4278 = vmatpush.bf16.msrb.mxu3 %v12773_v2 }
 0x4a0   : > { %v3415_v40 = vadd.f32 %v3391_v27, %v3308_v55  ;;  %v3523_v55 = vadd.f32 %v3501_v54, %v14436_v19  ;;  %v3907_v19 = vld [vmem:[#allocation4] sm:$0xff] }
 0x4a1   : > { %v14494_v42 = vpop.f32.mrf.mxu3  ;;  %v4101_v54 = vld [vmem:[#allocation4 + $0x2] sm:$0xff] }
 0x4a2   : > { %v3522_v22 = vadd.f32 %v3498_v21, %v3415_v40  ;;  %v3717_v49 = vpop.f32.mrf.mxu2  ;;  %v3310_v40 = vadd.f32 %v14405_v13, %v3203_v25  ;;  %v3091_v25 = vadd.f32 %v14407_v7, %v14411_v63 }
 0x4a4   : > { %v3629_v46 = vadd.f32 %v3605_v38, %v3522_v22  ;;  %v3417_v38 = vadd.f32 %v14438_v6, %v3310_v40  ;;  %v3506_v2 = vpop.f32.mrf.mxu0  ;;  %v3931_v22 = vld [vmem:[#allocation4 + $0x1] sm:$0xff] }
 0x4a6   : > { %v3736_v26 = vadd.f32 %v3712_v39, %v3629_v46  ;;  %v3630_v39 = vadd.f32 %v3608_v12, %v3523_v55 }
 0x4a9   : > { %v3817_v1 = vpop.f32.mrf.mxu3 }
 0x4aa   : > { %v3842_v44 = vadd.f32 %v3817_v1, %v3735_v37  ;;  %v3737_v37 = vadd.f32 %v3715_v0, %v3630_v39  ;;  %v3720_v20 = vpop.f32.mrf.mxu2  ;;  %v3525_v39 = vadd.f32 %v3506_v2, %v14443_v31 }
 0x4ac   : > { %v3857_v27 = vadd.f32 %v14510_v48, %v3842_v44  ;;  %v3524_v44 = vadd.f32 %v3503_v36, %v3417_v38  ;;  %v2901_v36 = vld [vmem:[#allocation4 + $0x1b] sm:$0xff]  ;;  %v3205_v38 = vadd.f32 %v14409_v8, %v3091_v25  ;;  %v3096_v25 = vadd.f32 %v14416_v17, %v14420_v52 }
 0x4ae   : > { %v3867_v33 = vadd.f32 %v3857_v27, %v2899_v16  ;;  %v3613_v27 = vpop.f32.mrf.mxu1  ;;  %v3631_v55 = vadd.f32 %v3610_v18, %v3524_v44  ;;  %v3312_v18 = vadd.f32 %v14414_v10, %v3205_v38 }
 0x4b0   : > { %v3877_v34 = vmax.f32 %v3867_v33, 0.0 }
 0x4b1   : > { %v3819_v35 = vpop.f32.mrf.mxu3 }
 0x4b2   : > { %v3887_v21 = vmul.f32 %v3877_v34, %v14233_v53  ;;  %v3843_v29 = vadd.f32 %v3819_v35, %v3736_v26  ;;  %v12779_v35 = vld [vmem:[%s16278_s3 + $0x2d0] sm:$0xff] }
 0x4b3   : > { %4383 = vmatpush.bf16.msra.mxu0 %v12779_v35 }
 0x4b4   : > { %3897 = vst.msk [vmem:[#allocation4 + $0xb] sm:$0xff] %vm520_vm0, %v3887_v21  ;;  %v3858_v28 = vadd.f32 %v14510_v48, %v3843_v29  ;;  %v3738_v29 = vadd.f32 %v3717_v49, %v3631_v55  ;;  %v3722_v49 = vpop.f32.mrf.mxu2 }
 0x4b6   : > { %v3868_v41 = vadd.f32 %v3858_v28, %v2900_v50  ;;  %v3508_v28 = vpop.f32.mrf.mxu0 }
 0x4b8   : > { %v3878_v1 = vmax.f32 %v3868_v41, 0.0 }
 0x4b9   : > { %v3822_v30 = vpop.f32.mrf.mxu3 }
 0x4ba   : > { %v3888_v13 = vmul.f32 %v3878_v1, %v13887_v43  ;;  %v3844_v16 = vadd.f32 %v3822_v30, %v3737_v37  ;;  %v3615_v37 = vpop.f32.mrf.mxu1 }
 0x4bb   : > { %v3932_v46 = vld [vmem:[#allocation4 + $0x9] sm:$0xff] }
 0x4bc   : > { %v3908_v33 = vld [vmem:[#allocation4 + $0x8] sm:$0xff]  ;;  %3898 = vst.msk [vmem:[#allocation4 + $0x13] sm:$0xff] %vm520_vm0, %v3888_v13  ;;  %v3859_v6 = vadd.f32 %v14510_v48, %v3844_v16  ;;  %v3941_v12 = vpack.c.bf16 %v3932_v46, %v3931_v22 }
 0x4bd   : > { %v4102_v26 = vld [vmem:[#allocation4 + $0xa] sm:$0xff]  ;;  %v3917_v0 = vpack.c.bf16 %v3908_v33, %v3907_v19  ;;  %v3419_v19 = vadd.f32 %v14445_v5, %v3312_v18 }
 0x4be   : > { %v4111_v34 = vpack.c.bf16 %v4102_v26, %v4101_v54  ;;  %v3869_v21 = vadd.f32 %v3859_v6, %v2901_v36  ;;  %10536 = vmatmul.msk.bf16.vlgmr.msrb.gmra.mxu0 %vm520_vm0, %v3941_v12  ;;  %v2902_v22 = vld [vmem:[#allocation4 + $0x23] sm:$0xff]  ;;  %v3632_v54 = vadd.f32 %v3613_v27, %v3525_v39  ;;  %v3511_v6 = vpop.f32.mrf.mxu0  ;;  %v2903_v36 = vld [vmem:[#allocation4 + $0x2b] sm:$0xff]  ;;  %v3207_v39 = vadd.f32 %v14418_v62, %v3096_v25 }
 0x4bf   : > { %10557 = vmatmul.msk.bf16.vlgmr.msrb.gmra.mxu1 %vm520_vm0, %v3917_v0  ;;  %v3526_v13 = vadd.f32 %v3508_v28, %v3419_v19  ;;  %v12788_v25 = vld [vmem:[%s16278_s3 + $0x318] sm:$0xff] }
 0x4c0   : > { %10586 = vmatmul.msk.bf16.vlgmr.msrb.gmra.mxu2 %vm520_vm0, %v4111_v34  ;;  %v3879_v40 = vmax.f32 %v3869_v21, 0.0  ;;  %v3739_v31 = vadd.f32 %v3720_v20, %v3632_v54  ;;  %v12778_v20 = vld [vmem:[%s16278_s3 + $0x2c8] sm:$0xff] }
 0x4c1   : > { %v3824_v50 = vpop.f32.mrf.mxu3  ;;  %v3633_v21 = vadd.f32 %v3615_v37, %v3526_v13  ;;  %4384 = vmatpush.bf16.msra.mxu0 %v12778_v20  ;;  %4596 = vmatpush.bf16.msra.mxu2 %v12788_v25 }
 0x4c2   : > { %v3889_v41 = vmul.f32 %v3879_v40, %v13895_v56  ;;  %v3845_v7 = vadd.f32 %v3824_v50, %v3738_v29  ;;  %v3618_v55 = vpop.f32.mrf.mxu1  ;;  %v3725_v40 = vpop.f32.mrf.mxu2 }
 0x4c3   : > { %v4209_v63 = vld [vmem:[#allocation4 + $0x12] sm:$0xff]  ;;  %v3740_v28 = vadd.f32 %v3722_v49, %v3633_v21  ;;  %v12783_v21 = vld [vmem:[%s16278_s3 + $0x2f0] sm:$0xff] }
 0x4c4   : > { %3899 = vst.msk [vmem:[#allocation4 + $0x1b] sm:$0xff] %vm520_vm0, %v3889_v41  ;;  %v3860_v1 = vadd.f32 %v14510_v48, %v3845_v7  ;;  %v4218_v30 = vpack.c.bf16 %v4209_v63, %v4102_v26  ;;  %v3933_v46 = vld [vmem:[#allocation4 + $0x11] sm:$0xff]  ;;  %v3527_v41 = vadd.f32 %v3511_v6, %v14453_v4 }
 0x4c5   : > { %v3909_v33 = vld [vmem:[#allocation4 + $0x10] sm:$0xff] }
 0x4c6   : > { %v3870_v8 = vadd.f32 %v3860_v1, %v2902_v22  ;;  %10615 = vmatmul.msk.bf16.vlgmr.msrb.gmra.mxu3 %vm520_vm0, %v4218_v30  ;;  %v3513_v1 = vpop.f32.mrf.mxu0  ;;  %v2904_v30 = vld [vmem:[#allocation4 + $0x33] sm:$0xff]  ;;  %v3634_v22 = vadd.f32 %v3618_v55, %v3527_v41 }
 0x4c8   : > { %v3880_v2 = vmax.f32 %v3870_v8, 0.0  ;;  %v3741_v4 = vadd.f32 %v3725_v40, %v3634_v22 }
 0x4c9   : > { %v3827_v44 = vpop.f32.mrf.mxu3 }
 0x4ca   : > { %v3890_v10 = vmul.f32 %v3880_v2, %v14254_v60  ;;  %v3846_v16 = vadd.f32 %v3827_v44, %v3739_v31  ;;  %v3620_v62 = vpop.f32.mrf.mxu1  ;;  %v3727_v8 = vpop.f32.mrf.mxu2 }
 0x4cb   : > { %v3934_v12 = vld [vmem:[#allocation4 + $0x19] sm:$0xff] }
 0x4cc   : > { %v3910_v26 = vld [vmem:[#allocation4 + $0x18] sm:$0xff]  ;;  %3900 = vst.msk [vmem:[#allocation4 + $0x23] sm:$0xff] %vm520_vm0, %v3890_v10  ;;  %v3861_v5 = vadd.f32 %v14510_v48, %v3846_v16  ;;  %v3942_v27 = vpack.c.bf16 %v3934_v12, %v3933_v46 }
 0x4cd   : > { %v4104_v0 = vld [vmem:[#allocation4 + $0x1a] sm:$0xff]  ;;  %v3918_v34 = vpack.c.bf16 %v3910_v26, %v3909_v33 }
 0x4ce   : > { %v4112_v35 = vpack.c.bf16 %v4104_v0, %v4209_v63  ;;  %v3871_v29 = vadd.f32 %v3861_v5, %v2903_v36  ;;  %10537 = vmatmul.msk.bf16.gmra.mxu0 %vm520_vm0, %v3942_v27  ;;  %v3314_v63 = vadd.f32 %v14423_v11, %v3207_v39  ;;  %v2905_v5 = vld [vmem:[#allocation4 + $0x3b] sm:$0xff]  ;;  %v3101_v27 = vadd.f32 %v14447_v32, %v14428_v45  ;;  %v3516_v20 = vpop.f32.mrf.mxu0  ;;  %v12784_v36 = vld [vmem:[%s16278_s3 + $0x2f8] sm:$0xff] }
 0x4cf   : > { %10558 = vmatmul.msk.bf16.gmra.mxu1 %vm520_vm0, %v3918_v34 }
 0x4d0   : > { %10587 = vmatmul.msk.bf16.gmra.mxu2 %vm520_vm0, %v4112_v35  ;;  %v3881_v50 = vmax.f32 %v3871_v29, 0.0  ;;  %v3421_v49 = vadd.f32 %v14455_v15, %v3314_v63  ;;  %4489 = vmatpush.bf16.msra.mxu1 %v12784_v36  ;;  %v12787_v29 = vld [vmem:[%s16278_s3 + $0x310] sm:$0xff]  ;;  %v3209_v40 = vadd.f32 %v14449_v61, %v3101_v27 }
 0x4d1   : > { %v3829_v38 = vpop.f32.mrf.mxu3  ;;  %4597 = vmatpush.bf16.msra.mxu2 %v12787_v29 }
 0x4d2   : > { %v3891_v17 = vmul.f32 %v3881_v50, %v13901_v59  ;;  %v3847_v52 = vadd.f32 %v3829_v38, %v3740_v28  ;;  %v3528_v2 = vadd.f32 %v3513_v1, %v3421_v49  ;;  %v3529_v28 = vadd.f32 %v3516_v20, %v14472_v23  ;;  %v3623_v39 = vpop.f32.mrf.mxu1  ;;  %v3730_v41 = vpop.f32.mrf.mxu2  ;;  %v12792_v1 = vld [vmem:[%s16278_s3 + $0x338] sm:$0xff] }
 0x4d3   : > { %v4211_v7 = vld [vmem:[#allocation4 + $0x22] sm:$0xff]  ;;  %4703 = vmatpush.bf16.msra.mxu3 %v12792_v1 }
 0x4d4   : > { %3901 = vst.msk [vmem:[#allocation4 + $0x2b] sm:$0xff] %vm520_vm0, %v3891_v17  ;;  %v3862_v18 = vadd.f32 %v14510_v48, %v3847_v52  ;;  %v4219_v37 = vpack.c.bf16 %v4211_v7, %v4104_v0  ;;  %v3935_v13 = vld [vmem:[#allocation4 + $0x21] sm:$0xff]  ;;  %v12777_v0 = vld [vmem:[%s16278_s3 + $0x2c0] sm:$0xff]  ;;  %v3635_v34 = vadd.f32 %v3620_v62, %v3528_v2  ;;  %v3316_v52 = vadd.f32 %v14451_v57, %v3209_v40  ;;  %v12782_v57 = vld [vmem:[%s16278_s3 + $0x2e8] sm:$0xff] }
 0x4d5   : > { %v3911_v10 = vld [vmem:[#allocation4 + $0x20] sm:$0xff]  ;;  %4385 = vmatpush.bf16.msra.mxu0 %v12777_v0  ;;  %4490 = vmatpush.bf16.msra.mxu1 %v12783_v21  ;;  %v12781_v62 = vld [vmem:[%s16278_s3 + $0x2e0] sm:$0xff] }
 0x4d6   : > { %v3872_v19 = vadd.f32 %v3862_v18, %v2904_v30  ;;  %10616 = vmatmul.msk.bf16.gmra.mxu3 %vm520_vm0, %v4219_v37  ;;  %v3742_v55 = vadd.f32 %v3727_v8, %v3635_v34  ;;  %v2906_v18 = vld [vmem:[#allocation4 + $0x43] sm:$0xff]  ;;  %v3423_v61 = vadd.f32 %v14494_v42, %v3316_v52  ;;  %v3636_v37 = vadd.f32 %v3623_v39, %v3529_v28  ;;  %v12786_v30 = vld [vmem:[%s16278_s3 + $0x308] sm:$0xff]  ;;  %v3518_v42 = vpop.f32.mrf.mxu0  ;;  %v2907_v0 = vld [vmem:[#allocation4 + $0x4b] sm:$0xff] }
 0x4d7   : > { %4598 = vmatpush.bf16.msra.mxu2 %v12786_v30  ;;  %v12796_v34 = vld [vmem:[%s16278_s3 + $0x358] sm:$0xff]  ;;  %v12789_v21 = vld [vmem:[%s16278_s3 + $0x320] sm:$0xff] }
 0x4d8   : > { %v3882_v54 = vmax.f32 %v3872_v19, 0.0  ;;  %v3743_v49 = vadd.f32 %v3730_v41, %v3636_v37  ;;  %v2908_v28 = vld [vmem:[#allocation4 + $0x53] sm:$0x3f] }
 0x4d9   : > { %v3832_v31 = vpop.f32.mrf.mxu3  ;;  %4491 = vmatpush.bf16.msra.mxu1 %v12782_v57  ;;  %4810 = vmatpush.bf16.msrb.mxu0 %v12796_v34  ;;  %v4316_v30 = vld [vmem:[#allocation4 + $0x13] sm:$0xff] }
 0x4da   : > { %v3892_v11 = vmul.f32 %v3882_v54, %v13919_v14  ;;  %v3848_v44 = vadd.f32 %v3832_v31, %v3741_v4  ;;  %v12785_v4 = vld [vmem:[%s16278_s3 + $0x300] sm:$0xff]  ;;  %v3530_v54 = vadd.f32 %v3518_v42, %v3423_v61 }
 0x4db   : > { %v3936_v16 = vld [vmem:[#allocation4 + $0x29] sm:$0xff]  ;;  %4599 = vmatpush.bf16.msra.mxu2 %v12785_v4 }
 0x4dc   : > { %v3912_v46 = vld [vmem:[#allocation4 + $0x28] sm:$0xff]  ;;  %3902 = vst.msk [vmem:[#allocation4 + $0x33] sm:$0xff] %vm520_vm0, %v3892_v11  ;;  %v3863_v15 = vadd.f32 %v14510_v48, %v3848_v44  ;;  %v3943_v6 = vpack.c.bf16 %v3936_v16, %v3935_v13  ;;  %v12791_v44 = vld [vmem:[%s16278_s3 + $0x330] sm:$0xff] }
 0x4dd   : > { %v4106_v33 = vld [vmem:[#allocation4 + $0x2a] sm:$0xff]  ;;  %v3919_v12 = vpack.c.bf16 %v3912_v46, %v3911_v10  ;;  %4492 = vmatpush.bf16.msra.mxu1 %v12781_v62  ;;  %4704 = vmatpush.bf16.msra.mxu3 %v12791_v44 }
 0x4de   : > { %v4113_v26 = vpack.c.bf16 %v4106_v33, %v4211_v7  ;;  %v3873_v35 = vadd.f32 %v3863_v15, %v2905_v5  ;;  %10538 = vmatmul.msk.bf16.gmra.mxu0 %vm520_vm0, %v3943_v6  ;;  %v4315_v42 = vld [vmem:[#allocation4 + $0xb] sm:$0xff]  ;;  %v4318_v44 = vld [vmem:[#allocation4 + $0x23] sm:$0xff] }
 0x4df   : > { %10559 = vmatmul.msk.bf16.gmra.mxu1 %vm520_vm0, %v3919_v12  ;;  %v3625_v12 = vpop.f32.mrf.mxu1  ;;  %v4325_v62 = vpack.c.bf16 %v4316_v30, %v4315_v42  ;;  %v4319_v34 = vld [vmem:[#allocation4 + $0x2b] sm:$0xff] }
 0x4e0   : > { %10588 = vmatmul.msk.bf16.gmra.mxu2 %vm520_vm0, %v4113_v26  ;;  %v3883_v45 = vmax.f32 %v3873_v35, 0.0  ;;  %v3732_v26 = vpop.f32.mrf.mxu2  ;;  %v3637_v5 = vadd.f32 %v3625_v12, %v3530_v54  ;;  %v12790_v35 = vld [vmem:[%s16278_s3 + $0x328] sm:$0xff]  ;;  %v4638_v12 = vld [vmem:[#allocation4 + $0x25] sm:$0xff] }
 0x4e1   : > { %v3834_v32 = vpop.f32.mrf.mxu3  ;;  %4705 = vmatpush.bf16.msra.mxu3 %v12790_v35  ;;  %v12793_v35 = vld [vmem:[%s16278_s3 + $0x340] sm:$0xff] }
 0x4e2   : > { %v3893_v50 = vmul.f32 %v3883_v45, %v14296_v58  ;;  %v3849_v38 = vadd.f32 %v3834_v32, %v3742_v55  ;;  %v3744_v20 = vadd.f32 %v3732_v26, %v3637_v5 }
 0x4e3   : > { %v4213_v17 = vld [vmem:[#allocation4 + $0x32] sm:$0xff] }
 0x4e4   : > { %3903 = vst.msk [vmem:[#allocation4 + $0x3b] sm:$0xff] %vm520_vm0, %v3893_v50  ;;  %v3864_v7 = vadd.f32 %v14510_v48, %v3849_v38  ;;  %v4220_v63 = vpack.c.bf16 %v4213_v17, %v4106_v33  ;;  %v3937_v2 = vld [vmem:[#allocation4 + $0x31] sm:$0xff] }
 0x4e5   : > { %v3913_v11 = vld [vmem:[#allocation4 + $0x30] sm:$0xff]  ;;  %4706 = vmatpush.bf16.msra.mxu3 %v12789_v21 }
 0x4e6   : > { %v3874_v23 = vadd.f32 %v3864_v7, %v2906_v18  ;;  %10617 = vmatmul.msk.bf16.gmra.mxu3 %vm520_vm0, %v4220_v63 }
 0x4e8   : > { %v3884_v22 = vmax.f32 %v3874_v23, 0.0 }
 0x4e9   : > { %v3837_v19 = vpop.f32.mrf.mxu3 }
 0x4ea   : > { %v3894_v8 = vmul.f32 %v3884_v22, %v13923_v24  ;;  %v3850_v31 = vadd.f32 %v3837_v19, %v3743_v49  ;;  %v4423_v49 = vld [vmem:[#allocation4 + $0x14] sm:$0xff]  ;;  %v4530_v22 = vld [vmem:[#allocation4 + $0x1c] sm:$0xff]  ;;  %v4422_v19 = vld [vmem:[#allocation4 + $0xc] sm:$0xff] }
 0x4eb   : > { %v3938_v13 = vld [vmem:[#allocation4 + $0x39] sm:$0xff]  ;;  %v4432_v4 = vpack.c.bf16 %v4423_v49, %v4422_v19  ;;  %v4539_v54 = vpack.c.bf16 %v4530_v22, %v4423_v49 }
 0x4ec   : > { %v3914_v10 = vld [vmem:[#allocation4 + $0x38] sm:$0xff]  ;;  %3904 = vst.msk [vmem:[#allocation4 + $0x43] sm:$0xff] %vm520_vm0, %v3894_v8  ;;  %v3865_v46 = vadd.f32 %v14510_v48, %v3850_v31  ;;  %v3944_v33 = vpack.c.bf16 %v3938_v13, %v3937_v2  ;;  %v4425_v13 = vld [vmem:[#allocation4 + $0x24] sm:$0xff] }
 0x4ed   : > { %v4108_v16 = vld [vmem:[#allocation4 + $0x3a] sm:$0xff]  ;;  %v3920_v15 = vpack.c.bf16 %v3914_v10, %v3913_v11  ;;  %v4532_v10 = vld [vmem:[#allocation4 + $0x2c] sm:$0xff] }
 0x4ee   : > { %v4114_v6 = vpack.c.bf16 %v4108_v16, %v4213_v17  ;;  %v3875_v27 = vadd.f32 %v3865_v46, %v2907_v0  ;;  %10539 = vmatmul.msk.bf16.gmra.mxu0 %vm520_vm0, %v3944_v33  ;;  %v4637_v8 = vld [vmem:[#allocation4 + $0x1d] sm:$0xff]  ;;  %v4636_v31 = vld [vmem:[#allocation4 + $0x15] sm:$0xff]  ;;  %v4433_v33 = vpack.c.bf16 %v4425_v13, %v4530_v22 }
 0x4ef   : > { %10560 = vmatmul.msk.bf16.gmra.mxu1 %vm520_vm0, %v3920_v15  ;;  %v4646_v2 = vpack.c.bf16 %v4637_v8, %v4636_v31  ;;  %v12794_v11 = vld [vmem:[%s16278_s3 + $0x348] sm:$0xff]  ;;  %v4540_v15 = vpack.c.bf16 %v4532_v10, %v4425_v13 }
 0x4f0   : > { %10589 = vmatmul.msk.bf16.gmra.mxu2 %vm520_vm0, %v4114_v6  ;;  %v3885_v36 = vmax.f32 %v3875_v27, 0.0  ;;  %v4639_v6 = vld [vmem:[#allocation4 + $0x2d] sm:$0xff]  ;;  %v4538_v19 = vld [vmem:[#allocation4 + $0x5c] sm:$0x3f] }
 0x4f1   : > { %v3839_v25 = vpop.f32.mrf.mxu3  ;;  %v4647_v26 = vpack.c.bf16 %v4639_v6, %v4638_v12  ;;  %v4320_v0 = vld [vmem:[#allocation4 + $0x33] sm:$0xff] }
 0x4f2   : > { %v3895_v55 = vmul.f32 %v3885_v36, %v13934_v47  ;;  %v3851_v45 = vadd.f32 %v3839_v25, %v3744_v20  ;;  %v4427_v5 = vld [vmem:[#allocation4 + $0x34] sm:$0xff]  ;;  %v4327_v20 = vpack.c.bf16 %v4320_v0, %v4319_v34 }
 0x4f3   : > { %v4215_v32 = vld [vmem:[#allocation4 + $0x42] sm:$0xff]  ;;  %v4434_v36 = vpack.c.bf16 %v4427_v5, %v4532_v10 }
 0x4f4   : > { %3905 = vst.msk [vmem:[#allocation4 + $0x4b] sm:$0xff] %vm520_vm0, %v3895_v55  ;;  %v3866_v29 = vadd.f32 %v14510_v48, %v3851_v45  ;;  %v4221_v40 = vpack.c.bf16 %v4215_v32, %v4108_v16  ;;  %v3939_v41 = vld [vmem:[#allocation4 + $0x41] sm:$0xff]  ;;  %v4640_v45 = vld [vmem:[#allocation4 + $0x35] sm:$0xff] }
 0x4f5   : > { %v3915_v17 = vld [vmem:[#allocation4 + $0x40] sm:$0xff] }
 0x4f6   : > { %v3876_v50 = vadd.f32 %v3866_v29, %v2908_v28  ;;  %10618 = vmatmul.msk.bf16.gmra.mxu3 %vm520_vm0, %v4221_v40  ;;  %v12795_v48 = vld [vmem:[%s16278_s3 + $0x350] sm:$0xff] }
 0x4f7   : > { %4811 = vmatpush.bf16.msrb.mxu0 %v12795_v48  ;;  %v4317_v16 = vld [vmem:[#allocation4 + $0x1b] sm:$0xff]  ;;  %v4322_v21 = vld [vmem:[#allocation4 + $0x43] sm:$0xff] }
 0x4f8   : > { %v3886_v38 = vmax.f32 %v3876_v50, 0.0  ;;  %v4326_v46 = vpack.c.bf16 %v4318_v44, %v4317_v16  ;;  %v4534_v27 = vld [vmem:[#allocation4 + $0x3c] sm:$0xff] }
 0x4f9   : > { %v4541_v25 = vpack.c.bf16 %v4534_v27, %v4427_v5  ;;  %v4641_v55 = vld [vmem:[#allocation4 + $0x3d] sm:$0xff] }
 0x4fa   : > { %v3896_v39 = vmul.f32 %v3886_v38, %v14351_v3  ;;  %v4321_v38 = vld [vmem:[#allocation4 + $0x3b] sm:$0xff] }
 0x4fb   : > { %v3940_v52 = vld [vmem:[#allocation4 + $0x49] sm:$0x3f]  ;;  %4812 = vmatpush.bf16.msrb.mxu0 %v12794_v11  ;;  %v4645_v10 = vld [vmem:[#allocation4 + $0x5d] sm:$0x3f] }
 0x4fc   : > { %v3916_v7 = vld [vmem:[#allocation4 + $0x48] sm:$0x3f]  ;;  %3906 = vst.msk [vmem:[#allocation4 + $0x53] sm:$0x3f] %vm2897_vm2, %v3896_v39  ;;  %v3945_v18 = vpack.c.bf16 %v3940_v52, %v3939_v41  ;;  %v4328_v41 = vpack.c.bf16 %v4322_v21, %v4321_v38 }
 0x4fd   : > { %v4110_v63 = vld [vmem:[#allocation4 + $0x4a] sm:$0x3f]  ;;  %v3921_v61 = vpack.c.bf16 %v3916_v7, %v3915_v17 }
 0x4fe   : > { %v4115_v37 = vpack.c.bf16 %v4110_v63, %v4215_v32  ;;  %10540 = vmatmul.msk.bf16.gmra.mxu0 %vm520_vm0, %v3945_v18  ;;  %v4216_v23 = vld [vmem:[#allocation4 + $0x4a] sm:$0xff]  ;;  %v4648_v32 = vpack.c.bf16 %v4641_v55, %v4640_v45 }
 0x4ff   : > { %10561 = vmatmul.msk.bf16.gmra.mxu1 %vm520_vm0, %v3921_v61  ;;  %4813 = vmatpush.bf16.msrb.mxu0 %v12793_v35  ;;  %v4429_v29 = vld [vmem:[#allocation4 + $0x44] sm:$0xff]  ;;  %v4743_v35 = vld [vmem:[#allocation4 + $0x16] sm:$0xff] }
 0x500   : > { %10590 = vmatmul.msk.bf16.gmra.mxu2 %vm520_vm0, %v4115_v37  ;;  %v4435_v17 = vpack.c.bf16 %v4429_v29, %v4534_v27  ;;  %v4642_v48 = vld [vmem:[#allocation4 + $0x45] sm:$0xff] }
 0x503   : > { %v4217_v1 = vld [vmem:[#allocation4 + $0x52] sm:$0x3f] }
 0x504   : > { %v4222_v57 = vpack.c.bf16 %v4217_v1, %v4216_v23  ;;  %v4536_v40 = vld [vmem:[#allocation4 + $0x4c] sm:$0xff]  ;;  %v4431_v30 = vld [vmem:[#allocation4 + $0x54] sm:$0x3f] }
 0x505   : > { %v4542_v52 = vpack.c.bf16 %v4536_v40, %v4429_v29  ;;  %v4643_v7 = vld [vmem:[#allocation4 + $0x4d] sm:$0xff]  ;;  %v4644_v13 = vld [vmem:[#allocation4 + $0x55] sm:$0xff] }
 0x506   : > { %10619 = vmatmul.msk.bf16.gmra.mxu3 %vm520_vm0, %v4222_v57  ;;  %v4649_v23 = vpack.c.bf16 %v4643_v7, %v4642_v48  ;;  %v4324_v57 = vld [vmem:[#allocation4 + $0x53] sm:$0x3f]  ;;  %v4650_v6 = vpack.c.bf16 %v4645_v10, %v4644_v13 }
 0x507   : > { %v4537_v42 = vld [vmem:[#allocation4 + $0x54] sm:$0xff] }
 0x508   : > { %v4543_v11 = vpack.c.bf16 %v4538_v19, %v4537_v42 }
 0x50e   : > { %10644 = vmatmul.msk.bf16.vlgmr.msra.gmra.mxu0 %vm520_vm0, %v4325_v62 }
 0x50f   : > { %10673 = vmatmul.msk.bf16.vlgmr.msra.gmra.mxu1 %vm520_vm0, %v4432_v4 }
 0x510   : > { %10702 = vmatmul.msk.bf16.vlgmr.msra.gmra.mxu2 %vm520_vm0, %v4539_v54  ;;  %v4323_v54 = vld [vmem:[#allocation4 + $0x4b] sm:$0xff] }
 0x511   : > { %v4329_v31 = vpack.c.bf16 %v4324_v57, %v4323_v54  ;;  %v4748_v57 = vld [vmem:[#allocation4 + $0x3e] sm:$0xff] }
 0x516   : > { %10731 = vmatmul.msk.bf16.vlgmr.msra.gmra.mxu3 %vm520_vm0, %v4646_v2  ;;  %v4436_v2 = vpack.c.bf16 %v4431_v30, %v4536_v40  ;;  %v4746_v40 = vld [vmem:[#allocation4 + $0x2e] sm:$0xff] }
 0x51e   : > { %10645 = vmatmul.msk.bf16.gmra.mxu0 %vm520_vm0, %v4326_v46 }
 0x51f   : > { %10674 = vmatmul.msk.bf16.gmra.mxu1 %vm520_vm0, %v4433_v33 }
 0x520   : > { %10703 = vmatmul.msk.bf16.gmra.mxu2 %vm520_vm0, %v4540_v15 }
 0x526   : > { %10732 = vmatmul.msk.bf16.gmra.mxu3 %vm520_vm0, %v4647_v26  ;;  %v4744_v26 = vld [vmem:[#allocation4 + $0x1e] sm:$0xff] }
 0x52e   : > { %10646 = vmatmul.msk.bf16.gmra.mxu0 %vm520_vm0, %v4327_v20 }
 0x52f   : > { %10675 = vmatmul.msk.bf16.gmra.mxu1 %vm520_vm0, %v4434_v36  ;;  %v4753_v36 = vpack.c.bf16 %v4744_v26, %v4743_v35  ;;  %v4749_v26 = vld [vmem:[#allocation4 + $0x46] sm:$0xff] }
 0x530   : > { %10704 = vmatmul.msk.bf16.gmra.mxu2 %vm520_vm0, %v4541_v25 }
 0x536   : > { %10733 = vmatmul.msk.bf16.gmra.mxu3 %vm520_vm0, %v4648_v32 }
 0x53b   : > { %v4003_v28 = vpop.f32.mrf.mxu0 }
 0x53c   : > { %v4076_v50 = vpop.f32.mrf.mxu1 }
 0x53d   : > { %v4077_v39 = vadd.f32 %v4076_v50, %v4003_v28 }
 0x53e   : > { %10647 = vmatmul.msk.bf16.gmra.mxu0 %vm520_vm0, %v4328_v41  ;;  %v4745_v41 = vld [vmem:[#allocation4 + $0x26] sm:$0xff] }
 0x53f   : > { %10676 = vmatmul.msk.bf16.gmra.mxu1 %vm520_vm0, %v4435_v17 }
 0x540   : > { %10705 = vmatmul.msk.bf16.gmra.mxu2 %vm520_vm0, %v4542_v52  ;;  %v4754_v52 = vpack.c.bf16 %v4746_v40, %v4745_v41 }
 0x543   : > { %v4173_v63 = vpop.f32.mrf.mxu2  ;;  %v14658_v61 = vpop.f32.mrf.mxu0 }
 0x544   : > { %v4198_v18 = vadd.f32 %v4173_v63, %v4077_v39  ;;  %v14660_v37 = vpop.f32.mrf.mxu1 }
 0x546   : > { %10734 = vmatmul.msk.bf16.gmra.mxu3 %vm520_vm0, %v4649_v23 }
 0x549   : > { %v4280_v1 = vpop.f32.mrf.mxu3 }
 0x54a   : > { %v14665_v22 = vadd.f32 %v4280_v1, %v4198_v18 }
 0x54b   : > { %v14663_v49 = vpop.f32.mrf.mxu2  ;;  %v4008_v62 = vpop.f32.mrf.mxu0 }
 0x54c   : > { %v4081_v4 = vpop.f32.mrf.mxu1 }
 0x54d   : > { %v4082_v8 = vadd.f32 %v4081_v4, %v4008_v62  ;;  %v4747_v4 = vld [vmem:[#allocation4 + $0x36] sm:$0xff] }
 0x54e   : > { %10648 = vmatmul.msk.bf16.gmra.mxu0 %vm520_vm0, %v4329_v31  ;;  %v12804_v31 = vld [vmem:[%s16278_s3 + $0x398] sm:$0xff] }
 0x54f   : > { %10677 = vmatmul.msk.bf16.gmra.mxu1 %vm520_vm0, %v4436_v2 }
 0x550   : > { %10706 = vmatmul.msk.bf16.gmra.mxu2 %vm520_vm0, %v4543_v11  ;;  %4996 = vmatpush.bf16.msrb.mxu1 %v12804_v31  ;;  %v12807_v31 = vld [vmem:[%s16278_s3 + $0x3b0] sm:$0xff] }
 0x551   : > { %v14670_v44 = vpop.f32.mrf.mxu3 }
 0x553   : > { %v4178_v16 = vpop.f32.mrf.mxu2  ;;  %v14672_v33 = vpop.f32.mrf.mxu0 }
 0x554   : > { %v4200_v46 = vadd.f32 %v4178_v16, %v4082_v8  ;;  %v14674_v15 = vpop.f32.mrf.mxu1  ;;  %v4755_v8 = vpack.c.bf16 %v4748_v57, %v4747_v4  ;;  %v12800_v4 = vld [vmem:[%s16278_s3 + $0x378] sm:$0xff] }
 0x555   : > { %5069 = vmatpush.bf16.msrb.mxu2 %v12800_v4 }
 0x556   : > { %10735 = vmatmul.msk.bf16.gmra.mxu3 %vm520_vm0, %v4650_v6 }
 0x559   : > { %v4285_v12 = vpop.f32.mrf.mxu3 }
 0x55a   : > { %v4307_v5 = vadd.f32 %v4285_v12, %v4200_v46  ;;  %v4750_v46 = vld [vmem:[#allocation4 + $0x4e] sm:$0xff] }
 0x55b   : > { %v14677_v0 = vpop.f32.mrf.mxu2  ;;  %v4013_v27 = vpop.f32.mrf.mxu0 }
 0x55c   : > { %v4086_v34 = vpop.f32.mrf.mxu1 }
 0x55d   : > { %v4087_v20 = vadd.f32 %v4086_v34, %v4013_v27  ;;  %v4756_v34 = vpack.c.bf16 %v4750_v46, %v4749_v26  ;;  %v12812_v46 = vld [vmem:[%s16278_s3 + $0x3d8] sm:$0xff] }
 0x55e   : > { %10760 = vmatmul.msk.bf16.vlgmr.msrb.gmra.mxu0 %vm520_vm0, %v4753_v36  ;;  %v4751_v36 = vld [vmem:[#allocation4 + $0x56] sm:$0xff] }
 0x55f   : > { %5273 = vmatpush.bf16.msra.mxu0 %v12812_v46 }
 0x561   : > { %v14680_v25 = vpop.f32.mrf.mxu3 }
 0x563   : > { %v4183_v55 = vpop.f32.mrf.mxu2  ;;  %v14682_v32 = vpop.f32.mrf.mxu0 }
 0x564   : > { %v4202_v45 = vadd.f32 %v4183_v55, %v4087_v20  ;;  %v14684_v21 = vpop.f32.mrf.mxu1  ;;  %v12803_v20 = vld [vmem:[%s16278_s3 + $0x390] sm:$0xff] }
 0x565   : > { %4997 = vmatpush.bf16.msrb.mxu1 %v12803_v20  ;;  %v4752_v55 = vld [vmem:[#allocation4 + $0x5e] sm:$0x3f] }
 0x566   : > { %v4757_v40 = vpack.c.bf16 %v4752_v55, %v4751_v36  ;;  %v12797_v36 = vld [vmem:[%s16278_s3 + $0x360] sm:$0xff] }
 0x567   : > { %v12805_v55 = vld [vmem:[%s16278_s3 + $0x3a0] sm:$0xff] }
 0x569   : > { %v4290_v29 = vpop.f32.mrf.mxu3 }
 0x56a   : > { %v4309_v50 = vadd.f32 %v4290_v29, %v4202_v45 }
 0x56b   : > { %v14686_v28 = vpop.f32.mrf.mxu2  ;;  %v4018_v38 = vpop.f32.mrf.mxu0 }
 0x56c   : > { %v4091_v39 = vpop.f32.mrf.mxu1 }
 0x56d   : > { %v4092_v17 = vadd.f32 %v4091_v39, %v4018_v38 }
 0x56e   : > { %10761 = vmatmul.msk.bf16.gmra.mxu0 %vm520_vm0, %v4754_v52 }
 0x571   : > { %v14689_v7 = vpop.f32.mrf.mxu3 }
 0x573   : > { %v4188_v63 = vpop.f32.mrf.mxu2  ;;  %v14691_v48 = vpop.f32.mrf.mxu0 }
 0x574   : > { %v4204_v18 = vadd.f32 %v4188_v63, %v4092_v17  ;;  %v14693_v23 = vpop.f32.mrf.mxu1 }
 0x579   : > { %v4295_v1 = vpop.f32.mrf.mxu3 }
 0x57a   : > { %v4311_v42 = vadd.f32 %v4295_v1, %v4204_v18  ;;  %v12801_v1 = vld [vmem:[%s16278_s3 + $0x380] sm:$0xff] }
 0x57b   : > { %v14695_v30 = vpop.f32.mrf.mxu2  ;;  %v4023_v19 = vpop.f32.mrf.mxu0 }
 0x57c   : > { %v4096_v62 = vpop.f32.mrf.mxu1 }
 0x57d   : > { %v4097_v54 = vadd.f32 %v4096_v62, %v4023_v19 }
 0x57e   : > { %10762 = vmatmul.msk.bf16.gmra.mxu0 %vm520_vm0, %v4755_v8 }
 0x581   : > { %v14701_v2 = vpop.f32.mrf.mxu3 }
 0x583   : > { %v4193_v11 = vpop.f32.mrf.mxu2  ;;  %v14703_v10 = vpop.f32.mrf.mxu0 }
 0x584   : > { %v4206_v13 = vadd.f32 %v4193_v11, %v4097_v54  ;;  %v14724_v52 = vpop.f32.mrf.mxu1  ;;  %v12808_v54 = vld [vmem:[%s16278_s3 + $0x3b8] sm:$0xff] }
 0x585   : > { %5166 = vmatpush.bf16.msrb.mxu3 %v12808_v54 }
 0x589   : > { %v4300_v16 = vpop.f32.mrf.mxu3  ;;  %5167 = vmatpush.bf16.msrb.mxu3 %v12807_v31 }
 0x58a   : > { %v4313_v6 = vadd.f32 %v4300_v16, %v4206_v13  ;;  %v12798_v13 = vld [vmem:[%s16278_s3 + $0x368] sm:$0xff] }
 0x58b   : > { %v4387_v12 = vpop.f32.mrf.mxu0  ;;  %v14726_v63 = vpop.f32.mrf.mxu2  ;;  %v12806_v16 = vld [vmem:[%s16278_s3 + $0x3a8] sm:$0xff] }
 0x58c   : > { %v4412_v27 = vadd.f32 %v4387_v12, %v14665_v22  ;;  %v12802_v22 = vld [vmem:[%s16278_s3 + $0x388] sm:$0xff]  ;;  %v4494_v19 = vpop.f32.mrf.mxu1 }
 0x58d   : > { %4998 = vmatpush.bf16.msrb.mxu1 %v12802_v22  ;;  %5168 = vmatpush.bf16.msrb.mxu3 %v12806_v16  ;;  %v4079_v22 = vadd.f32 %v14660_v37, %v14658_v61 }
 0x58e   : > { %10763 = vmatmul.msk.bf16.gmra.mxu0 %vm520_vm0, %v4756_v34 }
 0x591   : > { %4999 = vmatpush.bf16.msrb.mxu1 %v12801_v1  ;;  %5169 = vmatpush.bf16.msrb.mxu3 %v12805_v55  ;;  %v4519_v1 = vadd.f32 %v4494_v19, %v4412_v27 }
 0x593   : > { %v14707_v35 = vpop.f32.mrf.mxu0  ;;  %v4601_v62 = vpop.f32.mrf.mxu2 }
 0x594   : > { %v4496_v12 = vpop.f32.mrf.mxu1 }
 0x59b   : > { %v4392_v45 = vpop.f32.mrf.mxu0  ;;  %v4603_v34 = vpop.f32.mrf.mxu2 }
 0x59c   : > { %v14712_v29 = vadd.f32 %v4392_v45, %v4307_v5  ;;  %v14728_v5 = vpop.f32.mrf.mxu3  ;;  %v12811_v45 = vld [vmem:[%s16278_s3 + $0x3d0] sm:$0xff]  ;;  %v4499_v4 = vpop.f32.mrf.mxu1 }
 0x59d   : > { %5274 = vmatpush.bf16.msra.mxu0 %v12811_v45 }
 0x59e   : > { %10764 = vmatmul.msk.bf16.gmra.mxu0 %vm520_vm0, %v4757_v40  ;;  %v12810_v40 = vld [vmem:[%s16278_s3 + $0x3c8] sm:$0xff] }
 0x5a1   : > { %5275 = vmatpush.bf16.msra.mxu0 %v12810_v40 }
 0x5a3   : > { %v14715_v38 = vpop.f32.mrf.mxu0  ;;  %v4606_v54 = vpop.f32.mrf.mxu2 }
 0x5a4   : > { %v4708_v8 = vpop.f32.mrf.mxu3  ;;  %v4501_v55 = vpop.f32.mrf.mxu1 }
 0x5ab   : > { %v4397_v39 = vpop.f32.mrf.mxu0 }
 0x5ac   : > { %v14720_v41 = vadd.f32 %v4397_v39, %v4309_v50  ;;  %v4710_v20 = vpop.f32.mrf.mxu3  ;;  %v12816_v39 = vld [vmem:[%s16278_s3 + $0x3f8] sm:$0xff] }
 0x5ad   : > { %5380 = vmatpush.bf16.msra.mxu1 %v12816_v39 }
 0x5b3   : > { %v14722_v17 = vpop.f32.mrf.mxu0 }
 0x5bb   : > { %v4402_v18 = vpop.f32.mrf.mxu0 }
 0x5bc   : > { %v14733_v57 = vadd.f32 %v4402_v18, %v4311_v42  ;;  %v12799_v42 = vld [vmem:[%s16278_s3 + $0x370] sm:$0xff]  ;;  %v4199_v18 = vadd.f32 %v14663_v49, %v4079_v22  ;;  %v14788_v49 = vld [vmem:[%s16279_s4 + $0x2] ss:$0 sm:$0xff]  ;;  %v4084_v22 = vadd.f32 %v14674_v15, %v14672_v33  ;;  %v4905_v33 = vld [vmem:[#allocation5] sm:$0xff] }
 0x5bd   : > { %5070 = vmatpush.bf16.msrb.mxu2 %v12799_v42  ;;  %v12809_v42 = vld [vmem:[%s16278_s3 + $0x3c0] sm:$0xff] }
 0x5be   : > { %v4306_v31 = vadd.f32 %v14670_v44, %v4199_v18  ;;  %5276 = vmatpush.bf16.msra.mxu0 %v12809_v42  ;;  %v4608_v44 = vpop.f32.mrf.mxu2  ;;  %v4521_v18 = vadd.f32 %v4499_v4, %v14712_v29  ;;  %v5099_v15 = vld [vmem:[#allocation5 + $0x2] sm:$0xff] }
 0x5c0   : > { %v4413_v61 = vadd.f32 %v14707_v35, %v4306_v31  ;;  %v4628_v42 = vadd.f32 %v4606_v54, %v4521_v18  ;;  %v4089_v18 = vadd.f32 %v14684_v21, %v14682_v32 }
 0x5c1   : > { %5071 = vmatpush.bf16.msrb.mxu2 %v12798_v13  ;;  %v4713_v13 = vpop.f32.mrf.mxu3 }
 0x5c2   : > { %v4520_v16 = vadd.f32 %v4496_v12, %v4413_v61  ;;  %v12815_v12 = vld [vmem:[%s16278_s3 + $0x3f0] sm:$0xff] }
 0x5c3   : > { %v14735_v50 = vpop.f32.mrf.mxu0  ;;  %5381 = vmatpush.bf16.msra.mxu1 %v12815_v12 }
 0x5c5   : > { %5072 = vmatpush.bf16.msrb.mxu2 %v12797_v36  ;;  %v4627_v36 = vadd.f32 %v4603_v34, %v4520_v16  ;;  %v4201_v34 = vadd.f32 %v14677_v0, %v4084_v22 }
 0x5c6   : > { %v4611_v16 = vpop.f32.mrf.mxu2 }
 0x5c9   : > { %v4715_v35 = vpop.f32.mrf.mxu3 }
 0x5cb   : > { %v4407_v11 = vpop.f32.mrf.mxu0 }
 0x5cc   : > { %v14758_v26 = vadd.f32 %v4407_v11, %v4313_v6  ;;  %v4626_v11 = vadd.f32 %v4601_v62, %v4519_v1  ;;  %v4734_v62 = vadd.f32 %v4710_v20, %v4627_v36  ;;  %v4308_v1 = vadd.f32 %v14680_v25, %v4201_v34 }
 0x5ce   : > { %v4733_v37 = vadd.f32 %v4708_v8, %v4626_v11  ;;  %v4929_v11 = vld [vmem:[#allocation5 + $0x1] sm:$0xff]  ;;  %v4415_v61 = vadd.f32 %v14715_v38, %v4308_v1 }
 0x5d3   : > { %v14769_v6 = vpop.f32.mrf.mxu0 }
 0x5db   : > { %v4815_v27 = vpop.f32.mrf.mxu0 }
 0x5dc   : > { %v4840_v19 = vadd.f32 %v4815_v27, %v4733_v37  ;;  %v4735_v37 = vadd.f32 %v4713_v13, %v4628_v42  ;;  %v4504_v27 = vpop.f32.mrf.mxu1  ;;  %v4613_v42 = vpop.f32.mrf.mxu2 }
 0x5de   : > { %v4855_v46 = vadd.f32 %v14788_v49, %v4840_v19 }
 0x5e0   : > { %v4865_v45 = vmax.f32 %v4855_v46, 0.0 }
 0x5e2   : > { %v4875_v40 = vmul.f32 %v4865_v45, %v14233_v53 }
 0x5e3   : > { %v4817_v8 = vpop.f32.mrf.mxu0 }
 0x5e4   : > { %4885 = vst.msk [vmem:[#allocation5 + $0xb] sm:$0xff] %vm520_vm0, %v4875_v40  ;;  %v4841_v39 = vadd.f32 %v4817_v8, %v4734_v62  ;;  %v4718_v62 = vpop.f32.mrf.mxu3  ;;  %v4522_v40 = vadd.f32 %v4501_v55, %v4415_v61 }
 0x5e6   : > { %v4856_v20 = vadd.f32 %v14788_v49, %v4841_v39  ;;  %v4629_v38 = vadd.f32 %v4608_v44, %v4522_v40 }
 0x5e8   : > { %v4866_v31 = vmax.f32 %v4856_v20, 0.0  ;;  %v4736_v22 = vadd.f32 %v4715_v35, %v4629_v38  ;;  %v4506_v20 = vpop.f32.mrf.mxu1 }
 0x5ea   : > { %v4876_v19 = vmul.f32 %v4866_v31, %v13887_v43  ;;  %v4203_v31 = vadd.f32 %v14686_v28, %v4089_v18 }
 0x5eb   : > { %v4820_v0 = vpop.f32.mrf.mxu0  ;;  %v4930_v46 = vld [vmem:[#allocation5 + $0x9] sm:$0xff] }
 0x5ec   : > { %v4906_v29 = vld [vmem:[#allocation5 + $0x8] sm:$0xff]  ;;  %4886 = vst.msk [vmem:[#allocation5 + $0x13] sm:$0xff] %vm520_vm0, %v4876_v19  ;;  %v4842_v36 = vadd.f32 %v4820_v0, %v4735_v37  ;;  %v4939_v25 = vpack.c.bf16 %v4930_v46, %v4929_v11  ;;  %v4523_v11 = vadd.f32 %v4504_v27, %v14720_v41  ;;  %v4720_v35 = vpop.f32.mrf.mxu3 }
 0x5ed   : > { %v5100_v4 = vld [vmem:[#allocation5 + $0xa] sm:$0xff]  ;;  %v4915_v54 = vpack.c.bf16 %v4906_v29, %v4905_v33  ;;  %v4310_v33 = vadd.f32 %v14689_v7, %v4203_v31 }
 0x5ee   : > { %v5109_v45 = vpack.c.bf16 %v5100_v4, %v5099_v15  ;;  %v4857_v8 = vadd.f32 %v14788_v49, %v4842_v36  ;;  %10798 = vmatmul.msk.bf16.vlgmr.msrb.gmra.mxu1 %vm520_vm0, %v4939_v25  ;;  %v4630_v15 = vadd.f32 %v4611_v16, %v4523_v11  ;;  %v12814_v7 = vld [vmem:[%s16278_s3 + $0x3e8] sm:$0xff] }
 0x5ef   : > { %10819 = vmatmul.msk.bf16.vlgmr.msrb.gmra.mxu2 %vm520_vm0, %v4915_v54  ;;  %v4417_v32 = vadd.f32 %v14722_v17, %v4310_v33  ;;  %5382 = vmatpush.bf16.msra.mxu1 %v12814_v7  ;;  %v12823_v7 = vld [vmem:[%s16278_s3 + $0x430] sm:$0xff] }
 0x5f0   : > { %10848 = vmatmul.msk.bf16.vlgmr.msrb.gmra.mxu3 %vm520_vm0, %v5109_v45  ;;  %v4867_v13 = vmax.f32 %v4857_v8, 0.0  ;;  %v4737_v21 = vadd.f32 %v4718_v62, %v4630_v15  ;;  %v4509_v16 = vpop.f32.mrf.mxu1  ;;  %v4616_v45 = vpop.f32.mrf.mxu2 }
 0x5f1   : > { %v4524_v17 = vadd.f32 %v4506_v20, %v4417_v32 }
 0x5f2   : > { %v4877_v39 = vmul.f32 %v4867_v13, %v13895_v56 }
 0x5f3   : > { %v4822_v12 = vpop.f32.mrf.mxu0  ;;  %v5207_v34 = vld [vmem:[#allocation5 + $0x12] sm:$0xff]  ;;  %v4631_v62 = vadd.f32 %v4613_v42, %v4524_v17 }
 0x5f4   : > { %4887 = vst.msk [vmem:[#allocation5 + $0x1b] sm:$0xff] %vm520_vm0, %v4877_v39  ;;  %v4843_v55 = vadd.f32 %v4822_v12, %v4736_v22  ;;  %v5216_v1 = vpack.c.bf16 %v5207_v34, %v5100_v4  ;;  %v4931_v19 = vld [vmem:[#allocation5 + $0x11] sm:$0xff]  ;;  %v4723_v8 = vpop.f32.mrf.mxu3  ;;  %v4094_v12 = vadd.f32 %v14693_v23, %v14691_v48 }
 0x5f5   : > { %v4907_v0 = vld [vmem:[#allocation5 + $0x10] sm:$0xff]  ;;  %v4738_v38 = vadd.f32 %v4720_v35, %v4631_v62 }
 0x5f6   : > { %v4858_v44 = vadd.f32 %v14788_v49, %v4843_v55  ;;  %10877 = vmatmul.msk.bf16.vlgmr.msra.gmra.mxu0 %vm520_vm0, %v5216_v1  ;;  %v4205_v20 = vadd.f32 %v14695_v30, %v4094_v12  ;;  %v4525_v55 = vadd.f32 %v4509_v16, %v14733_v57 }
 0x5f8   : > { %v4868_v61 = vmax.f32 %v4858_v44, 0.0  ;;  %v4312_v42 = vadd.f32 %v14701_v2, %v4205_v20  ;;  %v4632_v31 = vadd.f32 %v4616_v45, %v4525_v55  ;;  %v4511_v11 = vpop.f32.mrf.mxu1  ;;  %v4618_v35 = vpop.f32.mrf.mxu2  ;;  %v12817_v55 = vld [vmem:[%s16278_s3 + $0x400] sm:$0xff] }
 0x5fa   : > { %v4878_v37 = vmul.f32 %v4868_v61, %v14254_v60  ;;  %v4419_v48 = vadd.f32 %v14735_v50, %v4312_v42  ;;  %v4739_v23 = vadd.f32 %v4723_v8, %v4632_v31  ;;  %v12813_v50 = vld [vmem:[%s16278_s3 + $0x3e0] sm:$0xff]  ;;  %v4099_v8 = vadd.f32 %v14724_v52, %v14703_v10  ;;  %v12822_v10 = vld [vmem:[%s16278_s3 + $0x428] sm:$0xff]  ;;  %v12828_v52 = vld [vmem:[%s16278_s3 + $0x458] sm:$0xff] }
 0x5fb   : > { %v4825_v46 = vpop.f32.mrf.mxu0  ;;  %v4932_v28 = vld [vmem:[#allocation5 + $0x19] sm:$0xff]  ;;  %5383 = vmatpush.bf16.msra.mxu1 %v12813_v50  ;;  %5701 = vmatpush.bf16.msrb.mxu0 %v12828_v52 }
 0x5fc   : > { %v4908_v29 = vld [vmem:[#allocation5 + $0x18] sm:$0xff]  ;;  %4888 = vst.msk [vmem:[#allocation5 + $0x23] sm:$0xff] %vm520_vm0, %v4878_v37  ;;  %v4844_v27 = vadd.f32 %v4825_v46, %v4737_v21  ;;  %v4940_v4 = vpack.c.bf16 %v4932_v28, %v4931_v19  ;;  %v4725_v30 = vpop.f32.mrf.mxu3  ;;  %v4526_v28 = vadd.f32 %v4511_v11, %v4419_v48 }
 0x5fd   : > { %v5102_v41 = vld [vmem:[#allocation5 + $0x1a] sm:$0xff]  ;;  %v4916_v36 = vpack.c.bf16 %v4908_v29, %v4907_v0 }
 0x5fe   : > { %v5110_v25 = vpack.c.bf16 %v5102_v41, %v5207_v34  ;;  %v4859_v54 = vadd.f32 %v14788_v49, %v4844_v27  ;;  %10799 = vmatmul.msk.bf16.gmra.mxu1 %vm520_vm0, %v4940_v4  ;;  %v12824_v27 = vld [vmem:[%s16278_s3 + $0x438] sm:$0xff]  ;;  %v4633_v4 = vadd.f32 %v4618_v35, %v4526_v28  ;;  %v12827_v35 = vld [vmem:[%s16278_s3 + $0x450] sm:$0xff] }
 0x5ff   : > { %10820 = vmatmul.msk.bf16.gmra.mxu2 %vm520_vm0, %v4916_v36  ;;  %5594 = vmatpush.bf16.msra.mxu3 %v12824_v27  ;;  %v5421_v52 = vld [vmem:[#allocation5 + $0x14] sm:$0xff] }
 0x600   : > { %10849 = vmatmul.msk.bf16.gmra.mxu3 %vm520_vm0, %v5110_v25  ;;  %v4869_v40 = vmax.f32 %v4859_v54, 0.0  ;;  %v12819_v25 = vld [vmem:[%s16278_s3 + $0x410] sm:$0xff]  ;;  %v4514_v17 = vpop.f32.mrf.mxu1  ;;  %v4740_v16 = vadd.f32 %v4725_v30, %v4633_v4  ;;  %v4621_v45 = vpop.f32.mrf.mxu2  ;;  %5702 = vmatpush.bf16.msrb.mxu0 %v12827_v35 }
 0x601   : > { %v4527_v12 = vadd.f32 %v4514_v17, %v14758_v26 }
 0x602   : > { %v4879_v13 = vmul.f32 %v4869_v40, %v13901_v59 }
 0x603   : > { %v4827_v22 = vpop.f32.mrf.mxu0  ;;  %v5209_v39 = vld [vmem:[#allocation5 + $0x22] sm:$0xff]  ;;  %5595 = vmatpush.bf16.msra.mxu3 %v12823_v7  ;;  %v4634_v20 = vadd.f32 %v4621_v45, %v4527_v12 }
 0x604   : > { %4889 = vst.msk [vmem:[#allocation5 + $0x2b] sm:$0xff] %vm520_vm0, %v4879_v13  ;;  %v4845_v34 = vadd.f32 %v4827_v22, %v4738_v38  ;;  %v5217_v18 = vpack.c.bf16 %v5209_v39, %v5102_v41  ;;  %v4933_v15 = vld [vmem:[#allocation5 + $0x21] sm:$0xff]  ;;  %v4728_v22 = vpop.f32.mrf.mxu3 }
 0x605   : > { %v4909_v61 = vld [vmem:[#allocation5 + $0x20] sm:$0xff]  ;;  %v4741_v31 = vadd.f32 %v4728_v22, %v4634_v20  ;;  %v5313_v20 = vld [vmem:[#allocation5 + $0xb] sm:$0xff] }
 0x606   : > { %v4860_v1 = vadd.f32 %v14788_v49, %v4845_v34  ;;  %10878 = vmatmul.msk.bf16.gmra.mxu0 %vm520_vm0, %v5217_v18  ;;  %v12820_v41 = vld [vmem:[%s16278_s3 + $0x418] sm:$0xff]  ;;  %v12818_v18 = vld [vmem:[%s16278_s3 + $0x408] sm:$0xff] }
 0x607   : > { %5487 = vmatpush.bf16.msra.mxu2 %v12820_v41  ;;  %5596 = vmatpush.bf16.msra.mxu3 %v12822_v10  ;;  %v5314_v10 = vld [vmem:[#allocation5 + $0x13] sm:$0xff]  ;;  %v5316_v35 = vld [vmem:[#allocation5 + $0x23] sm:$0xff] }
 0x608   : > { %v4870_v44 = vmax.f32 %v4860_v1, 0.0  ;;  %v12821_v1 = vld [vmem:[%s16278_s3 + $0x420] sm:$0xff] }
 0x60a   : > { %v4880_v33 = vmul.f32 %v4870_v44, %v13919_v14 }
 0x60b   : > { %v4830_v32 = vpop.f32.mrf.mxu0  ;;  %v4934_v57 = vld [vmem:[#allocation5 + $0x29] sm:$0xff]  ;;  %5488 = vmatpush.bf16.msra.mxu2 %v12819_v25  ;;  %5597 = vmatpush.bf16.msra.mxu3 %v12821_v1 }
 0x60c   : > { %v4910_v21 = vld [vmem:[#allocation5 + $0x28] sm:$0xff]  ;;  %4890 = vst.msk [vmem:[#allocation5 + $0x33] sm:$0xff] %vm520_vm0, %v4880_v33  ;;  %v4846_v19 = vadd.f32 %v4830_v32, %v4739_v23  ;;  %v4941_v2 = vpack.c.bf16 %v4934_v57, %v4933_v15 }
 0x60d   : > { %v5104_v37 = vld [vmem:[#allocation5 + $0x2a] sm:$0xff]  ;;  %v4917_v0 = vpack.c.bf16 %v4910_v21, %v4909_v61  ;;  %v4623_v21 = vpop.f32.mrf.mxu2 }
 0x60e   : > { %v5111_v46 = vpack.c.bf16 %v5104_v37, %v5209_v39  ;;  %v4861_v29 = vadd.f32 %v14788_v49, %v4846_v19  ;;  %10800 = vmatmul.msk.bf16.gmra.mxu1 %vm520_vm0, %v4941_v2  ;;  %v4207_v39 = vadd.f32 %v14726_v63, %v4099_v8  ;;  %v4730_v2 = vpop.f32.mrf.mxu3 }
 0x60f   : > { %10821 = vmatmul.msk.bf16.gmra.mxu2 %vm520_vm0, %v4917_v0  ;;  %v12832_v0 = vld [vmem:[%s16278_s3 + $0x478] sm:$0xff] }
 0x610   : > { %10850 = vmatmul.msk.bf16.gmra.mxu3 %vm520_vm0, %v5111_v46  ;;  %v4871_v36 = vmax.f32 %v4861_v29, 0.0  ;;  %v4314_v63 = vadd.f32 %v14728_v5, %v4207_v39  ;;  %5489 = vmatpush.bf16.msra.mxu2 %v12818_v18  ;;  %v12826_v46 = vld [vmem:[%s16278_s3 + $0x448] sm:$0xff] }
 0x611   : > { %5808 = vmatpush.bf16.msrb.mxu1 %v12832_v0  ;;  %5703 = vmatpush.bf16.msrb.mxu0 %v12826_v46 }
 0x612   : > { %v4881_v54 = vmul.f32 %v4871_v36, %v14296_v58  ;;  %v4421_v42 = vadd.f32 %v14769_v6, %v4314_v63  ;;  %v4516_v6 = vpop.f32.mrf.mxu1  ;;  %v12825_v36 = vld [vmem:[%s16278_s3 + $0x440] sm:$0xff]  ;;  %v5528_v63 = vld [vmem:[#allocation5 + $0x1c] sm:$0xff] }
 0x613   : > { %v4832_v62 = vpop.f32.mrf.mxu0  ;;  %v5211_v40 = vld [vmem:[#allocation5 + $0x32] sm:$0xff] }
 0x614   : > { %4891 = vst.msk [vmem:[#allocation5 + $0x3b] sm:$0xff] %vm520_vm0, %v4881_v54  ;;  %v4847_v38 = vadd.f32 %v4832_v62, %v4740_v16  ;;  %v5218_v13 = vpack.c.bf16 %v5211_v40, %v5104_v37  ;;  %v4935_v44 = vld [vmem:[#allocation5 + $0x31] sm:$0xff]  ;;  %5490 = vmatpush.bf16.msra.mxu2 %v12817_v55  ;;  %v4528_v37 = vadd.f32 %v4516_v6, %v4421_v42 }
 0x615   : > { %v4911_v5 = vld [vmem:[#allocation5 + $0x30] sm:$0xff]  ;;  %5704 = vmatpush.bf16.msrb.mxu0 %v12825_v36  ;;  %v5323_v55 = vpack.c.bf16 %v5314_v10, %v5313_v20  ;;  %v5537_v42 = vpack.c.bf16 %v5528_v63, %v5421_v52 }
 0x616   : > { %v4862_v34 = vadd.f32 %v14788_v49, %v4847_v38  ;;  %10879 = vmatmul.msk.bf16.gmra.mxu0 %vm520_vm0, %v5218_v13  ;;  %v4635_v50 = vadd.f32 %v4623_v21, %v4528_v37  ;;  %v5318_v21 = vld [vmem:[#allocation5 + $0x33] sm:$0xff] }
 0x618   : > { %v4872_v26 = vmax.f32 %v4862_v34, 0.0  ;;  %v4742_v29 = vadd.f32 %v4730_v2, %v4635_v50  ;;  %v5317_v2 = vld [vmem:[#allocation5 + $0x2b] sm:$0xff] }
 0x619   : > { %v5325_v0 = vpack.c.bf16 %v5318_v21, %v5317_v2  ;;  %v12829_v50 = vld [vmem:[%s16278_s3 + $0x460] sm:$0xff]  ;;  %v5742_v21 = vld [vmem:[#allocation5 + $0x1e] sm:$0xff] }
 0x61a   : > { %v4882_v11 = vmul.f32 %v4872_v26, %v13923_v24  ;;  %v5420_v26 = vld [vmem:[#allocation5 + $0xc] sm:$0xff] }
 0x61b   : > { %v4835_v48 = vpop.f32.mrf.mxu0  ;;  %v4936_v23 = vld [vmem:[#allocation5 + $0x39] sm:$0xff]  ;;  %v5430_v1 = vpack.c.bf16 %v5421_v52, %v5420_v26 }
 0x61c   : > { %v4912_v33 = vld [vmem:[#allocation5 + $0x38] sm:$0xff]  ;;  %4892 = vst.msk [vmem:[#allocation5 + $0x43] sm:$0xff] %vm520_vm0, %v4882_v11  ;;  %v4848_v61 = vadd.f32 %v4835_v48, %v4741_v31  ;;  %v4942_v30 = vpack.c.bf16 %v4936_v23, %v4935_v44  ;;  %v5423_v48 = vld [vmem:[#allocation5 + $0x24] sm:$0xff]  ;;  %v5530_v23 = vld [vmem:[#allocation5 + $0x2c] sm:$0xff] }
 0x61d   : > { %v5106_v15 = vld [vmem:[#allocation5 + $0x3a] sm:$0xff]  ;;  %v4918_v32 = vpack.c.bf16 %v4912_v33, %v4911_v5  ;;  %v12830_v5 = vld [vmem:[%s16278_s3 + $0x468] sm:$0xff] }
 0x61e   : > { %v5112_v57 = vpack.c.bf16 %v5106_v15, %v5211_v40  ;;  %v4863_v19 = vadd.f32 %v14788_v49, %v4848_v61  ;;  %10801 = vmatmul.msk.bf16.gmra.mxu1 %vm520_vm0, %v4942_v30  ;;  %v5635_v31 = vld [vmem:[#allocation5 + $0x1d] sm:$0xff]  ;;  %v5634_v11 = vld [vmem:[#allocation5 + $0x15] sm:$0xff]  ;;  %v5431_v61 = vpack.c.bf16 %v5423_v48, %v5528_v63  ;;  %v5538_v30 = vpack.c.bf16 %v5530_v23, %v5423_v48 }
 0x61f   : > { %10822 = vmatmul.msk.bf16.gmra.mxu2 %vm520_vm0, %v4918_v32  ;;  %v5644_v44 = vpack.c.bf16 %v5635_v31, %v5634_v11  ;;  %v5315_v33 = vld [vmem:[#allocation5 + $0x1b] sm:$0xff]  ;;  %v5637_v32 = vld [vmem:[#allocation5 + $0x2d] sm:$0xff] }
 0x620   : > { %10851 = vmatmul.msk.bf16.gmra.mxu3 %vm520_vm0, %v5112_v57  ;;  %v4873_v28 = vmax.f32 %v4863_v19, 0.0  ;;  %v5636_v57 = vld [vmem:[#allocation5 + $0x25] sm:$0xff]  ;;  %v5425_v37 = vld [vmem:[#allocation5 + $0x34] sm:$0xff]  ;;  %v5536_v26 = vld [vmem:[#allocation5 + $0x5c] sm:$0x3f] }
 0x621   : > { %v5645_v6 = vpack.c.bf16 %v5637_v32, %v5636_v57  ;;  %v5432_v46 = vpack.c.bf16 %v5425_v37, %v5530_v23  ;;  %v5643_v48 = vld [vmem:[#allocation5 + $0x5d] sm:$0x3f] }
 0x622   : > { %v4883_v41 = vmul.f32 %v4873_v28, %v13934_v47 }
 0x623   : > { %v4837_v27 = vpop.f32.mrf.mxu0  ;;  %v5213_v4 = vld [vmem:[#allocation5 + $0x42] sm:$0xff] }
 0x624   : > { %4893 = vst.msk [vmem:[#allocation5 + $0x4b] sm:$0xff] %vm520_vm0, %v4883_v41  ;;  %v4849_v25 = vadd.f32 %v4837_v27, %v4742_v29  ;;  %v5219_v7 = vpack.c.bf16 %v5213_v4, %v5106_v15  ;;  %v4937_v45 = vld [vmem:[#allocation5 + $0x41] sm:$0xff]  ;;  %v5324_v15 = vpack.c.bf16 %v5316_v35, %v5315_v33  ;;  %v5638_v41 = vld [vmem:[#allocation5 + $0x35] sm:$0xff] }
 0x625   : > { %v4913_v62 = vld [vmem:[#allocation5 + $0x40] sm:$0xff] }
 0x626   : > { %v4864_v17 = vadd.f32 %v14788_v49, %v4849_v25  ;;  %10880 = vmatmul.msk.bf16.gmra.mxu0 %vm520_vm0, %v5219_v7  ;;  %v12831_v49 = vld [vmem:[%s16278_s3 + $0x470] sm:$0xff] }
 0x627   : > { %5809 = vmatpush.bf16.msrb.mxu1 %v12831_v49  ;;  %v5532_v19 = vld [vmem:[#allocation5 + $0x3c] sm:$0xff] }
 0x628   : > { %v4874_v16 = vmax.f32 %v4864_v17, 0.0  ;;  %v5539_v28 = vpack.c.bf16 %v5532_v19, %v5425_v37  ;;  %v5639_v29 = vld [vmem:[#allocation5 + $0x3d] sm:$0xff] }
 0x629   : > { %v5646_v27 = vpack.c.bf16 %v5639_v29, %v5638_v41  ;;  %v5319_v17 = vld [vmem:[#allocation5 + $0x3b] sm:$0xff] }
 0x62a   : > { %v4884_v54 = vmul.f32 %v4874_v16, %v14351_v3 }
 0x62b   : > { %v4938_v40 = vld [vmem:[#allocation5 + $0x49] sm:$0x3f]  ;;  %5810 = vmatpush.bf16.msrb.mxu1 %v12830_v5 }
 0x62c   : > { %v4914_v8 = vld [vmem:[#allocation5 + $0x48] sm:$0x3f]  ;;  %4894 = vst.msk [vmem:[#allocation5 + $0x53] sm:$0x3f] %vm2897_vm2, %v4884_v54  ;;  %v4943_v13 = vpack.c.bf16 %v4938_v40, %v4937_v45 }
 0x62d   : > { %v5108_v38 = vld [vmem:[#allocation5 + $0x4a] sm:$0x3f]  ;;  %v4919_v22 = vpack.c.bf16 %v4914_v8, %v4913_v62 }
 0x62e   : > { %v5113_v39 = vpack.c.bf16 %v5108_v38, %v5213_v4  ;;  %10802 = vmatmul.msk.bf16.gmra.mxu1 %vm520_vm0, %v4943_v13  ;;  %v5214_v12 = vld [vmem:[#allocation5 + $0x4a] sm:$0xff] }
 0x62f   : > { %10823 = vmatmul.msk.bf16.gmra.mxu2 %vm520_vm0, %v4919_v22  ;;  %5811 = vmatpush.bf16.msrb.mxu1 %v12829_v50  ;;  %v5320_v4 = vld [vmem:[#allocation5 + $0x43] sm:$0xff] }
 0x630   : > { %10852 = vmatmul.msk.bf16.gmra.mxu3 %vm520_vm0, %v5113_v39  ;;  %v5427_v36 = vld [vmem:[#allocation5 + $0x44] sm:$0xff]  ;;  %v5326_v16 = vpack.c.bf16 %v5320_v4, %v5319_v17 }
 0x631   : > { %v5433_v54 = vpack.c.bf16 %v5427_v36, %v5532_v19  ;;  %v5640_v39 = vld [vmem:[#allocation5 + $0x45] sm:$0xff] }
 0x633   : > { %v5215_v34 = vld [vmem:[#allocation5 + $0x52] sm:$0x3f] }
 0x634   : > { %v5220_v18 = vpack.c.bf16 %v5215_v34, %v5214_v12  ;;  %v5534_v25 = vld [vmem:[#allocation5 + $0x4c] sm:$0xff]  ;;  %v5429_v52 = vld [vmem:[#allocation5 + $0x54] sm:$0x3f] }
 0x635   : > { %v5540_v45 = vpack.c.bf16 %v5534_v25, %v5427_v36  ;;  %v5641_v40 = vld [vmem:[#allocation5 + $0x4d] sm:$0xff]  ;;  %v5434_v11 = vpack.c.bf16 %v5429_v52, %v5534_v25  ;;  %v5642_v35 = vld [vmem:[#allocation5 + $0x55] sm:$0xff]  ;;  %v5746_v52 = vld [vmem:[#allocation5 + $0x3e] sm:$0xff] }
 0x636   : > { %10881 = vmatmul.msk.bf16.gmra.mxu0 %vm520_vm0, %v5220_v18  ;;  %v5647_v12 = vpack.c.bf16 %v5641_v40, %v5640_v39  ;;  %v5322_v10 = vld [vmem:[#allocation5 + $0x53] sm:$0x3f]  ;;  %v5648_v32 = vpack.c.bf16 %v5643_v48, %v5642_v35 }
 0x637   : > { %v5535_v20 = vld [vmem:[#allocation5 + $0x54] sm:$0xff] }
 0x63e   : > { %10906 = vmatmul.msk.bf16.vlgmr.msra.gmra.mxu1 %vm520_vm0, %v5323_v55 }
 0x63f   : > { %10935 = vmatmul.msk.bf16.vlgmr.msra.gmra.mxu2 %vm520_vm0, %v5430_v1 }
 0x640   : > { %10964 = vmatmul.msk.bf16.vlgmr.msra.gmra.mxu3 %vm520_vm0, %v5537_v42  ;;  %v5321_v42 = vld [vmem:[#allocation5 + $0x4b] sm:$0xff] }
 0x641   : > { %v5327_v31 = vpack.c.bf16 %v5322_v10, %v5321_v42  ;;  %v5745_v42 = vld [vmem:[#allocation5 + $0x36] sm:$0xff] }
 0x646   : > { %10993 = vmatmul.msk.bf16.vlgmr.msrb.gmra.mxu0 %vm520_vm0, %v5644_v44  ;;  %v5541_v44 = vpack.c.bf16 %v5536_v26, %v5535_v20 }
 0x64e   : > { %10907 = vmatmul.msk.bf16.gmra.mxu1 %vm520_vm0, %v5324_v15 }
 0x64f   : > { %10936 = vmatmul.msk.bf16.gmra.mxu2 %vm520_vm0, %v5431_v61 }
 0x650   : > { %10965 = vmatmul.msk.bf16.gmra.mxu3 %vm520_vm0, %v5538_v30 }
 0x656   : > { %10994 = vmatmul.msk.bf16.gmra.mxu0 %vm520_vm0, %v5645_v6 }
 0x65e   : > { %10908 = vmatmul.msk.bf16.gmra.mxu1 %vm520_vm0, %v5325_v0  ;;  %v5741_v0 = vld [vmem:[#allocation5 + $0x16] sm:$0xff] }
 0x65f   : > { %10937 = vmatmul.msk.bf16.gmra.mxu2 %vm520_vm0, %v5432_v46  ;;  %v5751_v46 = vpack.c.bf16 %v5742_v21, %v5741_v0  ;;  %v5747_v21 = vld [vmem:[#allocation5 + $0x46] sm:$0xff] }
 0x660   : > { %10966 = vmatmul.msk.bf16.gmra.mxu3 %vm520_vm0, %v5539_v28 }
 0x666   : > { %10995 = vmatmul.msk.bf16.gmra.mxu0 %vm520_vm0, %v5646_v27 }
 0x66b   : > { %v5001_v7 = vpop.f32.mrf.mxu1 }
 0x66e   : > { %10909 = vmatmul.msk.bf16.gmra.mxu1 %vm520_vm0, %v5326_v16 }
 0x66f   : > { %10938 = vmatmul.msk.bf16.gmra.mxu2 %vm520_vm0, %v5433_v54 }
 0x670   : > { %10967 = vmatmul.msk.bf16.gmra.mxu3 %vm520_vm0, %v5540_v45  ;;  %v5743_v45 = vld [vmem:[#allocation5 + $0x26] sm:$0xff] }
 0x672   : > { %v5074_v62 = vpop.f32.mrf.mxu2 }
 0x673   : > { %v5075_v8 = vadd.f32 %v5074_v62, %v5001_v7  ;;  %v5171_v38 = vpop.f32.mrf.mxu3  ;;  %v14936_v13 = vpop.f32.mrf.mxu1  ;;  %v5744_v7 = vld [vmem:[#allocation5 + $0x2e] sm:$0xff] }
 0x674   : > { %v5278_v22 = vpop.f32.mrf.mxu0  ;;  %v5752_v62 = vpack.c.bf16 %v5744_v7, %v5743_v45 }
 0x675   : > { %v5196_v49 = vadd.f32 %v5171_v38, %v5075_v8 }
 0x676   : > { %10996 = vmatmul.msk.bf16.gmra.mxu0 %vm520_vm0, %v5647_v12 }
 0x677   : > { %v14938_v34 = vadd.f32 %v5278_v22, %v5196_v49 }
 0x67a   : > { %v14941_v18 = vpop.f32.mrf.mxu2 }
 0x67b   : > { %v14943_v63 = vpop.f32.mrf.mxu3  ;;  %v5006_v55 = vpop.f32.mrf.mxu1 }
 0x67c   : > { %v14945_v1 = vpop.f32.mrf.mxu0 }
 0x67e   : > { %10910 = vmatmul.msk.bf16.gmra.mxu1 %vm520_vm0, %v5327_v31  ;;  %v5753_v31 = vpack.c.bf16 %v5746_v52, %v5745_v42 }
 0x67f   : > { %10939 = vmatmul.msk.bf16.gmra.mxu2 %vm520_vm0, %v5434_v11  ;;  %v12840_v11 = vld [vmem:[%s16280_s5 + $0x38] sm:$0xff] }
 0x680   : > { %10968 = vmatmul.msk.bf16.gmra.mxu3 %vm520_vm0, %v5541_v44  ;;  %5993 = vmatpush.bf16.msrb.mxu2 %v12840_v11 }
 0x682   : > { %v5079_v5 = vpop.f32.mrf.mxu2 }
 0x683   : > { %v5080_v23 = vadd.f32 %v5079_v5, %v5006_v55  ;;  %v5176_v33 = vpop.f32.mrf.mxu3  ;;  %v14950_v15 = vpop.f32.mrf.mxu1 }
 0x684   : > { %v5283_v61 = vpop.f32.mrf.mxu0 }
 0x685   : > { %v5198_v30 = vadd.f32 %v5176_v33, %v5080_v23 }
 0x686   : > { %10997 = vmatmul.msk.bf16.gmra.mxu0 %vm520_vm0, %v5648_v32 }
 0x687   : > { %v5305_v57 = vadd.f32 %v5283_v61, %v5198_v30  ;;  %v5748_v30 = vld [vmem:[#allocation5 + $0x4e] sm:$0xff] }
 0x688   : > { %v5754_v0 = vpack.c.bf16 %v5748_v30, %v5747_v21  ;;  %v12842_v21 = vld [vmem:[%s16280_s5 + $0x48] sm:$0xff] }
 0x68a   : > { %v14953_v6 = vpop.f32.mrf.mxu2 }
 0x68b   : > { %v14955_v37 = vpop.f32.mrf.mxu3  ;;  %v5011_v19 = vpop.f32.mrf.mxu1 }
 0x68c   : > { %v14957_v2 = vpop.f32.mrf.mxu0 }
 0x68e   : > { %11022 = vmatmul.msk.bf16.vlgmr.msrb.gmra.mxu1 %vm520_vm0, %v5751_v46 }
 0x692   : > { %v5084_v50 = vpop.f32.mrf.mxu2 }
 0x693   : > { %v5085_v28 = vadd.f32 %v5084_v50, %v5011_v19  ;;  %v5181_v29 = vpop.f32.mrf.mxu3  ;;  %v14960_v41 = vpop.f32.mrf.mxu1  ;;  %v12839_v50 = vld [vmem:[%s16280_s5 + $0x30] sm:$0xff] }
 0x694   : > { %v5288_v27 = vpop.f32.mrf.mxu0  ;;  %5994 = vmatpush.bf16.msrb.mxu2 %v12839_v50  ;;  %v5077_v50 = vadd.f32 %v14941_v18, %v14936_v13 }
 0x695   : > { %v5200_v4 = vadd.f32 %v5181_v29, %v5085_v28  ;;  %v5749_v28 = vld [vmem:[#allocation5 + $0x56] sm:$0xff]  ;;  %v5750_v29 = vld [vmem:[#allocation5 + $0x5e] sm:$0x3f] }
 0x696   : > { %v5755_v7 = vpack.c.bf16 %v5750_v29, %v5749_v28  ;;  %v12833_v29 = vld [vmem:[%s16280_s5] sm:$0xff] }
 0x697   : > { %v5307_v36 = vadd.f32 %v5288_v27, %v5200_v4 }
 0x69a   : > { %v14962_v25 = vpop.f32.mrf.mxu2 }
 0x69b   : > { %v14964_v17 = vpop.f32.mrf.mxu3  ;;  %v5016_v16 = vpop.f32.mrf.mxu1 }
 0x69c   : > { %v14966_v54 = vpop.f32.mrf.mxu0 }
 0x69e   : > { %11023 = vmatmul.msk.bf16.gmra.mxu1 %vm520_vm0, %v5752_v62 }
 0x6a2   : > { %v5089_v40 = vpop.f32.mrf.mxu2 }
 0x6a3   : > { %v5090_v8 = vadd.f32 %v5089_v40, %v5016_v16  ;;  %v5186_v38 = vpop.f32.mrf.mxu3  ;;  %v14969_v22 = vpop.f32.mrf.mxu1 }
 0x6a4   : > { %v5293_v39 = vpop.f32.mrf.mxu0 }
 0x6a5   : > { %v5202_v49 = vadd.f32 %v5186_v38, %v5090_v8 }
 0x6a7   : > { %v5309_v12 = vadd.f32 %v5293_v39, %v5202_v49 }
 0x6aa   : > { %v14971_v10 = vpop.f32.mrf.mxu2 }
 0x6ab   : > { %v14973_v20 = vpop.f32.mrf.mxu3  ;;  %v5021_v26 = vpop.f32.mrf.mxu1 }
 0x6ac   : > { %v14975_v55 = vpop.f32.mrf.mxu0 }
 0x6ae   : > { %11024 = vmatmul.msk.bf16.gmra.mxu1 %vm520_vm0, %v5753_v31  ;;  %v12844_v31 = vld [vmem:[%s16280_s5 + $0x58] sm:$0xff] }
 0x6af   : > { %6163 = vmatpush.bf16.msra.mxu0 %v12844_v31 }
 0x6b2   : > { %v5094_v44 = vpop.f32.mrf.mxu2 }
 0x6b3   : > { %v5095_v5 = vadd.f32 %v5094_v44, %v5021_v26  ;;  %v5191_v35 = vpop.f32.mrf.mxu3  ;;  %v14981_v48 = vpop.f32.mrf.mxu1  ;;  %v12837_v44 = vld [vmem:[%s16280_s5 + $0x20] sm:$0xff] }
 0x6b4   : > { %v5298_v33 = vpop.f32.mrf.mxu0 }
 0x6b5   : > { %v5204_v23 = vadd.f32 %v5191_v35, %v5095_v5  ;;  %v12835_v5 = vld [vmem:[%s16280_s5 + $0x10] sm:$0xff] }
 0x6b6   : > { %v12843_v35 = vld [vmem:[%s16280_s5 + $0x50] sm:$0xff] }
 0x6b7   : > { %v5311_v61 = vadd.f32 %v5298_v33, %v5204_v23  ;;  %6164 = vmatpush.bf16.msra.mxu0 %v12843_v35 }
 0x6ba   : > { %v14998_v40 = vpop.f32.mrf.mxu2 }
 0x6bb   : > { %v5385_v32 = vpop.f32.mrf.mxu1  ;;  %v15002_v38 = vpop.f32.mrf.mxu3  ;;  %6165 = vmatpush.bf16.msra.mxu0 %v12842_v21 }
 0x6bc   : > { %v5410_v19 = vadd.f32 %v5385_v32, %v14938_v34  ;;  %v12838_v34 = vld [vmem:[%s16280_s5 + $0x28] sm:$0xff]  ;;  %v15006_v52 = vpop.f32.mrf.mxu0 }
 0x6bd   : > { %5995 = vmatpush.bf16.msrb.mxu2 %v12838_v34  ;;  %v12834_v32 = vld [vmem:[%s16280_s5 + $0x8] sm:$0xff]  ;;  %v5197_v34 = vadd.f32 %v14943_v63, %v5077_v50  ;;  %v12845_v63 = vld [vmem:[%s16280_s5 + $0x60] sm:$0xff] }
 0x6be   : > { %11025 = vmatmul.msk.bf16.gmra.mxu1 %vm520_vm0, %v5754_v0  ;;  %v12848_v0 = vld [vmem:[%s16280_s5 + $0x78] sm:$0xff] }
 0x6bf   : > { %6270 = vmatpush.bf16.msra.mxu1 %v12848_v0  ;;  %v4895_v50 = vld [vmem:[#allocation4 + $0xb] sm:$0xff] }
 0x6c1   : > { %5996 = vmatpush.bf16.msrb.mxu2 %v12837_v44  ;;  %v12852_v44 = vld [vmem:[%s16280_s5 + $0x98] sm:$0xff] }
 0x6c2   : > { %v5492_v39 = vpop.f32.mrf.mxu2 }
 0x6c3   : > { %v5387_v46 = vpop.f32.mrf.mxu1  ;;  %v5599_v26 = vpop.f32.mrf.mxu3  ;;  %v5517_v13 = vadd.f32 %v5492_v39, %v5410_v19 }
 0x6c5   : > { %6377 = vmatpush.bf16.msra.mxu2 %v12852_v44 }
 0x6ca   : > { %v5494_v11 = vpop.f32.mrf.mxu2 }
 0x6cb   : > { %v5390_v27 = vpop.f32.mrf.mxu1  ;;  %v5601_v33 = vpop.f32.mrf.mxu3 }
 0x6cc   : > { %v14988_v4 = vadd.f32 %v5390_v27, %v5305_v57  ;;  %v12841_v27 = vld [vmem:[%s16280_s5 + $0x40] sm:$0xff] }
 0x6cd   : > { %6166 = vmatpush.bf16.msra.mxu0 %v12841_v27 }
 0x6ce   : > { %11026 = vmatmul.msk.bf16.gmra.mxu1 %vm520_vm0, %v5755_v7  ;;  %v12847_v7 = vld [vmem:[%s16280_s5 + $0x70] sm:$0xff] }
 0x6cf   : > { %6271 = vmatpush.bf16.msra.mxu1 %v12847_v7 }
 0x6d2   : > { %v5497_v28 = vpop.f32.mrf.mxu2 }
 0x6d3   : > { %v14991_v16 = vpop.f32.mrf.mxu1  ;;  %v5604_v31 = vpop.f32.mrf.mxu3  ;;  %v5519_v7 = vadd.f32 %v5497_v28, %v14988_v4 }
 0x6da   : > { %v5499_v35 = vpop.f32.mrf.mxu2 }
 0x6db   : > { %v5395_v45 = vpop.f32.mrf.mxu1 }
 0x6dc   : > { %v14996_v62 = vadd.f32 %v5395_v45, %v5307_v36  ;;  %v12836_v36 = vld [vmem:[%s16280_s5 + $0x18] sm:$0xff]  ;;  %v12846_v45 = vld [vmem:[%s16280_s5 + $0x68] sm:$0xff] }
 0x6dd   : > { %6066 = vmatpush.bf16.msrb.mxu3 %v12836_v36  ;;  %v5624_v36 = vadd.f32 %v5599_v26, %v5517_v13  ;;  %6272 = vmatpush.bf16.msra.mxu1 %v12846_v45 }
 0x6e1   : > { %6067 = vmatpush.bf16.msrb.mxu3 %v12835_v5  ;;  %6273 = vmatpush.bf16.msra.mxu1 %v12845_v63 }
 0x6e2   : > { %v5502_v45 = vpop.f32.mrf.mxu2 }
 0x6e3   : > { %v15000_v8 = vpop.f32.mrf.mxu1 }
 0x6e5   : > { %6068 = vmatpush.bf16.msrb.mxu3 %v12834_v32 }
 0x6e9   : > { %6069 = vmatpush.bf16.msrb.mxu3 %v12833_v29  ;;  %v5606_v29 = vpop.f32.mrf.mxu3 }
 0x6eb   : > { %v5400_v57 = vpop.f32.mrf.mxu1 }
 0x6ec   : > { %v15004_v49 = vadd.f32 %v5400_v57, %v5309_v12  ;;  %v5706_v12 = vpop.f32.mrf.mxu0  ;;  %v5304_v57 = vadd.f32 %v14945_v1, %v5197_v34  ;;  %v15063_v1 = vld [vmem:[%s16279_s4 + $0x3] ss:$0 sm:$0xff] }
 0x6ed   : > { %v5731_v19 = vadd.f32 %v5706_v12, %v5624_v36 }
 0x6ee   : > { %v5411_v5 = vadd.f32 %v5387_v46, %v5304_v57  ;;  %v5082_v46 = vadd.f32 %v14953_v6, %v14950_v15  ;;  %v5626_v6 = vadd.f32 %v5604_v31, %v5519_v7  ;;  %v5087_v31 = vadd.f32 %v14962_v25, %v14960_v41 }
 0x6f0   : > { %v5518_v39 = vadd.f32 %v5494_v11, %v5411_v5  ;;  %v5199_v11 = vadd.f32 %v14955_v37, %v5082_v46  ;;  %v4896_v37 = vld [vmem:[#allocation4 + $0x13] sm:$0xff]  ;;  %v5201_v41 = vadd.f32 %v14964_v17, %v5087_v31 }
 0x6f1   : > { %v5609_v28 = vpop.f32.mrf.mxu3 }
 0x6f2   : > { %v5625_v21 = vadd.f32 %v5601_v33, %v5518_v39  ;;  %v5306_v44 = vadd.f32 %v14957_v2, %v5199_v11 }
 0x6f3   : > { %v15008_v42 = vpop.f32.mrf.mxu1 }
 0x6f4   : > { %v5413_v5 = vadd.f32 %v14991_v16, %v5306_v44 }
 0x6f6   : > { %v5520_v63 = vadd.f32 %v5499_v35, %v5413_v5  ;;  %v5308_v5 = vadd.f32 %v14966_v54, %v5201_v41 }
 0x6f9   : > { %v5611_v44 = vpop.f32.mrf.mxu3 }
 0x6fb   : > { %v5405_v23 = vpop.f32.mrf.mxu1 }
 0x6fc   : > { %v15025_v30 = vadd.f32 %v5405_v23, %v5311_v61  ;;  %v5708_v61 = vpop.f32.mrf.mxu0 }
 0x6fd   : > { %v5732_v27 = vadd.f32 %v5708_v61, %v5625_v21  ;;  %v5627_v21 = vadd.f32 %v5606_v29, %v5520_v63  ;;  %v5521_v29 = vadd.f32 %v5502_v45, %v14996_v62 }
 0x703   : > { %v15048_v18 = vpop.f32.mrf.mxu1 }
 0x704   : > { %v5711_v26 = vpop.f32.mrf.mxu0 }
 0x705   : > { %v5733_v4 = vadd.f32 %v5711_v26, %v5626_v6 }
 0x70b   : > { %v5813_v23 = vpop.f32.mrf.mxu1 }
 0x70c   : > { %v5838_v32 = vadd.f32 %v5813_v23, %v5731_v19  ;;  %v5713_v15 = vpop.f32.mrf.mxu0  ;;  %v5926_v23 = vld [vmem:[#allocation4 + $0x1] sm:$0xff] }
 0x70d   : > { %v5734_v25 = vadd.f32 %v5713_v15, %v5627_v21  ;;  %v4898_v15 = vld [vmem:[#allocation4 + $0x23] sm:$0xff] }
 0x70e   : > { %v5853_v0 = vadd.f32 %v15063_v1, %v5838_v32  ;;  %v6096_v32 = vld [vmem:[#allocation4 + $0x2] sm:$0xff] }
 0x710   : > { %v5863_v12 = vadd.f32 %v5853_v0, %v4895_v50 }
 0x712   : > { %v5873_v34 = vmax.f32 %v5863_v12, 0.0  ;;  %v5504_v12 = vpop.f32.mrf.mxu2 }
 0x713   : > { %v5815_v13 = vpop.f32.mrf.mxu1 }
 0x714   : > { %v5883_v57 = vmul.f32 %v5873_v34, %v14233_v53  ;;  %v5839_v36 = vadd.f32 %v5815_v13, %v5732_v27  ;;  %v5903_v53 = vld [vmem:[#allocation4] sm:$0xff]  ;;  %v5716_v7 = vpop.f32.mrf.mxu0 }
 0x715   : > { %v4897_v34 = vld [vmem:[#allocation4 + $0x1b] sm:$0xff] }
 0x716   : > { %5893 = vst.msk [vmem:[#allocation4 + $0xb] sm:$0xff] %vm520_vm0, %v5883_v57  ;;  %v5854_v33 = vadd.f32 %v15063_v1, %v5839_v36 }
 0x718   : > { %v5864_v61 = vadd.f32 %v5854_v33, %v4896_v37 }
 0x71a   : > { %v5874_v19 = vmax.f32 %v5864_v61, 0.0  ;;  %v5628_v61 = vadd.f32 %v5609_v28, %v5521_v29 }
 0x71b   : > { %v5818_v39 = vpop.f32.mrf.mxu1 }
 0x71c   : > { %v5884_v2 = vmul.f32 %v5874_v19, %v13887_v43  ;;  %v5840_v46 = vadd.f32 %v5818_v39, %v5733_v4  ;;  %v12851_v43 = vld [vmem:[%s16280_s5 + $0x90] sm:$0xff]  ;;  %v5415_v4 = vadd.f32 %v15000_v8, %v5308_v5  ;;  %v5507_v19 = vpop.f32.mrf.mxu2  ;;  %v5718_v39 = vpop.f32.mrf.mxu0  ;;  %v4900_v5 = vld [vmem:[#allocation4 + $0x33] sm:$0xff] }
 0x71d   : > { %v5927_v0 = vld [vmem:[#allocation4 + $0x9] sm:$0xff]  ;;  %6378 = vmatpush.bf16.msra.mxu2 %v12851_v43  ;;  %v5523_v43 = vadd.f32 %v5507_v19, %v15004_v49 }
 0x71e   : > { %v5904_v50 = vld [vmem:[#allocation4 + $0x8] sm:$0xff]  ;;  %5894 = vst.msk [vmem:[#allocation4 + $0x13] sm:$0xff] %vm520_vm0, %v5884_v2  ;;  %v5855_v35 = vadd.f32 %v15063_v1, %v5840_v46  ;;  %v5936_v26 = vpack.c.bf16 %v5927_v0, %v5926_v23  ;;  %v5522_v45 = vadd.f32 %v5504_v12, %v5415_v4  ;;  %v5092_v46 = vadd.f32 %v14971_v10, %v14969_v22 }
 0x71f   : > { %v6097_v16 = vld [vmem:[#allocation4 + $0xa] sm:$0xff]  ;;  %v5913_v11 = vpack.c.bf16 %v5904_v50, %v5903_v53  ;;  %v5614_v50 = vpop.f32.mrf.mxu3 }
 0x720   : > { %v6106_v27 = vpack.c.bf16 %v6097_v16, %v6096_v32  ;;  %v5865_v13 = vadd.f32 %v5855_v35, %v4897_v34  ;;  %11052 = vmatmul.msk.bf16.vlgmr.msrb.gmra.mxu2 %vm520_vm0, %v5936_v26  ;;  %v5629_v31 = vadd.f32 %v5611_v44, %v5522_v45  ;;  %v5203_v22 = vadd.f32 %v14973_v20, %v5092_v46  ;;  %v4901_v46 = vld [vmem:[#allocation4 + $0x3b] sm:$0xff] }
 0x721   : > { %11073 = vmatmul.msk.bf16.vlgmr.msrb.gmra.mxu3 %vm520_vm0, %v5913_v11  ;;  %v4899_v11 = vld [vmem:[#allocation4 + $0x2b] sm:$0xff]  ;;  %v5630_v44 = vadd.f32 %v5614_v50, %v5523_v43  ;;  %v5097_v45 = vadd.f32 %v14998_v40, %v14981_v48 }
 0x722   : > { %11102 = vmatmul.msk.bf16.vlgmr.msra.gmra.mxu0 %vm520_vm0, %v6106_v27  ;;  %v5875_v57 = vmax.f32 %v5865_v13, 0.0  ;;  %v5736_v10 = vadd.f32 %v5718_v39, %v5629_v31  ;;  %v12856_v40 = vld [vmem:[%s16280_s5 + $0xb8] sm:$0xff] }
 0x723   : > { %v5820_v36 = vpop.f32.mrf.mxu1  ;;  %v5205_v48 = vadd.f32 %v15002_v38, %v5097_v45  ;;  %6484 = vmatpush.bf16.msra.mxu3 %v12856_v40  ;;  %v12855_v38 = vld [vmem:[%s16280_s5 + $0xb0] sm:$0xff]  ;;  %v4903_v45 = vld [vmem:[#allocation4 + $0x4b] sm:$0xff] }
 0x724   : > { %v5885_v6 = vmul.f32 %v5875_v57, %v13895_v56  ;;  %v5841_v33 = vadd.f32 %v5820_v36, %v5734_v25  ;;  %v5735_v56 = vadd.f32 %v5716_v7, %v5628_v61  ;;  %v5509_v7 = vpop.f32.mrf.mxu2  ;;  %v5721_v13 = vpop.f32.mrf.mxu0  ;;  %v5310_v57 = vadd.f32 %v14975_v55, %v5203_v22 }
 0x725   : > { %v6204_v37 = vld [vmem:[#allocation4 + $0x12] sm:$0xff] }
 0x726   : > { %5895 = vst.msk [vmem:[#allocation4 + $0x1b] sm:$0xff] %vm520_vm0, %v5885_v6  ;;  %v5856_v17 = vadd.f32 %v15063_v1, %v5841_v33  ;;  %v6213_v63 = vpack.c.bf16 %v6204_v37, %v6097_v16  ;;  %v5928_v32 = vld [vmem:[#allocation4 + $0x11] sm:$0xff]  ;;  %v5417_v33 = vadd.f32 %v15008_v42, %v5310_v57 }
 0x727   : > { %v5905_v2 = vld [vmem:[#allocation4 + $0x10] sm:$0xff]  ;;  %v5616_v49 = vpop.f32.mrf.mxu3  ;;  %6485 = vmatpush.bf16.msra.mxu3 %v12855_v38 }
 0x728   : > { %v5866_v62 = vadd.f32 %v5856_v17, %v4898_v15  ;;  %11131 = vmatmul.msk.bf16.vlgmr.msra.gmra.mxu1 %vm520_vm0, %v6213_v63  ;;  %v5524_v61 = vadd.f32 %v5509_v7, %v5417_v33  ;;  %v5737_v17 = vadd.f32 %v5721_v13, %v5630_v44  ;;  %v4902_v13 = vld [vmem:[#allocation4 + $0x43] sm:$0xff]  ;;  %v12853_v44 = vld [vmem:[%s16280_s5 + $0xa0] sm:$0xff] }
 0x72a   : > { %v5876_v23 = vmax.f32 %v5866_v62, 0.0  ;;  %v5631_v39 = vadd.f32 %v5616_v49, %v5524_v61  ;;  %v12863_v61 = vld [vmem:[%s16280_s5 + $0xf0] sm:$0xff] }
 0x72b   : > { %v5823_v53 = vpop.f32.mrf.mxu1 }
 0x72c   : > { %v5886_v54 = vmul.f32 %v5876_v23, %v14254_v60  ;;  %v5842_v28 = vadd.f32 %v5823_v53, %v5735_v56  ;;  %v12850_v60 = vld [vmem:[%s16280_s5 + $0x88] sm:$0xff]  ;;  %v5512_v4 = vpop.f32.mrf.mxu2  ;;  %v5723_v42 = vpop.f32.mrf.mxu0 }
 0x72d   : > { %v5929_v8 = vld [vmem:[#allocation4 + $0x19] sm:$0xff]  ;;  %6379 = vmatpush.bf16.msra.mxu2 %v12850_v60 }
 0x72e   : > { %v5906_v21 = vld [vmem:[#allocation4 + $0x18] sm:$0xff]  ;;  %5896 = vst.msk [vmem:[#allocation4 + $0x23] sm:$0xff] %vm520_vm0, %v5886_v54  ;;  %v5857_v16 = vadd.f32 %v15063_v1, %v5842_v28  ;;  %v5937_v12 = vpack.c.bf16 %v5929_v8, %v5928_v32  ;;  %v12860_v8 = vld [vmem:[%s16280_s5 + $0xd8] sm:$0xff] }
 0x72f   : > { %v6099_v0 = vld [vmem:[#allocation4 + $0x1a] sm:$0xff]  ;;  %v5914_v35 = vpack.c.bf16 %v5906_v21, %v5905_v2  ;;  %v5738_v21 = vadd.f32 %v5723_v42, %v5631_v39  ;;  %v5619_v50 = vpop.f32.mrf.mxu3  ;;  %6591 = vmatpush.bf16.msrb.mxu0 %v12860_v8  ;;  %v12868_v42 = vld [vmem:[%s16280_s5 + $0x118] sm:$0xff] }
 0x730   : > { %v6107_v26 = vpack.c.bf16 %v6099_v0, %v6204_v37  ;;  %v5867_v27 = vadd.f32 %v5857_v16, %v4899_v11  ;;  %11053 = vmatmul.msk.bf16.gmra.mxu2 %vm520_vm0, %v5937_v12  ;;  %v5312_v11 = vadd.f32 %v15006_v52, %v5205_v48  ;;  %v12858_v52 = vld [vmem:[%s16280_s5 + $0xc8] sm:$0xff] }
 0x731   : > { %11074 = vmatmul.msk.bf16.gmra.mxu3 %vm520_vm0, %v5914_v35  ;;  %v12859_v35 = vld [vmem:[%s16280_s5 + $0xd0] sm:$0xff]  ;;  %v4904_v48 = vld [vmem:[#allocation4 + $0x53] sm:$0x3f] }
 0x732   : > { %11103 = vmatmul.msk.bf16.gmra.mxu0 %vm520_vm0, %v6107_v26  ;;  %v5877_v34 = vmax.f32 %v5867_v27, 0.0  ;;  %v5419_v7 = vadd.f32 %v15048_v18, %v5312_v11 }
 0x733   : > { %v5825_v41 = vpop.f32.mrf.mxu1  ;;  %6592 = vmatpush.bf16.msrb.mxu0 %v12859_v35 }
 0x734   : > { %v5887_v25 = vmul.f32 %v5877_v34, %v13901_v59  ;;  %v5843_v29 = vadd.f32 %v5825_v41, %v5736_v10  ;;  %v5514_v22 = vpop.f32.mrf.mxu2  ;;  %v5726_v34 = vpop.f32.mrf.mxu0 }
 0x735   : > { %v6206_v36 = vld [vmem:[#allocation4 + $0x22] sm:$0xff]  ;;  %v5526_v18 = vadd.f32 %v5514_v22, %v5419_v7 }
 0x736   : > { %5897 = vst.msk [vmem:[#allocation4 + $0x2b] sm:$0xff] %vm520_vm0, %v5887_v25  ;;  %v5858_v20 = vadd.f32 %v15063_v1, %v5843_v29  ;;  %v6214_v6 = vpack.c.bf16 %v6206_v36, %v6099_v0  ;;  %v5930_v19 = vld [vmem:[#allocation4 + $0x21] sm:$0xff]  ;;  %v5525_v0 = vadd.f32 %v5512_v4, %v15025_v30 }
 0x737   : > { %v5907_v62 = vld [vmem:[#allocation4 + $0x20] sm:$0xff]  ;;  %v12864_v25 = vld [vmem:[%s16280_s5 + $0xf8] sm:$0xff]  ;;  %6593 = vmatpush.bf16.msrb.mxu0 %v12858_v52 }
 0x738   : > { %v5868_v37 = vadd.f32 %v5858_v20, %v4900_v5  ;;  %11132 = vmatmul.msk.bf16.gmra.mxu1 %vm520_vm0, %v6214_v6  ;;  %v5632_v30 = vadd.f32 %v5619_v50, %v5525_v0  ;;  %v12857_v20 = vld [vmem:[%s16280_s5 + $0xc0] sm:$0xff]  ;;  %v5621_v6 = vpop.f32.mrf.mxu3  ;;  %v6525_v22 = vld [vmem:[#allocation4 + $0x1c] sm:$0xff] }
 0x739   : > { %6698 = vmatpush.bf16.msrb.mxu1 %v12864_v25  ;;  %v12866_v25 = vld [vmem:[%s16280_s5 + $0x108] sm:$0xff] }
 0x73a   : > { %v5878_v59 = vmax.f32 %v5868_v37, 0.0  ;;  %v5739_v29 = vadd.f32 %v5726_v34, %v5632_v30  ;;  %v6418_v30 = vld [vmem:[#allocation4 + $0x14] sm:$0xff] }
 0x73b   : > { %v5828_v63 = vpop.f32.mrf.mxu1  ;;  %6594 = vmatpush.bf16.msrb.mxu0 %v12857_v20 }
 0x73c   : > { %v5888_v55 = vmul.f32 %v5878_v59, %v13919_v14  ;;  %v5844_v15 = vadd.f32 %v5828_v63, %v5737_v17  ;;  %v12849_v14 = vld [vmem:[%s16280_s5 + $0x80] sm:$0xff]  ;;  %v5633_v17 = vadd.f32 %v5621_v6, %v5526_v18  ;;  %v5728_v39 = vpop.f32.mrf.mxu0  ;;  %v6313_v18 = vld [vmem:[#allocation4 + $0x23] sm:$0xff] }
 0x73d   : > { %v5931_v56 = vld [vmem:[#allocation4 + $0x29] sm:$0xff]  ;;  %6380 = vmatpush.bf16.msra.mxu2 %v12849_v14  ;;  %6699 = vmatpush.bf16.msrb.mxu1 %v12863_v61 }
 0x73e   : > { %v5908_v23 = vld [vmem:[#allocation4 + $0x28] sm:$0xff]  ;;  %5898 = vst.msk [vmem:[#allocation4 + $0x33] sm:$0xff] %vm520_vm0, %v5888_v55  ;;  %v5859_v54 = vadd.f32 %v15063_v1, %v5844_v15  ;;  %v5938_v28 = vpack.c.bf16 %v5931_v56, %v5930_v19  ;;  %v12862_v56 = vld [vmem:[%s16280_s5 + $0xe8] sm:$0xff]  ;;  %v12861_v14 = vld [vmem:[%s16280_s5 + $0xe0] sm:$0xff] }
 0x73f   : > { %v6101_v53 = vld [vmem:[#allocation4 + $0x2a] sm:$0xff]  ;;  %v5915_v32 = vpack.c.bf16 %v5908_v23, %v5907_v62  ;;  %v5740_v23 = vadd.f32 %v5728_v39, %v5633_v17 }
 0x740   : > { %v6108_v2 = vpack.c.bf16 %v6101_v53, %v6206_v36  ;;  %v5869_v31 = vadd.f32 %v5859_v54, %v4901_v46  ;;  %11054 = vmatmul.msk.bf16.gmra.mxu2 %vm520_vm0, %v5938_v28 }
 0x741   : > { %11075 = vmatmul.msk.bf16.gmra.mxu3 %vm520_vm0, %v5915_v32  ;;  %6805 = vmatpush.bf16.msrb.mxu2 %v12868_v42  ;;  %v12871_v42 = vld [vmem:[%s16282_s7 + $0x10] sm:$0xff] }
 0x742   : > { %11104 = vmatmul.msk.bf16.gmra.mxu0 %vm520_vm0, %v6108_v2  ;;  %v5879_v16 = vmax.f32 %v5869_v31, 0.0  ;;  %6700 = vmatpush.bf16.msrb.mxu1 %v12862_v56  ;;  %v12879_v56 = vld [vmem:[%s16282_s7 + $0x10] sm:$0xff] }
 0x743   : > { %v5830_v12 = vpop.f32.mrf.mxu1 }
 0x744   : > { %v5889_v26 = vmul.f32 %v5879_v16, %v14296_v58  ;;  %v5845_v60 = vadd.f32 %v5830_v12, %v5738_v21  ;;  %v12854_v58 = vld [vmem:[%s16280_s5 + $0xa8] sm:$0xff] }
 0x745   : > { %v6208_v27 = vld [vmem:[#allocation4 + $0x32] sm:$0xff]  ;;  %6486 = vmatpush.bf16.msra.mxu3 %v12854_v58 }
 0x746   : > { %5899 = vst.msk [vmem:[#allocation4 + $0x3b] sm:$0xff] %vm520_vm0, %v5889_v26  ;;  %v5860_v10 = vadd.f32 %v15063_v1, %v5845_v60  ;;  %v6215_v43 = vpack.c.bf16 %v6208_v27, %v6101_v53  ;;  %v5932_v49 = vld [vmem:[#allocation4 + $0x31] sm:$0xff]  ;;  %6701 = vmatpush.bf16.msrb.mxu1 %v12861_v14 }
 0x747   : > { %v5909_v37 = vld [vmem:[#allocation4 + $0x30] sm:$0xff] }
 0x748   : > { %v5870_v41 = vadd.f32 %v5860_v10, %v4902_v13  ;;  %11133 = vmatmul.msk.bf16.gmra.mxu1 %vm520_vm0, %v6215_v43  ;;  %v6310_v10 = vld [vmem:[#allocation4 + $0xb] sm:$0xff]  ;;  %v6534_v13 = vpack.c.bf16 %v6525_v22, %v6418_v30  ;;  %v6631_v58 = vld [vmem:[#allocation4 + $0x15] sm:$0xff] }
 0x749   : > { %6487 = vmatpush.bf16.msra.mxu3 %v12853_v44  ;;  %v6417_v43 = vld [vmem:[#allocation4 + $0xc] sm:$0xff] }
 0x74a   : > { %v5880_v57 = vmax.f32 %v5870_v41, 0.0  ;;  %v6427_v34 = vpack.c.bf16 %v6418_v30, %v6417_v43  ;;  %v6632_v41 = vld [vmem:[#allocation4 + $0x1d] sm:$0xff] }
 0x74b   : > { %v5833_v36 = vpop.f32.mrf.mxu1  ;;  %v6641_v52 = vpack.c.bf16 %v6632_v41, %v6631_v58  ;;  %v12875_v30 = vld [vmem:[%s16282_s7 + $0x10] sm:$0xff] }
 0x74c   : > { %v5890_v33 = vmul.f32 %v5880_v57, %v13923_v24  ;;  %v5846_v5 = vadd.f32 %v5833_v36, %v5739_v29  ;;  %v6420_v29 = vld [vmem:[#allocation4 + $0x24] sm:$0xff]  ;;  %v6527_v57 = vld [vmem:[#allocation4 + $0x2c] sm:$0xff]  ;;  %v6312_v36 = vld [vmem:[#allocation4 + $0x1b] sm:$0xff] }
 0x74d   : > { %v5933_v59 = vld [vmem:[#allocation4 + $0x39] sm:$0xff]  ;;  %v6321_v44 = vpack.c.bf16 %v6313_v18, %v6312_v36  ;;  %v6428_v20 = vpack.c.bf16 %v6420_v29, %v6525_v22  ;;  %v6535_v6 = vpack.c.bf16 %v6527_v57, %v6420_v29  ;;  %v12881_v22 = vld [vmem:[%s16282_s7] sm:$0xff] }
 0x74e   : > { %v5910_v63 = vld [vmem:[#allocation4 + $0x38] sm:$0xff]  ;;  %5900 = vst.msk [vmem:[#allocation4 + $0x43] sm:$0xff] %vm520_vm0, %v5890_v33  ;;  %v5861_v55 = vadd.f32 %v15063_v1, %v5846_v5  ;;  %v5939_v15 = vpack.c.bf16 %v5933_v59, %v5932_v49  ;;  %v6634_v33 = vld [vmem:[#allocation4 + $0x2d] sm:$0xff]  ;;  %v6633_v5 = vld [vmem:[#allocation4 + $0x25] sm:$0xff] }
 0x74f   : > { %v6103_v4 = vld [vmem:[#allocation4 + $0x3a] sm:$0xff]  ;;  %v5916_v19 = vpack.c.bf16 %v5910_v63, %v5909_v37  ;;  %v6642_v49 = vpack.c.bf16 %v6634_v33, %v6633_v5  ;;  %v12865_v59 = vld [vmem:[%s16280_s5 + $0x100] sm:$0xff] }
 0x750   : > { %v6109_v62 = vpack.c.bf16 %v6103_v4, %v6208_v27  ;;  %v5871_v24 = vadd.f32 %v5861_v55, %v4903_v45  ;;  %11055 = vmatmul.msk.bf16.gmra.mxu2 %vm520_vm0, %v5939_v15  ;;  %v6311_v27 = vld [vmem:[#allocation4 + $0x13] sm:$0xff]  ;;  %v6314_v63 = vld [vmem:[#allocation4 + $0x2b] sm:$0xff]  ;;  %v6316_v14 = vld [vmem:[#allocation4 + $0x3b] sm:$0xff] }
 0x751   : > { %11076 = vmatmul.msk.bf16.gmra.mxu3 %vm520_vm0, %v5916_v19  ;;  %v6320_v7 = vpack.c.bf16 %v6311_v27, %v6310_v10  ;;  %v6315_v37 = vld [vmem:[#allocation4 + $0x33] sm:$0xff]  ;;  %v12872_v19 = vld [vmem:[%s16282_s7 + $0x18] sm:$0xff]  ;;  %v6533_v58 = vld [vmem:[#allocation4 + $0x5c] sm:$0x3f] }
 0x752   : > { %11105 = vmatmul.msk.bf16.gmra.mxu0 %vm520_vm0, %v6109_v62  ;;  %v5881_v53 = vmax.f32 %v5871_v24, 0.0  ;;  %v6422_v61 = vld [vmem:[#allocation4 + $0x34] sm:$0xff]  ;;  %v12880_v62 = vld [vmem:[%s16282_s7 + $0x18] sm:$0xff]  ;;  %6927 = vmatpush.bf16.msrb.mxu3 %v12872_v19  ;;  %v6640_v5 = vld [vmem:[#allocation4 + $0x5d] sm:$0x3f] }
 0x753   : > { %v5835_v54 = vpop.f32.mrf.mxu1  ;;  %v6429_v55 = vpack.c.bf16 %v6422_v61, %v6527_v57  ;;  %7045 = vmatpush.bf16.msra.mxu0 %v12880_v62  ;;  %v6635_v24 = vld [vmem:[#allocation4 + $0x35] sm:$0xff]  ;;  %v6882_v19 = vld [vmem:[#allocation4 + $0xb] ss:$2 sm:$0xf] }
 0x754   : > { %v5891_v28 = vmul.f32 %v5881_v53, %v13934_v47  ;;  %v5847_v32 = vadd.f32 %v5835_v54, %v5740_v23  ;;  %v12884_v23 = vld [vmem:[%s16282_s7 + $0x18] sm:$0xff]  ;;  %v12870_v53 = vld [vmem:[%s16282_s7 + $0x8] sm:$0xff] }
 0x755   : > { %v6210_v2 = vld [vmem:[#allocation4 + $0x42] sm:$0xff]  ;;  %v12878_v54 = vld [vmem:[%s16282_s7 + $0x8] sm:$0xff]  ;;  %7104 = vmatpush.bf16.msra.mxu1 %v12884_v23 }
 0x756   : > { %5901 = vst.msk [vmem:[#allocation4 + $0x4b] sm:$0xff] %vm520_vm0, %v5891_v28  ;;  %v5862_v46 = vadd.f32 %v15063_v1, %v5847_v32  ;;  %v6216_v31 = vpack.c.bf16 %v6210_v2, %v6103_v4  ;;  %v5934_v21 = vld [vmem:[#allocation4 + $0x41] sm:$0xff]  ;;  %v6322_v4 = vpack.c.bf16 %v6315_v37, %v6314_v63  ;;  %6928 = vmatpush.bf16.msrb.mxu3 %v12871_v42  ;;  %v12874_v10 = vld [vmem:[%s16282_s7 + $0x8] sm:$0xff] }
 0x757   : > { %v5911_v0 = vld [vmem:[#allocation4 + $0x40] sm:$0xff]  ;;  %7046 = vmatpush.bf16.msra.mxu0 %v12879_v56  ;;  %v7000_v62 = vld [vmem:[#allocation4 + $0x33] ss:$2 sm:$0xf]  ;;  %v6883_v56 = vpack.c.bf16 %v6882_v19, %v6882_v19 }
 0x758   : > { %v5872_v40 = vadd.f32 %v5862_v46, %v4904_v48  ;;  %11134 = vmatmul.msk.bf16.gmra.mxu1 %vm520_vm0, %v6216_v31  ;;  %v6529_v17 = vld [vmem:[#allocation4 + $0x3c] sm:$0xff]  ;;  %v7001_v23 = vpack.c.bf16 %v7000_v62, %v7000_v62 }
 0x759   : > { %v6536_v15 = vpack.c.bf16 %v6529_v17, %v6422_v61  ;;  %v6636_v45 = vld [vmem:[#allocation4 + $0x3d] sm:$0xff] }
 0x75a   : > { %v5882_v8 = vmax.f32 %v5872_v40, 0.0  ;;  %v6643_v39 = vpack.c.bf16 %v6636_v45, %v6635_v24  ;;  %v6317_v28 = vld [vmem:[#allocation4 + $0x43] sm:$0xff]  ;;  %6929 = vmatpush.bf16.msrb.mxu3 %v12870_v53  ;;  %v6738_v24 = vld [vmem:[#allocation4 + $0x16] sm:$0xff] }
 0x75b   : > { %v6323_v31 = vpack.c.bf16 %v6317_v28, %v6316_v14  ;;  %7047 = vmatpush.bf16.msra.mxu0 %v12878_v54 }
 0x75c   : > { %v5892_v47 = vmul.f32 %v5882_v8, %v14351_v3  ;;  %v12867_v3 = vld [vmem:[%s16280_s5 + $0x110] sm:$0xff]  ;;  %v12869_v8 = vld [vmem:[%s16282_s7] sm:$0xff] }
 0x75d   : > { %v5935_v50 = vld [vmem:[#allocation4 + $0x49] sm:$0x3f]  ;;  %6806 = vmatpush.bf16.msrb.mxu2 %v12867_v3 }
 0x75e   : > { %v5912_v16 = vld [vmem:[#allocation4 + $0x48] sm:$0x3f]  ;;  %5902 = vst.msk [vmem:[#allocation4 + $0x53] sm:$0x3f] %vm2897_vm2, %v5892_v47  ;;  %v5940_v38 = vpack.c.bf16 %v5935_v50, %v5934_v21  ;;  %v12877_v47 = vld [vmem:[%s16282_s7] sm:$0xff]  ;;  %v12883_v21 = vld [vmem:[%s16282_s7 + $0x10] sm:$0xff]  ;;  %6930 = vmatpush.bf16.msrb.mxu3 %v12869_v8 }
 0x75f   : > { %v6105_v12 = vld [vmem:[#allocation4 + $0x4a] sm:$0x3f]  ;;  %v5917_v35 = vpack.c.bf16 %v5912_v16, %v5911_v0  ;;  %7048 = vmatpush.bf16.msra.mxu0 %v12877_v47  ;;  %7105 = vmatpush.bf16.msra.mxu1 %v12883_v21 }
 0x760   : > { %v6110_v26 = vpack.c.bf16 %v6105_v12, %v6210_v2  ;;  %11056 = vmatmul.msk.bf16.gmra.mxu2 %vm520_vm0, %v5940_v38  ;;  %v6211_v1 = vld [vmem:[#allocation4 + $0x4a] sm:$0xff]  ;;  %v12882_v38 = vld [vmem:[%s16282_s7 + $0x8] sm:$0xff] }
 0x761   : > { %11077 = vmatmul.msk.bf16.gmra.mxu3 %vm520_vm0, %v5917_v35  ;;  %6807 = vmatpush.bf16.msrb.mxu2 %v12866_v25  ;;  %v6424_v32 = vld [vmem:[#allocation4 + $0x44] sm:$0xff] }
 0x762   : > { %11106 = vmatmul.msk.bf16.gmra.mxu0 %vm520_vm0, %v6110_v26  ;;  %v6430_v48 = vpack.c.bf16 %v6424_v32, %v6529_v17  ;;  %v12876_v0 = vld [vmem:[%s16282_s7 + $0x18] sm:$0xff] }
 0x763   : > { %v6637_v3 = vld [vmem:[#allocation4 + $0x45] sm:$0xff]  ;;  %7106 = vmatpush.bf16.msra.mxu1 %v12882_v38 }
 0x764   : > { %v6318_v25 = vld [vmem:[#allocation4 + $0x4b] sm:$0xff] }
 0x765   : > { %v6212_v60 = vld [vmem:[#allocation4 + $0x52] sm:$0x3f]  ;;  %6808 = vmatpush.bf16.msrb.mxu2 %v12865_v59  ;;  %v7059_v28 = vld [vmem:[#allocation4 + $0x47] ss:$2 sm:$0xf] }
 0x766   : > { %v6217_v11 = vpack.c.bf16 %v6212_v60, %v6211_v1  ;;  %v6531_v2 = vld [vmem:[#allocation4 + $0x4c] sm:$0xff]  ;;  %v6532_v41 = vld [vmem:[#allocation4 + $0x54] sm:$0xff]  ;;  %v7060_v14 = vpack.c.bf16 %v7059_v28, %v7059_v28 }
 0x767   : > { %v6537_v40 = vpack.c.bf16 %v6531_v2, %v6424_v32  ;;  %v6638_v12 = vld [vmem:[#allocation4 + $0x4d] sm:$0xff]  ;;  %7107 = vmatpush.bf16.msra.mxu1 %v12881_v22  ;;  %v6538_v36 = vpack.c.bf16 %v6533_v58, %v6532_v41  ;;  %v6639_v33 = vld [vmem:[#allocation4 + $0x55] sm:$0xff] }
 0x768   : > { %11135 = vmatmul.msk.bf16.gmra.mxu1 %vm520_vm0, %v6217_v11  ;;  %v6644_v11 = vpack.c.bf16 %v6638_v12, %v6637_v3  ;;  %v6645_v59 = vpack.c.bf16 %v6640_v5, %v6639_v33  ;;  %v6740_v47 = vld [vmem:[#allocation4 + $0x26] sm:$0xff]  ;;  %v6746_v62 = vld [vmem:[#allocation4 + $0x56] sm:$0xff] }
 0x770   : > { %11160 = vmatmul.msk.bf16.vlgmr.msra.gmra.mxu2 %vm520_vm0, %v6320_v7 }
 0x771   : > { %11189 = vmatmul.msk.bf16.vlgmr.msra.gmra.mxu3 %vm520_vm0, %v6427_v34  ;;  %v6319_v34 = vld [vmem:[#allocation4 + $0x53] sm:$0x3f] }
 0x772   : > { %11218 = vmatmul.msk.bf16.vlgmr.msrb.gmra.mxu0 %vm520_vm0, %v6534_v13  ;;  %6986 = vmatpush.bf16.msra.mxu3 %v12876_v0  ;;  %v6426_v13 = vld [vmem:[#allocation4 + $0x54] sm:$0x3f]  ;;  %v6324_v29 = vpack.c.bf16 %v6319_v34, %v6318_v25 }
 0x773   : > { %v6431_v57 = vpack.c.bf16 %v6426_v13, %v6531_v2 }
 0x776   : > { %6987 = vmatpush.bf16.msra.mxu3 %v12875_v30 }
 0x778   : > { %11247 = vmatmul.msk.bf16.vlgmr.msrb.gmra.mxu1 %vm520_vm0, %v6641_v52 }
 0x77a   : > { %6988 = vmatpush.bf16.msra.mxu3 %v12874_v10 }
 0x780   : > { %11161 = vmatmul.msk.bf16.gmra.mxu2 %vm520_vm0, %v6321_v44  ;;  %v12873_v44 = vld [vmem:[%s16282_s7] sm:$0xff] }
 0x781   : > { %11190 = vmatmul.msk.bf16.gmra.mxu3 %vm520_vm0, %v6428_v20 }
 0x782   : > { %11219 = vmatmul.msk.bf16.gmra.mxu0 %vm520_vm0, %v6535_v6  ;;  %6989 = vmatpush.bf16.msra.mxu3 %v12873_v44 }
 0x788   : > { %11248 = vmatmul.msk.bf16.gmra.mxu1 %vm520_vm0, %v6642_v49 }
 0x790   : > { %11162 = vmatmul.msk.bf16.gmra.mxu2 %vm520_vm0, %v6322_v4 }
 0x791   : > { %11191 = vmatmul.msk.bf16.gmra.mxu3 %vm520_vm0, %v6429_v55 }
 0x792   : > { %11220 = vmatmul.msk.bf16.gmra.mxu0 %vm520_vm0, %v6536_v15  ;;  %v6739_v15 = vld [vmem:[#allocation4 + $0x1e] sm:$0xff] }
 0x793   : > { %v6748_v42 = vpack.c.bf16 %v6739_v15, %v6738_v24  ;;  %v6747_v24 = vld [vmem:[#allocation4 + $0x5e] sm:$0x3f] }
 0x798   : > { %11249 = vmatmul.msk.bf16.gmra.mxu1 %vm520_vm0, %v6643_v39 }
 0x79f   : > { %v6168_v46 = vpop.f32.mrf.mxu0 }
 0x7a0   : > { %11163 = vmatmul.msk.bf16.gmra.mxu2 %vm520_vm0, %v6323_v31 }
 0x7a1   : > { %11192 = vmatmul.msk.bf16.gmra.mxu3 %vm520_vm0, %v6430_v48  ;;  %v6741_v48 = vld [vmem:[#allocation4 + $0x2e] sm:$0xff] }
 0x7a2   : > { %11221 = vmatmul.msk.bf16.gmra.mxu0 %vm520_vm0, %v6537_v40  ;;  %v6941_v40 = vld [vmem:[#allocation4 + $0x1f] ss:$2 sm:$0xf]  ;;  %v6749_v0 = vpack.c.bf16 %v6741_v48, %v6740_v47 }
 0x7a3   : > { %v5998_v50 = vpop.f32.mrf.mxu2 }
 0x7a4   : > { %v6071_v16 = vpop.f32.mrf.mxu3 }
 0x7a5   : > { %v6072_v35 = vadd.f32 %v6071_v16, %v5998_v50  ;;  %v6275_v26 = vpop.f32.mrf.mxu1  ;;  %v6942_v50 = vpack.c.bf16 %v6941_v40, %v6941_v40 }
 0x7a7   : > { %v6170_v1 = vpop.f32.mrf.mxu0  ;;  %v6193_v60 = vadd.f32 %v6168_v46, %v6072_v35 }
 0x7a8   : > { %11250 = vmatmul.msk.bf16.gmra.mxu1 %vm520_vm0, %v6644_v11  ;;  %v6743_v1 = vld [vmem:[#allocation4 + $0x3e] sm:$0xff]  ;;  %v6742_v11 = vld [vmem:[#allocation4 + $0x36] sm:$0xff] }
 0x7a9   : > { %v15247_v27 = vadd.f32 %v6275_v26, %v6193_v60  ;;  %v6750_v22 = vpack.c.bf16 %v6743_v1, %v6742_v11 }
 0x7ab   : > { %v6000_v43 = vpop.f32.mrf.mxu2 }
 0x7ac   : > { %v6073_v7 = vpop.f32.mrf.mxu3 }
 0x7ad   : > { %v6277_v52 = vpop.f32.mrf.mxu1 }
 0x7af   : > { %v6173_v18 = vpop.f32.mrf.mxu0 }
 0x7b0   : > { %11164 = vmatmul.msk.bf16.gmra.mxu2 %vm520_vm0, %v6324_v29 }
 0x7b1   : > { %11193 = vmatmul.msk.bf16.gmra.mxu3 %vm520_vm0, %v6431_v57  ;;  %v6744_v57 = vld [vmem:[#allocation4 + $0x46] sm:$0xff] }
 0x7b2   : > { %11222 = vmatmul.msk.bf16.gmra.mxu0 %vm520_vm0, %v6538_v36 }
 0x7b3   : > { %v6003_v20 = vpop.f32.mrf.mxu2 }
 0x7b4   : > { %v6076_v6 = vpop.f32.mrf.mxu3 }
 0x7b5   : > { %v6077_v49 = vadd.f32 %v6076_v6, %v6003_v20  ;;  %v6280_v37 = vpop.f32.mrf.mxu1 }
 0x7b7   : > { %v15265_v61 = vpop.f32.mrf.mxu0  ;;  %v6195_v17 = vadd.f32 %v6173_v18, %v6077_v49  ;;  %v6745_v18 = vld [vmem:[#allocation4 + $0x4e] sm:$0xff] }
 0x7b8   : > { %11251 = vmatmul.msk.bf16.gmra.mxu1 %vm520_vm0, %v6645_v59  ;;  %v6751_v44 = vpack.c.bf16 %v6745_v18, %v6744_v57  ;;  %v12915_v57 = vld [vmem:[%s16284_s9 + $0xf0] sm:$0xff] }
 0x7b9   : > { %v15267_v63 = vadd.f32 %v6280_v37, %v6195_v17 }
 0x7bb   : > { %v15270_v4 = vpop.f32.mrf.mxu2 }
 0x7bc   : > { %v15272_v55 = vpop.f32.mrf.mxu3 }
 0x7bd   : > { %v15274_v45 = vpop.f32.mrf.mxu1 }
 0x7bf   : > { %v6178_v39 = vpop.f32.mrf.mxu0 }
 0x7c0   : > { %11276 = vmatmul.msk.bf16.vlgmr.msrb.gmra.mxu2 %vm520_vm0, %v6748_v42 }
 0x7c1   : > { %11297 = vmatmul.msk.bf16.vlgmr.msrb.gmra.mxu3 %vm520_vm0, %v6883_v56  ;;  %v6752_v56 = vpack.c.bf16 %v6747_v24, %v6746_v62  ;;  %v13152_v62 = vld [vmem:[%s16283_s8] ss:$0 sm:$0xff]  ;;  %v12899_v24 = vld [vmem:[%s16284_s9 + $0x70] sm:$0xff] }
 0x7c2   : > { %11331 = vmatmul.msk.bf16.vlgmr.msra.gmra.mxu0 %vm520_vm0, %v7001_v23 }
 0x7c3   : > { %v6008_v53 = vpop.f32.mrf.mxu2 }
 0x7c4   : > { %v6081_v54 = vpop.f32.mrf.mxu3 }
 0x7c5   : > { %v6285_v32 = vpop.f32.mrf.mxu1 }
 0x7c7   : > { %v15279_v2 = vpop.f32.mrf.mxu0 }
 0x7c8   : > { %11348 = vmatmul.msk.bf16.vlgmr.msra.gmra.mxu1 %vm520_vm0, %v7060_v14 }
 0x7cb   : > { %v15282_v46 = vpop.f32.mrf.mxu2 }
 0x7cc   : > { %v15284_v31 = vpop.f32.mrf.mxu3 }
 0x7cd   : > { %v15286_v8 = vpop.f32.mrf.mxu1 }
 0x7cf   : > { %v6183_v21 = vpop.f32.mrf.mxu0 }
 0x7d0   : > { %11277 = vmatmul.msk.bf16.gmra.mxu2 %vm520_vm0, %v6749_v0 }
 0x7d1   : > { %11314 = vmatmul.msk.bf16.vlgmr.msra.gmra.mxu3 %vm520_vm0, %v6942_v50 }
 0x7d3   : > { %v6013_v16 = vpop.f32.mrf.mxu2 }
 0x7d4   : > { %v6086_v12 = vpop.f32.mrf.mxu3 }
 0x7d5   : > { %v6290_v38 = vpop.f32.mrf.mxu1 }
 0x7d7   : > { %v15290_v35 = vpop.f32.mrf.mxu0 }
 0x7db   : > { %v15292_v26 = vpop.f32.mrf.mxu2 }
 0x7dc   : > { %v15294_v3 = vpop.f32.mrf.mxu3 }
 0x7dd   : > { %v15296_v60 = vpop.f32.mrf.mxu1 }
 0x7df   : > { %v6188_v30 = vpop.f32.mrf.mxu0 }
 0x7e0   : > { %11278 = vmatmul.msk.bf16.gmra.mxu2 %vm520_vm0, %v6750_v22  ;;  %v12916_v22 = vld [vmem:[%s16284_s9 + $0xf8] sm:$0xff] }
 0x7e1   : > { %7453 = vmatpush.bf16.msra.mxu2 %v12916_v22 }
 0x7e3   : > { %v6018_v10 = vpop.f32.mrf.mxu2 }
 0x7e4   : > { %v6091_v43 = vpop.f32.mrf.mxu3 }
 0x7e5   : > { %v6092_v7 = vadd.f32 %v6091_v43, %v6018_v10  ;;  %v6295_v34 = vpop.f32.mrf.mxu1  ;;  %7454 = vmatpush.bf16.msra.mxu2 %v12915_v57 }
 0x7e7   : > { %v6190_v13 = vpop.f32.mrf.mxu0  ;;  %v6201_v41 = vadd.f32 %v6188_v30, %v6092_v7 }
 0x7e9   : > { %v6308_v58 = vadd.f32 %v6295_v34, %v6201_v41 }
 0x7eb   : > { %v6020_v52 = vpop.f32.mrf.mxu2 }
 0x7ec   : > { %v6093_v25 = vpop.f32.mrf.mxu3 }
 0x7ed   : > { %v6297_v29 = vpop.f32.mrf.mxu1 }
 0x7ef   : > { %v6596_v36 = vpop.f32.mrf.mxu0 }
 0x7f0   : > { %11279 = vmatmul.msk.bf16.gmra.mxu2 %vm520_vm0, %v6751_v44 }
 0x7f3   : > { %v6382_v20 = vpop.f32.mrf.mxu2 }
 0x7f4   : > { %v6489_v6 = vpop.f32.mrf.mxu3  ;;  %v6407_v33 = vadd.f32 %v6382_v20, %v15247_v27 }
 0x7f5   : > { %v6703_v5 = vpop.f32.mrf.mxu1 }
 0x7f6   : > { %v6514_v49 = vadd.f32 %v6489_v6, %v6407_v33 }
 0x7f7   : > { %v6598_v37 = vpop.f32.mrf.mxu0 }
 0x7f8   : > { %v6621_v17 = vadd.f32 %v6596_v36, %v6514_v49  ;;  %v12892_v49 = vld [vmem:[%s16284_s9 + $0x38] sm:$0xff] }
 0x7f9   : > { %v12908_v37 = vld [vmem:[%s16284_s9 + $0xb8] sm:$0xff]  ;;  %7274 = vmatpush.bf16.msrb.mxu0 %v12892_v49  ;;  %v12887_v49 = vld [vmem:[%s16284_s9 + $0x10] sm:$0xff] }
 0x7fa   : > { %v15301_v59 = vadd.f32 %v6703_v5, %v6621_v17  ;;  %v12900_v5 = vld [vmem:[%s16284_s9 + $0x78] sm:$0xff]  ;;  %7362 = vmatpush.bf16.msrb.mxu1 %v12908_v37 }
 0x7fb   : > { %v6384_v15 = vpop.f32.mrf.mxu2  ;;  %7208 = vmatpush.bf16.msrb.mxu3 %v12900_v5  ;;  %v12895_v5 = vld [vmem:[%s16284_s9 + $0x50] sm:$0xff] }
 0x7fc   : > { %v6491_v19 = vpop.f32.mrf.mxu3 }
 0x7fd   : > { %v6705_v39 = vpop.f32.mrf.mxu1 }
 0x7fe   : > { %v12891_v39 = vld [vmem:[%s16284_s9 + $0x30] sm:$0xff] }
 0x7ff   : > { %v6601_v42 = vpop.f32.mrf.mxu0  ;;  %7209 = vmatpush.bf16.msrb.mxu3 %v12899_v24  ;;  %7275 = vmatpush.bf16.msrb.mxu0 %v12891_v39  ;;  %v13156_v24 = vld [vmem:[%s16283_s8] ss:$0 sm:$0xff]  ;;  %v12894_v39 = vld [vmem:[%s16284_s9 + $0x48] sm:$0xff] }
 0x800   : > { %11280 = vmatmul.msk.bf16.gmra.mxu2 %vm520_vm0, %v6752_v56 }
 0x803   : > { %v6387_v23 = vpop.f32.mrf.mxu2 }
 0x804   : > { %v6494_v53 = vpop.f32.mrf.mxu3  ;;  %v6409_v54 = vadd.f32 %v6387_v23, %v15267_v63 }
 0x805   : > { %v6708_v27 = vpop.f32.mrf.mxu1 }
 0x806   : > { %v6516_v28 = vadd.f32 %v6494_v53, %v6409_v54  ;;  %v13154_v54 = vld [vmem:[%s16283_s8] ss:$0 sm:$0xff] }
 0x807   : > { %v15305_v32 = vpop.f32.mrf.mxu0 }
 0x808   : > { %v6623_v14 = vadd.f32 %v6601_v42, %v6516_v28  ;;  %v12907_v42 = vld [vmem:[%s16284_s9 + $0xb0] sm:$0xff]  ;;  %v12890_v28 = vld [vmem:[%s16284_s9 + $0x28] sm:$0xff] }
 0x809   : > { %7363 = vmatpush.bf16.msrb.mxu1 %v12907_v42  ;;  %7276 = vmatpush.bf16.msrb.mxu0 %v12890_v28  ;;  %v12886_v42 = vld [vmem:[%s16284_s9 + $0x8] sm:$0xff] }
 0x80a   : > { %v15307_v48 = vadd.f32 %v6708_v27, %v6623_v14  ;;  %v12898_v27 = vld [vmem:[%s16284_s9 + $0x68] sm:$0xff] }
 0x80b   : > { %v15309_v40 = vpop.f32.mrf.mxu2  ;;  %v12906_v14 = vld [vmem:[%s16284_s9 + $0xa8] sm:$0xff]  ;;  %7210 = vmatpush.bf16.msrb.mxu3 %v12898_v27 }
 0x80c   : > { %v15311_v47 = vpop.f32.mrf.mxu3 }
 0x80d   : > { %v15313_v21 = vpop.f32.mrf.mxu1  ;;  %7364 = vmatpush.bf16.msrb.mxu1 %v12906_v14  ;;  %v12885_v14 = vld [vmem:[%s16284_s9] sm:$0xff] }
 0x80f   : > { %v6606_v0 = vpop.f32.mrf.mxu0 }
 0x810   : > { %v15378_v0 = vld [vmem:[%s16281_s6] ss:$0 sm:$0xff] }
 0x813   : > { %v6392_v50 = vpop.f32.mrf.mxu2 }
 0x814   : > { %v6499_v16 = vpop.f32.mrf.mxu3  ;;  %v13155_v50 = vld [vmem:[%s16283_s8] ss:$0 sm:$0xff] }
 0x815   : > { %v6713_v12 = vpop.f32.mrf.mxu1 }
 0x817   : > { %v15315_v38 = vpop.f32.mrf.mxu0 }
 0x81b   : > { %v15317_v63 = vpop.f32.mrf.mxu2 }
 0x81c   : > { %v15319_v1 = vpop.f32.mrf.mxu3 }
 0x81d   : > { %v15321_v11 = vpop.f32.mrf.mxu1 }
 0x81f   : > { %v6611_v30 = vpop.f32.mrf.mxu0 }
 0x820   : > { %v6079_v30 = vadd.f32 %v15272_v55, %v15270_v4 }
 0x823   : > { %v6397_v10 = vpop.f32.mrf.mxu2 }
 0x824   : > { %v6504_v43 = vpop.f32.mrf.mxu3 }
 0x825   : > { %v6718_v7 = vpop.f32.mrf.mxu1 }
 0x826   : > { %v12897_v7 = vld [vmem:[%s16284_s9 + $0x60] sm:$0xff] }
 0x827   : > { %v15326_v34 = vpop.f32.mrf.mxu0  ;;  %7211 = vmatpush.bf16.msrb.mxu3 %v12897_v7 }
 0x82b   : > { %v15328_v13 = vpop.f32.mrf.mxu2 }
 0x82c   : > { %v15330_v41 = vpop.f32.mrf.mxu3 }
 0x82d   : > { %v15332_v52 = vpop.f32.mrf.mxu1 }
 0x82f   : > { %v6616_v25 = vpop.f32.mrf.mxu0 }
 0x833   : > { %v6402_v18 = vpop.f32.mrf.mxu2 }
 0x834   : > { %v6509_v29 = vpop.f32.mrf.mxu3  ;;  %v6415_v36 = vadd.f32 %v6402_v18, %v6308_v58  ;;  %v12914_v58 = vld [vmem:[%s16284_s9 + $0xe8] sm:$0xff]  ;;  %v12905_v18 = vld [vmem:[%s16284_s9 + $0xa0] sm:$0xff] }
 0x835   : > { %v6723_v44 = vpop.f32.mrf.mxu1  ;;  %7455 = vmatpush.bf16.msra.mxu2 %v12914_v58  ;;  %7365 = vmatpush.bf16.msrb.mxu1 %v12905_v18  ;;  %v12903_v58 = vld [vmem:[%s16284_s9 + $0x90] sm:$0xff] }
 0x836   : > { %v6522_v20 = vadd.f32 %v6509_v29, %v6415_v36  ;;  %v12896_v36 = vld [vmem:[%s16284_s9 + $0x58] sm:$0xff] }
 0x837   : > { %v6618_v6 = vpop.f32.mrf.mxu0  ;;  %7212 = vmatpush.bf16.msrb.mxu3 %v12896_v36 }
 0x838   : > { %v6629_v33 = vadd.f32 %v6616_v25, %v6522_v20  ;;  %v12889_v25 = vld [vmem:[%s16284_s9 + $0x20] sm:$0xff]  ;;  %v12904_v20 = vld [vmem:[%s16284_s9 + $0x98] sm:$0xff] }
 0x839   : > { %7277 = vmatpush.bf16.msrb.mxu0 %v12889_v25  ;;  %7366 = vmatpush.bf16.msrb.mxu1 %v12904_v20  ;;  %v12931_v25 = vld [vmem:[%s16284_s9 + $0x170] sm:$0xff]  ;;  %v6089_v20 = vadd.f32 %v15294_v3, %v15292_v26 }
 0x83a   : > { %v15346_v17 = vadd.f32 %v6723_v44, %v6629_v33  ;;  %v12888_v44 = vld [vmem:[%s16284_s9 + $0x18] sm:$0xff] }
 0x83b   : > { %v6404_v15 = vpop.f32.mrf.mxu2  ;;  %7213 = vmatpush.bf16.msrb.mxu3 %v12895_v5  ;;  %v6200_v26 = vadd.f32 %v15290_v35, %v6089_v20  ;;  %v12920_v5 = vld [vmem:[%s16284_s9 + $0x118] sm:$0xff] }
 0x83c   : > { %v6511_v19 = vpop.f32.mrf.mxu3  ;;  %v12912_v15 = vld [vmem:[%s16284_s9 + $0xd8] sm:$0xff] }
 0x83d   : > { %v6725_v56 = vpop.f32.mrf.mxu1  ;;  %7278 = vmatpush.bf16.msrb.mxu0 %v12888_v44  ;;  %7367 = vmatpush.bf16.msrb.mxu1 %v12903_v58  ;;  %v12909_v44 = vld [vmem:[%s16284_s9 + $0xc0] sm:$0xff]  ;;  %v6307_v58 = vadd.f32 %v15296_v60, %v6200_v26 }
 0x83f   : > { %v7050_v23 = vpop.f32.mrf.mxu0  ;;  %7214 = vmatpush.bf16.msrb.mxu3 %v12894_v39 }
 0x840   : > { %v7051_v53 = vadd.f32 %v13152_v62, %v7050_v23 }
 0x841   : > { %7279 = vmatpush.bf16.msrb.mxu0 %v12887_v49  ;;  %v12928_v49 = vld [vmem:[%s16284_s9 + $0x158] sm:$0xff] }
 0x842   : > { %7054 = vst [vmem:[#allocation9 + $0x13] sm:$0xf] %v7051_v53 }
 0x843   : > { %v6810_v16 = vpop.f32.mrf.mxu2 }
 0x844   : > { %v6932_v12 = vpop.f32.mrf.mxu3  ;;  %v6835_v22 = vadd.f32 %v6810_v16, %v15301_v59  ;;  %v6196_v59 = vadd.f32 %v15265_v61, %v6079_v30  ;;  %v12913_v61 = vld [vmem:[%s16284_s9 + $0xe0] sm:$0xff]  ;;  %v12924_v30 = vld [vmem:[%s16284_s9 + $0x138] sm:$0xff] }
 0x845   : > { %v6933_v10 = vadd.f32 %v13154_v54, %v6932_v12  ;;  %v7109_v43 = vpop.f32.mrf.mxu1  ;;  %7456 = vmatpush.bf16.msra.mxu2 %v12913_v61  ;;  %7280 = vmatpush.bf16.msrb.mxu0 %v12886_v42  ;;  %v6084_v54 = vadd.f32 %v15284_v31, %v15282_v46  ;;  %v12929_v61 = vld [vmem:[%s16284_s9 + $0x160] sm:$0xff] }
 0x846   : > { %v6849_v29 = vadd.f32 %v15378_v0, %v6835_v22  ;;  %v7110_v55 = vadd.f32 %v13155_v50, %v7109_v43  ;;  %v6303_v37 = vadd.f32 %v15274_v45, %v6196_v59  ;;  %v12901_v50 = vld [vmem:[%s16284_s9 + $0x80] sm:$0xff]  ;;  %v12911_v43 = vld [vmem:[%s16284_s9 + $0xd0] sm:$0xff]  ;;  %v12930_v59 = vld [vmem:[%s16284_s9 + $0x168] sm:$0xff] }
 0x847   : > { %6936 = vst [vmem:[#allocation9 + $0x7] sm:$0xf] %v6933_v10  ;;  %v7052_v4 = vpop.f32.mrf.mxu0  ;;  %v6198_v31 = vadd.f32 %v15279_v2, %v6084_v54 }
 0x848   : > { %v6859_v57 = vmax.f32 %v6849_v29, 0.0  ;;  %7113 = vst [vmem:[#allocation9 + $0x19] sm:$0xf] %v7110_v55  ;;  %v6410_v62 = vadd.f32 %v15309_v40, %v6303_v37  ;;  %v12902_v40 = vld [vmem:[%s16284_s9 + $0x88] sm:$0xff] }
 0x849   : > { %7457 = vmatpush.bf16.msra.mxu2 %v12912_v15  ;;  %7368 = vmatpush.bf16.msrb.mxu1 %v12902_v40  ;;  %v6305_v2 = vadd.f32 %v15286_v8, %v6198_v31  ;;  %v12922_v8 = vld [vmem:[%s16284_s9 + $0x128] sm:$0xff] }
 0x84a   : > { %6869 = vst [vmem:[#allocation6] sm:$0xff] %v6859_v57  ;;  %v6517_v56 = vadd.f32 %v15311_v47, %v6410_v62  ;;  %v12893_v47 = vld [vmem:[%s16284_s9 + $0x40] sm:$0xff]  ;;  %7281 = vmatpush.bf16.msrb.mxu0 %v12885_v14  ;;  %v12910_v55 = vld [vmem:[%s16284_s9 + $0xc8] sm:$0xff] }
 0x84b   : > { %v6812_v6 = vpop.f32.mrf.mxu2  ;;  %7215 = vmatpush.bf16.msrb.mxu3 %v12893_v47  ;;  %v6412_v18 = vadd.f32 %v15317_v63, %v6305_v2  ;;  %v12940_v63 = vld [vmem:[%s16284_s9 + $0x1b8] sm:$0xff]  ;;  %v12937_v62 = vld [vmem:[%s16284_s9 + $0x1a0] sm:$0xff]  ;;  %v12918_v47 = vld [vmem:[%s16284_s9 + $0x108] sm:$0xff] }
 0x84c   : > { %v6934_v33 = vpop.f32.mrf.mxu3  ;;  %v6624_v16 = vadd.f32 %v15305_v32, %v6517_v56  ;;  %v12932_v32 = vld [vmem:[%s16284_s9 + $0x178] sm:$0xff]  ;;  %v12939_v6 = vld [vmem:[%s16284_s9 + $0x1b0] sm:$0xff]  ;;  %v12926_v14 = vld [vmem:[%s16284_s9 + $0x148] sm:$0xff] }
 0x84d   : > { %v7111_v19 = vpop.f32.mrf.mxu1  ;;  %7369 = vmatpush.bf16.msrb.mxu1 %v12901_v50  ;;  %7458 = vmatpush.bf16.msra.mxu2 %v12911_v43  ;;  %v6519_v57 = vadd.f32 %v15319_v1, %v6412_v18  ;;  %v12921_v1 = vld [vmem:[%s16284_s9 + $0x120] sm:$0xff]  ;;  %v12946_v2 = vld [vmem:[%s16284_s9 + $0x1e8] sm:$0xff] }
 0x84e   : > { %v6731_v12 = vadd.f32 %v15313_v21, %v6624_v16  ;;  %7635 = vmatpush.bf16.msra.mxu0 %v12932_v32  ;;  %v12923_v21 = vld [vmem:[%s16284_s9 + $0x130] sm:$0xff]  ;;  %v12936_v16 = vld [vmem:[%s16284_s9 + $0x198] sm:$0xff]  ;;  %v12945_v18 = vld [vmem:[%s16284_s9 + $0x1e0] sm:$0xff] }
 0x84f   : > { %7544 = vmatpush.bf16.msra.mxu3 %v12924_v30  ;;  %v6626_v33 = vadd.f32 %v15315_v38, %v6519_v57  ;;  %v12938_v38 = vld [vmem:[%s16284_s9 + $0x1a8] sm:$0xff]  ;;  %v12919_v19 = vld [vmem:[%s16284_s9 + $0x110] sm:$0xff]  ;;  %v12956_v32 = vld [vmem:[%s16284_s9 + $0x238] sm:$0xff] }
 0x850   : > { %v12947_v30 = vld [vmem:[%s16284_s9 + $0x1f0] sm:$0xff] }
 0x851   : > { %v6879_v45 = vld [vmem:[#allocation6] ss:$2 sm:$0xf]  ;;  %7459 = vmatpush.bf16.msra.mxu2 %v12910_v55  ;;  %7726 = vmatpush.bf16.msra.mxu1 %v12940_v63  ;;  %v6733_v37 = vadd.f32 %v15321_v11, %v6626_v33  ;;  %v12927_v11 = vld [vmem:[%s16284_s9 + $0x150] sm:$0xff] }
 0x852   : > { %6880 = vst [vmem:[#allocation8 + $0x7] sm:$0xf] %v6879_v45  ;;  %7636 = vmatpush.bf16.msra.mxu0 %v12931_v25  ;;  %v12933_v25 = vld [vmem:[%s16284_s9 + $0x180] sm:$0xff] }
 0x853   : > { %v6815_v23 = vpop.f32.mrf.mxu2  ;;  %7545 = vmatpush.bf16.msra.mxu3 %v12923_v21  ;;  %v12953_v33 = vld [vmem:[%s16284_s9 + $0x220] sm:$0xff] }
 0x854   : > { %v6991_v53 = vpop.f32.mrf.mxu3  ;;  %v6837_v27 = vadd.f32 %v6815_v23, %v15307_v48 }
 0x855   : > { %v6992_v28 = vadd.f32 %v13156_v24, %v6991_v53  ;;  %7460 = vmatpush.bf16.msra.mxu2 %v12909_v44  ;;  %7727 = vmatpush.bf16.msra.mxu1 %v12939_v6  ;;  %v6414_v24 = vadd.f32 %v15328_v13, %v6307_v58  ;;  %v12944_v6 = vld [vmem:[%s16284_s9 + $0x1d8] sm:$0xff] }
 0x856   : > { %v6851_v46 = vadd.f32 %v15378_v0, %v6837_v27  ;;  %7637 = vmatpush.bf16.msra.mxu0 %v12930_v59 }
 0x857   : > { %6995 = vst [vmem:[#allocation9 + $0xd] sm:$0xf] %v6992_v28  ;;  %7546 = vmatpush.bf16.msra.mxu3 %v12922_v8  ;;  %v6521_v54 = vadd.f32 %v15330_v41, %v6414_v24  ;;  %v12948_v41 = vld [vmem:[%s16284_s9 + $0x1f8] sm:$0xff] }
 0x858   : > { %v6861_v48 = vmax.f32 %v6851_v46, 0.0  ;;  %v12917_v46 = vld [vmem:[%s16284_s9 + $0x100] sm:$0xff] }
 0x859   : > { %7728 = vmatpush.bf16.msra.mxu1 %v12938_v38  ;;  %v7138_v39 = vld [vmem:[#allocation8 + $0x1] sm:$0xff]  ;;  %v6628_v31 = vadd.f32 %v15326_v34, %v6521_v54  ;;  %7817 = vmatpush.bf16.msrb.mxu2 %v12948_v41 }
 0x85a   : > { %6871 = vst [vmem:[#allocation6 + $0x10] sm:$0xff] %v6861_v48  ;;  %7638 = vmatpush.bf16.msra.mxu0 %v12929_v61  ;;  %v7117_v42 = vld [vmem:[#allocation8] sm:$0xff]  ;;  %v12925_v48 = vld [vmem:[%s16284_s9 + $0x140] sm:$0xff] }
 0x85b   : > { %v6817_v22 = vpop.f32.mrf.mxu2  ;;  %7547 = vmatpush.bf16.msra.mxu3 %v12921_v1  ;;  %v7292_v56 = vld [vmem:[#allocation8 + $0x2] sm:$0xff] }
 0x85c   : > { %v6993_v10 = vpop.f32.mrf.mxu3  ;;  %v6838_v7 = vadd.f32 %v6817_v22, %v6731_v12  ;;  %v12935_v12 = vld [vmem:[%s16284_s9 + $0x190] sm:$0xff]  ;;  %v6735_v22 = vadd.f32 %v15332_v52, %v6628_v31 }
 0x85d   : > { %7729 = vmatpush.bf16.msra.mxu1 %v12937_v62  ;;  %v12934_v10 = vld [vmem:[%s16284_s9 + $0x188] sm:$0xff]  ;;  %7818 = vmatpush.bf16.msrb.mxu2 %v12947_v30  ;;  %v7749_v31 = vld [vmem:[#allocation8 + $0x1d] sm:$0x3f] }
 0x85e   : > { %v6852_v29 = vadd.f32 %v15378_v0, %v6838_v7  ;;  %7639 = vmatpush.bf16.msra.mxu0 %v12928_v49  ;;  %v12955_v7 = vld [vmem:[%s16284_s9 + $0x230] sm:$0xff]  ;;  %v12952_v49 = vld [vmem:[%s16284_s9 + $0x218] sm:$0xff] }
 0x85f   : > { %7548 = vmatpush.bf16.msra.mxu3 %v12920_v5  ;;  %v12943_v5 = vld [vmem:[%s16284_s9 + $0x1d0] sm:$0xff] }
 0x860   : > { %v6862_v4 = vmax.f32 %v6852_v29, 0.0  ;;  %v12954_v29 = vld [vmem:[%s16284_s9 + $0x228] sm:$0xff] }
 0x861   : > { %7730 = vmatpush.bf16.msra.mxu1 %v12936_v16  ;;  %7819 = vmatpush.bf16.msrb.mxu2 %v12946_v2 }
 0x862   : > { %6872 = vst [vmem:[#allocation6 + $0x18] sm:$0xff] %v6862_v4  ;;  %7640 = vmatpush.bf16.msra.mxu0 %v12927_v11 }
 0x863   : > { %v6820_v36 = vpop.f32.mrf.mxu2  ;;  %7549 = vmatpush.bf16.msra.mxu3 %v12919_v19  ;;  %v12950_v19 = vld [vmem:[%s16284_s9 + $0x208] sm:$0xff] }
 0x865   : > { %7731 = vmatpush.bf16.msra.mxu1 %v12935_v12  ;;  %7820 = vmatpush.bf16.msrb.mxu2 %v12945_v18  ;;  %v7840_v12 = vld [vmem:[#allocation8 + $0x1e] sm:$0x3f] }
 0x866   : > { %7641 = vmatpush.bf16.msra.mxu0 %v12926_v14  ;;  %v7842_v30 = vpack.c.bf16 %v7840_v12, %v7840_v12  ;;  %v12966_v12 = vld [vmem:[%s16284_s9 + $0x288] sm:$0xff] }
 0x867   : > { %7550 = vmatpush.bf16.msra.mxu3 %v12918_v47 }
 0x869   : > { %v6938_v3 = vld [vmem:[#allocation6 + $0x14] ss:$2 sm:$0xf]  ;;  %7732 = vmatpush.bf16.msra.mxu1 %v12934_v10  ;;  %7821 = vmatpush.bf16.msrb.mxu2 %v12944_v6 }
 0x86a   : > { %6939 = vst [vmem:[#allocation8 + $0xd] sm:$0xf] %v6938_v3  ;;  %7642 = vmatpush.bf16.msra.mxu0 %v12925_v48  ;;  %v7751_v48 = vpack.c.bf16 %v7749_v31, %v7749_v31  ;;  %v12963_v6 = vld [vmem:[%s16284_s9 + $0x270] sm:$0xff] }
 0x86b   : > { %v6822_v35 = vpop.f32.mrf.mxu2  ;;  %7551 = vmatpush.bf16.msra.mxu3 %v12917_v46 }
 0x86c   : > { %v6840_v15 = vadd.f32 %v6822_v35, %v6733_v37 }
 0x86d   : > { %7733 = vmatpush.bf16.msra.mxu1 %v12933_v25  ;;  %7822 = vmatpush.bf16.msrb.mxu2 %v12943_v5 }
 0x86e   : > { %v6854_v60 = vadd.f32 %v15378_v0, %v6840_v15  ;;  %v12941_v15 = vld [vmem:[%s16284_s9 + $0x1c0] sm:$0xff] }
 0x870   : > { %v6864_v45 = vmax.f32 %v6854_v60, 0.0 }
 0x871   : > { %v7139_v40 = vld [vmem:[#allocation8 + $0x9] sm:$0xff] }
 0x872   : > { %v15521_v23 = vld [vmem:[#allocation8 + $0x8] sm:$0xff]  ;;  %6874 = vst [vmem:[#allocation6 + $0x28] sm:$0xff] %v6864_v45  ;;  %v7141_v27 = vpack.c.bf16 %v7139_v40, %v7138_v39 }
 0x873   : > { %v7293_v53 = vld [vmem:[#allocation8 + $0xa] sm:$0xff]  ;;  %v7120_v28 = vpack.c.bf16 %v15521_v23, %v7117_v42  ;;  %v6825_v50 = vpop.f32.mrf.mxu2 }
 0x874   : > { %v7295_v13 = vpack.c.bf16 %v7293_v53, %v7292_v56  ;;  %7216 = vmatmul.bf16.vlgmr.msrb.gmra.mxu3 %v7141_v27  ;;  %v7383_v44 = vld [vmem:[#allocation8 + $0x6] sm:$0xff] }
 0x875   : > { %7282 = vmatmul.bf16.vlgmr.msrb.gmra.mxu0 %v7120_v28  ;;  %7908 = vmatpush.bf16.msrb.mxu3 %v12956_v32  ;;  %v7474_v62 = vld [vmem:[#allocation8 + $0x7] sm:$0xff] }
 0x876   : > { %7370 = vmatmul.bf16.vlgmr.msrb.gmra.mxu1 %v7295_v13  ;;  %v12949_v45 = vld [vmem:[%s16284_s9 + $0x200] sm:$0xff] }
 0x879   : > { %v6997_v34 = vld [vmem:[#allocation6 + $0x28] ss:$2 sm:$0xf]  ;;  %7909 = vmatpush.bf16.msrb.mxu3 %v12955_v7 }
 0x87a   : > { %6998 = vst [vmem:[#allocation8 + $0x13] sm:$0xf] %v6997_v34 }
 0x87b   : > { %v6827_v43 = vpop.f32.mrf.mxu2 }
 0x87c   : > { %v6842_v21 = vadd.f32 %v6827_v43, %v6735_v22 }
 0x87d   : > { %7910 = vmatpush.bf16.msrb.mxu3 %v12954_v29 }
 0x87e   : > { %v6856_v52 = vadd.f32 %v15378_v0, %v6842_v21 }
 0x880   : > { %v6866_v4 = vmax.f32 %v6856_v52, 0.0 }
 0x881   : > { %v7140_v8 = vld [vmem:[#allocation8 + $0x11] sm:$0x3f]  ;;  %7911 = vmatpush.bf16.msrb.mxu3 %v12953_v33  ;;  %v12979_v33 = vld [vmem:[%s16284_s9 + $0x2f0] sm:$0xff] }
 0x882   : > { %v7119_v55 = vld [vmem:[#allocation8 + $0x10] sm:$0x3f]  ;;  %6876 = vst [vmem:[#allocation6 + $0x38] sm:$0xff] %v6866_v4  ;;  %v7142_v57 = vpack.c.bf16 %v7140_v8, %v7140_v8 }
 0x883   : > { %v7294_v59 = vld [vmem:[#allocation8 + $0x12] sm:$0x3f]  ;;  %v7121_v63 = vpack.c.bf16 %v7119_v55, %v7119_v55  ;;  %v6830_v1 = vpop.f32.mrf.mxu2  ;;  %v12972_v55 = vld [vmem:[%s16284_s9 + $0x2b8] sm:$0xff] }
 0x884   : > { %v7296_v36 = vpack.c.bf16 %v7294_v59, %v7294_v59  ;;  %v15573_v20 = vld [vmem:[#allocation8 + $0xe] sm:$0xff]  ;;  %v6843_v26 = vadd.f32 %v6830_v1, %v15346_v17  ;;  %7221 = vmatmul.bf16.gmra.mxu3 %v7142_v57  ;;  %v12964_v59 = vld [vmem:[%s16284_s9 + $0x278] sm:$0xff]  ;;  %8055 = vmatpush.bf16.msrb.mxu0 %v12972_v55  ;;  %v15750_v55 = vld [vmem:[%s16285_s10] ss:$0 sm:$0xff] }
 0x885   : > { %v7386_v61 = vpack.c.bf16 %v15573_v20, %v7383_v44  ;;  %7287 = vmatmul.bf16.gmra.mxu0 %v7121_v63  ;;  %7912 = vmatpush.bf16.msrb.mxu3 %v12952_v49  ;;  %v12942_v17 = vld [vmem:[%s16284_s9 + $0x1c8] sm:$0xff]  ;;  %v12980_v57 = vld [vmem:[%s16284_s9 + $0x2f8] sm:$0xff] }
 0x886   : > { %7375 = vmatmul.bf16.gmra.mxu1 %v7296_v36  ;;  %v6857_v3 = vadd.f32 %v15378_v0, %v6843_v26  ;;  %v12951_v0 = vld [vmem:[%s16284_s9 + $0x210] sm:$0xff]  ;;  %v7475_v35 = vld [vmem:[#allocation8 + $0xf] sm:$0xff]  ;;  %7823 = vmatpush.bf16.msrb.mxu2 %v12942_v17  ;;  %v12988_v63 = vld [vmem:[%s16284_s9 + $0x338] sm:$0xff] }
 0x887   : > { %7461 = vmatmul.bf16.vlgmr.msra.gmra.mxu2 %v7386_v61  ;;  %v7566_v58 = vld [vmem:[#allocation8 + $0x10] sm:$0xff]  ;;  %v7477_v24 = vpack.c.bf16 %v7475_v35, %v7474_v62  ;;  %8121 = vmatpush.bf16.msrb.mxu1 %v12964_v59  ;;  %v12971_v61 = vld [vmem:[%s16284_s9 + $0x2b0] sm:$0xff]  ;;  %v12985_v62 = vld [vmem:[%s16284_s9 + $0x320] sm:$0xff] }
 0x888   : > { %v6867_v37 = vmax.f32 %v6857_v3, 0.0  ;;  %v7568_v60 = vpack.c.bf16 %v7566_v58, %v15521_v23  ;;  %v7656_v42 = vld [vmem:[#allocation8 + $0xc] sm:$0xff]  ;;  %v12987_v26 = vld [vmem:[%s16284_s9 + $0x330] sm:$0xff]  ;;  %8056 = vmatpush.bf16.msrb.mxu0 %v12971_v61  ;;  %v13012_v59 = vld [vmem:[%s16284_s9 + $0x3f8] sm:$0xff] }
 0x889   : > { %7913 = vmatpush.bf16.msrb.mxu3 %v12951_v0  ;;  %v7747_v14 = vld [vmem:[#allocation8 + $0xd] sm:$0xff] }
 0x88a   : > { %6877 = vst [vmem:[#allocation6 + $0x40] sm:$0xff] %v6867_v37  ;;  %7824 = vmatpush.bf16.msrb.mxu2 %v12941_v15  ;;  %v12962_v17 = vld [vmem:[%s16284_s9 + $0x268] sm:$0xff]  ;;  %v12969_v15 = vld [vmem:[%s16284_s9 + $0x2a0] sm:$0xff] }
 0x88b   : > { %v6832_v38 = vpop.f32.mrf.mxu2  ;;  %8122 = vmatpush.bf16.msrb.mxu1 %v12963_v6  ;;  %v12978_v0 = vld [vmem:[%s16284_s9 + $0x2e8] sm:$0xff]  ;;  %v12995_v6 = vld [vmem:[%s16284_s9 + $0x370] sm:$0xff] }
 0x88c   : > { %v12970_v38 = vld [vmem:[%s16284_s9 + $0x2a8] sm:$0xff] }
 0x88d   : > { %7914 = vmatpush.bf16.msrb.mxu3 %v12950_v19  ;;  %v12986_v35 = vld [vmem:[%s16284_s9 + $0x328] sm:$0xff]  ;;  %8057 = vmatpush.bf16.msrb.mxu0 %v12970_v38  ;;  %v12961_v19 = vld [vmem:[%s16284_s9 + $0x260] sm:$0xff] }
 0x88e   : > { %8209 = vmatpush.bf16.msra.mxu2 %v12980_v57  ;;  %v13020_v57 = vld [vmem:[%s16284_s9 + $0x438] sm:$0xff]  ;;  %v7114_v38 = vld [vmem:[#allocation9 + $0x7] sm:$0xff] }
 0x88f   : > { %8123 = vmatpush.bf16.msrb.mxu1 %v12962_v17 }
 0x891   : > { %v7056_v11 = vld [vmem:[#allocation6 + $0x3c] ss:$2 sm:$0xf]  ;;  %7915 = vmatpush.bf16.msrb.mxu3 %v12949_v45  ;;  %8058 = vmatpush.bf16.msrb.mxu0 %v12969_v15 }
 0x892   : > { %7057 = vst [vmem:[#allocation8 + $0x19] sm:$0xf] %v7056_v11  ;;  %8210 = vmatpush.bf16.msra.mxu2 %v12979_v33  ;;  %v12977_v11 = vld [vmem:[%s16284_s9 + $0x2e0] sm:$0xff]  ;;  %v13003_v33 = vld [vmem:[%s16284_s9 + $0x3b0] sm:$0xff] }
 0x893   : > { %8124 = vmatpush.bf16.msrb.mxu1 %v12961_v19 }
 0x894   : > { %7552 = vmatmul.bf16.vlgmr.msra.gmra.mxu3 %v7477_v24 }
 0x895   : > { %7643 = vmatmul.bf16.vlgmr.msra.gmra.mxu0 %v7568_v60  ;;  %8300 = vmatpush.bf16.msra.mxu3 %v12988_v63 }
 0x896   : > { %8211 = vmatpush.bf16.msra.mxu2 %v12978_v0 }
 0x899   : > { %v7385_v39 = vld [vmem:[#allocation8 + $0x16] sm:$0x3f]  ;;  %v7658_v13 = vld [vmem:[#allocation8 + $0x1c] sm:$0x3f]  ;;  %8301 = vmatpush.bf16.msra.mxu3 %v12987_v26 }
 0x89a   : > { %v7657_v56 = vld [vmem:[#allocation8 + $0x14] sm:$0xff]  ;;  %v7387_v40 = vpack.c.bf16 %v7385_v39, %v7385_v39  ;;  %v7660_v50 = vpack.c.bf16 %v7658_v13, %v7658_v13  ;;  %8212 = vmatpush.bf16.msra.mxu2 %v12977_v11 }
 0x89b   : > { %v7659_v53 = vpack.c.bf16 %v7657_v56, %v7656_v42  ;;  %v7476_v54 = vld [vmem:[#allocation8 + $0x17] sm:$0x3f]  ;;  %v12968_v56 = vld [vmem:[%s16284_s9 + $0x298] sm:$0xff] }
 0x89c   : > { %7466 = vmatmul.bf16.gmra.mxu2 %v7387_v40  ;;  %v7567_v27 = vld [vmem:[#allocation8 + $0x18] sm:$0x3f]  ;;  %v7478_v28 = vpack.c.bf16 %v7476_v54, %v7476_v54  ;;  %v12960_v40 = vld [vmem:[%s16284_s9 + $0x258] sm:$0xff]  ;;  %8059 = vmatpush.bf16.msrb.mxu0 %v12968_v56  ;;  %v13018_v11 = vld [vmem:[%s16284_s9 + $0x428] sm:$0xff] }
 0x89d   : > { %7734 = vmatmul.bf16.vlgmr.msra.gmra.mxu1 %v7659_v53  ;;  %v7569_v23 = vpack.c.bf16 %v7567_v27, %v7567_v27  ;;  %v7748_v47 = vld [vmem:[#allocation8 + $0x15] sm:$0xff]  ;;  %8302 = vmatpush.bf16.msra.mxu3 %v12986_v35  ;;  %v12976_v53 = vld [vmem:[%s16284_s9 + $0x2d8] sm:$0xff]  ;;  %v12993_v56 = vld [vmem:[%s16284_s9 + $0x360] sm:$0xff] }
 0x89e   : > { %v7750_v16 = vpack.c.bf16 %v7748_v47, %v7747_v14  ;;  %v7839_v41 = vld [vmem:[#allocation8 + $0x16] sm:$0xff]  ;;  %v12984_v27 = vld [vmem:[%s16284_s9 + $0x318] sm:$0xff]  ;;  %8125 = vmatpush.bf16.msrb.mxu1 %v12960_v40  ;;  %8213 = vmatpush.bf16.msra.mxu2 %v12976_v53  ;;  %v13001_v40 = vld [vmem:[%s16284_s9 + $0x3a0] sm:$0xff] }
 0x89f   : > { %v7841_v46 = vpack.c.bf16 %v7839_v41, %v15573_v20  ;;  %v12967_v13 = vld [vmem:[%s16284_s9 + $0x290] sm:$0xff] }
 0x8a0   : > { %v12959_v47 = vld [vmem:[%s16284_s9 + $0x250] sm:$0xff]  ;;  %8060 = vmatpush.bf16.msrb.mxu0 %v12967_v13  ;;  %v12992_v13 = vld [vmem:[%s16284_s9 + $0x358] sm:$0xff] }
 0x8a1   : > { %8303 = vmatpush.bf16.msra.mxu3 %v12985_v62  ;;  %v12975_v14 = vld [vmem:[%s16284_s9 + $0x2d0] sm:$0xff] }
 0x8a2   : > { %8126 = vmatpush.bf16.msrb.mxu1 %v12959_v47  ;;  %8214 = vmatpush.bf16.msra.mxu2 %v12975_v14  ;;  %v13000_v47 = vld [vmem:[%s16284_s9 + $0x398] sm:$0xff] }
 0x8a4   : > { %7557 = vmatmul.bf16.gmra.mxu3 %v7478_v28  ;;  %8061 = vmatpush.bf16.msrb.mxu0 %v12966_v12  ;;  %v12991_v12 = vld [vmem:[%s16284_s9 + $0x350] sm:$0xff] }
 0x8a5   : > { %7648 = vmatmul.bf16.gmra.mxu0 %v7569_v23  ;;  %8304 = vmatpush.bf16.msra.mxu3 %v12984_v27  ;;  %v7115_v27 = vld [vmem:[#allocation9 + $0xf] sm:$0xff] }
 0x8ac   : > { %7825 = vmatmul.bf16.vlgmr.msrb.gmra.mxu2 %v7750_v16 }
 0x8ad   : > { %7739 = vmatmul.bf16.gmra.mxu1 %v7660_v50  ;;  %v12983_v50 = vld [vmem:[%s16284_s9 + $0x310] sm:$0xff] }
 0x8ae   : > { %8305 = vmatpush.bf16.msra.mxu3 %v12983_v50 }
 0x8b4   : > { %7916 = vmatmul.bf16.vlgmr.msrb.gmra.mxu3 %v7841_v46 }
 0x8bc   : > { %7830 = vmatmul.bf16.gmra.mxu2 %v7751_v48 }
 0x8c4   : > { %7921 = vmatmul.bf16.gmra.mxu3 %v7842_v30  ;;  %v12958_v30 = vld [vmem:[%s16284_s9 + $0x248] sm:$0xff] }
 0x8c5   : > { %8127 = vmatpush.bf16.msrb.mxu1 %v12958_v30  ;;  %v12999_v30 = vld [vmem:[%s16284_s9 + $0x390] sm:$0xff] }
 0x8f2   : > { %v7283_v32 = vpop.f32.mrf.mxu0 }
 0x8f3   : > { %v7371_v34 = vpop.f32.mrf.mxu1 }
 0x8f7   : > { %v7217_v22 = vpop.f32.mrf.mxu3 }
 0x8f8   : > { %v7284_v58 = vadd.f32 %v7283_v32, %v7217_v22  ;;  %v12974_v32 = vld [vmem:[%s16284_s9 + $0x2c8] sm:$0xff] }
 0x8f9   : > { %v12982_v22 = vld [vmem:[%s16284_s9 + $0x308] sm:$0xff]  ;;  %8215 = vmatpush.bf16.msra.mxu2 %v12974_v32 }
 0x8fa   : > { %v15607_v10 = vpop.f32.mrf.mxu0  ;;  %v7380_v45 = vadd.f32 %v7371_v34, %v7284_v58  ;;  %8306 = vmatpush.bf16.msra.mxu3 %v12982_v22  ;;  %v13002_v58 = vld [vmem:[%s16284_s9 + $0x3a8] sm:$0xff]  ;;  %v13015_v22 = vld [vmem:[%s16284_s9 + $0x410] sm:$0xff] }
 0x8fb   : > { %v15609_v43 = vpop.f32.mrf.mxu1 }
 0x8ff   : > { %v7219_v2 = vpop.f32.mrf.mxu3 }
 0x900   : > { %v7286_v28 = vadd.f32 %v15607_v10, %v7219_v2  ;;  %v12965_v10 = vld [vmem:[%s16284_s9 + $0x280] sm:$0xff] }
 0x901   : > { %8062 = vmatpush.bf16.msrb.mxu0 %v12965_v10  ;;  %v7116_v10 = vld [vmem:[#allocation9 + $0x17] sm:$0x3f] }
 0x902   : > { %v15611_v7 = vpop.f32.mrf.mxu0  ;;  %v7381_v46 = vadd.f32 %v15609_v43, %v7286_v28  ;;  %v12957_v43 = vld [vmem:[%s16284_s9 + $0x240] sm:$0xff] }
 0x903   : > { %v15613_v21 = vpop.f32.mrf.mxu1  ;;  %8128 = vmatpush.bf16.msrb.mxu1 %v12957_v43 }
 0x907   : > { %v15615_v52 = vpop.f32.mrf.mxu3 }
 0x908   : > { %v7289_v2 = vadd.f32 %v15611_v7, %v15615_v52  ;;  %v13004_v7 = vld [vmem:[%s16284_s9 + $0x3b8] sm:$0xff] }
 0x909   : > { %8482 = vmatpush.bf16.msra.mxu1 %v13004_v7 }
 0x90a   : > { %v7290_v25 = vpop.f32.mrf.mxu0  ;;  %v7462_v29 = vpop.f32.mrf.mxu2 }
 0x90b   : > { %v7378_v18 = vpop.f32.mrf.mxu1  ;;  %v7471_v54 = vadd.f32 %v7462_v29, %v7380_v45  ;;  %v12973_v29 = vld [vmem:[%s16284_s9 + $0x2c0] sm:$0xff] }
 0x90c   : > { %8216 = vmatpush.bf16.msra.mxu2 %v12973_v29  ;;  %v13006_v29 = vld [vmem:[%s16284_s9 + $0x3c8] sm:$0xff] }
 0x90d   : > { %8483 = vmatpush.bf16.msra.mxu1 %v13003_v33 }
 0x90f   : > { %v7224_v4 = vpop.f32.mrf.mxu3 }
 0x910   : > { %v12981_v4 = vld [vmem:[%s16284_s9 + $0x300] sm:$0xff]  ;;  %8573 = vmatpush.bf16.msrb.mxu2 %v13012_v59 }
 0x911   : > { %8307 = vmatpush.bf16.msra.mxu3 %v12981_v4  ;;  %8484 = vmatpush.bf16.msra.mxu1 %v13002_v58  ;;  %v13014_v4 = vld [vmem:[%s16284_s9 + $0x408] sm:$0xff] }
 0x912   : > { %v15617_v8 = vpop.f32.mrf.mxu0  ;;  %v15631_v36 = vpop.f32.mrf.mxu2 }
 0x913   : > { %v7472_v34 = vadd.f32 %v15631_v36, %v7381_v46 }
 0x915   : > { %8664 = vmatpush.bf16.msrb.mxu3 %v13020_v57  ;;  %8485 = vmatpush.bf16.msra.mxu1 %v13001_v40  ;;  %v13023_v40 = vld [vmem:[%s16284_s9 + $0x450] sm:$0xff] }
 0x917   : > { %v7553_v44 = vpop.f32.mrf.mxu3 }
 0x918   : > { %v7562_v23 = vadd.f32 %v7553_v44, %v7471_v54  ;;  %v7382_v44 = vadd.f32 %v15613_v21, %v7289_v2  ;;  %v13011_v21 = vld [vmem:[%s16284_s9 + $0x3f0] sm:$0xff]  ;;  %v13017_v54 = vld [vmem:[%s16284_s9 + $0x420] sm:$0xff]  ;;  %v12990_v2 = vld [vmem:[%s16284_s9 + $0x348] sm:$0xff] }
 0x919   : > { %8574 = vmatpush.bf16.msrb.mxu2 %v13011_v21  ;;  %8486 = vmatpush.bf16.msra.mxu1 %v13000_v47  ;;  %v12997_v21 = vld [vmem:[%s16284_s9 + $0x380] sm:$0xff] }
 0x91a   : > { %v15633_v20 = vpop.f32.mrf.mxu0  ;;  %v15635_v1 = vpop.f32.mrf.mxu1  ;;  %v7653_v31 = vadd.f32 %v15617_v8, %v7562_v23  ;;  %v12996_v8 = vld [vmem:[%s16284_s9 + $0x378] sm:$0xff] }
 0x91b   : > { %8391 = vmatpush.bf16.msra.mxu0 %v12996_v8  ;;  %v15848_v8 = vpop.permute.xlu0 %7954 }
 0x91c   : > { %v7744_v25 = vadd.f32 %v15635_v1, %v7653_v31 }
 0x91d   : > { %8487 = vmatpush.bf16.msra.mxu1 %v12999_v30 }
 0x91f   : > { %v15649_v3 = vpop.f32.mrf.mxu2  ;;  %v15651_v5 = vpop.f32.mrf.mxu3  ;;  %8392 = vmatpush.bf16.msra.mxu0 %v12995_v6 }
 0x920   : > { %v7563_v18 = vadd.f32 %v15651_v5, %v7472_v34  ;;  %v7473_v26 = vadd.f32 %v15649_v3, %v7382_v44  ;;  %v12994_v3 = vld [vmem:[%s16284_s9 + $0x368] sm:$0xff]  ;;  %v13007_v34 = vld [vmem:[%s16284_s9 + $0x3d0] sm:$0xff] }
 0x922   : > { %v15653_v49 = vpop.f32.mrf.mxu0  ;;  %v15655_v37 = vpop.f32.mrf.mxu1  ;;  %v7654_v1 = vadd.f32 %v15633_v20, %v7563_v18  ;;  %v13019_v20 = vld [vmem:[%s16284_s9 + $0x430] sm:$0xff] }
 0x923   : > { %8665 = vmatpush.bf16.msrb.mxu3 %v13019_v20  ;;  %8393 = vmatpush.bf16.msra.mxu0 %v12994_v3  ;;  %v13026_v3 = vld [vmem:[%s16284_s9 + $0x468] sm:$0xff] }
 0x924   : > { %v7745_v17 = vadd.f32 %v15655_v37, %v7654_v1  ;;  %v13010_v37 = vld [vmem:[%s16284_s9 + $0x3e8] sm:$0xff] }
 0x925   : > { %8575 = vmatpush.bf16.msrb.mxu2 %v13010_v37 }
 0x927   : > { %v7469_v24 = vpop.f32.mrf.mxu2  ;;  %v15681_v60 = vpop.f32.mrf.mxu3  ;;  %8666 = vmatpush.bf16.msrb.mxu3 %v13018_v11  ;;  %8394 = vmatpush.bf16.msra.mxu0 %v12993_v56  ;;  %v13024_v56 = vld [vmem:[%s16284_s9 + $0x458] sm:$0xff] }
 0x928   : > { %v7564_v0 = vadd.f32 %v15681_v60, %v7473_v26 }
 0x92a   : > { %v7651_v39 = vpop.f32.mrf.mxu0  ;;  %v15683_v42 = vpop.f32.mrf.mxu1  ;;  %v7655_v60 = vadd.f32 %v15653_v49, %v7564_v0  ;;  %v13009_v49 = vld [vmem:[%s16284_s9 + $0x3e0] sm:$0xff]  ;;  %v13028_v0 = vld [vmem:[%s16284_s9 + $0x478] sm:$0xff] }
 0x92b   : > { %8576 = vmatpush.bf16.msrb.mxu2 %v13009_v49  ;;  %8667 = vmatpush.bf16.msrb.mxu3 %v13017_v54 }
 0x92c   : > { %v7746_v28 = vadd.f32 %v15683_v42, %v7655_v60  ;;  %v13016_v42 = vld [vmem:[%s16284_s9 + $0x418] sm:$0xff]  ;;  %8395 = vmatpush.bf16.msra.mxu0 %v12992_v13 }
 0x92f   : > { %v7560_v16 = vpop.f32.mrf.mxu3  ;;  %v7826_v41 = vpop.f32.mrf.mxu2  ;;  %8668 = vmatpush.bf16.msrb.mxu3 %v13016_v42  ;;  %v8596_v42 = vld [vmem:[#allocation7 + $0x1d] sm:$0x3f] }
 0x930   : > { %v7835_v52 = vadd.f32 %v7826_v41, %v7744_v25  ;;  %v13008_v16 = vld [vmem:[%s16284_s9 + $0x3d8] sm:$0xff]  ;;  %8396 = vmatpush.bf16.msra.mxu0 %v12991_v12  ;;  %v12998_v25 = vld [vmem:[%s16284_s9 + $0x388] sm:$0xff] }
 0x931   : > { %8577 = vmatpush.bf16.msrb.mxu2 %v13008_v16  ;;  %8488 = vmatpush.bf16.msra.mxu1 %v12998_v25 }
 0x932   : > { %v7742_v48 = vpop.f32.mrf.mxu1 }
 0x933   : > { %8669 = vmatpush.bf16.msrb.mxu3 %v13015_v22  ;;  %v8687_v22 = vld [vmem:[#allocation7 + $0x1e] sm:$0x3f] }
 0x934   : > { %8397 = vmatpush.bf16.msra.mxu0 %v12990_v2 }
 0x935   : > { %8578 = vmatpush.bf16.msrb.mxu2 %v13007_v34  ;;  %8489 = vmatpush.bf16.msra.mxu1 %v12997_v21  ;;  %v13043_v21 = vld [vmem:[%s16284_s9 + $0x4f0] sm:$0xff] }
 0x937   : > { %v7828_v63 = vpop.f32.mrf.mxu2  ;;  %v7917_v36 = vpop.f32.mrf.mxu3  ;;  %8670 = vmatpush.bf16.msrb.mxu3 %v13014_v4 }
 0x938   : > { %v7926_v61 = vadd.f32 %v7917_v36, %v7835_v52  ;;  %v7836_v15 = vadd.f32 %v7828_v63, %v7745_v17  ;;  %v13013_v17 = vld [vmem:[%s16284_s9 + $0x400] sm:$0xff] }
 0x939   : > { %8579 = vmatpush.bf16.msrb.mxu2 %v13006_v29 }
 0x93a   : > { %v7933_v5 = vadd.f32 %v15750_v55, %v7926_v61 }
 0x93b   : > { %8671 = vmatpush.bf16.msrb.mxu3 %v13013_v17  ;;  %v13035_v17 = vld [vmem:[%s16284_s9 + $0x4b0] sm:$0xff] }
 0x93c   : > { %v7936_v35 = vadd.f32 %v7933_v5, %v7114_v38  ;;  %v12989_v5 = vld [vmem:[%s16284_s9 + $0x340] sm:$0xff] }
 0x93d   : > { %v13005_v38 = vld [vmem:[%s16284_s9 + $0x3c0] sm:$0xff]  ;;  %8398 = vmatpush.bf16.msra.mxu0 %v12989_v5 }
 0x93e   : > { %v7939_v19 = vmax.f32 %v7936_v35, 0.0  ;;  %8580 = vmatpush.bf16.msrb.mxu2 %v13005_v38  ;;  %v13027_v35 = vld [vmem:[%s16284_s9 + $0x470] sm:$0xff] }
 0x93f   : > { %v7831_v62 = vpop.f32.mrf.mxu2  ;;  %v7919_v24 = vpop.f32.mrf.mxu3 }
 0x940   : > { %v15790_v45 = vmul.f32 %v13936_v51, %v7939_v19  ;;  %v7927_v39 = vadd.f32 %v7919_v24, %v7836_v15  ;;  %v7837_v14 = vadd.f32 %v7831_v62, %v7746_v28  ;;  %v13025_v24 = vld [vmem:[%s16284_s9 + $0x460] sm:$0xff] }
 0x942   : > { %7960 = vst [vmem:[#allocation7 + $0x7] sm:$0xff] %v15790_v45  ;;  %v7934_v53 = vadd.f32 %v15750_v55, %v7927_v39 }
 0x944   : > { %v7937_v23 = vadd.f32 %v7934_v53, %v7115_v27  ;;  %v13022_v53 = vld [vmem:[%s16284_s9 + $0x448] sm:$0xff] }
 0x946   : > { %v7940_v50 = vmax.f32 %v7937_v23, 0.0 }
 0x947   : > { %v7922_v41 = vpop.f32.mrf.mxu3  ;;  %v7833_v46 = vpop.f32.mrf.mxu2 }
 0x948   : > { %v15820_v31 = vmul.f32 %v13950_v9, %v7940_v50  ;;  %v7928_v48 = vadd.f32 %v7922_v41, %v7837_v14  ;;  %v13021_v14 = vld [vmem:[%s16284_s9 + $0x440] sm:$0xff] }
 0x949   : > { %v7985_v7 = vld [vmem:[#allocation7 + $0x1] sm:$0xff] }
 0x94a   : > { %7961 = vst [vmem:[#allocation7 + $0xf] sm:$0xff] %v15820_v31  ;;  %v7935_v32 = vadd.f32 %v15750_v55, %v7928_v48  ;;  %v7963_v59 = vld [vmem:[#allocation7] sm:$0xff]  ;;  %v8324_v28 = vpack.c.bf16 %v15820_v31, %v15790_v45  ;;  %v8598_v45 = vpack.c.bf16 %v8596_v42, %v8596_v42 }
 0x94b   : > { %v8139_v57 = vld [vmem:[#allocation7 + $0x2] sm:$0xff] }
 0x94c   : > { %v7938_v43 = vadd.f32 %v7935_v32, %v7116_v10  ;;  %v8230_v63 = vld [vmem:[#allocation7 + $0x6] sm:$0xff]  ;;  %v8689_v10 = vpack.c.bf16 %v8687_v22, %v8687_v22 }
 0x94e   : > { %v7941_v18 = vmax.f32 %v7938_v43, 0.0 }
 0x94f   : > { %v7924_v52 = vpop.f32.mrf.mxu3 }
 0x950   : > { %v7959_v55 = vmul.f32 %v15848_v8, %v7941_v18 }
 0x951   : > { %v7986_v36 = vld [vmem:[#allocation7 + $0x9] sm:$0xff]  ;;  %v7987_v58 = vld [vmem:[#allocation7 + $0x11] sm:$0x3f] }
 0x952   : > { %v7964_v44 = vld [vmem:[#allocation7 + $0x8] sm:$0xff]  ;;  %7962 = vst [vmem:[#allocation7 + $0x17] sm:$0x3f] %v7959_v55  ;;  %v7988_v61 = vpack.c.bf16 %v7986_v36, %v7985_v7  ;;  %v7965_v15 = vld [vmem:[#allocation7 + $0x10] sm:$0x3f]  ;;  %v7989_v11 = vpack.c.bf16 %v7987_v58, %v7987_v58 }
 0x953   : > { %v8140_v1 = vld [vmem:[#allocation7 + $0xa] sm:$0xff]  ;;  %v7966_v6 = vpack.c.bf16 %v7964_v44, %v7963_v59  ;;  %v7967_v62 = vpack.c.bf16 %v7965_v15, %v7965_v15 }
 0x954   : > { %v8142_v33 = vpack.c.bf16 %v8140_v1, %v8139_v57  ;;  %v15851_v26 = vld [vmem:[#allocation7 + $0xe] sm:$0xff]  ;;  %8063 = vmatmul.bf16.vlgmr.msrb.gmra.mxu0 %v7988_v61 }
 0x955   : > { %v8233_v20 = vpack.c.bf16 %v15851_v26, %v8230_v63  ;;  %8129 = vmatmul.bf16.vlgmr.msrb.gmra.mxu1 %v7966_v6  ;;  %8755 = vmatpush.bf16.msrb.mxu0 %v13028_v0  ;;  %v8503_v13 = vld [vmem:[#allocation7 + $0xc] sm:$0xff]  ;;  %v13051_v0 = vld [vmem:[%s16284_s9 + $0x530] sm:$0xff] }
 0x956   : > { %8217 = vmatmul.bf16.vlgmr.msra.gmra.mxu2 %v8142_v33  ;;  %v8594_v47 = vld [vmem:[#allocation7 + $0xd] sm:$0xff] }
 0x957   : > { %8308 = vmatmul.bf16.vlgmr.msra.gmra.mxu3 %v8233_v20  ;;  %v13044_v1 = vld [vmem:[%s16284_s9 + $0x4f8] sm:$0xff] }
 0x958   : > { %v13036_v61 = vld [vmem:[%s16284_s9 + $0x4b8] sm:$0xff]  ;;  %8888 = vmatpush.bf16.msrb.mxu1 %v13044_v1  ;;  %v13053_v1 = vld [vmem:[%s16284_s9 + $0x540] sm:$0xff] }
 0x959   : > { %8756 = vmatpush.bf16.msrb.mxu0 %v13027_v35  ;;  %v8141_v19 = vld [vmem:[#allocation7 + $0x12] sm:$0x3f]  ;;  %v8414_v46 = vld [vmem:[#allocation7 + $0x18] sm:$0x3f]  ;;  %v13052_v6 = vld [vmem:[%s16284_s9 + $0x538] sm:$0xff]  ;;  %8954 = vmatpush.bf16.msra.mxu2 %v13036_v61 }
 0x95a   : > { %v8232_v37 = vld [vmem:[#allocation7 + $0x16] sm:$0x3f]  ;;  %v8143_v60 = vpack.c.bf16 %v8141_v19, %v8141_v19  ;;  %v8505_v48 = vld [vmem:[#allocation7 + $0x1c] sm:$0x3f]  ;;  %v8416_v12 = vpack.c.bf16 %v8414_v46, %v8414_v46  ;;  %v13060_v33 = vld [vmem:[%s16284_s9 + $0x578] sm:$0xff]  ;;  %9042 = vmatpush.bf16.msra.mxu3 %v13052_v6 }
 0x95b   : > { %v8234_v39 = vpack.c.bf16 %v8232_v37, %v8232_v37  ;;  %v8413_v49 = vld [vmem:[#allocation7 + $0x10] sm:$0xff]  ;;  %v8507_v30 = vpack.c.bf16 %v8505_v48, %v8505_v48  ;;  %v13059_v35 = vld [vmem:[%s16284_s9 + $0x570] sm:$0xff]  ;;  %v13042_v37 = vld [vmem:[%s16284_s9 + $0x4e8] sm:$0xff] }
 0x95c   : > { %v8504_v54 = vld [vmem:[#allocation7 + $0x14] sm:$0xff]  ;;  %v8415_v23 = vpack.c.bf16 %v8413_v49, %v7964_v44  ;;  %8889 = vmatpush.bf16.msrb.mxu1 %v13043_v21  ;;  %v13047_v46 = vld [vmem:[%s16284_s9 + $0x510] sm:$0xff]  ;;  %v13068_v61 = vld [vmem:[%s16284_s9 + $0x5b8] sm:$0xff] }
 0x95d   : > { %8757 = vmatpush.bf16.msrb.mxu0 %v13026_v3  ;;  %v8595_v27 = vld [vmem:[#allocation7 + $0x15] sm:$0xff]  ;;  %v8506_v50 = vpack.c.bf16 %v8504_v54, %v8503_v13  ;;  %8955 = vmatpush.bf16.msra.mxu2 %v13035_v17  ;;  %v13040_v13 = vld [vmem:[%s16284_s9 + $0x4d8] sm:$0xff]  ;;  %v13055_v48 = vld [vmem:[%s16284_s9 + $0x550] sm:$0xff] }
 0x95e   : > { %v8597_v16 = vpack.c.bf16 %v8595_v27, %v8594_v47  ;;  %v8323_v41 = vld [vmem:[#allocation7 + $0x17] sm:$0x3f]  ;;  %9043 = vmatpush.bf16.msra.mxu3 %v13051_v0  ;;  %v13032_v47 = vld [vmem:[%s16284_s9 + $0x498] sm:$0xff]  ;;  %v13067_v0 = vld [vmem:[%s16284_s9 + $0x5b0] sm:$0xff] }
 0x95f   : > { %v8325_v31 = vpack.c.bf16 %v8323_v41, %v8323_v41  ;;  %v8686_v32 = vld [vmem:[#allocation7 + $0x16] sm:$0xff]  ;;  %v13031_v41 = vld [vmem:[%s16284_s9 + $0x490] sm:$0xff]  ;;  %v13076_v6 = vld [vmem:[%s16284_s9 + $0x5f8] sm:$0xff] }
 0x960   : > { %v8688_v34 = vpack.c.bf16 %v8686_v32, %v15851_v26  ;;  %8890 = vmatpush.bf16.msrb.mxu1 %v13042_v37 }
 0x961   : > { %8758 = vmatpush.bf16.msrb.mxu0 %v13025_v24  ;;  %v13058_v24 = vld [vmem:[%s16284_s9 + $0x568] sm:$0xff] }
 0x964   : > { %8068 = vmatmul.bf16.gmra.mxu0 %v7989_v11  ;;  %v13034_v11 = vld [vmem:[%s16284_s9 + $0x4a8] sm:$0xff] }
 0x965   : > { %8134 = vmatmul.bf16.gmra.mxu1 %v7967_v62  ;;  %8759 = vmatpush.bf16.msrb.mxu0 %v13024_v56  ;;  %v13050_v62 = vld [vmem:[%s16284_s9 + $0x528] sm:$0xff]  ;;  %v13049_v56 = vld [vmem:[%s16284_s9 + $0x520] sm:$0xff] }
 0x966   : > { %8222 = vmatmul.bf16.gmra.mxu2 %v8143_v60  ;;  %v13041_v60 = vld [vmem:[%s16284_s9 + $0x4e0] sm:$0xff]  ;;  %9044 = vmatpush.bf16.msra.mxu3 %v13050_v62 }
 0x967   : > { %8313 = vmatmul.bf16.gmra.mxu3 %v8234_v39  ;;  %8956 = vmatpush.bf16.msra.mxu2 %v13034_v11  ;;  %v13033_v39 = vld [vmem:[%s16284_s9 + $0x4a0] sm:$0xff] }
 0x968   : > { %8891 = vmatpush.bf16.msrb.mxu1 %v13041_v60 }
 0x969   : > { %8760 = vmatpush.bf16.msrb.mxu0 %v13023_v40  ;;  %v13057_v40 = vld [vmem:[%s16284_s9 + $0x560] sm:$0xff] }
 0x96a   : > { %9045 = vmatpush.bf16.msra.mxu3 %v13049_v56  ;;  %v13090_v56 = vld [vmem:[%s16284_s9 + $0x668] sm:$0xff] }
 0x96b   : > { %8957 = vmatpush.bf16.msra.mxu2 %v13033_v39 }
 0x96c   : > { %8892 = vmatpush.bf16.msrb.mxu1 %v13040_v13 }
 0x96d   : > { %8761 = vmatpush.bf16.msrb.mxu0 %v13022_v53 }
 0x96f   : > { %8958 = vmatpush.bf16.msra.mxu2 %v13032_v47 }
 0x971   : > { %8762 = vmatpush.bf16.msrb.mxu0 %v13021_v14  ;;  %v13048_v14 = vld [vmem:[%s16284_s9 + $0x518] sm:$0xff] }
 0x972   : > { %9046 = vmatpush.bf16.msra.mxu3 %v13048_v14  ;;  %v13089_v14 = vld [vmem:[%s16284_s9 + $0x660] sm:$0xff] }
 0x973   : > { %8959 = vmatpush.bf16.msra.mxu2 %v13031_v41 }
 0x974   : > { %8399 = vmatmul.bf16.vlgmr.msra.gmra.mxu0 %v8324_v28 }
 0x975   : > { %8490 = vmatmul.bf16.vlgmr.msra.gmra.mxu1 %v8415_v23  ;;  %9133 = vmatpush.bf16.msra.mxu0 %v13060_v33 }
 0x976   : > { %8581 = vmatmul.bf16.vlgmr.msrb.gmra.mxu2 %v8506_v50  ;;  %v13056_v50 = vld [vmem:[%s16284_s9 + $0x558] sm:$0xff]  ;;  %9047 = vmatpush.bf16.msra.mxu3 %v13047_v46 }
 0x977   : > { %8672 = vmatmul.bf16.vlgmr.msrb.gmra.mxu3 %v8597_v16  ;;  %v13039_v16 = vld [vmem:[%s16284_s9 + $0x4d0] sm:$0xff]  ;;  %v13080_v46 = vld [vmem:[%s16284_s9 + $0x618] sm:$0xff] }
 0x978   : > { %8893 = vmatpush.bf16.msrb.mxu1 %v13039_v16 }
 0x979   : > { %9134 = vmatpush.bf16.msra.mxu0 %v13059_v35 }
 0x97d   : > { %9135 = vmatpush.bf16.msra.mxu0 %v13058_v24  ;;  %v13074_v24 = vld [vmem:[%s16284_s9 + $0x5e8] sm:$0xff] }
 0x981   : > { %9136 = vmatpush.bf16.msra.mxu0 %v13057_v40 }
 0x984   : > { %8404 = vmatmul.bf16.gmra.mxu0 %v8325_v31 }
 0x985   : > { %8495 = vmatmul.bf16.gmra.mxu1 %v8416_v12  ;;  %9137 = vmatpush.bf16.msra.mxu0 %v13056_v50 }
 0x986   : > { %8586 = vmatmul.bf16.gmra.mxu2 %v8507_v30 }
 0x987   : > { %8677 = vmatmul.bf16.gmra.mxu3 %v8598_v45 }
 0x989   : > { %9138 = vmatpush.bf16.msra.mxu0 %v13055_v48  ;;  %v13088_v48 = vld [vmem:[%s16284_s9 + $0x658] sm:$0xff] }
 0x994   : > { %8763 = vmatmul.bf16.vlgmr.msrb.gmra.mxu0 %v8688_v34 }
 0x9a4   : > { %8768 = vmatmul.bf16.gmra.mxu0 %v8689_v10  ;;  %v13038_v10 = vld [vmem:[%s16284_s9 + $0x4c8] sm:$0xff] }
 0x9a5   : > { %8894 = vmatpush.bf16.msrb.mxu1 %v13038_v10  ;;  %v13087_v10 = vld [vmem:[%s16284_s9 + $0x650] sm:$0xff] }
 0x9d1   : > { %v8064_v43 = vpop.f32.mrf.mxu0 }
 0x9d2   : > { %v8130_v2 = vpop.f32.mrf.mxu1 }
 0x9d3   : > { %v8131_v53 = vadd.f32 %v8130_v2, %v8064_v43  ;;  %v13030_v43 = vld [vmem:[%s16284_s9 + $0x488] sm:$0xff] }
 0x9d4   : > { %v13046_v2 = vld [vmem:[%s16284_s9 + $0x508] sm:$0xff]  ;;  %8960 = vmatpush.bf16.msra.mxu2 %v13030_v43 }
 0x9d5   : > { %9048 = vmatpush.bf16.msra.mxu3 %v13046_v2  ;;  %v13062_v2 = vld [vmem:[%s16284_s9 + $0x588] sm:$0xff] }
 0x9d9   : > { %v8218_v25 = vpop.f32.mrf.mxu2  ;;  %v15895_v29 = vpop.f32.mrf.mxu0 }
 0x9da   : > { %v15893_v18 = vpop.f32.mrf.mxu3  ;;  %v15897_v4 = vpop.f32.mrf.mxu1  ;;  %v8227_v49 = vadd.f32 %v8218_v25, %v8131_v53 }
 0x9db   : > { %v8133_v45 = vadd.f32 %v15897_v4, %v15895_v29  ;;  %v13037_v29 = vld [vmem:[%s16284_s9 + $0x4c0] sm:$0xff] }
 0x9dc   : > { %v8318_v42 = vadd.f32 %v15893_v18, %v8227_v49  ;;  %v13054_v18 = vld [vmem:[%s16284_s9 + $0x548] sm:$0xff]  ;;  %v13029_v4 = vld [vmem:[%s16284_s9 + $0x480] sm:$0xff]  ;;  %8895 = vmatpush.bf16.msrb.mxu1 %v13037_v29 }
 0x9dd   : > { %9139 = vmatpush.bf16.msra.mxu0 %v13054_v18  ;;  %8961 = vmatpush.bf16.msra.mxu2 %v13029_v4  ;;  %v13078_v29 = vld [vmem:[%s16284_s9 + $0x608] sm:$0xff] }
 0x9de   : > { %v13086_v4 = vld [vmem:[%s16284_s9 + $0x648] sm:$0xff] }
 0x9e0   : > { %9224 = vmatpush.bf16.msra.mxu1 %v13068_v61 }
 0x9e1   : > { %v15899_v7 = vpop.f32.mrf.mxu2  ;;  %v15903_v55 = vpop.f32.mrf.mxu0  ;;  %9140 = vmatpush.bf16.msra.mxu0 %v13053_v1  ;;  %9315 = vmatpush.bf16.msrb.mxu2 %v13076_v6 }
 0x9e2   : > { %v15901_v52 = vpop.f32.mrf.mxu3  ;;  %v15905_v59 = vpop.f32.mrf.mxu1  ;;  %v8228_v12 = vadd.f32 %v15899_v7, %v8133_v45 }
 0x9e4   : > { %v8319_v7 = vadd.f32 %v15901_v52, %v8228_v12  ;;  %v8136_v52 = vadd.f32 %v15905_v59, %v15903_v55  ;;  %v16050_v55 = vld [vmem:[%s16285_s10 + $0x1] ss:$0 sm:$0xff]  ;;  %9225 = vmatpush.bf16.msra.mxu1 %v13067_v0 }
 0x9e5   : > { %v13077_v0 = vld [vmem:[%s16284_s9 + $0x600] sm:$0xff] }
 0x9e9   : > { %v15907_v57 = vpop.f32.mrf.mxu2  ;;  %v8071_v36 = vpop.f32.mrf.mxu0 }
 0x9ea   : > { %v15909_v63 = vpop.f32.mrf.mxu3  ;;  %v8137_v44 = vpop.f32.mrf.mxu1  ;;  %v8229_v21 = vadd.f32 %v15907_v57, %v8136_v52  ;;  %v13075_v57 = vld [vmem:[%s16284_s9 + $0x5f0] sm:$0xff] }
 0x9eb   : > { %v13045_v44 = vld [vmem:[%s16284_s9 + $0x500] sm:$0xff]  ;;  %9316 = vmatpush.bf16.msrb.mxu2 %v13075_v57 }
 0x9ec   : > { %9049 = vmatpush.bf16.msra.mxu3 %v13045_v44  ;;  %v8320_v37 = vadd.f32 %v15909_v63, %v8229_v21  ;;  %v13082_v63 = vld [vmem:[%s16284_s9 + $0x628] sm:$0xff]  ;;  %v13085_v57 = vld [vmem:[%s16284_s9 + $0x640] sm:$0xff] }
 0x9ef   : > { %9317 = vmatpush.bf16.msrb.mxu2 %v13074_v24 }
 0x9f1   : > { %v8225_v26 = vpop.f32.mrf.mxu2  ;;  %v8400_v20 = vpop.f32.mrf.mxu0 }
 0x9f2   : > { %v8316_v5 = vpop.f32.mrf.mxu3  ;;  %v8491_v38 = vpop.f32.mrf.mxu1  ;;  %v8409_v31 = vadd.f32 %v8400_v20, %v8318_v42  ;;  %v13084_v26 = vld [vmem:[%s16284_s9 + $0x638] sm:$0xff] }
 0x9f3   : > { %v13092_v5 = vld [vmem:[%s16284_s9 + $0x678] sm:$0xff]  ;;  %9406 = vmatpush.bf16.msrb.mxu3 %v13084_v26 }
 0x9f4   : > { %v8500_v25 = vadd.f32 %v8491_v38, %v8409_v31  ;;  %9497 = vmatpush.bf16.msrb.mxu0 %v13092_v5  ;;  %v13072_v42 = vld [vmem:[%s16284_s9 + $0x5d8] sm:$0xff] }
 0x9f9   : > { %v8582_v3 = vpop.f32.mrf.mxu2  ;;  %v15937_v15 = vpop.f32.mrf.mxu0 }
 0x9fa   : > { %v15935_v58 = vpop.f32.mrf.mxu3  ;;  %v15939_v19 = vpop.f32.mrf.mxu1  ;;  %v8591_v36 = vadd.f32 %v8582_v3, %v8500_v25  ;;  %v8410_v33 = vadd.f32 %v15937_v15, %v8319_v7  ;;  %v13091_v15 = vld [vmem:[%s16284_s9 + $0x670] sm:$0xff]  ;;  %v13070_v25 = vld [vmem:[%s16284_s9 + $0x5c8] sm:$0xff] }
 0x9fb   : > { %9498 = vmatpush.bf16.msrb.mxu0 %v13091_v15 }
 0x9fc   : > { %v8682_v20 = vadd.f32 %v15935_v58, %v8591_v36  ;;  %v8501_v35 = vadd.f32 %v15939_v19, %v8410_v33  ;;  %v13083_v58 = vld [vmem:[%s16284_s9 + $0x630] sm:$0xff]  ;;  %v13066_v19 = vld [vmem:[%s16284_s9 + $0x5a8] sm:$0xff] }
 0x9fd   : > { %9407 = vmatpush.bf16.msrb.mxu3 %v13083_v58  ;;  %9226 = vmatpush.bf16.msra.mxu1 %v13066_v19  ;;  %v13098_v58 = vld [vmem:[%s16284_s9 + $0x6a8] sm:$0xff] }
 0x9ff   : > { %9499 = vmatpush.bf16.msrb.mxu0 %v13090_v56  ;;  %v13096_v56 = vld [vmem:[%s16284_s9 + $0x698] sm:$0xff] }
 0xa01   : > { %v15965_v54 = vpop.f32.mrf.mxu2  ;;  %v15969_v28 = vpop.f32.mrf.mxu0  ;;  %9408 = vmatpush.bf16.msrb.mxu3 %v13082_v63 }
 0xa02   : > { %v15967_v27 = vpop.f32.mrf.mxu3  ;;  %v15971_v23 = vpop.f32.mrf.mxu1  ;;  %v8592_v11 = vadd.f32 %v15965_v54, %v8501_v35  ;;  %v8411_v60 = vadd.f32 %v15969_v28, %v8320_v37  ;;  %v13065_v54 = vld [vmem:[%s16284_s9 + $0x5a0] sm:$0xff]  ;;  %v13100_v35 = vld [vmem:[%s16284_s9 + $0x6b8] sm:$0xff] }
 0xa03   : > { %v13073_v28 = vld [vmem:[%s16284_s9 + $0x5e0] sm:$0xff]  ;;  %9227 = vmatpush.bf16.msra.mxu1 %v13065_v54  ;;  %9500 = vmatpush.bf16.msrb.mxu0 %v13089_v14 }
 0xa04   : > { %v8683_v40 = vadd.f32 %v15967_v27, %v8592_v11  ;;  %v8502_v13 = vadd.f32 %v15971_v23, %v8411_v60  ;;  %v13081_v27 = vld [vmem:[%s16284_s9 + $0x620] sm:$0xff]  ;;  %9318 = vmatpush.bf16.msrb.mxu2 %v13073_v28  ;;  %v13064_v23 = vld [vmem:[%s16284_s9 + $0x598] sm:$0xff] }
 0xa05   : > { %9409 = vmatpush.bf16.msrb.mxu3 %v13081_v27  ;;  %v13097_v60 = vld [vmem:[%s16284_s9 + $0x6a0] sm:$0xff] }
 0xa07   : > { %9228 = vmatpush.bf16.msra.mxu1 %v13064_v23  ;;  %9501 = vmatpush.bf16.msrb.mxu0 %v13088_v48 }
 0xa08   : > { %9319 = vmatpush.bf16.msrb.mxu2 %v13072_v42 }
 0xa09   : > { %v16001_v30 = vpop.f32.mrf.mxu2  ;;  %v8407_v34 = vpop.f32.mrf.mxu0  ;;  %9410 = vmatpush.bf16.msrb.mxu3 %v13080_v46 }
 0xa0a   : > { %v16003_v32 = vpop.f32.mrf.mxu3  ;;  %v8498_v22 = vpop.f32.mrf.mxu1  ;;  %v8593_v50 = vadd.f32 %v16001_v30, %v8502_v13  ;;  %v13063_v30 = vld [vmem:[%s16284_s9 + $0x590] sm:$0xff] }
 0xa0b   : > { %v13071_v34 = vld [vmem:[%s16284_s9 + $0x5d0] sm:$0xff]  ;;  %9229 = vmatpush.bf16.msra.mxu1 %v13063_v30  ;;  %9502 = vmatpush.bf16.msrb.mxu0 %v13087_v10 }
 0xa0c   : > { %v8684_v45 = vadd.f32 %v16003_v32, %v8593_v50  ;;  %v13079_v32 = vld [vmem:[%s16284_s9 + $0x610] sm:$0xff]  ;;  %9320 = vmatpush.bf16.msrb.mxu2 %v13071_v34 }
 0xa0d   : > { %9411 = vmatpush.bf16.msrb.mxu3 %v13079_v32  ;;  %v9520_v32 = vld [vmem:[#allocation8 + $0x1e] sm:$0x3f] }
 0xa0e   : > { %v9522_v10 = vpack.c.bf16 %v9520_v32, %v9520_v32 }
 0xa0f   : > { %9230 = vmatpush.bf16.msra.mxu1 %v13062_v2  ;;  %9503 = vmatpush.bf16.msrb.mxu0 %v13086_v4 }
 0xa10   : > { %9321 = vmatpush.bf16.msrb.mxu2 %v13070_v25 }
 0xa11   : > { %v8589_v38 = vpop.f32.mrf.mxu2  ;;  %v8764_v17 = vpop.f32.mrf.mxu0  ;;  %9412 = vmatpush.bf16.msrb.mxu3 %v13078_v29 }
 0xa12   : > { %v8680_v59 = vpop.f32.mrf.mxu3  ;;  %v8773_v3 = vadd.f32 %v8764_v17, %v8682_v20 }
 0xa13   : > { %v13069_v59 = vld [vmem:[%s16284_s9 + $0x5c0] sm:$0xff]  ;;  %9504 = vmatpush.bf16.msrb.mxu0 %v13085_v57 }
 0xa14   : > { %v8781_v62 = vadd.f32 %v16050_v55, %v8773_v3  ;;  %9322 = vmatpush.bf16.msrb.mxu2 %v13069_v59  ;;  %v13099_v3 = vld [vmem:[%s16284_s9 + $0x6b0] sm:$0xff] }
 0xa15   : > { %9413 = vmatpush.bf16.msrb.mxu3 %v13077_v0 }
 0xa16   : > { %v8784_v39 = vmax.f32 %v8781_v62, 0.0 }
 0xa18   : > { %v16083_v53 = vmul.f32 %v8784_v39, %v13936_v51 }
 0xa19   : > { %v8766_v49 = vpop.f32.mrf.mxu0 }
 0xa1a   : > { %8790 = vst [vmem:[#allocation8 + $0x7] sm:$0xff] %v16083_v53  ;;  %v8774_v47 = vadd.f32 %v8766_v49, %v8683_v40  ;;  %v13095_v40 = vld [vmem:[%s16284_s9 + $0x690] sm:$0xff]  ;;  %v13094_v49 = vld [vmem:[%s16284_s9 + $0x688] sm:$0xff] }
 0xa1c   : > { %v8782_v16 = vadd.f32 %v16050_v55, %v8774_v47 }
 0xa1e   : > { %v8785_v41 = vmax.f32 %v8782_v16, 0.0  ;;  %v13093_v16 = vld [vmem:[%s16284_s9 + $0x680] sm:$0xff] }
 0xa20   : > { %v16115_v31 = vmul.f32 %v8785_v41, %v13950_v9  ;;  %v9429_v41 = vld [vmem:[#allocation8 + $0x1d] sm:$0x3f] }
 0xa21   : > { %v8769_v12 = vpop.f32.mrf.mxu0  ;;  %v8818_v7 = vld [vmem:[#allocation8 + $0x1] sm:$0xff] }
 0xa22   : > { %8791 = vst [vmem:[#allocation8 + $0xf] sm:$0xff] %v16115_v31  ;;  %v8775_v22 = vadd.f32 %v8769_v12, %v8684_v45  ;;  %v8796_v44 = vld [vmem:[#allocation8] sm:$0xff]  ;;  %v9157_v47 = vpack.c.bf16 %v16115_v31, %v16083_v53  ;;  %v9431_v53 = vpack.c.bf16 %v9429_v41, %v9429_v41  ;;  %v13159_v41 = vld [vmem:[%s16285_s10 + $0x2] ss:$0 sm:$0xff] }
 0xa23   : > { %v8972_v1 = vld [vmem:[#allocation8 + $0x2] sm:$0xff] }
 0xa24   : > { %v8783_v43 = vadd.f32 %v16050_v55, %v8775_v22  ;;  %v9063_v61 = vld [vmem:[#allocation8 + $0x6] sm:$0xff] }
 0xa25   : > { %v13061_v55 = vld [vmem:[%s16284_s9 + $0x580] sm:$0xff] }
 0xa26   : > { %v8786_v18 = vmax.f32 %v8783_v43, 0.0  ;;  %9231 = vmatpush.bf16.msra.mxu1 %v13061_v55 }
 0xa28   : > { %v8789_v36 = vmul.f32 %v8786_v18, %v15848_v8 }
 0xa29   : > { %v8819_v6 = vld [vmem:[#allocation8 + $0x9] sm:$0xff]  ;;  %v8771_v26 = vpop.f32.mrf.mxu0  ;;  %v8820_v15 = vld [vmem:[#allocation8 + $0x11] sm:$0x3f] }
 0xa2a   : > { %v8797_v52 = vld [vmem:[#allocation8 + $0x8] sm:$0xff]  ;;  %8792 = vst [vmem:[#allocation8 + $0x17] sm:$0x3f] %v8789_v36  ;;  %v8821_v5 = vpack.c.bf16 %v8819_v6, %v8818_v7  ;;  %v8798_v37 = vld [vmem:[#allocation8 + $0x10] sm:$0x3f]  ;;  %v8822_v19 = vpack.c.bf16 %v8820_v15, %v8820_v15 }
 0xa2b   : > { %v8973_v33 = vld [vmem:[#allocation8 + $0xa] sm:$0xff]  ;;  %v8799_v21 = vpack.c.bf16 %v8797_v52, %v8796_v44  ;;  %v8800_v24 = vpack.c.bf16 %v8798_v37, %v8798_v37 }
 0xa2c   : > { %v8975_v20 = vpack.c.bf16 %v8973_v33, %v8972_v1  ;;  %v16144_v38 = vld [vmem:[#allocation8 + $0xe] sm:$0xff]  ;;  %8896 = vmatmul.bf16.vlgmr.msrb.gmra.mxu1 %v8821_v5 }
 0xa2d   : > { %v9066_v17 = vpack.c.bf16 %v16144_v38, %v9063_v61  ;;  %8962 = vmatmul.bf16.vlgmr.msra.gmra.mxu2 %v8799_v21  ;;  %9588 = vmatpush.bf16.msrb.mxu1 %v13100_v35  ;;  %v9336_v14 = vld [vmem:[#allocation8 + $0xc] sm:$0xff] }
 0xa2e   : > { %9050 = vmatmul.bf16.vlgmr.msra.gmra.mxu3 %v8975_v20  ;;  %v9427_v50 = vld [vmem:[#allocation8 + $0xd] sm:$0xff] }
 0xa2f   : > { %9141 = vmatmul.bf16.vlgmr.msra.gmra.mxu0 %v9066_v17 }
 0xa31   : > { %9589 = vmatpush.bf16.msrb.mxu1 %v13099_v3  ;;  %v8974_v11 = vld [vmem:[#allocation8 + $0x12] sm:$0x3f]  ;;  %v9247_v48 = vld [vmem:[#allocation8 + $0x18] sm:$0x3f] }
 0xa32   : > { %v9065_v62 = vld [vmem:[#allocation8 + $0x16] sm:$0x3f]  ;;  %v8976_v39 = vpack.c.bf16 %v8974_v11, %v8974_v11  ;;  %v9338_v45 = vld [vmem:[#allocation8 + $0x1c] sm:$0x3f]  ;;  %v9249_v12 = vpack.c.bf16 %v9247_v48, %v9247_v48 }
 0xa33   : > { %v9067_v63 = vpack.c.bf16 %v9065_v62, %v9065_v62  ;;  %v9246_v54 = vld [vmem:[#allocation8 + $0x10] sm:$0xff]  ;;  %v9340_v30 = vpack.c.bf16 %v9338_v45, %v9338_v45 }
 0xa34   : > { %v9337_v28 = vld [vmem:[#allocation8 + $0x14] sm:$0xff]  ;;  %v9248_v27 = vpack.c.bf16 %v9246_v54, %v8797_v52 }
 0xa35   : > { %9590 = vmatpush.bf16.msrb.mxu1 %v13098_v58  ;;  %v9428_v13 = vld [vmem:[#allocation8 + $0x15] sm:$0xff]  ;;  %v9339_v23 = vpack.c.bf16 %v9337_v28, %v9336_v14  ;;  %v9669_v28 = vld [vmem:[%s16286_s11 + $0x78] sm:$0xff] }
 0xa36   : > { %v9430_v42 = vpack.c.bf16 %v9428_v13, %v9427_v50  ;;  %v9156_v46 = vld [vmem:[#allocation8 + $0x17] sm:$0x3f]  ;;  %9671 = vmatpush.msra.mxu2 %v9669_v28 }
 0xa37   : > { %v9158_v31 = vpack.c.bf16 %v9156_v46, %v9156_v46  ;;  %v9519_v34 = vld [vmem:[#allocation8 + $0x16] sm:$0xff]  ;;  %v9666_v46 = vld [vmem:[%s16286_s11 + $0x60] sm:$0xff] }
 0xa38   : > { %v9521_v22 = vpack.c.bf16 %v9519_v34, %v16144_v38  ;;  %v9668_v13 = vld [vmem:[%s16286_s11 + $0x70] sm:$0xff] }
 0xa39   : > { %9591 = vmatpush.bf16.msrb.mxu1 %v13097_v60  ;;  %9672 = vmatpush.msra.mxu2 %v9668_v13  ;;  %v9664_v34 = vld [vmem:[%s16286_s11 + $0x50] sm:$0xff] }
 0xa3c   : > { %8901 = vmatmul.bf16.gmra.mxu1 %v8822_v19 }
 0xa3d   : > { %8967 = vmatmul.bf16.gmra.mxu2 %v8800_v24  ;;  %9592 = vmatpush.bf16.msrb.mxu1 %v13096_v56 }
 0xa3e   : > { %9055 = vmatmul.bf16.gmra.mxu3 %v8976_v39 }
 0xa3f   : > { %9146 = vmatmul.bf16.gmra.mxu0 %v9067_v63 }
 0xa41   : > { %9593 = vmatpush.bf16.msrb.mxu1 %v13095_v40 }
 0xa45   : > { %9594 = vmatpush.bf16.msrb.mxu1 %v13094_v49 }
 0xa49   : > { %9595 = vmatpush.bf16.msrb.mxu1 %v13093_v16 }
 0xa4c   : > { %9232 = vmatmul.bf16.vlgmr.msra.gmra.mxu1 %v9157_v47 }
 0xa4d   : > { %9323 = vmatmul.bf16.vlgmr.msrb.gmra.mxu2 %v9248_v27  ;;  %v9667_v27 = vld [vmem:[%s16286_s11 + $0x68] sm:$0xff] }
 0xa4e   : > { %9414 = vmatmul.bf16.vlgmr.msrb.gmra.mxu3 %v9339_v23  ;;  %9673 = vmatpush.msra.mxu2 %v9667_v27 }
 0xa4f   : > { %9505 = vmatmul.bf16.vlgmr.msrb.gmra.mxu0 %v9430_v42 }
 0xa50   : > { %9674 = vmatpush.msra.mxu2 %v9666_v46 }
 0xa5c   : > { %9237 = vmatmul.bf16.gmra.mxu1 %v9158_v31 }
 0xa5d   : > { %9328 = vmatmul.bf16.gmra.mxu2 %v9249_v12 }
 0xa5e   : > { %9419 = vmatmul.bf16.gmra.mxu3 %v9340_v30 }
 0xa5f   : > { %9510 = vmatmul.bf16.gmra.mxu0 %v9431_v53  ;;  %v9665_v53 = vld [vmem:[%s16286_s11 + $0x58] sm:$0xff] }
 0xa60   : > { %9675 = vmatpush.msra.mxu2 %v9665_v53 }
 0xa62   : > { %9676 = vmatpush.msra.mxu2 %v9664_v34 }
 0xa6c   : > { %9596 = vmatmul.bf16.vlgmr.msrb.gmra.mxu1 %v9521_v22  ;;  %v8793_v22 = vld [vmem:[#allocation7 + $0x7] sm:$0xff] }
 0xa7c   : > { %9601 = vmatmul.bf16.gmra.mxu1 %v9522_v10 }
 0xaa9   : > { %v8897_v43 = vpop.f32.mrf.mxu1 }
 0xaac   : > { %v9142_v2 = vpop.f32.mrf.mxu0 }
 0xab0   : > { %v8963_v25 = vpop.f32.mrf.mxu2 }
 0xab1   : > { %v9051_v18 = vpop.f32.mrf.mxu3  ;;  %v8899_v29 = vpop.f32.mrf.mxu1  ;;  %v8964_v0 = vadd.f32 %v8963_v25, %v8897_v43  ;;  %v9663_v43 = vld [vmem:[%s16286_s11 + $0x48] sm:$0xff] }
 0xab2   : > { %9677 = vmatpush.msra.mxu2 %v9663_v43 }
 0xab3   : > { %v9060_v35 = vadd.f32 %v9051_v18, %v8964_v0  ;;  %v9656_v0 = vld [vmem:[%s16286_s11 + $0x10] sm:$0xff] }
 0xab4   : > { %v9144_v4 = vpop.f32.mrf.mxu0 }
 0xab5   : > { %v9151_v11 = vadd.f32 %v9142_v2, %v9060_v35 }
 0xab8   : > { %v8965_v7 = vpop.f32.mrf.mxu2 }
 0xab9   : > { %v9053_v36 = vpop.f32.mrf.mxu3  ;;  %v8902_v44 = vpop.f32.mrf.mxu1  ;;  %v8966_v37 = vadd.f32 %v8965_v7, %v8899_v29  ;;  %v9662_v29 = vld [vmem:[%s16286_s11 + $0x40] sm:$0xff] }
 0xaba   : > { %9678 = vmatpush.msra.mxu2 %v9662_v29 }
 0xabb   : > { %v9061_v24 = vadd.f32 %v9053_v36, %v8966_v37 }
 0xabc   : > { %v9147_v1 = vpop.f32.mrf.mxu0 }
 0xabd   : > { %v9152_v54 = vadd.f32 %v9144_v4, %v9061_v24 }
 0xac0   : > { %v8968_v61 = vpop.f32.mrf.mxu2 }
 0xac1   : > { %v9056_v6 = vpop.f32.mrf.mxu3  ;;  %v8904_v52 = vpop.f32.mrf.mxu1  ;;  %v8969_v40 = vadd.f32 %v8968_v61, %v8902_v44  ;;  %v9661_v44 = vld [vmem:[%s16286_s11 + $0x38] sm:$0xff] }
 0xac2   : > { %v8794_v52 = vld [vmem:[#allocation7 + $0xf] sm:$0xff]  ;;  %9679 = vmatpush.msra.mxu2 %v9661_v44 }
 0xac3   : > { %v9062_v50 = vadd.f32 %v9056_v6, %v8969_v40  ;;  %v9660_v6 = vld [vmem:[%s16286_s11 + $0x30] sm:$0xff] }
 0xac4   : > { %v9149_v33 = vpop.f32.mrf.mxu0  ;;  %9680 = vmatpush.msra.mxu2 %v9660_v6 }
 0xac5   : > { %v9153_v12 = vadd.f32 %v9147_v1, %v9062_v50 }
 0xac8   : > { %v8970_v26 = vpop.f32.mrf.mxu2 }
 0xac9   : > { %v9058_v5 = vpop.f32.mrf.mxu3  ;;  %v9233_v21 = vpop.f32.mrf.mxu1 }
 0xaca   : > { %v9242_v62 = vadd.f32 %v9233_v21, %v9151_v11  ;;  %v9658_v21 = vld [vmem:[%s16286_s11 + $0x20] sm:$0xff]  ;;  %v13230_v11 = vmov 16.0  }
 0xacb   : > { %13160 = vrcp.f32 %v13230_v11 }
 0xacc   : > { %v9506_v20 = vpop.f32.mrf.mxu0 }
 0xad0   : > { %v9324_v38 = vpop.f32.mrf.mxu2 }
 0xad1   : > { %v9415_v55 = vpop.f32.mrf.mxu3  ;;  %v9235_v59 = vpop.f32.mrf.mxu1  ;;  %v9333_v60 = vadd.f32 %v9324_v38, %v9242_v62 }
 0xad2   : > { %v9243_v47 = vadd.f32 %v9235_v59, %v9152_v54  ;;  %v9657_v59 = vld [vmem:[%s16286_s11 + $0x18] sm:$0xff] }
 0xad3   : > { %v9424_v49 = vadd.f32 %v9415_v55, %v9333_v60  ;;  %v9633_v60 = vld [vmem:[#allocation7 + $0x20] sm:$0xf] }
 0xad4   : > { %v9508_v17 = vpop.f32.mrf.mxu0  ;;  %v9638_v54 = vsel %vm9637_vm3, %v9633_v60, 0.0 }
 0xad5   : > { %v9515_v42 = vadd.f32 %v9506_v20, %v9424_v49 }
 0xad8   : > { %v9326_v57 = vpop.f32.mrf.mxu2 }
 0xad9   : > { %v9417_v3 = vpop.f32.mrf.mxu3  ;;  %v9238_v58 = vpop.f32.mrf.mxu1  ;;  %v9334_v16 = vadd.f32 %v9326_v57, %v9243_v47  ;;  %v8795_v57 = vld [vmem:[#allocation7 + $0x17] sm:$0x3f] }
 0xada   : > { %v9244_v32 = vadd.f32 %v9238_v58, %v9153_v12  ;;  %v9654_v58 = vld [vmem:[%s16286_s11] sm:$0xff] }
 0xadb   : > { %v9425_v31 = vadd.f32 %v9417_v3, %v9334_v16  ;;  %v9655_v3 = vld [vmem:[%s16286_s11 + $0x8] sm:$0xff] }
 0xadc   : > { %v9511_v15 = vpop.f32.mrf.mxu0 }
 0xadd   : > { %v9516_v18 = vadd.f32 %v9508_v17, %v9425_v31 }
 0xae0   : > { %v9329_v19 = vpop.f32.mrf.mxu2 }
 0xae1   : > { %v9420_v39 = vpop.f32.mrf.mxu3  ;;  %v9240_v63 = vpop.f32.mrf.mxu1  ;;  %v9335_v2 = vadd.f32 %v9329_v19, %v9244_v32 }
 0xae2   : > { %v13161_v19 = vpop.eup %13160 }
 0xae3   : > { %v9426_v1 = vadd.f32 %v9420_v39, %v9335_v2  ;;  %vm9651_vm4 = vweird.f32 %v13161_v19 }
 0xae4   : > { %v9513_v56 = vpop.f32.mrf.mxu0 }
 0xae5   : > { %v9517_v26 = vadd.f32 %v9511_v15, %v9426_v1  ;;  %v9647_v56 = vmul.f32 16.0, %v13161_v19 }
 0xae7   : > { %v9648_v13 = vsub.f32 1.0, %v9647_v56 }
 0xae8   : > { %v9331_v14 = vpop.f32.mrf.mxu2 }
 0xae9   : > { %v9422_v23 = vpop.f32.mrf.mxu3  ;;  %v9597_v48 = vpop.f32.mrf.mxu1  ;;  %v9649_v27 = vmul.f32 %v13161_v19, %v9648_v13 }
 0xaea   : > { %v9606_v45 = vadd.f32 %v9597_v48, %v9515_v42 }
 0xaeb   : > { %v9650_v16 = vadd.f32 %v13161_v19, %v9649_v27 }
 0xaec   : > { %v9614_v30 = vadd.f32 %v13159_v41, %v9606_v45  ;;  %v9670_v45 = vld [vmem:[%s16309_s26] sm:$0x1] }
 0xaee   : > { %v9617_v10 = vadd.f32 %v9614_v30, %v8793_v22 }
 0xaf0   : > { %v9620_v25 = vmax.f32 %v9617_v10, 0.0 }
 0xaf1   : > { %v9599_v4 = vpop.f32.mrf.mxu1 }
 0xaf2   : > { %v9623_v7 = vmul.f32 %v9620_v25, %v13936_v51  ;;  %v9607_v36 = vadd.f32 %v9599_v4, %v9516_v18  ;;  %v9659_v51 = vld [vmem:[%s16286_s11 + $0x28] sm:$0xff] }
 0xaf3   : > { %9681 = vmatpush.msra.mxu2 %v9659_v51 }
 0xaf4   : > { %9626 = vst [vmem:[#allocation7 + $0x7] sm:$0xff] %v9623_v7  ;;  %v9615_v61 = vadd.f32 %v13159_v41, %v9607_v36 }
 0xaf5   : > { %9682 = vmatpush.msra.mxu2 %v9658_v21 }
 0xaf6   : > { %v9618_v33 = vadd.f32 %v9615_v61, %v8794_v52 }
 0xaf7   : > { %9683 = vmatpush.msra.mxu2 %v9657_v59 }
 0xaf8   : > { %v9621_v5 = vmax.f32 %v9618_v33, 0.0 }
 0xaf9   : > { %v9602_v20 = vpop.f32.mrf.mxu1  ;;  %9684 = vmatpush.msra.mxu2 %v9656_v0 }
 0xafa   : > { %v9624_v38 = vmul.f32 %v9621_v5, %v13950_v9  ;;  %v9608_v55 = vadd.f32 %v9602_v20, %v9517_v26 }
 0xafb   : > { %9685 = vmatpush.msra.mxu2 %v9655_v3  ;;  %v9629_v24 = vld [vmem:[#allocation7] sm:$0xff] }
 0xafc   : > { %9627 = vst [vmem:[#allocation7 + $0xf] sm:$0xff] %v9624_v38  ;;  %v9616_v17 = vadd.f32 %v13159_v41, %v9608_v55  ;;  %v9652_v41 = vsel %vm9651_vm4, %v13161_v19, %v9650_v16 }
 0xafd   : > { %9686 = vmatpush.msra.mxu2 %v9654_v58 }
 0xafe   : > { %v9619_v35 = vadd.f32 %v9616_v17, %v8795_v57 }
 0xb00   : > { %v9622_v9 = vmax.f32 %v9619_v35, 0.0 }
 0xb01   : > { %v9604_v15 = vpop.f32.mrf.mxu1 }
 0xb02   : > { %v9625_v37 = vmul.f32 %v9622_v9, %v15848_v8 }
 0xb03   : > { %v9630_v62 = vld [vmem:[#allocation7 + $0x8] sm:$0xff] }
 0xb04   : > { %9628 = vst [vmem:[#allocation7 + $0x17] sm:$0x3f] %v9625_v37  ;;  %v9634_v39 = vadd.f32 %v9630_v62, %v9629_v24 }
 0xb0b   : > { %v9631_v63 = vld [vmem:[#allocation7 + $0x10] sm:$0xff]  ;;  %v9632_v49 = vld [vmem:[#allocation7 + $0x18] sm:$0xff] }
 0xb0c   : > { %v9635_v40 = vadd.f32 %v9634_v39, %v9631_v63 }
 0xb0e   : > { %v9636_v28 = vadd.f32 %v9635_v40, %v9632_v49 }
 0xb10   : > { %v9639_v8 = vadd.f32 %v9638_v54, %v9636_v28 }
 0xb12   : > { %v9640_v47 = vrot.slane %v9639_v8, 4 }
 0xb14   : > { %v9641_v14 = vadd.f32 %v9640_v47, %v9639_v8 }
 0xb16   : > { %v9642_v50 = vrot.slane %v9641_v14, 2 }
 0xb18   : > { %v9643_v23 = vadd.f32 %v9642_v50, %v9641_v14 }
 0xb1a   : > { %v9644_v42 = vrot.slane %v9643_v23, 1 }
 0xb1c   : > { %v9645_v46 = vadd.f32 %v9644_v42, %v9643_v23 }
 0xb1e   : > { %v9653_v48 = vmul.f32 %v9652_v41, %v9645_v46 }
 0xb20   : > { %9687 = vmatmul.f32.vlgmr.msra.gmra.mxu2 %v9653_v48 }
 0xba3   : > { %v9688_v53 = vpop.f32.mrf.mxu2 }
 0xba4   : > { %v9689_v31 = vadd.f32 %v9688_v53, %v9670_v45 }
 0xba6   : > { %9691 = vst [vmem:[%s513_s30] sm:$0x1] %v9689_v31 }
 0xba7   : > { %13191 = shalt.err (!%p13188_p3)
}
 0xba8   : > { %13102 = dma.vmem_to_hbm [thread:$0]  (%p13354_p5), %s9704_s28, 16, %s9706_s29, %s9693_s23  }
 0xba9 PF: > { %s16310_s17 = sld [smem:[#allocation15_spill]] }
 0xbaa   : > { %s16311_s12 = sld [smem:[#allocation13_spill]] }
 0xbaf   : > { %p13108_p4 = scmp.ge.s32.totalorder %s16310_s17, 2 }
 0xbb0   : > { %s9717_s30 = sand.u32 1, %s16311_s12  }
 0xbb1   : > { %p13105_p7 = pnand %p13108_p4, %p13358_p6  ;;  %s9718_s25 = scalar_lea.sflag [#allocation11], %s9717_s30 }
 0xbb3   : > { %p13106_p8 = pneg %p13105_p7 }
 0xbb5   : > { %13209 = dma.done.wait (%p13106_p8), %s9718_s25, 16  }
 0xbb6   : > { %13211 = vsyncadd (%p13106_p8), %s9718_s25, 4294967280  ;;  %s16313_s24 = sld [smem:[#allocation16_spill]]  ;;  %s16316_s21 = smov %s13218_s22 }
 0xbb7   : > { %s16314_s27 = sld [smem:[#allocation14_spill]] }
 0xbb8   : > { %s16315_s23 = sld [smem:[#allocation17_spill]] }
 0xbbc   : > { %p26_p9 = scmp.ge.s32.totalorder %s16313_s24, 4  }
 0xbbd   : > { %s16317_s22 = smov %s16314_s27 }
 0xbbe   :  { %28 = sbr.rel (!%p26_p9) target bundleno = 6 (0x6), region = 216 }
 0xbc3   :  { %9723 = vsyncpa [#allocation11], 1 }
 0xbc4   :  { %9725 = vsyncpa [#allocation11 + $0x1], 1 }

</bundles_post_ra>
